<compile_context>
chip_gen: v7x
topology: tpu7x:2x2x1
jax: 0.10.0
libtpu: 0.0.40
codegen_flags: <defaults>
</compile_context>

<pallas_src>
import functools
import math

import jax
import jax.numpy as jnp
from jax.experimental import pallas as pl
from jax.experimental.pallas import tpu as pltpu  # noqa: F401  (not needed: no scratch / compiler params)

CFG = dict(
    img=16, patch=4, in_ch=3,
    hidden=32, heads=4, mlp=64, layers=12,
    out_indices=(5, 7, 11),          # ViT branch: [3,5,7,11][-3:]
    nclasses=5, nqueries=8, dec_layers=3,
)

LN_EPS = 1e-12                       # HF ViT layer_norm_eps
BF16 = jnp.bfloat16
F32 = jnp.float32


# --------------------------------------------------------------------------
# in-kernel helpers (operate on VMEM / register-resident values)
# --------------------------------------------------------------------------

def _ln(x, g, b):
    """LayerNorm in f32. g, b: [1, H]."""
    mu = jnp.mean(x, axis=-1, keepdims=True)
    var = jnp.mean((x - mu) ** 2, axis=-1, keepdims=True)
    return (x - mu) * jax.lax.rsqrt(var + LN_EPS) * g + b


def _dot_bias(a, w_bf16, bias_f32):
    """bf16 MXU matmul with f32 accumulation + f32 bias."""
    return jnp.dot(a.astype(BF16), w_bf16, preferred_element_type=F32) + bias_f32


def _sdp_attention(qh, kh, vh):
    """Single-head attention; q/k/v already bf16 (scale folded into q weights)."""
    s = jax.lax.dot_general(qh, kh, (((1,), (1,)), ((), ())),
                            preferred_element_type=F32)
    s = s - jnp.max(s, axis=-1, keepdims=True)
    p = jnp.exp(s)
    p = p * pl.reciprocal(jnp.sum(p, axis=-1, keepdims=True), approx=True)
    return jnp.dot(p.astype(BF16), vh, preferred_element_type=F32)


def _multihead_attention(qp, kv, *, B, nh, H, Sq, Skv):
    """Per-batch / per-head attention on register values.

    qp: [B*Sq, H]  bf16 (q projection)
    kv: [B*Skv, 2H] bf16 (fused k|v projection)
    returns: [B*Sq, H] f32
    """
    dh = H // nh
    rows = []
    for b in range(B):
        heads = []
        for hi in range(nh):
            qh = qp[b * Sq:(b + 1) * Sq, hi * dh:(hi + 1) * dh]
            kh = kv[b * Skv:(b + 1) * Skv, hi * dh:(hi + 1) * dh]
            vh = kv[b * Skv:(b + 1) * Skv, H + hi * dh:H + (hi + 1) * dh]
            heads.append(_sdp_attention(qh, kh, vh))
        rows.append(jnp.concatenate(heads, axis=-1))
    return jnp.concatenate(rows, axis=0)


# --------------------------------------------------------------------------
# Fully fused kernel: patch-embed -> 11 ViT layers -> neck(drop CLS)
#                     -> 3 cross-attn decoder layers -> heads -> CE+BCE loss
# --------------------------------------------------------------------------

def _dgss_kernel(patches_ref, patch_w_ref, patch_b_ref, cls_ref, pos_ref,
                 e_ln1g, e_ln1b, e_wqkv, e_bqkv, e_wo, e_bo,
                 e_ln2g, e_ln2b, e_w1, e_b1, e_w2, e_b2,
                 d_ln1g, d_ln1b, d_wq, d_bq, d_wkv, d_bkv, d_wo, d_bo,
                 d_ln2g, d_ln2b, d_w1, d_b1, d_w2, d_b2,
                 qemb_ref, wheads_ref, bheads_ref, onehot_ref, mtgt_ref,
                 loss_ref,
                 *, B, S, Np, H, nh, nq, nc, HW, n_enc, n_dec):
    ncp1 = nc + 1

    # ---- patch embedding (one matmul) + cls token + positional embedding ----
    emb = _dot_bias(patches_ref[...], patch_w_ref[...], patch_b_ref[...])   # [B*Np, H]
    pos = pos_ref[...]                                                       # [S, H]
    cls_tok = cls_ref[...] + pos[0:1]                                        # [1, H]
    pieces = []
    for b in range(B):
        pieces.append(cls_tok)
        pieces.append(emb[b * Np:(b + 1) * Np] + pos[1:])
    x0 = jnp.concatenate(pieces, axis=0)                                     # [B*S, H] f32

    # ---- ViT encoder: n_enc pre-LN transformer layers -----------------------
    # (HF convention: hidden_states[out_indices[-1]] is the output of layer
    #  out_indices[-1]-1, so only n_enc = out_indices[-1] layers need to run.)
    def enc_layer(l, x):
        h = _ln(x, e_ln1g[l], e_ln1b[l])
        qkv = _dot_bias(h, e_wqkv[l], e_bqkv[l]).astype(BF16)                # [B*S, 3H], one cast
        attn = _multihead_attention(qkv[:, :H], qkv[:, H:],
                                    B=B, nh=nh, H=H, Sq=S, Skv=S)
        x = x + _dot_bias(attn, e_wo[l], e_bo[l])
        h2 = _ln(x, e_ln2g[l], e_ln2b[l])
        m = _dot_bias(h2, e_w1[l], e_b1[l])
        m = jax.nn.gelu(m, approximate=True)
        return x + _dot_bias(m, e_w2[l], e_b2[l])

    x = jax.lax.fori_loop(0, n_enc, enc_layer, x0)                           # [B*S, H]

    # ---- ViTNeck (no_neck=True): drop the CLS token --------------------------
    feat = jnp.concatenate([x[b * S + 1:(b + 1) * S] for b in range(B)], axis=0)  # [B*HW, H]
    feat_bf = feat.astype(BF16)

    # ---- mask decoder: n_dec cross-attn layers (queries attend to features) --
    q = jnp.concatenate([qemb_ref[...]] * B, axis=0)                         # [B*nq, H]
    for li in range(n_dec):
        h = _ln(q, d_ln1g[li], d_ln1b[li])
        qp = _dot_bias(h, d_wq[li], d_bq[li]).astype(BF16)                   # [B*nq, H]
        kv = _dot_bias(feat, d_wkv[li], d_bkv[li]).astype(BF16)              # [B*HW, 2H]
        attn = _multihead_attention(qp, kv, B=B, nh=nh, H=H, Sq=nq, Skv=HW)
        q = q + _dot_bias(attn, d_wo[li], d_bo[li])
        h2 = _ln(q, d_ln2g[li], d_ln2b[li])
        m = _dot_bias(h2, d_w1[li], d_b1[li])
        m = jax.nn.gelu(m, approximate=True)
        q = q + _dot_bias(m, d_w2[li], d_b2[li])

    # ---- fused class + mask heads --------------------------------------------
    heads = _dot_bias(q, wheads_ref[...], bheads_ref[...])                   # [B*nq, nc+1+H]

    # class cross-entropy (fixed query->label assignment; TODO(synk): Hungarian)
    onehot = onehot_ref[...]                                                 # [B*nq, nc+1]
    cls_logits = heads[:, :ncp1]
    z = cls_logits - jnp.max(cls_logits, axis=-1, keepdims=True)
    lse = jnp.log(jnp.sum(jnp.exp(z), axis=-1, keepdims=True))
    ce_rows = jnp.sum(onehot * (lse - z), axis=-1, keepdims=True)            # [B*nq, 1]
    ce_sum = jnp.sum(ce_rows, axis=0, keepdims=True)                         # [1, 1]

    # mask BCE-with-logits: first nc queries vs pooled binary masks
    mask_emb = heads[:, ncp1:].astype(BF16)                                  # [B*nq, H], one cast
    mtgt = mtgt_ref[...]                                                     # [B*nc, HW]
    bce_sum = jnp.zeros((1, 1), F32)
    for b in range(B):
        me_b = mask_emb[b * nq:b * nq + nc]                                  # [nc, H]
        ft_b = feat_bf[b * HW:(b + 1) * HW]                                  # [HW, H]
        mlog = jax.lax.dot_general(me_b, ft_b, (((1,), (1,)), ((), ())),
                                   preferred_element_type=F32)               # [nc, HW]
        t_b = mtgt[b * nc:(b + 1) * nc]
        lb = jnp.maximum(mlog, 0.0) - mlog * t_b + jnp.log1p(jnp.exp(-jnp.abs(mlog)))
        bce_sum = bce_sum + jnp.sum(jnp.sum(lb, axis=-1, keepdims=True),
                                    axis=0, keepdims=True)

    # TODO(synk): (1,1) VMEM output is a single masked-lane store; SMEM scalar
    # output skipped for lowering safety (negligible cost).
    loss_ref[...] = ce_sum / (B * nq) + bce_sum / (B * nc * HW)


# --------------------------------------------------------------------------
# Parameters (deterministic random init, stacked per-layer, matmul weights bf16)
# --------------------------------------------------------------------------

def _init_params(key, cfg):
    H, MLP = cfg['hidden'], cfg['mlp']
    L, Ld = cfg['layers'], cfg['dec_layers']
    nh = cfg['heads']
    dh = H // nh
    scale = 1.0 / math.sqrt(dh)          # attention scale folded into q weights
    pdim = cfg['patch'] ** 2 * cfg['in_ch']
    Np = (cfg['img'] // cfg['patch']) ** 2
    S = Np + 1
    nc, nq = cfg['nclasses'], cfg['nqueries']

    keys = iter(jax.random.split(key, 64))
    nrm = lambda shape, std=0.02: std * jax.random.normal(next(keys), shape, F32)

    def enc_stack():
        wq = nrm((L, H, H)) * scale
        wk = nrm((L, H, H))
        wv = nrm((L, H, H))
        return dict(
            ln1_g=jnp.ones((L, 1, H), F32), ln1_b=jnp.zeros((L, 1, H), F32),
            wqkv=jnp.concatenate([wq, wk, wv], axis=-1).astype(BF16),
            bqkv=jnp.zeros((L, 1, 3 * H), F32),
            wo=nrm((L, H, H)).astype(BF16), bo=jnp.zeros((L, 1, H), F32),
            ln2_g=jnp.ones((L, 1, H), F32), ln2_b=jnp.zeros((L, 1, H), F32),
            w1=nrm((L, H, MLP)).astype(BF16), b1=jnp.zeros((L, 1, MLP), F32),
            w2=nrm((L, MLP, H)).astype(BF16), b2=jnp.zeros((L, 1, H), F32),
        )

    def dec_stack():
        wk = nrm((Ld, H, H))
        wv = nrm((Ld, H, H))
        return dict(
            ln1_g=jnp.ones((Ld, 1, H), F32), ln1_b=jnp.zeros((Ld, 1, H), F32),
            wq=(nrm((Ld, H, H)) * scale).astype(BF16),
            bq=jnp.zeros((Ld, 1, H), F32),
            wkv=jnp.concatenate([wk, wv], axis=-1).astype(BF16),
            bkv=jnp.zeros((Ld, 1, 2 * H), F32),
            wo=nrm((Ld, H, H)).astype(BF16), bo=jnp.zeros((Ld, 1, H), F32),
            ln2_g=jnp.ones((Ld, 1, H), F32), ln2_b=jnp.zeros((Ld, 1, H), F32),
            w1=nrm((Ld, H, MLP)).astype(BF16), b1=jnp.zeros((Ld, 1, MLP), F32),
            w2=nrm((Ld, MLP, H)).astype(BF16), b2=jnp.zeros((Ld, 1, H), F32),
        )

    wheads = jnp.concatenate([nrm((H, nc + 1)), nrm((H, H))], axis=-1)   # cls | mask
    return dict(
        patch_w=nrm((pdim, H)).astype(BF16), patch_b=jnp.zeros((1, H), F32),
        cls=nrm((1, H)), pos=nrm((S, H)),
        enc=enc_stack(), dec=dec_stack(),
        qemb=nrm((nq, H)),
        wheads=wheads.astype(BF16),
        bheads=jnp.zeros((1, nc + 1 + H), F32),
    )


# --------------------------------------------------------------------------
# Full forward (return_logits=False path): ONE pallas_call + thin XLA glue
# --------------------------------------------------------------------------

@jax.jit
def dgss_forward(params, pixel_values, bin_masks, classes):
    cfg = CFG
    B = pixel_values.shape[0]
    P = cfg['patch']
    gh = cfg['img'] // P
    Np = gh * gh
    S = Np + 1
    HW = Np
    H, nh = cfg['hidden'], cfg['heads']
    nc, nq = cfg['nclasses'], cfg['nqueries']
    n_enc = cfg['out_indices'][-1]       # only layers feeding hidden_states[11]
    n_dec = cfg['dec_layers']

    # patchify NCHW -> [B*Np, P*P*C]  (one-time input layout glue)
    xp = pixel_values.reshape(B, cfg['in_ch'], gh, P, gh, P)
    patches = xp.transpose(0, 2, 4, 1, 3, 5).reshape(B * Np, cfg['in_ch'] * P * P)

    # targets (tiny glue): fixed query->label assignment + pooled binary masks
    no_obj = jnp.full((B, nq - nc), nc, dtype=jnp.int32)
    tgt_cls = jnp.concatenate([classes.astype(jnp.int32), no_obj], axis=1)
    onehot = jax.nn.one_hot(tgt_cls, nc + 1, dtype=F32).reshape(B * nq, nc + 1)
    tgt_masks = bin_masks.reshape(B, nc, gh, P, gh, P).mean(axis=(3, 5))
    tgt_masks = tgt_masks.reshape(B * nc, gh * gh)

    # only the layers that are actually consumed (drop the unused 12th layer)
    enc = {k: v[:n_enc] for k, v in params['enc'].items()}
    dec = params['dec']

    kernel = functools.partial(
        _dgss_kernel, B=B, S=S, Np=Np, H=H, nh=nh, nq=nq, nc=nc, HW=HW,
        n_enc=n_enc, n_dec=n_dec)

    # Grid-less single-invocation call: every operand is a whole-array VMEM
    # block (<1 MB total live footprint -> fine even on v7x's 64 MiB VMEM).
    loss = pl.pallas_call(
        kernel,
        out_shape=jax.ShapeDtypeStruct((1, 1), F32),
    )(patches, params['patch_w'], params['patch_b'], params['cls'], params['pos'],
      enc['ln1_g'], enc['ln1_b'], enc['wqkv'], enc['bqkv'], enc['wo'], enc['bo'],
      enc['ln2_g'], enc['ln2_b'], enc['w1'], enc['b1'], enc['w2'], enc['b2'],
      dec['ln1_g'], dec['ln1_b'], dec['wq'], dec['bq'], dec['wkv'], dec['bkv'],
      dec['wo'], dec['bo'], dec['ln2_g'], dec['ln2_b'],
      dec['w1'], dec['b1'], dec['w2'], dec['b2'],
      params['qemb'], params['wheads'], params['bheads'], onehot, tgt_masks)
    return loss[0, 0]


# --------------------------------------------------------------------------
# main
# --------------------------------------------------------------------------
if __name__ == "__main__":
    key = jax.random.PRNGKey(0)
    k_param, k_px, k_mask, k_cls = jax.random.split(key, 4)

    params = _init_params(k_param, CFG)

    B = 2
    pixel_values = jax.random.normal(
        k_px, (B, CFG['in_ch'], CFG['img'], CFG['img']), dtype=jnp.float32)
    bin_masks = (jax.random.uniform(
        k_mask, (B, CFG['nclasses'], CFG['img'], CFG['img'])) > 0.5).astype(jnp.float32)
    classes = jax.random.randint(
        k_cls, (B, CFG['nclasses']), 0, CFG['nclasses'], dtype=jnp.int32)

    loss = dgss_forward(params, pixel_values, bin_masks, classes)
    loss = jax.block_until_ready(loss)
    assert loss.shape == () and bool(jnp.isfinite(loss))
    print("KERNEL_OK")
</pallas_src>

<mosaic_0001>
module attributes {stable_mosaic.version = 11 : i64} {
  func.func @_dgss_kernel(%arg0: memref<32x48xf32, #tpu.memory_space<vmem>>, %arg1: memref<48x32xbf16, #tpu.memory_space<vmem>>, %arg2: memref<1x32xf32, #tpu.memory_space<vmem>>, %arg3: memref<1x32xf32, #tpu.memory_space<vmem>>, %arg4: memref<17x32xf32, #tpu.memory_space<vmem>>, %arg5: memref<11x1x32xf32, #tpu.memory_space<vmem>>, %arg6: memref<11x1x32xf32, #tpu.memory_space<vmem>>, %arg7: memref<11x32x96xbf16, #tpu.memory_space<vmem>>, %arg8: memref<11x1x96xf32, #tpu.memory_space<vmem>>, %arg9: memref<11x32x32xbf16, #tpu.memory_space<vmem>>, %arg10: memref<11x1x32xf32, #tpu.memory_space<vmem>>, %arg11: memref<11x1x32xf32, #tpu.memory_space<vmem>>, %arg12: memref<11x1x32xf32, #tpu.memory_space<vmem>>, %arg13: memref<11x32x64xbf16, #tpu.memory_space<vmem>>, %arg14: memref<11x1x64xf32, #tpu.memory_space<vmem>>, %arg15: memref<11x64x32xbf16, #tpu.memory_space<vmem>>, %arg16: memref<11x1x32xf32, #tpu.memory_space<vmem>>, %arg17: memref<3x1x32xf32, #tpu.memory_space<vmem>>, %arg18: memref<3x1x32xf32, #tpu.memory_space<vmem>>, %arg19: memref<3x32x32xbf16, #tpu.memory_space<vmem>>, %arg20: memref<3x1x32xf32, #tpu.memory_space<vmem>>, %arg21: memref<3x32x64xbf16, #tpu.memory_space<vmem>>, %arg22: memref<3x1x64xf32, #tpu.memory_space<vmem>>, %arg23: memref<3x32x32xbf16, #tpu.memory_space<vmem>>, %arg24: memref<3x1x32xf32, #tpu.memory_space<vmem>>, %arg25: memref<3x1x32xf32, #tpu.memory_space<vmem>>, %arg26: memref<3x1x32xf32, #tpu.memory_space<vmem>>, %arg27: memref<3x32x64xbf16, #tpu.memory_space<vmem>>, %arg28: memref<3x1x64xf32, #tpu.memory_space<vmem>>, %arg29: memref<3x64x32xbf16, #tpu.memory_space<vmem>>, %arg30: memref<3x1x32xf32, #tpu.memory_space<vmem>>, %arg31: memref<8x32xf32, #tpu.memory_space<vmem>>, %arg32: memref<32x38xbf16, #tpu.memory_space<vmem>>, %arg33: memref<1x38xf32, #tpu.memory_space<vmem>>, %arg34: memref<16x6xf32, #tpu.memory_space<vmem>>, %arg35: memref<10x16xf32, #tpu.memory_space<vmem>>, %arg36: memref<1x1xf32, #tpu.memory_space<vmem>>) attributes {dimension_semantics = [], scalar_prefetch = 0 : i64, scratch_operands = 0 : i64, tpu.core_type = #tpu.core_type<tc>} {
    %c0 = arith.constant 0 : index
    %c0_0 = arith.constant 0 : index
    %0 = vector.load %arg0[%c0, %c0_0] : memref<32x48xf32, #tpu.memory_space<vmem>>, vector<32x48xf32>
    %c0_1 = arith.constant 0 : index
    %c0_2 = arith.constant 0 : index
    %1 = vector.load %arg1[%c0_1, %c0_2] : memref<48x32xbf16, #tpu.memory_space<vmem>>, vector<48x32xbf16>
    %c0_3 = arith.constant 0 : index
    %c0_4 = arith.constant 0 : index
    %2 = vector.load %arg2[%c0_3, %c0_4] : memref<1x32xf32, #tpu.memory_space<vmem>>, vector<1x32xf32>
    %3 = arith.truncf %0 : vector<32x48xf32> to vector<32x48xbf16>
    %cst = arith.constant dense<0.000000e+00> : vector<32x32xf32>
    %4 = tpu.matmul %3, %1, %cst {dimension_numbers = #tpu.dot_dimension_numbers<[1], [0], [0], [1], [0, 0, 1, 1], [], []>} : vector<32x48xbf16>, vector<48x32xbf16>, vector<32x32xf32> -> vector<32x32xf32>
    %5 = vector.broadcast %2 : vector<1x32xf32> to vector<32x32xf32>
    %6 = arith.addf %4, %5 : vector<32x32xf32>
    %c0_5 = arith.constant 0 : index
    %c0_6 = arith.constant 0 : index
    %7 = vector.load %arg4[%c0_5, %c0_6] : memref<17x32xf32, #tpu.memory_space<vmem>>, vector<17x32xf32>
    %c0_7 = arith.constant 0 : index
    %c0_8 = arith.constant 0 : index
    %8 = vector.load %arg3[%c0_7, %c0_8] : memref<1x32xf32, #tpu.memory_space<vmem>>, vector<1x32xf32>
    %9 = vector.extract_strided_slice %7 {offsets = [0, 0], sizes = [1, 32], strides = [1, 1]} : vector<17x32xf32> to vector<1x32xf32>
    %10 = arith.addf %8, %9 : vector<1x32xf32>
    %11 = vector.extract_strided_slice %6 {offsets = [0, 0], sizes = [16, 32], strides = [1, 1]} : vector<32x32xf32> to vector<16x32xf32>
    %12 = vector.extract_strided_slice %7 {offsets = [1, 0], sizes = [16, 32], strides = [1, 1]} : vector<17x32xf32> to vector<16x32xf32>
    %13 = arith.addf %11, %12 : vector<16x32xf32>
    %14 = vector.extract_strided_slice %6 {offsets = [16, 0], sizes = [16, 32], strides = [1, 1]} : vector<32x32xf32> to vector<16x32xf32>
    %15 = vector.extract_strided_slice %7 {offsets = [1, 0], sizes = [16, 32], strides = [1, 1]} : vector<17x32xf32> to vector<16x32xf32>
    %16 = arith.addf %14, %15 : vector<16x32xf32>
    %17 = tpu.concatenate %10, %13, %10, %16 in 0 : vector<1x32xf32>, vector<16x32xf32>, vector<1x32xf32>, vector<16x32xf32> -> vector<34x32xf32>
    %c0_i32 = arith.constant 0 : i32
    %c11_i32 = arith.constant 11 : i32
    %18 = arith.addi %c0_i32, %c11_i32 : i32
    %c1_i32 = arith.constant 1 : i32
    %19 = scf.for %arg37 = %c0_i32 to %18 step %c1_i32 iter_args(%arg38 = %17) -> (vector<34x32xf32>)  : i32 {
      %817 = arith.index_cast %arg37 : i32 to index
      %c0_317 = arith.constant 0 : index
      %c0_318 = arith.constant 0 : index
      %818 = vector.load %arg5[%817, %c0_317, %c0_318] : memref<11x1x32xf32, #tpu.memory_space<vmem>>, vector<1x1x32xf32>
      %819 = vector.shape_cast %818 : vector<1x1x32xf32> to vector<1x32xf32>
      %820 = arith.index_cast %arg37 : i32 to index
      %c0_319 = arith.constant 0 : index
      %c0_320 = arith.constant 0 : index
      %821 = vector.load %arg6[%820, %c0_319, %c0_320] : memref<11x1x32xf32, #tpu.memory_space<vmem>>, vector<1x1x32xf32>
      %822 = vector.shape_cast %821 : vector<1x1x32xf32> to vector<1x32xf32>
      %cst_321 = arith.constant dense<0.000000e+00> : vector<34xf32>
      %823 = vector.multi_reduction <add>, %arg38, %cst_321 [1] : vector<34x32xf32> to vector<34xf32>
      %824 = vector.shape_cast %823 : vector<34xf32> to vector<34x1xf32>
      %cst_322 = arith.constant 3.200000e+01 : f32
      %825 = vector.broadcast %cst_322 : f32 to vector<34x1xf32>
      %826 = arith.divf %824, %825 : vector<34x1xf32>
      %827 = vector.broadcast %826 : vector<34x1xf32> to vector<34x32xf32>
      %828 = arith.subf %arg38, %827 : vector<34x32xf32>
      %829 = arith.mulf %828, %828 : vector<34x32xf32>
      %cst_323 = arith.constant dense<0.000000e+00> : vector<34xf32>
      %830 = vector.multi_reduction <add>, %829, %cst_323 [1] : vector<34x32xf32> to vector<34xf32>
      %831 = vector.shape_cast %830 : vector<34xf32> to vector<34x1xf32>
      %cst_324 = arith.constant 3.200000e+01 : f32
      %832 = vector.broadcast %cst_324 : f32 to vector<34x1xf32>
      %833 = arith.divf %831, %832 : vector<34x1xf32>
      %834 = vector.broadcast %826 : vector<34x1xf32> to vector<34x32xf32>
      %835 = arith.subf %arg38, %834 : vector<34x32xf32>
      %cst_325 = arith.constant 9.99999996E-13 : f32
      %836 = vector.broadcast %cst_325 : f32 to vector<34x1xf32>
      %837 = arith.addf %833, %836 : vector<34x1xf32>
      %838 = math.rsqrt %837 : vector<34x1xf32>
      %839 = vector.broadcast %838 : vector<34x1xf32> to vector<34x32xf32>
      %840 = arith.mulf %835, %839 : vector<34x32xf32>
      %841 = vector.broadcast %819 : vector<1x32xf32> to vector<34x32xf32>
      %842 = arith.mulf %840, %841 : vector<34x32xf32>
      %843 = vector.broadcast %822 : vector<1x32xf32> to vector<34x32xf32>
      %844 = arith.addf %842, %843 : vector<34x32xf32>
      %845 = arith.index_cast %arg37 : i32 to index
      %c0_326 = arith.constant 0 : index
      %c0_327 = arith.constant 0 : index
      %846 = vector.load %arg7[%845, %c0_326, %c0_327] : memref<11x32x96xbf16, #tpu.memory_space<vmem>>, vector<1x32x96xbf16>
      %847 = vector.shape_cast %846 : vector<1x32x96xbf16> to vector<32x96xbf16>
      %848 = arith.index_cast %arg37 : i32 to index
      %c0_328 = arith.constant 0 : index
      %c0_329 = arith.constant 0 : index
      %849 = vector.load %arg8[%848, %c0_328, %c0_329] : memref<11x1x96xf32, #tpu.memory_space<vmem>>, vector<1x1x96xf32>
      %850 = vector.shape_cast %849 : vector<1x1x96xf32> to vector<1x96xf32>
      %851 = arith.truncf %844 : vector<34x32xf32> to vector<34x32xbf16>
      %cst_330 = arith.constant dense<0.000000e+00> : vector<34x96xf32>
      %852 = tpu.matmul %851, %847, %cst_330 {dimension_numbers = #tpu.dot_dimension_numbers<[1], [0], [0], [1], [0, 0, 1, 1], [], []>} : vector<34x32xbf16>, vector<32x96xbf16>, vector<34x96xf32> -> vector<34x96xf32>
      %853 = vector.broadcast %850 : vector<1x96xf32> to vector<34x96xf32>
      %854 = arith.addf %852, %853 : vector<34x96xf32>
      %855 = arith.truncf %854 : vector<34x96xf32> to vector<34x96xbf16>
      %856 = vector.extract_strided_slice %855 {offsets = [0, 0], sizes = [34, 32], strides = [1, 1]} : vector<34x96xbf16> to vector<34x32xbf16>
      %857 = vector.extract_strided_slice %855 {offsets = [0, 32], sizes = [34, 64], strides = [1, 1]} : vector<34x96xbf16> to vector<34x64xbf16>
      %858 = vector.extract_strided_slice %856 {offsets = [0, 0], sizes = [17, 8], strides = [1, 1]} : vector<34x32xbf16> to vector<17x8xbf16>
      %859 = vector.extract_strided_slice %857 {offsets = [0, 0], sizes = [17, 8], strides = [1, 1]} : vector<34x64xbf16> to vector<17x8xbf16>
      %860 = vector.extract_strided_slice %857 {offsets = [0, 32], sizes = [17, 8], strides = [1, 1]} : vector<34x64xbf16> to vector<17x8xbf16>
      %cst_331 = arith.constant dense<0.000000e+00> : vector<17x17xf32>
      %861 = tpu.matmul %858, %859, %cst_331 {dimension_numbers = #tpu.dot_dimension_numbers<[1], [1], [0], [0], [0, 0, 1, 0], [], []>} : vector<17x8xbf16>, vector<17x8xbf16>, vector<17x17xf32> -> vector<17x17xf32>
      %cst_332 = arith.constant dense<0xFF800000> : vector<17xf32>
      %862 = vector.multi_reduction <maximumf>, %861, %cst_332 [1] : vector<17x17xf32> to vector<17xf32>
      %863 = vector.shape_cast %862 : vector<17xf32> to vector<17x1xf32>
      %864 = vector.broadcast %863 : vector<17x1xf32> to vector<17x17xf32>
      %865 = arith.subf %861, %864 : vector<17x17xf32>
      %866 = math.exp %865 : vector<17x17xf32>
      %cst_333 = arith.constant dense<0.000000e+00> : vector<17xf32>
      %867 = vector.multi_reduction <add>, %866, %cst_333 [1] : vector<17x17xf32> to vector<17xf32>
      %868 = vector.shape_cast %867 : vector<17xf32> to vector<17x1xf32>
      %869 = tpu.reciprocal %868 {approx = true} : vector<17x1xf32> -> vector<17x1xf32>
      %870 = vector.broadcast %869 : vector<17x1xf32> to vector<17x17xf32>
      %871 = arith.mulf %866, %870 : vector<17x17xf32>
      %872 = arith.truncf %871 : vector<17x17xf32> to vector<17x17xbf16>
      %cst_334 = arith.constant dense<0.000000e+00> : vector<17x8xf32>
      %873 = tpu.matmul %872, %860, %cst_334 {dimension_numbers = #tpu.dot_dimension_numbers<[1], [0], [0], [1], [0, 0, 1, 1], [], []>} : vector<17x17xbf16>, vector<17x8xbf16>, vector<17x8xf32> -> vector<17x8xf32>
      %874 = vector.extract_strided_slice %856 {offsets = [0, 8], sizes = [17, 8], strides = [1, 1]} : vector<34x32xbf16> to vector<17x8xbf16>
      %875 = vector.extract_strided_slice %857 {offsets = [0, 8], sizes = [17, 8], strides = [1, 1]} : vector<34x64xbf16> to vector<17x8xbf16>
      %876 = vector.extract_strided_slice %857 {offsets = [0, 40], sizes = [17, 8], strides = [1, 1]} : vector<34x64xbf16> to vector<17x8xbf16>
      %cst_335 = arith.constant dense<0.000000e+00> : vector<17x17xf32>
      %877 = tpu.matmul %874, %875, %cst_335 {dimension_numbers = #tpu.dot_dimension_numbers<[1], [1], [0], [0], [0, 0, 1, 0], [], []>} : vector<17x8xbf16>, vector<17x8xbf16>, vector<17x17xf32> -> vector<17x17xf32>
      %cst_336 = arith.constant dense<0xFF800000> : vector<17xf32>
      %878 = vector.multi_reduction <maximumf>, %877, %cst_336 [1] : vector<17x17xf32> to vector<17xf32>
      %879 = vector.shape_cast %878 : vector<17xf32> to vector<17x1xf32>
      %880 = vector.broadcast %879 : vector<17x1xf32> to vector<17x17xf32>
      %881 = arith.subf %877, %880 : vector<17x17xf32>
      %882 = math.exp %881 : vector<17x17xf32>
      %cst_337 = arith.constant dense<0.000000e+00> : vector<17xf32>
      %883 = vector.multi_reduction <add>, %882, %cst_337 [1] : vector<17x17xf32> to vector<17xf32>
      %884 = vector.shape_cast %883 : vector<17xf32> to vector<17x1xf32>
      %885 = tpu.reciprocal %884 {approx = true} : vector<17x1xf32> -> vector<17x1xf32>
      %886 = vector.broadcast %885 : vector<17x1xf32> to vector<17x17xf32>
      %887 = arith.mulf %882, %886 : vector<17x17xf32>
      %888 = arith.truncf %887 : vector<17x17xf32> to vector<17x17xbf16>
      %cst_338 = arith.constant dense<0.000000e+00> : vector<17x8xf32>
      %889 = tpu.matmul %888, %876, %cst_338 {dimension_numbers = #tpu.dot_dimension_numbers<[1], [0], [0], [1], [0, 0, 1, 1], [], []>} : vector<17x17xbf16>, vector<17x8xbf16>, vector<17x8xf32> -> vector<17x8xf32>
      %890 = vector.extract_strided_slice %856 {offsets = [0, 16], sizes = [17, 8], strides = [1, 1]} : vector<34x32xbf16> to vector<17x8xbf16>
      %891 = vector.extract_strided_slice %857 {offsets = [0, 16], sizes = [17, 8], strides = [1, 1]} : vector<34x64xbf16> to vector<17x8xbf16>
      %892 = vector.extract_strided_slice %857 {offsets = [0, 48], sizes = [17, 8], strides = [1, 1]} : vector<34x64xbf16> to vector<17x8xbf16>
      %cst_339 = arith.constant dense<0.000000e+00> : vector<17x17xf32>
      %893 = tpu.matmul %890, %891, %cst_339 {dimension_numbers = #tpu.dot_dimension_numbers<[1], [1], [0], [0], [0, 0, 1, 0], [], []>} : vector<17x8xbf16>, vector<17x8xbf16>, vector<17x17xf32> -> vector<17x17xf32>
      %cst_340 = arith.constant dense<0xFF800000> : vector<17xf32>
      %894 = vector.multi_reduction <maximumf>, %893, %cst_340 [1] : vector<17x17xf32> to vector<17xf32>
      %895 = vector.shape_cast %894 : vector<17xf32> to vector<17x1xf32>
      %896 = vector.broadcast %895 : vector<17x1xf32> to vector<17x17xf32>
      %897 = arith.subf %893, %896 : vector<17x17xf32>
      %898 = math.exp %897 : vector<17x17xf32>
      %cst_341 = arith.constant dense<0.000000e+00> : vector<17xf32>
      %899 = vector.multi_reduction <add>, %898, %cst_341 [1] : vector<17x17xf32> to vector<17xf32>
      %900 = vector.shape_cast %899 : vector<17xf32> to vector<17x1xf32>
      %901 = tpu.reciprocal %900 {approx = true} : vector<17x1xf32> -> vector<17x1xf32>
      %902 = vector.broadcast %901 : vector<17x1xf32> to vector<17x17xf32>
      %903 = arith.mulf %898, %902 : vector<17x17xf32>
      %904 = arith.truncf %903 : vector<17x17xf32> to vector<17x17xbf16>
      %cst_342 = arith.constant dense<0.000000e+00> : vector<17x8xf32>
      %905 = tpu.matmul %904, %892, %cst_342 {dimension_numbers = #tpu.dot_dimension_numbers<[1], [0], [0], [1], [0, 0, 1, 1], [], []>} : vector<17x17xbf16>, vector<17x8xbf16>, vector<17x8xf32> -> vector<17x8xf32>
      %906 = vector.extract_strided_slice %856 {offsets = [0, 24], sizes = [17, 8], strides = [1, 1]} : vector<34x32xbf16> to vector<17x8xbf16>
      %907 = vector.extract_strided_slice %857 {offsets = [0, 24], sizes = [17, 8], strides = [1, 1]} : vector<34x64xbf16> to vector<17x8xbf16>
      %908 = vector.extract_strided_slice %857 {offsets = [0, 56], sizes = [17, 8], strides = [1, 1]} : vector<34x64xbf16> to vector<17x8xbf16>
      %cst_343 = arith.constant dense<0.000000e+00> : vector<17x17xf32>
      %909 = tpu.matmul %906, %907, %cst_343 {dimension_numbers = #tpu.dot_dimension_numbers<[1], [1], [0], [0], [0, 0, 1, 0], [], []>} : vector<17x8xbf16>, vector<17x8xbf16>, vector<17x17xf32> -> vector<17x17xf32>
      %cst_344 = arith.constant dense<0xFF800000> : vector<17xf32>
      %910 = vector.multi_reduction <maximumf>, %909, %cst_344 [1] : vector<17x17xf32> to vector<17xf32>
      %911 = vector.shape_cast %910 : vector<17xf32> to vector<17x1xf32>
      %912 = vector.broadcast %911 : vector<17x1xf32> to vector<17x17xf32>
      %913 = arith.subf %909, %912 : vector<17x17xf32>
      %914 = math.exp %913 : vector<17x17xf32>
      %cst_345 = arith.constant dense<0.000000e+00> : vector<17xf32>
      %915 = vector.multi_reduction <add>, %914, %cst_345 [1] : vector<17x17xf32> to vector<17xf32>
      %916 = vector.shape_cast %915 : vector<17xf32> to vector<17x1xf32>
      %917 = tpu.reciprocal %916 {approx = true} : vector<17x1xf32> -> vector<17x1xf32>
      %918 = vector.broadcast %917 : vector<17x1xf32> to vector<17x17xf32>
      %919 = arith.mulf %914, %918 : vector<17x17xf32>
      %920 = arith.truncf %919 : vector<17x17xf32> to vector<17x17xbf16>
      %cst_346 = arith.constant dense<0.000000e+00> : vector<17x8xf32>
      %921 = tpu.matmul %920, %908, %cst_346 {dimension_numbers = #tpu.dot_dimension_numbers<[1], [0], [0], [1], [0, 0, 1, 1], [], []>} : vector<17x17xbf16>, vector<17x8xbf16>, vector<17x8xf32> -> vector<17x8xf32>
      %922 = tpu.concatenate %873, %889, %905, %921 in 1 : vector<17x8xf32>, vector<17x8xf32>, vector<17x8xf32>, vector<17x8xf32> -> vector<17x32xf32>
      %923 = vector.extract_strided_slice %856 {offsets = [17, 0], sizes = [17, 8], strides = [1, 1]} : vector<34x32xbf16> to vector<17x8xbf16>
      %924 = vector.extract_strided_slice %857 {offsets = [17, 0], sizes = [17, 8], strides = [1, 1]} : vector<34x64xbf16> to vector<17x8xbf16>
      %925 = vector.extract_strided_slice %857 {offsets = [17, 32], sizes = [17, 8], strides = [1, 1]} : vector<34x64xbf16> to vector<17x8xbf16>
      %cst_347 = arith.constant dense<0.000000e+00> : vector<17x17xf32>
      %926 = tpu.matmul %923, %924, %cst_347 {dimension_numbers = #tpu.dot_dimension_numbers<[1], [1], [0], [0], [0, 0, 1, 0], [], []>} : vector<17x8xbf16>, vector<17x8xbf16>, vector<17x17xf32> -> vector<17x17xf32>
      %cst_348 = arith.constant dense<0xFF800000> : vector<17xf32>
      %927 = vector.multi_reduction <maximumf>, %926, %cst_348 [1] : vector<17x17xf32> to vector<17xf32>
      %928 = vector.shape_cast %927 : vector<17xf32> to vector<17x1xf32>
      %929 = vector.broadcast %928 : vector<17x1xf32> to vector<17x17xf32>
      %930 = arith.subf %926, %929 : vector<17x17xf32>
      %931 = math.exp %930 : vector<17x17xf32>
      %cst_349 = arith.constant dense<0.000000e+00> : vector<17xf32>
      %932 = vector.multi_reduction <add>, %931, %cst_349 [1] : vector<17x17xf32> to vector<17xf32>
      %933 = vector.shape_cast %932 : vector<17xf32> to vector<17x1xf32>
      %934 = tpu.reciprocal %933 {approx = true} : vector<17x1xf32> -> vector<17x1xf32>
      %935 = vector.broadcast %934 : vector<17x1xf32> to vector<17x17xf32>
      %936 = arith.mulf %931, %935 : vector<17x17xf32>
      %937 = arith.truncf %936 : vector<17x17xf32> to vector<17x17xbf16>
      %cst_350 = arith.constant dense<0.000000e+00> : vector<17x8xf32>
      %938 = tpu.matmul %937, %925, %cst_350 {dimension_numbers = #tpu.dot_dimension_numbers<[1], [0], [0], [1], [0, 0, 1, 1], [], []>} : vector<17x17xbf16>, vector<17x8xbf16>, vector<17x8xf32> -> vector<17x8xf32>
      %939 = vector.extract_strided_slice %856 {offsets = [17, 8], sizes = [17, 8], strides = [1, 1]} : vector<34x32xbf16> to vector<17x8xbf16>
      %940 = vector.extract_strided_slice %857 {offsets = [17, 8], sizes = [17, 8], strides = [1, 1]} : vector<34x64xbf16> to vector<17x8xbf16>
      %941 = vector.extract_strided_slice %857 {offsets = [17, 40], sizes = [17, 8], strides = [1, 1]} : vector<34x64xbf16> to vector<17x8xbf16>
      %cst_351 = arith.constant dense<0.000000e+00> : vector<17x17xf32>
      %942 = tpu.matmul %939, %940, %cst_351 {dimension_numbers = #tpu.dot_dimension_numbers<[1], [1], [0], [0], [0, 0, 1, 0], [], []>} : vector<17x8xbf16>, vector<17x8xbf16>, vector<17x17xf32> -> vector<17x17xf32>
      %cst_352 = arith.constant dense<0xFF800000> : vector<17xf32>
      %943 = vector.multi_reduction <maximumf>, %942, %cst_352 [1] : vector<17x17xf32> to vector<17xf32>
      %944 = vector.shape_cast %943 : vector<17xf32> to vector<17x1xf32>
      %945 = vector.broadcast %944 : vector<17x1xf32> to vector<17x17xf32>
      %946 = arith.subf %942, %945 : vector<17x17xf32>
      %947 = math.exp %946 : vector<17x17xf32>
      %cst_353 = arith.constant dense<0.000000e+00> : vector<17xf32>
      %948 = vector.multi_reduction <add>, %947, %cst_353 [1] : vector<17x17xf32> to vector<17xf32>
      %949 = vector.shape_cast %948 : vector<17xf32> to vector<17x1xf32>
      %950 = tpu.reciprocal %949 {approx = true} : vector<17x1xf32> -> vector<17x1xf32>
      %951 = vector.broadcast %950 : vector<17x1xf32> to vector<17x17xf32>
      %952 = arith.mulf %947, %951 : vector<17x17xf32>
      %953 = arith.truncf %952 : vector<17x17xf32> to vector<17x17xbf16>
      %cst_354 = arith.constant dense<0.000000e+00> : vector<17x8xf32>
      %954 = tpu.matmul %953, %941, %cst_354 {dimension_numbers = #tpu.dot_dimension_numbers<[1], [0], [0], [1], [0, 0, 1, 1], [], []>} : vector<17x17xbf16>, vector<17x8xbf16>, vector<17x8xf32> -> vector<17x8xf32>
      %955 = vector.extract_strided_slice %856 {offsets = [17, 16], sizes = [17, 8], strides = [1, 1]} : vector<34x32xbf16> to vector<17x8xbf16>
      %956 = vector.extract_strided_slice %857 {offsets = [17, 16], sizes = [17, 8], strides = [1, 1]} : vector<34x64xbf16> to vector<17x8xbf16>
      %957 = vector.extract_strided_slice %857 {offsets = [17, 48], sizes = [17, 8], strides = [1, 1]} : vector<34x64xbf16> to vector<17x8xbf16>
      %cst_355 = arith.constant dense<0.000000e+00> : vector<17x17xf32>
      %958 = tpu.matmul %955, %956, %cst_355 {dimension_numbers = #tpu.dot_dimension_numbers<[1], [1], [0], [0], [0, 0, 1, 0], [], []>} : vector<17x8xbf16>, vector<17x8xbf16>, vector<17x17xf32> -> vector<17x17xf32>
      %cst_356 = arith.constant dense<0xFF800000> : vector<17xf32>
      %959 = vector.multi_reduction <maximumf>, %958, %cst_356 [1] : vector<17x17xf32> to vector<17xf32>
      %960 = vector.shape_cast %959 : vector<17xf32> to vector<17x1xf32>
      %961 = vector.broadcast %960 : vector<17x1xf32> to vector<17x17xf32>
      %962 = arith.subf %958, %961 : vector<17x17xf32>
      %963 = math.exp %962 : vector<17x17xf32>
      %cst_357 = arith.constant dense<0.000000e+00> : vector<17xf32>
      %964 = vector.multi_reduction <add>, %963, %cst_357 [1] : vector<17x17xf32> to vector<17xf32>
      %965 = vector.shape_cast %964 : vector<17xf32> to vector<17x1xf32>
      %966 = tpu.reciprocal %965 {approx = true} : vector<17x1xf32> -> vector<17x1xf32>
      %967 = vector.broadcast %966 : vector<17x1xf32> to vector<17x17xf32>
      %968 = arith.mulf %963, %967 : vector<17x17xf32>
      %969 = arith.truncf %968 : vector<17x17xf32> to vector<17x17xbf16>
      %cst_358 = arith.constant dense<0.000000e+00> : vector<17x8xf32>
      %970 = tpu.matmul %969, %957, %cst_358 {dimension_numbers = #tpu.dot_dimension_numbers<[1], [0], [0], [1], [0, 0, 1, 1], [], []>} : vector<17x17xbf16>, vector<17x8xbf16>, vector<17x8xf32> -> vector<17x8xf32>
      %971 = vector.extract_strided_slice %856 {offsets = [17, 24], sizes = [17, 8], strides = [1, 1]} : vector<34x32xbf16> to vector<17x8xbf16>
      %972 = vector.extract_strided_slice %857 {offsets = [17, 24], sizes = [17, 8], strides = [1, 1]} : vector<34x64xbf16> to vector<17x8xbf16>
      %973 = vector.extract_strided_slice %857 {offsets = [17, 56], sizes = [17, 8], strides = [1, 1]} : vector<34x64xbf16> to vector<17x8xbf16>
      %cst_359 = arith.constant dense<0.000000e+00> : vector<17x17xf32>
      %974 = tpu.matmul %971, %972, %cst_359 {dimension_numbers = #tpu.dot_dimension_numbers<[1], [1], [0], [0], [0, 0, 1, 0], [], []>} : vector<17x8xbf16>, vector<17x8xbf16>, vector<17x17xf32> -> vector<17x17xf32>
      %cst_360 = arith.constant dense<0xFF800000> : vector<17xf32>
      %975 = vector.multi_reduction <maximumf>, %974, %cst_360 [1] : vector<17x17xf32> to vector<17xf32>
      %976 = vector.shape_cast %975 : vector<17xf32> to vector<17x1xf32>
      %977 = vector.broadcast %976 : vector<17x1xf32> to vector<17x17xf32>
      %978 = arith.subf %974, %977 : vector<17x17xf32>
      %979 = math.exp %978 : vector<17x17xf32>
      %cst_361 = arith.constant dense<0.000000e+00> : vector<17xf32>
      %980 = vector.multi_reduction <add>, %979, %cst_361 [1] : vector<17x17xf32> to vector<17xf32>
      %981 = vector.shape_cast %980 : vector<17xf32> to vector<17x1xf32>
      %982 = tpu.reciprocal %981 {approx = true} : vector<17x1xf32> -> vector<17x1xf32>
      %983 = vector.broadcast %982 : vector<17x1xf32> to vector<17x17xf32>
      %984 = arith.mulf %979, %983 : vector<17x17xf32>
      %985 = arith.truncf %984 : vector<17x17xf32> to vector<17x17xbf16>
      %cst_362 = arith.constant dense<0.000000e+00> : vector<17x8xf32>
      %986 = tpu.matmul %985, %973, %cst_362 {dimension_numbers = #tpu.dot_dimension_numbers<[1], [0], [0], [1], [0, 0, 1, 1], [], []>} : vector<17x17xbf16>, vector<17x8xbf16>, vector<17x8xf32> -> vector<17x8xf32>
      %987 = tpu.concatenate %938, %954, %970, %986 in 1 : vector<17x8xf32>, vector<17x8xf32>, vector<17x8xf32>, vector<17x8xf32> -> vector<17x32xf32>
      %988 = tpu.concatenate %922, %987 in 0 : vector<17x32xf32>, vector<17x32xf32> -> vector<34x32xf32>
      %989 = arith.index_cast %arg37 : i32 to index
      %c0_363 = arith.constant 0 : index
      %c0_364 = arith.constant 0 : index
      %990 = vector.load %arg9[%989, %c0_363, %c0_364] : memref<11x32x32xbf16, #tpu.memory_space<vmem>>, vector<1x32x32xbf16>
      %991 = vector.shape_cast %990 : vector<1x32x32xbf16> to vector<32x32xbf16>
      %992 = arith.index_cast %arg37 : i32 to index
      %c0_365 = arith.constant 0 : index
      %c0_366 = arith.constant 0 : index
      %993 = vector.load %arg10[%992, %c0_365, %c0_366] : memref<11x1x32xf32, #tpu.memory_space<vmem>>, vector<1x1x32xf32>
      %994 = vector.shape_cast %993 : vector<1x1x32xf32> to vector<1x32xf32>
      %995 = arith.truncf %988 : vector<34x32xf32> to vector<34x32xbf16>
      %cst_367 = arith.constant dense<0.000000e+00> : vector<34x32xf32>
      %996 = tpu.matmul %995, %991, %cst_367 {dimension_numbers = #tpu.dot_dimension_numbers<[1], [0], [0], [1], [0, 0, 1, 1], [], []>} : vector<34x32xbf16>, vector<32x32xbf16>, vector<34x32xf32> -> vector<34x32xf32>
      %997 = vector.broadcast %994 : vector<1x32xf32> to vector<34x32xf32>
      %998 = arith.addf %996, %997 : vector<34x32xf32>
      %999 = arith.addf %arg38, %998 : vector<34x32xf32>
      %1000 = arith.index_cast %arg37 : i32 to index
      %c0_368 = arith.constant 0 : index
      %c0_369 = arith.constant 0 : index
      %1001 = vector.load %arg11[%1000, %c0_368, %c0_369] : memref<11x1x32xf32, #tpu.memory_space<vmem>>, vector<1x1x32xf32>
      %1002 = vector.shape_cast %1001 : vector<1x1x32xf32> to vector<1x32xf32>
      %1003 = arith.index_cast %arg37 : i32 to index
      %c0_370 = arith.constant 0 : index
      %c0_371 = arith.constant 0 : index
      %1004 = vector.load %arg12[%1003, %c0_370, %c0_371] : memref<11x1x32xf32, #tpu.memory_space<vmem>>, vector<1x1x32xf32>
      %1005 = vector.shape_cast %1004 : vector<1x1x32xf32> to vector<1x32xf32>
      %cst_372 = arith.constant dense<0.000000e+00> : vector<34xf32>
      %1006 = vector.multi_reduction <add>, %999, %cst_372 [1] : vector<34x32xf32> to vector<34xf32>
      %1007 = vector.shape_cast %1006 : vector<34xf32> to vector<34x1xf32>
      %cst_373 = arith.constant 3.200000e+01 : f32
      %1008 = vector.broadcast %cst_373 : f32 to vector<34x1xf32>
      %1009 = arith.divf %1007, %1008 : vector<34x1xf32>
      %1010 = vector.broadcast %1009 : vector<34x1xf32> to vector<34x32xf32>
      %1011 = arith.subf %999, %1010 : vector<34x32xf32>
      %1012 = arith.mulf %1011, %1011 : vector<34x32xf32>
      %cst_374 = arith.constant dense<0.000000e+00> : vector<34xf32>
      %1013 = vector.multi_reduction <add>, %1012, %cst_374 [1] : vector<34x32xf32> to vector<34xf32>
      %1014 = vector.shape_cast %1013 : vector<34xf32> to vector<34x1xf32>
      %cst_375 = arith.constant 3.200000e+01 : f32
      %1015 = vector.broadcast %cst_375 : f32 to vector<34x1xf32>
      %1016 = arith.divf %1014, %1015 : vector<34x1xf32>
      %1017 = vector.broadcast %1009 : vector<34x1xf32> to vector<34x32xf32>
      %1018 = arith.subf %999, %1017 : vector<34x32xf32>
      %cst_376 = arith.constant 9.99999996E-13 : f32
      %1019 = vector.broadcast %cst_376 : f32 to vector<34x1xf32>
      %1020 = arith.addf %1016, %1019 : vector<34x1xf32>
      %1021 = math.rsqrt %1020 : vector<34x1xf32>
      %1022 = vector.broadcast %1021 : vector<34x1xf32> to vector<34x32xf32>
      %1023 = arith.mulf %1018, %1022 : vector<34x32xf32>
      %1024 = vector.broadcast %1002 : vector<1x32xf32> to vector<34x32xf32>
      %1025 = arith.mulf %1023, %1024 : vector<34x32xf32>
      %1026 = vector.broadcast %1005 : vector<1x32xf32> to vector<34x32xf32>
      %1027 = arith.addf %1025, %1026 : vector<34x32xf32>
      %1028 = arith.index_cast %arg37 : i32 to index
      %c0_377 = arith.constant 0 : index
      %c0_378 = arith.constant 0 : index
      %1029 = vector.load %arg13[%1028, %c0_377, %c0_378] : memref<11x32x64xbf16, #tpu.memory_space<vmem>>, vector<1x32x64xbf16>
      %1030 = vector.shape_cast %1029 : vector<1x32x64xbf16> to vector<32x64xbf16>
      %1031 = arith.index_cast %arg37 : i32 to index
      %c0_379 = arith.constant 0 : index
      %c0_380 = arith.constant 0 : index
      %1032 = vector.load %arg14[%1031, %c0_379, %c0_380] : memref<11x1x64xf32, #tpu.memory_space<vmem>>, vector<1x1x64xf32>
      %1033 = vector.shape_cast %1032 : vector<1x1x64xf32> to vector<1x64xf32>
      %1034 = arith.truncf %1027 : vector<34x32xf32> to vector<34x32xbf16>
      %cst_381 = arith.constant dense<0.000000e+00> : vector<34x64xf32>
      %1035 = tpu.matmul %1034, %1030, %cst_381 {dimension_numbers = #tpu.dot_dimension_numbers<[1], [0], [0], [1], [0, 0, 1, 1], [], []>} : vector<34x32xbf16>, vector<32x64xbf16>, vector<34x64xf32> -> vector<34x64xf32>
      %1036 = vector.broadcast %1033 : vector<1x64xf32> to vector<34x64xf32>
      %1037 = arith.addf %1035, %1036 : vector<34x64xf32>
      %1038 = arith.mulf %1037, %1037 : vector<34x64xf32>
      %1039 = arith.mulf %1037, %1038 : vector<34x64xf32>
      %cst_382 = arith.constant 4.471500e-02 : f32
      %1040 = vector.broadcast %cst_382 : f32 to vector<34x64xf32>
      %1041 = arith.mulf %1040, %1039 : vector<34x64xf32>
      %1042 = arith.addf %1037, %1041 : vector<34x64xf32>
      %cst_383 = arith.constant 0.797884583 : f32
      %1043 = vector.broadcast %cst_383 : f32 to vector<34x64xf32>
      %1044 = arith.mulf %1043, %1042 : vector<34x64xf32>
      %1045 = math.tanh %1044 : vector<34x64xf32>
      %cst_384 = arith.constant 1.000000e+00 : f32
      %1046 = vector.broadcast %cst_384 : f32 to vector<34x64xf32>
      %1047 = arith.addf %1046, %1045 : vector<34x64xf32>
      %cst_385 = arith.constant 5.000000e-01 : f32
      %1048 = vector.broadcast %cst_385 : f32 to vector<34x64xf32>
      %1049 = arith.mulf %1048, %1047 : vector<34x64xf32>
      %1050 = arith.mulf %1037, %1049 : vector<34x64xf32>
      %1051 = arith.index_cast %arg37 : i32 to index
      %c0_386 = arith.constant 0 : index
      %c0_387 = arith.constant 0 : index
      %1052 = vector.load %arg15[%1051, %c0_386, %c0_387] : memref<11x64x32xbf16, #tpu.memory_space<vmem>>, vector<1x64x32xbf16>
      %1053 = vector.shape_cast %1052 : vector<1x64x32xbf16> to vector<64x32xbf16>
      %1054 = arith.index_cast %arg37 : i32 to index
      %c0_388 = arith.constant 0 : index
      %c0_389 = arith.constant 0 : index
      %1055 = vector.load %arg16[%1054, %c0_388, %c0_389] : memref<11x1x32xf32, #tpu.memory_space<vmem>>, vector<1x1x32xf32>
      %1056 = vector.shape_cast %1055 : vector<1x1x32xf32> to vector<1x32xf32>
      %1057 = arith.truncf %1050 : vector<34x64xf32> to vector<34x64xbf16>
      %cst_390 = arith.constant dense<0.000000e+00> : vector<34x32xf32>
      %1058 = tpu.matmul %1057, %1053, %cst_390 {dimension_numbers = #tpu.dot_dimension_numbers<[1], [0], [0], [1], [0, 0, 1, 1], [], []>} : vector<34x64xbf16>, vector<64x32xbf16>, vector<34x32xf32> -> vector<34x32xf32>
      %1059 = vector.broadcast %1056 : vector<1x32xf32> to vector<34x32xf32>
      %1060 = arith.addf %1058, %1059 : vector<34x32xf32>
      %1061 = arith.addf %999, %1060 : vector<34x32xf32>
      scf.yield %1061 : vector<34x32xf32>
    }
    %c11_i32_9 = arith.constant 11 : i32
    %20 = vector.extract_strided_slice %19 {offsets = [1, 0], sizes = [16, 32], strides = [1, 1]} : vector<34x32xf32> to vector<16x32xf32>
    %21 = vector.extract_strided_slice %19 {offsets = [18, 0], sizes = [16, 32], strides = [1, 1]} : vector<34x32xf32> to vector<16x32xf32>
    %22 = tpu.concatenate %20, %21 in 0 : vector<16x32xf32>, vector<16x32xf32> -> vector<32x32xf32>
    %23 = arith.truncf %22 : vector<32x32xf32> to vector<32x32xbf16>
    %c0_10 = arith.constant 0 : index
    %c0_11 = arith.constant 0 : index
    %24 = vector.load %arg31[%c0_10, %c0_11] : memref<8x32xf32, #tpu.memory_space<vmem>>, vector<8x32xf32>
    %25 = tpu.concatenate %24, %24 in 0 : vector<8x32xf32>, vector<8x32xf32> -> vector<16x32xf32>
    %c0_12 = arith.constant 0 : index
    %c0_13 = arith.constant 0 : index
    %c0_14 = arith.constant 0 : index
    %26 = vector.load %arg17[%c0_12, %c0_13, %c0_14] : memref<3x1x32xf32, #tpu.memory_space<vmem>>, vector<1x1x32xf32>
    %27 = vector.shape_cast %26 : vector<1x1x32xf32> to vector<1x32xf32>
    %c0_15 = arith.constant 0 : index
    %c0_16 = arith.constant 0 : index
    %c0_17 = arith.constant 0 : index
    %28 = vector.load %arg18[%c0_15, %c0_16, %c0_17] : memref<3x1x32xf32, #tpu.memory_space<vmem>>, vector<1x1x32xf32>
    %29 = vector.shape_cast %28 : vector<1x1x32xf32> to vector<1x32xf32>
    %cst_18 = arith.constant dense<0.000000e+00> : vector<16xf32>
    %30 = vector.multi_reduction <add>, %25, %cst_18 [1] : vector<16x32xf32> to vector<16xf32>
    %31 = vector.shape_cast %30 : vector<16xf32> to vector<16x1xf32>
    %cst_19 = arith.constant 3.200000e+01 : f32
    %32 = vector.broadcast %cst_19 : f32 to vector<16x1xf32>
    %33 = arith.divf %31, %32 : vector<16x1xf32>
    %34 = vector.broadcast %33 : vector<16x1xf32> to vector<16x32xf32>
    %35 = arith.subf %25, %34 : vector<16x32xf32>
    %36 = arith.mulf %35, %35 : vector<16x32xf32>
    %cst_20 = arith.constant dense<0.000000e+00> : vector<16xf32>
    %37 = vector.multi_reduction <add>, %36, %cst_20 [1] : vector<16x32xf32> to vector<16xf32>
    %38 = vector.shape_cast %37 : vector<16xf32> to vector<16x1xf32>
    %cst_21 = arith.constant 3.200000e+01 : f32
    %39 = vector.broadcast %cst_21 : f32 to vector<16x1xf32>
    %40 = arith.divf %38, %39 : vector<16x1xf32>
    %41 = vector.broadcast %33 : vector<16x1xf32> to vector<16x32xf32>
    %42 = arith.subf %25, %41 : vector<16x32xf32>
    %cst_22 = arith.constant 9.99999996E-13 : f32
    %43 = vector.broadcast %cst_22 : f32 to vector<16x1xf32>
    %44 = arith.addf %40, %43 : vector<16x1xf32>
    %45 = math.rsqrt %44 : vector<16x1xf32>
    %46 = vector.broadcast %45 : vector<16x1xf32> to vector<16x32xf32>
    %47 = arith.mulf %42, %46 : vector<16x32xf32>
    %48 = vector.broadcast %27 : vector<1x32xf32> to vector<16x32xf32>
    %49 = arith.mulf %47, %48 : vector<16x32xf32>
    %50 = vector.broadcast %29 : vector<1x32xf32> to vector<16x32xf32>
    %51 = arith.addf %49, %50 : vector<16x32xf32>
    %c0_23 = arith.constant 0 : index
    %c0_24 = arith.constant 0 : index
    %c0_25 = arith.constant 0 : index
    %52 = vector.load %arg19[%c0_23, %c0_24, %c0_25] : memref<3x32x32xbf16, #tpu.memory_space<vmem>>, vector<1x32x32xbf16>
    %53 = vector.shape_cast %52 : vector<1x32x32xbf16> to vector<32x32xbf16>
    %c0_26 = arith.constant 0 : index
    %c0_27 = arith.constant 0 : index
    %c0_28 = arith.constant 0 : index
    %54 = vector.load %arg20[%c0_26, %c0_27, %c0_28] : memref<3x1x32xf32, #tpu.memory_space<vmem>>, vector<1x1x32xf32>
    %55 = vector.shape_cast %54 : vector<1x1x32xf32> to vector<1x32xf32>
    %56 = arith.truncf %51 : vector<16x32xf32> to vector<16x32xbf16>
    %cst_29 = arith.constant dense<0.000000e+00> : vector<16x32xf32>
    %57 = tpu.matmul %56, %53, %cst_29 {dimension_numbers = #tpu.dot_dimension_numbers<[1], [0], [0], [1], [0, 0, 1, 1], [], []>} : vector<16x32xbf16>, vector<32x32xbf16>, vector<16x32xf32> -> vector<16x32xf32>
    %58 = vector.broadcast %55 : vector<1x32xf32> to vector<16x32xf32>
    %59 = arith.addf %57, %58 : vector<16x32xf32>
    %60 = arith.truncf %59 : vector<16x32xf32> to vector<16x32xbf16>
    %c0_30 = arith.constant 0 : index
    %c0_31 = arith.constant 0 : index
    %c0_32 = arith.constant 0 : index
    %61 = vector.load %arg21[%c0_30, %c0_31, %c0_32] : memref<3x32x64xbf16, #tpu.memory_space<vmem>>, vector<1x32x64xbf16>
    %62 = vector.shape_cast %61 : vector<1x32x64xbf16> to vector<32x64xbf16>
    %c0_33 = arith.constant 0 : index
    %c0_34 = arith.constant 0 : index
    %c0_35 = arith.constant 0 : index
    %63 = vector.load %arg22[%c0_33, %c0_34, %c0_35] : memref<3x1x64xf32, #tpu.memory_space<vmem>>, vector<1x1x64xf32>
    %64 = vector.shape_cast %63 : vector<1x1x64xf32> to vector<1x64xf32>
    %65 = arith.truncf %22 : vector<32x32xf32> to vector<32x32xbf16>
    %cst_36 = arith.constant dense<0.000000e+00> : vector<32x64xf32>
    %66 = tpu.matmul %65, %62, %cst_36 {dimension_numbers = #tpu.dot_dimension_numbers<[1], [0], [0], [1], [0, 0, 1, 1], [], []>} : vector<32x32xbf16>, vector<32x64xbf16>, vector<32x64xf32> -> vector<32x64xf32>
    %67 = vector.broadcast %64 : vector<1x64xf32> to vector<32x64xf32>
    %68 = arith.addf %66, %67 : vector<32x64xf32>
    %69 = arith.truncf %68 : vector<32x64xf32> to vector<32x64xbf16>
    %70 = vector.extract_strided_slice %60 {offsets = [0, 0], sizes = [8, 8], strides = [1, 1]} : vector<16x32xbf16> to vector<8x8xbf16>
    %71 = vector.extract_strided_slice %69 {offsets = [0, 0], sizes = [16, 8], strides = [1, 1]} : vector<32x64xbf16> to vector<16x8xbf16>
    %72 = vector.extract_strided_slice %69 {offsets = [0, 32], sizes = [16, 8], strides = [1, 1]} : vector<32x64xbf16> to vector<16x8xbf16>
    %cst_37 = arith.constant dense<0.000000e+00> : vector<8x16xf32>
    %73 = tpu.matmul %70, %71, %cst_37 {dimension_numbers = #tpu.dot_dimension_numbers<[1], [1], [0], [0], [0, 0, 1, 0], [], []>} : vector<8x8xbf16>, vector<16x8xbf16>, vector<8x16xf32> -> vector<8x16xf32>
    %cst_38 = arith.constant dense<0xFF800000> : vector<8xf32>
    %74 = vector.multi_reduction <maximumf>, %73, %cst_38 [1] : vector<8x16xf32> to vector<8xf32>
    %75 = vector.shape_cast %74 : vector<8xf32> to vector<8x1xf32>
    %76 = vector.broadcast %75 : vector<8x1xf32> to vector<8x16xf32>
    %77 = arith.subf %73, %76 : vector<8x16xf32>
    %78 = math.exp %77 : vector<8x16xf32>
    %cst_39 = arith.constant dense<0.000000e+00> : vector<8xf32>
    %79 = vector.multi_reduction <add>, %78, %cst_39 [1] : vector<8x16xf32> to vector<8xf32>
    %80 = vector.shape_cast %79 : vector<8xf32> to vector<8x1xf32>
    %81 = tpu.reciprocal %80 {approx = true} : vector<8x1xf32> -> vector<8x1xf32>
    %82 = vector.broadcast %81 : vector<8x1xf32> to vector<8x16xf32>
    %83 = arith.mulf %78, %82 : vector<8x16xf32>
    %84 = arith.truncf %83 : vector<8x16xf32> to vector<8x16xbf16>
    %cst_40 = arith.constant dense<0.000000e+00> : vector<8x8xf32>
    %85 = tpu.matmul %84, %72, %cst_40 {dimension_numbers = #tpu.dot_dimension_numbers<[1], [0], [0], [1], [0, 0, 1, 1], [], []>} : vector<8x16xbf16>, vector<16x8xbf16>, vector<8x8xf32> -> vector<8x8xf32>
    %86 = vector.extract_strided_slice %60 {offsets = [0, 8], sizes = [8, 8], strides = [1, 1]} : vector<16x32xbf16> to vector<8x8xbf16>
    %87 = vector.extract_strided_slice %69 {offsets = [0, 8], sizes = [16, 8], strides = [1, 1]} : vector<32x64xbf16> to vector<16x8xbf16>
    %88 = vector.extract_strided_slice %69 {offsets = [0, 40], sizes = [16, 8], strides = [1, 1]} : vector<32x64xbf16> to vector<16x8xbf16>
    %cst_41 = arith.constant dense<0.000000e+00> : vector<8x16xf32>
    %89 = tpu.matmul %86, %87, %cst_41 {dimension_numbers = #tpu.dot_dimension_numbers<[1], [1], [0], [0], [0, 0, 1, 0], [], []>} : vector<8x8xbf16>, vector<16x8xbf16>, vector<8x16xf32> -> vector<8x16xf32>
    %cst_42 = arith.constant dense<0xFF800000> : vector<8xf32>
    %90 = vector.multi_reduction <maximumf>, %89, %cst_42 [1] : vector<8x16xf32> to vector<8xf32>
    %91 = vector.shape_cast %90 : vector<8xf32> to vector<8x1xf32>
    %92 = vector.broadcast %91 : vector<8x1xf32> to vector<8x16xf32>
    %93 = arith.subf %89, %92 : vector<8x16xf32>
    %94 = math.exp %93 : vector<8x16xf32>
    %cst_43 = arith.constant dense<0.000000e+00> : vector<8xf32>
    %95 = vector.multi_reduction <add>, %94, %cst_43 [1] : vector<8x16xf32> to vector<8xf32>
    %96 = vector.shape_cast %95 : vector<8xf32> to vector<8x1xf32>
    %97 = tpu.reciprocal %96 {approx = true} : vector<8x1xf32> -> vector<8x1xf32>
    %98 = vector.broadcast %97 : vector<8x1xf32> to vector<8x16xf32>
    %99 = arith.mulf %94, %98 : vector<8x16xf32>
    %100 = arith.truncf %99 : vector<8x16xf32> to vector<8x16xbf16>
    %cst_44 = arith.constant dense<0.000000e+00> : vector<8x8xf32>
    %101 = tpu.matmul %100, %88, %cst_44 {dimension_numbers = #tpu.dot_dimension_numbers<[1], [0], [0], [1], [0, 0, 1, 1], [], []>} : vector<8x16xbf16>, vector<16x8xbf16>, vector<8x8xf32> -> vector<8x8xf32>
    %102 = vector.extract_strided_slice %60 {offsets = [0, 16], sizes = [8, 8], strides = [1, 1]} : vector<16x32xbf16> to vector<8x8xbf16>
    %103 = vector.extract_strided_slice %69 {offsets = [0, 16], sizes = [16, 8], strides = [1, 1]} : vector<32x64xbf16> to vector<16x8xbf16>
    %104 = vector.extract_strided_slice %69 {offsets = [0, 48], sizes = [16, 8], strides = [1, 1]} : vector<32x64xbf16> to vector<16x8xbf16>
    %cst_45 = arith.constant dense<0.000000e+00> : vector<8x16xf32>
    %105 = tpu.matmul %102, %103, %cst_45 {dimension_numbers = #tpu.dot_dimension_numbers<[1], [1], [0], [0], [0, 0, 1, 0], [], []>} : vector<8x8xbf16>, vector<16x8xbf16>, vector<8x16xf32> -> vector<8x16xf32>
    %cst_46 = arith.constant dense<0xFF800000> : vector<8xf32>
    %106 = vector.multi_reduction <maximumf>, %105, %cst_46 [1] : vector<8x16xf32> to vector<8xf32>
    %107 = vector.shape_cast %106 : vector<8xf32> to vector<8x1xf32>
    %108 = vector.broadcast %107 : vector<8x1xf32> to vector<8x16xf32>
    %109 = arith.subf %105, %108 : vector<8x16xf32>
    %110 = math.exp %109 : vector<8x16xf32>
    %cst_47 = arith.constant dense<0.000000e+00> : vector<8xf32>
    %111 = vector.multi_reduction <add>, %110, %cst_47 [1] : vector<8x16xf32> to vector<8xf32>
    %112 = vector.shape_cast %111 : vector<8xf32> to vector<8x1xf32>
    %113 = tpu.reciprocal %112 {approx = true} : vector<8x1xf32> -> vector<8x1xf32>
    %114 = vector.broadcast %113 : vector<8x1xf32> to vector<8x16xf32>
    %115 = arith.mulf %110, %114 : vector<8x16xf32>
    %116 = arith.truncf %115 : vector<8x16xf32> to vector<8x16xbf16>
    %cst_48 = arith.constant dense<0.000000e+00> : vector<8x8xf32>
    %117 = tpu.matmul %116, %104, %cst_48 {dimension_numbers = #tpu.dot_dimension_numbers<[1], [0], [0], [1], [0, 0, 1, 1], [], []>} : vector<8x16xbf16>, vector<16x8xbf16>, vector<8x8xf32> -> vector<8x8xf32>
    %118 = vector.extract_strided_slice %60 {offsets = [0, 24], sizes = [8, 8], strides = [1, 1]} : vector<16x32xbf16> to vector<8x8xbf16>
    %119 = vector.extract_strided_slice %69 {offsets = [0, 24], sizes = [16, 8], strides = [1, 1]} : vector<32x64xbf16> to vector<16x8xbf16>
    %120 = vector.extract_strided_slice %69 {offsets = [0, 56], sizes = [16, 8], strides = [1, 1]} : vector<32x64xbf16> to vector<16x8xbf16>
    %cst_49 = arith.constant dense<0.000000e+00> : vector<8x16xf32>
    %121 = tpu.matmul %118, %119, %cst_49 {dimension_numbers = #tpu.dot_dimension_numbers<[1], [1], [0], [0], [0, 0, 1, 0], [], []>} : vector<8x8xbf16>, vector<16x8xbf16>, vector<8x16xf32> -> vector<8x16xf32>
    %cst_50 = arith.constant dense<0xFF800000> : vector<8xf32>
    %122 = vector.multi_reduction <maximumf>, %121, %cst_50 [1] : vector<8x16xf32> to vector<8xf32>
    %123 = vector.shape_cast %122 : vector<8xf32> to vector<8x1xf32>
    %124 = vector.broadcast %123 : vector<8x1xf32> to vector<8x16xf32>
    %125 = arith.subf %121, %124 : vector<8x16xf32>
    %126 = math.exp %125 : vector<8x16xf32>
    %cst_51 = arith.constant dense<0.000000e+00> : vector<8xf32>
    %127 = vector.multi_reduction <add>, %126, %cst_51 [1] : vector<8x16xf32> to vector<8xf32>
    %128 = vector.shape_cast %127 : vector<8xf32> to vector<8x1xf32>
    %129 = tpu.reciprocal %128 {approx = true} : vector<8x1xf32> -> vector<8x1xf32>
    %130 = vector.broadcast %129 : vector<8x1xf32> to vector<8x16xf32>
    %131 = arith.mulf %126, %130 : vector<8x16xf32>
    %132 = arith.truncf %131 : vector<8x16xf32> to vector<8x16xbf16>
    %cst_52 = arith.constant dense<0.000000e+00> : vector<8x8xf32>
    %133 = tpu.matmul %132, %120, %cst_52 {dimension_numbers = #tpu.dot_dimension_numbers<[1], [0], [0], [1], [0, 0, 1, 1], [], []>} : vector<8x16xbf16>, vector<16x8xbf16>, vector<8x8xf32> -> vector<8x8xf32>
    %134 = tpu.concatenate %85, %101, %117, %133 in 1 : vector<8x8xf32>, vector<8x8xf32>, vector<8x8xf32>, vector<8x8xf32> -> vector<8x32xf32>
    %135 = vector.extract_strided_slice %60 {offsets = [8, 0], sizes = [8, 8], strides = [1, 1]} : vector<16x32xbf16> to vector<8x8xbf16>
    %136 = vector.extract_strided_slice %69 {offsets = [16, 0], sizes = [16, 8], strides = [1, 1]} : vector<32x64xbf16> to vector<16x8xbf16>
    %137 = vector.extract_strided_slice %69 {offsets = [16, 32], sizes = [16, 8], strides = [1, 1]} : vector<32x64xbf16> to vector<16x8xbf16>
    %cst_53 = arith.constant dense<0.000000e+00> : vector<8x16xf32>
    %138 = tpu.matmul %135, %136, %cst_53 {dimension_numbers = #tpu.dot_dimension_numbers<[1], [1], [0], [0], [0, 0, 1, 0], [], []>} : vector<8x8xbf16>, vector<16x8xbf16>, vector<8x16xf32> -> vector<8x16xf32>
    %cst_54 = arith.constant dense<0xFF800000> : vector<8xf32>
    %139 = vector.multi_reduction <maximumf>, %138, %cst_54 [1] : vector<8x16xf32> to vector<8xf32>
    %140 = vector.shape_cast %139 : vector<8xf32> to vector<8x1xf32>
    %141 = vector.broadcast %140 : vector<8x1xf32> to vector<8x16xf32>
    %142 = arith.subf %138, %141 : vector<8x16xf32>
    %143 = math.exp %142 : vector<8x16xf32>
    %cst_55 = arith.constant dense<0.000000e+00> : vector<8xf32>
    %144 = vector.multi_reduction <add>, %143, %cst_55 [1] : vector<8x16xf32> to vector<8xf32>
    %145 = vector.shape_cast %144 : vector<8xf32> to vector<8x1xf32>
    %146 = tpu.reciprocal %145 {approx = true} : vector<8x1xf32> -> vector<8x1xf32>
    %147 = vector.broadcast %146 : vector<8x1xf32> to vector<8x16xf32>
    %148 = arith.mulf %143, %147 : vector<8x16xf32>
    %149 = arith.truncf %148 : vector<8x16xf32> to vector<8x16xbf16>
    %cst_56 = arith.constant dense<0.000000e+00> : vector<8x8xf32>
    %150 = tpu.matmul %149, %137, %cst_56 {dimension_numbers = #tpu.dot_dimension_numbers<[1], [0], [0], [1], [0, 0, 1, 1], [], []>} : vector<8x16xbf16>, vector<16x8xbf16>, vector<8x8xf32> -> vector<8x8xf32>
    %151 = vector.extract_strided_slice %60 {offsets = [8, 8], sizes = [8, 8], strides = [1, 1]} : vector<16x32xbf16> to vector<8x8xbf16>
    %152 = vector.extract_strided_slice %69 {offsets = [16, 8], sizes = [16, 8], strides = [1, 1]} : vector<32x64xbf16> to vector<16x8xbf16>
    %153 = vector.extract_strided_slice %69 {offsets = [16, 40], sizes = [16, 8], strides = [1, 1]} : vector<32x64xbf16> to vector<16x8xbf16>
    %cst_57 = arith.constant dense<0.000000e+00> : vector<8x16xf32>
    %154 = tpu.matmul %151, %152, %cst_57 {dimension_numbers = #tpu.dot_dimension_numbers<[1], [1], [0], [0], [0, 0, 1, 0], [], []>} : vector<8x8xbf16>, vector<16x8xbf16>, vector<8x16xf32> -> vector<8x16xf32>
    %cst_58 = arith.constant dense<0xFF800000> : vector<8xf32>
    %155 = vector.multi_reduction <maximumf>, %154, %cst_58 [1] : vector<8x16xf32> to vector<8xf32>
    %156 = vector.shape_cast %155 : vector<8xf32> to vector<8x1xf32>
    %157 = vector.broadcast %156 : vector<8x1xf32> to vector<8x16xf32>
    %158 = arith.subf %154, %157 : vector<8x16xf32>
    %159 = math.exp %158 : vector<8x16xf32>
    %cst_59 = arith.constant dense<0.000000e+00> : vector<8xf32>
    %160 = vector.multi_reduction <add>, %159, %cst_59 [1] : vector<8x16xf32> to vector<8xf32>
    %161 = vector.shape_cast %160 : vector<8xf32> to vector<8x1xf32>
    %162 = tpu.reciprocal %161 {approx = true} : vector<8x1xf32> -> vector<8x1xf32>
    %163 = vector.broadcast %162 : vector<8x1xf32> to vector<8x16xf32>
    %164 = arith.mulf %159, %163 : vector<8x16xf32>
    %165 = arith.truncf %164 : vector<8x16xf32> to vector<8x16xbf16>
    %cst_60 = arith.constant dense<0.000000e+00> : vector<8x8xf32>
    %166 = tpu.matmul %165, %153, %cst_60 {dimension_numbers = #tpu.dot_dimension_numbers<[1], [0], [0], [1], [0, 0, 1, 1], [], []>} : vector<8x16xbf16>, vector<16x8xbf16>, vector<8x8xf32> -> vector<8x8xf32>
    %167 = vector.extract_strided_slice %60 {offsets = [8, 16], sizes = [8, 8], strides = [1, 1]} : vector<16x32xbf16> to vector<8x8xbf16>
    %168 = vector.extract_strided_slice %69 {offsets = [16, 16], sizes = [16, 8], strides = [1, 1]} : vector<32x64xbf16> to vector<16x8xbf16>
    %169 = vector.extract_strided_slice %69 {offsets = [16, 48], sizes = [16, 8], strides = [1, 1]} : vector<32x64xbf16> to vector<16x8xbf16>
    %cst_61 = arith.constant dense<0.000000e+00> : vector<8x16xf32>
    %170 = tpu.matmul %167, %168, %cst_61 {dimension_numbers = #tpu.dot_dimension_numbers<[1], [1], [0], [0], [0, 0, 1, 0], [], []>} : vector<8x8xbf16>, vector<16x8xbf16>, vector<8x16xf32> -> vector<8x16xf32>
    %cst_62 = arith.constant dense<0xFF800000> : vector<8xf32>
    %171 = vector.multi_reduction <maximumf>, %170, %cst_62 [1] : vector<8x16xf32> to vector<8xf32>
    %172 = vector.shape_cast %171 : vector<8xf32> to vector<8x1xf32>
    %173 = vector.broadcast %172 : vector<8x1xf32> to vector<8x16xf32>
    %174 = arith.subf %170, %173 : vector<8x16xf32>
    %175 = math.exp %174 : vector<8x16xf32>
    %cst_63 = arith.constant dense<0.000000e+00> : vector<8xf32>
    %176 = vector.multi_reduction <add>, %175, %cst_63 [1] : vector<8x16xf32> to vector<8xf32>
    %177 = vector.shape_cast %176 : vector<8xf32> to vector<8x1xf32>
    %178 = tpu.reciprocal %177 {approx = true} : vector<8x1xf32> -> vector<8x1xf32>
    %179 = vector.broadcast %178 : vector<8x1xf32> to vector<8x16xf32>
    %180 = arith.mulf %175, %179 : vector<8x16xf32>
    %181 = arith.truncf %180 : vector<8x16xf32> to vector<8x16xbf16>
    %cst_64 = arith.constant dense<0.000000e+00> : vector<8x8xf32>
    %182 = tpu.matmul %181, %169, %cst_64 {dimension_numbers = #tpu.dot_dimension_numbers<[1], [0], [0], [1], [0, 0, 1, 1], [], []>} : vector<8x16xbf16>, vector<16x8xbf16>, vector<8x8xf32> -> vector<8x8xf32>
    %183 = vector.extract_strided_slice %60 {offsets = [8, 24], sizes = [8, 8], strides = [1, 1]} : vector<16x32xbf16> to vector<8x8xbf16>
    %184 = vector.extract_strided_slice %69 {offsets = [16, 24], sizes = [16, 8], strides = [1, 1]} : vector<32x64xbf16> to vector<16x8xbf16>
    %185 = vector.extract_strided_slice %69 {offsets = [16, 56], sizes = [16, 8], strides = [1, 1]} : vector<32x64xbf16> to vector<16x8xbf16>
    %cst_65 = arith.constant dense<0.000000e+00> : vector<8x16xf32>
    %186 = tpu.matmul %183, %184, %cst_65 {dimension_numbers = #tpu.dot_dimension_numbers<[1], [1], [0], [0], [0, 0, 1, 0], [], []>} : vector<8x8xbf16>, vector<16x8xbf16>, vector<8x16xf32> -> vector<8x16xf32>
    %cst_66 = arith.constant dense<0xFF800000> : vector<8xf32>
    %187 = vector.multi_reduction <maximumf>, %186, %cst_66 [1] : vector<8x16xf32> to vector<8xf32>
    %188 = vector.shape_cast %187 : vector<8xf32> to vector<8x1xf32>
    %189 = vector.broadcast %188 : vector<8x1xf32> to vector<8x16xf32>
    %190 = arith.subf %186, %189 : vector<8x16xf32>
    %191 = math.exp %190 : vector<8x16xf32>
    %cst_67 = arith.constant dense<0.000000e+00> : vector<8xf32>
    %192 = vector.multi_reduction <add>, %191, %cst_67 [1] : vector<8x16xf32> to vector<8xf32>
    %193 = vector.shape_cast %192 : vector<8xf32> to vector<8x1xf32>
    %194 = tpu.reciprocal %193 {approx = true} : vector<8x1xf32> -> vector<8x1xf32>
    %195 = vector.broadcast %194 : vector<8x1xf32> to vector<8x16xf32>
    %196 = arith.mulf %191, %195 : vector<8x16xf32>
    %197 = arith.truncf %196 : vector<8x16xf32> to vector<8x16xbf16>
    %cst_68 = arith.constant dense<0.000000e+00> : vector<8x8xf32>
    %198 = tpu.matmul %197, %185, %cst_68 {dimension_numbers = #tpu.dot_dimension_numbers<[1], [0], [0], [1], [0, 0, 1, 1], [], []>} : vector<8x16xbf16>, vector<16x8xbf16>, vector<8x8xf32> -> vector<8x8xf32>
    %199 = tpu.concatenate %150, %166, %182, %198 in 1 : vector<8x8xf32>, vector<8x8xf32>, vector<8x8xf32>, vector<8x8xf32> -> vector<8x32xf32>
    %200 = tpu.concatenate %134, %199 in 0 : vector<8x32xf32>, vector<8x32xf32> -> vector<16x32xf32>
    %c0_69 = arith.constant 0 : index
    %c0_70 = arith.constant 0 : index
    %c0_71 = arith.constant 0 : index
    %201 = vector.load %arg23[%c0_69, %c0_70, %c0_71] : memref<3x32x32xbf16, #tpu.memory_space<vmem>>, vector<1x32x32xbf16>
    %202 = vector.shape_cast %201 : vector<1x32x32xbf16> to vector<32x32xbf16>
    %c0_72 = arith.constant 0 : index
    %c0_73 = arith.constant 0 : index
    %c0_74 = arith.constant 0 : index
    %203 = vector.load %arg24[%c0_72, %c0_73, %c0_74] : memref<3x1x32xf32, #tpu.memory_space<vmem>>, vector<1x1x32xf32>
    %204 = vector.shape_cast %203 : vector<1x1x32xf32> to vector<1x32xf32>
    %205 = arith.truncf %200 : vector<16x32xf32> to vector<16x32xbf16>
    %cst_75 = arith.constant dense<0.000000e+00> : vector<16x32xf32>
    %206 = tpu.matmul %205, %202, %cst_75 {dimension_numbers = #tpu.dot_dimension_numbers<[1], [0], [0], [1], [0, 0, 1, 1], [], []>} : vector<16x32xbf16>, vector<32x32xbf16>, vector<16x32xf32> -> vector<16x32xf32>
    %207 = vector.broadcast %204 : vector<1x32xf32> to vector<16x32xf32>
    %208 = arith.addf %206, %207 : vector<16x32xf32>
    %209 = arith.addf %25, %208 : vector<16x32xf32>
    %c0_76 = arith.constant 0 : index
    %c0_77 = arith.constant 0 : index
    %c0_78 = arith.constant 0 : index
    %210 = vector.load %arg25[%c0_76, %c0_77, %c0_78] : memref<3x1x32xf32, #tpu.memory_space<vmem>>, vector<1x1x32xf32>
    %211 = vector.shape_cast %210 : vector<1x1x32xf32> to vector<1x32xf32>
    %c0_79 = arith.constant 0 : index
    %c0_80 = arith.constant 0 : index
    %c0_81 = arith.constant 0 : index
    %212 = vector.load %arg26[%c0_79, %c0_80, %c0_81] : memref<3x1x32xf32, #tpu.memory_space<vmem>>, vector<1x1x32xf32>
    %213 = vector.shape_cast %212 : vector<1x1x32xf32> to vector<1x32xf32>
    %cst_82 = arith.constant dense<0.000000e+00> : vector<16xf32>
    %214 = vector.multi_reduction <add>, %209, %cst_82 [1] : vector<16x32xf32> to vector<16xf32>
    %215 = vector.shape_cast %214 : vector<16xf32> to vector<16x1xf32>
    %cst_83 = arith.constant 3.200000e+01 : f32
    %216 = vector.broadcast %cst_83 : f32 to vector<16x1xf32>
    %217 = arith.divf %215, %216 : vector<16x1xf32>
    %218 = vector.broadcast %217 : vector<16x1xf32> to vector<16x32xf32>
    %219 = arith.subf %209, %218 : vector<16x32xf32>
    %220 = arith.mulf %219, %219 : vector<16x32xf32>
    %cst_84 = arith.constant dense<0.000000e+00> : vector<16xf32>
    %221 = vector.multi_reduction <add>, %220, %cst_84 [1] : vector<16x32xf32> to vector<16xf32>
    %222 = vector.shape_cast %221 : vector<16xf32> to vector<16x1xf32>
    %cst_85 = arith.constant 3.200000e+01 : f32
    %223 = vector.broadcast %cst_85 : f32 to vector<16x1xf32>
    %224 = arith.divf %222, %223 : vector<16x1xf32>
    %225 = vector.broadcast %217 : vector<16x1xf32> to vector<16x32xf32>
    %226 = arith.subf %209, %225 : vector<16x32xf32>
    %cst_86 = arith.constant 9.99999996E-13 : f32
    %227 = vector.broadcast %cst_86 : f32 to vector<16x1xf32>
    %228 = arith.addf %224, %227 : vector<16x1xf32>
    %229 = math.rsqrt %228 : vector<16x1xf32>
    %230 = vector.broadcast %229 : vector<16x1xf32> to vector<16x32xf32>
    %231 = arith.mulf %226, %230 : vector<16x32xf32>
    %232 = vector.broadcast %211 : vector<1x32xf32> to vector<16x32xf32>
    %233 = arith.mulf %231, %232 : vector<16x32xf32>
    %234 = vector.broadcast %213 : vector<1x32xf32> to vector<16x32xf32>
    %235 = arith.addf %233, %234 : vector<16x32xf32>
    %c0_87 = arith.constant 0 : index
    %c0_88 = arith.constant 0 : index
    %c0_89 = arith.constant 0 : index
    %236 = vector.load %arg27[%c0_87, %c0_88, %c0_89] : memref<3x32x64xbf16, #tpu.memory_space<vmem>>, vector<1x32x64xbf16>
    %237 = vector.shape_cast %236 : vector<1x32x64xbf16> to vector<32x64xbf16>
    %c0_90 = arith.constant 0 : index
    %c0_91 = arith.constant 0 : index
    %c0_92 = arith.constant 0 : index
    %238 = vector.load %arg28[%c0_90, %c0_91, %c0_92] : memref<3x1x64xf32, #tpu.memory_space<vmem>>, vector<1x1x64xf32>
    %239 = vector.shape_cast %238 : vector<1x1x64xf32> to vector<1x64xf32>
    %240 = arith.truncf %235 : vector<16x32xf32> to vector<16x32xbf16>
    %cst_93 = arith.constant dense<0.000000e+00> : vector<16x64xf32>
    %241 = tpu.matmul %240, %237, %cst_93 {dimension_numbers = #tpu.dot_dimension_numbers<[1], [0], [0], [1], [0, 0, 1, 1], [], []>} : vector<16x32xbf16>, vector<32x64xbf16>, vector<16x64xf32> -> vector<16x64xf32>
    %242 = vector.broadcast %239 : vector<1x64xf32> to vector<16x64xf32>
    %243 = arith.addf %241, %242 : vector<16x64xf32>
    %244 = arith.mulf %243, %243 : vector<16x64xf32>
    %245 = arith.mulf %243, %244 : vector<16x64xf32>
    %cst_94 = arith.constant 4.471500e-02 : f32
    %246 = vector.broadcast %cst_94 : f32 to vector<16x64xf32>
    %247 = arith.mulf %246, %245 : vector<16x64xf32>
    %248 = arith.addf %243, %247 : vector<16x64xf32>
    %cst_95 = arith.constant 0.797884583 : f32
    %249 = vector.broadcast %cst_95 : f32 to vector<16x64xf32>
    %250 = arith.mulf %249, %248 : vector<16x64xf32>
    %251 = math.tanh %250 : vector<16x64xf32>
    %cst_96 = arith.constant 1.000000e+00 : f32
    %252 = vector.broadcast %cst_96 : f32 to vector<16x64xf32>
    %253 = arith.addf %252, %251 : vector<16x64xf32>
    %cst_97 = arith.constant 5.000000e-01 : f32
    %254 = vector.broadcast %cst_97 : f32 to vector<16x64xf32>
    %255 = arith.mulf %254, %253 : vector<16x64xf32>
    %256 = arith.mulf %243, %255 : vector<16x64xf32>
    %c0_98 = arith.constant 0 : index
    %c0_99 = arith.constant 0 : index
    %c0_100 = arith.constant 0 : index
    %257 = vector.load %arg29[%c0_98, %c0_99, %c0_100] : memref<3x64x32xbf16, #tpu.memory_space<vmem>>, vector<1x64x32xbf16>
    %258 = vector.shape_cast %257 : vector<1x64x32xbf16> to vector<64x32xbf16>
    %c0_101 = arith.constant 0 : index
    %c0_102 = arith.constant 0 : index
    %c0_103 = arith.constant 0 : index
    %259 = vector.load %arg30[%c0_101, %c0_102, %c0_103] : memref<3x1x32xf32, #tpu.memory_space<vmem>>, vector<1x1x32xf32>
    %260 = vector.shape_cast %259 : vector<1x1x32xf32> to vector<1x32xf32>
    %261 = arith.truncf %256 : vector<16x64xf32> to vector<16x64xbf16>
    %cst_104 = arith.constant dense<0.000000e+00> : vector<16x32xf32>
    %262 = tpu.matmul %261, %258, %cst_104 {dimension_numbers = #tpu.dot_dimension_numbers<[1], [0], [0], [1], [0, 0, 1, 1], [], []>} : vector<16x64xbf16>, vector<64x32xbf16>, vector<16x32xf32> -> vector<16x32xf32>
    %263 = vector.broadcast %260 : vector<1x32xf32> to vector<16x32xf32>
    %264 = arith.addf %262, %263 : vector<16x32xf32>
    %265 = arith.addf %209, %264 : vector<16x32xf32>
    %c1 = arith.constant 1 : index
    %c0_105 = arith.constant 0 : index
    %c0_106 = arith.constant 0 : index
    %266 = vector.load %arg17[%c1, %c0_105, %c0_106] : memref<3x1x32xf32, #tpu.memory_space<vmem>>, vector<1x1x32xf32>
    %267 = vector.shape_cast %266 : vector<1x1x32xf32> to vector<1x32xf32>
    %c1_107 = arith.constant 1 : index
    %c0_108 = arith.constant 0 : index
    %c0_109 = arith.constant 0 : index
    %268 = vector.load %arg18[%c1_107, %c0_108, %c0_109] : memref<3x1x32xf32, #tpu.memory_space<vmem>>, vector<1x1x32xf32>
    %269 = vector.shape_cast %268 : vector<1x1x32xf32> to vector<1x32xf32>
    %cst_110 = arith.constant dense<0.000000e+00> : vector<16xf32>
    %270 = vector.multi_reduction <add>, %265, %cst_110 [1] : vector<16x32xf32> to vector<16xf32>
    %271 = vector.shape_cast %270 : vector<16xf32> to vector<16x1xf32>
    %cst_111 = arith.constant 3.200000e+01 : f32
    %272 = vector.broadcast %cst_111 : f32 to vector<16x1xf32>
    %273 = arith.divf %271, %272 : vector<16x1xf32>
    %274 = vector.broadcast %273 : vector<16x1xf32> to vector<16x32xf32>
    %275 = arith.subf %265, %274 : vector<16x32xf32>
    %276 = arith.mulf %275, %275 : vector<16x32xf32>
    %cst_112 = arith.constant dense<0.000000e+00> : vector<16xf32>
    %277 = vector.multi_reduction <add>, %276, %cst_112 [1] : vector<16x32xf32> to vector<16xf32>
    %278 = vector.shape_cast %277 : vector<16xf32> to vector<16x1xf32>
    %cst_113 = arith.constant 3.200000e+01 : f32
    %279 = vector.broadcast %cst_113 : f32 to vector<16x1xf32>
    %280 = arith.divf %278, %279 : vector<16x1xf32>
    %281 = vector.broadcast %273 : vector<16x1xf32> to vector<16x32xf32>
    %282 = arith.subf %265, %281 : vector<16x32xf32>
    %cst_114 = arith.constant 9.99999996E-13 : f32
    %283 = vector.broadcast %cst_114 : f32 to vector<16x1xf32>
    %284 = arith.addf %280, %283 : vector<16x1xf32>
    %285 = math.rsqrt %284 : vector<16x1xf32>
    %286 = vector.broadcast %285 : vector<16x1xf32> to vector<16x32xf32>
    %287 = arith.mulf %282, %286 : vector<16x32xf32>
    %288 = vector.broadcast %267 : vector<1x32xf32> to vector<16x32xf32>
    %289 = arith.mulf %287, %288 : vector<16x32xf32>
    %290 = vector.broadcast %269 : vector<1x32xf32> to vector<16x32xf32>
    %291 = arith.addf %289, %290 : vector<16x32xf32>
    %c1_115 = arith.constant 1 : index
    %c0_116 = arith.constant 0 : index
    %c0_117 = arith.constant 0 : index
    %292 = vector.load %arg19[%c1_115, %c0_116, %c0_117] : memref<3x32x32xbf16, #tpu.memory_space<vmem>>, vector<1x32x32xbf16>
    %293 = vector.shape_cast %292 : vector<1x32x32xbf16> to vector<32x32xbf16>
    %c1_118 = arith.constant 1 : index
    %c0_119 = arith.constant 0 : index
    %c0_120 = arith.constant 0 : index
    %294 = vector.load %arg20[%c1_118, %c0_119, %c0_120] : memref<3x1x32xf32, #tpu.memory_space<vmem>>, vector<1x1x32xf32>
    %295 = vector.shape_cast %294 : vector<1x1x32xf32> to vector<1x32xf32>
    %296 = arith.truncf %291 : vector<16x32xf32> to vector<16x32xbf16>
    %cst_121 = arith.constant dense<0.000000e+00> : vector<16x32xf32>
    %297 = tpu.matmul %296, %293, %cst_121 {dimension_numbers = #tpu.dot_dimension_numbers<[1], [0], [0], [1], [0, 0, 1, 1], [], []>} : vector<16x32xbf16>, vector<32x32xbf16>, vector<16x32xf32> -> vector<16x32xf32>
    %298 = vector.broadcast %295 : vector<1x32xf32> to vector<16x32xf32>
    %299 = arith.addf %297, %298 : vector<16x32xf32>
    %300 = arith.truncf %299 : vector<16x32xf32> to vector<16x32xbf16>
    %c1_122 = arith.constant 1 : index
    %c0_123 = arith.constant 0 : index
    %c0_124 = arith.constant 0 : index
    %301 = vector.load %arg21[%c1_122, %c0_123, %c0_124] : memref<3x32x64xbf16, #tpu.memory_space<vmem>>, vector<1x32x64xbf16>
    %302 = vector.shape_cast %301 : vector<1x32x64xbf16> to vector<32x64xbf16>
    %c1_125 = arith.constant 1 : index
    %c0_126 = arith.constant 0 : index
    %c0_127 = arith.constant 0 : index
    %303 = vector.load %arg22[%c1_125, %c0_126, %c0_127] : memref<3x1x64xf32, #tpu.memory_space<vmem>>, vector<1x1x64xf32>
    %304 = vector.shape_cast %303 : vector<1x1x64xf32> to vector<1x64xf32>
    %305 = arith.truncf %22 : vector<32x32xf32> to vector<32x32xbf16>
    %cst_128 = arith.constant dense<0.000000e+00> : vector<32x64xf32>
    %306 = tpu.matmul %305, %302, %cst_128 {dimension_numbers = #tpu.dot_dimension_numbers<[1], [0], [0], [1], [0, 0, 1, 1], [], []>} : vector<32x32xbf16>, vector<32x64xbf16>, vector<32x64xf32> -> vector<32x64xf32>
    %307 = vector.broadcast %304 : vector<1x64xf32> to vector<32x64xf32>
    %308 = arith.addf %306, %307 : vector<32x64xf32>
    %309 = arith.truncf %308 : vector<32x64xf32> to vector<32x64xbf16>
    %310 = vector.extract_strided_slice %300 {offsets = [0, 0], sizes = [8, 8], strides = [1, 1]} : vector<16x32xbf16> to vector<8x8xbf16>
    %311 = vector.extract_strided_slice %309 {offsets = [0, 0], sizes = [16, 8], strides = [1, 1]} : vector<32x64xbf16> to vector<16x8xbf16>
    %312 = vector.extract_strided_slice %309 {offsets = [0, 32], sizes = [16, 8], strides = [1, 1]} : vector<32x64xbf16> to vector<16x8xbf16>
    %cst_129 = arith.constant dense<0.000000e+00> : vector<8x16xf32>
    %313 = tpu.matmul %310, %311, %cst_129 {dimension_numbers = #tpu.dot_dimension_numbers<[1], [1], [0], [0], [0, 0, 1, 0], [], []>} : vector<8x8xbf16>, vector<16x8xbf16>, vector<8x16xf32> -> vector<8x16xf32>
    %cst_130 = arith.constant dense<0xFF800000> : vector<8xf32>
    %314 = vector.multi_reduction <maximumf>, %313, %cst_130 [1] : vector<8x16xf32> to vector<8xf32>
    %315 = vector.shape_cast %314 : vector<8xf32> to vector<8x1xf32>
    %316 = vector.broadcast %315 : vector<8x1xf32> to vector<8x16xf32>
    %317 = arith.subf %313, %316 : vector<8x16xf32>
    %318 = math.exp %317 : vector<8x16xf32>
    %cst_131 = arith.constant dense<0.000000e+00> : vector<8xf32>
    %319 = vector.multi_reduction <add>, %318, %cst_131 [1] : vector<8x16xf32> to vector<8xf32>
    %320 = vector.shape_cast %319 : vector<8xf32> to vector<8x1xf32>
    %321 = tpu.reciprocal %320 {approx = true} : vector<8x1xf32> -> vector<8x1xf32>
    %322 = vector.broadcast %321 : vector<8x1xf32> to vector<8x16xf32>
    %323 = arith.mulf %318, %322 : vector<8x16xf32>
    %324 = arith.truncf %323 : vector<8x16xf32> to vector<8x16xbf16>
    %cst_132 = arith.constant dense<0.000000e+00> : vector<8x8xf32>
    %325 = tpu.matmul %324, %312, %cst_132 {dimension_numbers = #tpu.dot_dimension_numbers<[1], [0], [0], [1], [0, 0, 1, 1], [], []>} : vector<8x16xbf16>, vector<16x8xbf16>, vector<8x8xf32> -> vector<8x8xf32>
    %326 = vector.extract_strided_slice %300 {offsets = [0, 8], sizes = [8, 8], strides = [1, 1]} : vector<16x32xbf16> to vector<8x8xbf16>
    %327 = vector.extract_strided_slice %309 {offsets = [0, 8], sizes = [16, 8], strides = [1, 1]} : vector<32x64xbf16> to vector<16x8xbf16>
    %328 = vector.extract_strided_slice %309 {offsets = [0, 40], sizes = [16, 8], strides = [1, 1]} : vector<32x64xbf16> to vector<16x8xbf16>
    %cst_133 = arith.constant dense<0.000000e+00> : vector<8x16xf32>
    %329 = tpu.matmul %326, %327, %cst_133 {dimension_numbers = #tpu.dot_dimension_numbers<[1], [1], [0], [0], [0, 0, 1, 0], [], []>} : vector<8x8xbf16>, vector<16x8xbf16>, vector<8x16xf32> -> vector<8x16xf32>
    %cst_134 = arith.constant dense<0xFF800000> : vector<8xf32>
    %330 = vector.multi_reduction <maximumf>, %329, %cst_134 [1] : vector<8x16xf32> to vector<8xf32>
    %331 = vector.shape_cast %330 : vector<8xf32> to vector<8x1xf32>
    %332 = vector.broadcast %331 : vector<8x1xf32> to vector<8x16xf32>
    %333 = arith.subf %329, %332 : vector<8x16xf32>
    %334 = math.exp %333 : vector<8x16xf32>
    %cst_135 = arith.constant dense<0.000000e+00> : vector<8xf32>
    %335 = vector.multi_reduction <add>, %334, %cst_135 [1] : vector<8x16xf32> to vector<8xf32>
    %336 = vector.shape_cast %335 : vector<8xf32> to vector<8x1xf32>
    %337 = tpu.reciprocal %336 {approx = true} : vector<8x1xf32> -> vector<8x1xf32>
    %338 = vector.broadcast %337 : vector<8x1xf32> to vector<8x16xf32>
    %339 = arith.mulf %334, %338 : vector<8x16xf32>
    %340 = arith.truncf %339 : vector<8x16xf32> to vector<8x16xbf16>
    %cst_136 = arith.constant dense<0.000000e+00> : vector<8x8xf32>
    %341 = tpu.matmul %340, %328, %cst_136 {dimension_numbers = #tpu.dot_dimension_numbers<[1], [0], [0], [1], [0, 0, 1, 1], [], []>} : vector<8x16xbf16>, vector<16x8xbf16>, vector<8x8xf32> -> vector<8x8xf32>
    %342 = vector.extract_strided_slice %300 {offsets = [0, 16], sizes = [8, 8], strides = [1, 1]} : vector<16x32xbf16> to vector<8x8xbf16>
    %343 = vector.extract_strided_slice %309 {offsets = [0, 16], sizes = [16, 8], strides = [1, 1]} : vector<32x64xbf16> to vector<16x8xbf16>
    %344 = vector.extract_strided_slice %309 {offsets = [0, 48], sizes = [16, 8], strides = [1, 1]} : vector<32x64xbf16> to vector<16x8xbf16>
    %cst_137 = arith.constant dense<0.000000e+00> : vector<8x16xf32>
    %345 = tpu.matmul %342, %343, %cst_137 {dimension_numbers = #tpu.dot_dimension_numbers<[1], [1], [0], [0], [0, 0, 1, 0], [], []>} : vector<8x8xbf16>, vector<16x8xbf16>, vector<8x16xf32> -> vector<8x16xf32>
    %cst_138 = arith.constant dense<0xFF800000> : vector<8xf32>
    %346 = vector.multi_reduction <maximumf>, %345, %cst_138 [1] : vector<8x16xf32> to vector<8xf32>
    %347 = vector.shape_cast %346 : vector<8xf32> to vector<8x1xf32>
    %348 = vector.broadcast %347 : vector<8x1xf32> to vector<8x16xf32>
    %349 = arith.subf %345, %348 : vector<8x16xf32>
    %350 = math.exp %349 : vector<8x16xf32>
    %cst_139 = arith.constant dense<0.000000e+00> : vector<8xf32>
    %351 = vector.multi_reduction <add>, %350, %cst_139 [1] : vector<8x16xf32> to vector<8xf32>
    %352 = vector.shape_cast %351 : vector<8xf32> to vector<8x1xf32>
    %353 = tpu.reciprocal %352 {approx = true} : vector<8x1xf32> -> vector<8x1xf32>
    %354 = vector.broadcast %353 : vector<8x1xf32> to vector<8x16xf32>
    %355 = arith.mulf %350, %354 : vector<8x16xf32>
    %356 = arith.truncf %355 : vector<8x16xf32> to vector<8x16xbf16>
    %cst_140 = arith.constant dense<0.000000e+00> : vector<8x8xf32>
    %357 = tpu.matmul %356, %344, %cst_140 {dimension_numbers = #tpu.dot_dimension_numbers<[1], [0], [0], [1], [0, 0, 1, 1], [], []>} : vector<8x16xbf16>, vector<16x8xbf16>, vector<8x8xf32> -> vector<8x8xf32>
    %358 = vector.extract_strided_slice %300 {offsets = [0, 24], sizes = [8, 8], strides = [1, 1]} : vector<16x32xbf16> to vector<8x8xbf16>
    %359 = vector.extract_strided_slice %309 {offsets = [0, 24], sizes = [16, 8], strides = [1, 1]} : vector<32x64xbf16> to vector<16x8xbf16>
    %360 = vector.extract_strided_slice %309 {offsets = [0, 56], sizes = [16, 8], strides = [1, 1]} : vector<32x64xbf16> to vector<16x8xbf16>
    %cst_141 = arith.constant dense<0.000000e+00> : vector<8x16xf32>
    %361 = tpu.matmul %358, %359, %cst_141 {dimension_numbers = #tpu.dot_dimension_numbers<[1], [1], [0], [0], [0, 0, 1, 0], [], []>} : vector<8x8xbf16>, vector<16x8xbf16>, vector<8x16xf32> -> vector<8x16xf32>
    %cst_142 = arith.constant dense<0xFF800000> : vector<8xf32>
    %362 = vector.multi_reduction <maximumf>, %361, %cst_142 [1] : vector<8x16xf32> to vector<8xf32>
    %363 = vector.shape_cast %362 : vector<8xf32> to vector<8x1xf32>
    %364 = vector.broadcast %363 : vector<8x1xf32> to vector<8x16xf32>
    %365 = arith.subf %361, %364 : vector<8x16xf32>
    %366 = math.exp %365 : vector<8x16xf32>
    %cst_143 = arith.constant dense<0.000000e+00> : vector<8xf32>
    %367 = vector.multi_reduction <add>, %366, %cst_143 [1] : vector<8x16xf32> to vector<8xf32>
    %368 = vector.shape_cast %367 : vector<8xf32> to vector<8x1xf32>
    %369 = tpu.reciprocal %368 {approx = true} : vector<8x1xf32> -> vector<8x1xf32>
    %370 = vector.broadcast %369 : vector<8x1xf32> to vector<8x16xf32>
    %371 = arith.mulf %366, %370 : vector<8x16xf32>
    %372 = arith.truncf %371 : vector<8x16xf32> to vector<8x16xbf16>
    %cst_144 = arith.constant dense<0.000000e+00> : vector<8x8xf32>
    %373 = tpu.matmul %372, %360, %cst_144 {dimension_numbers = #tpu.dot_dimension_numbers<[1], [0], [0], [1], [0, 0, 1, 1], [], []>} : vector<8x16xbf16>, vector<16x8xbf16>, vector<8x8xf32> -> vector<8x8xf32>
    %374 = tpu.concatenate %325, %341, %357, %373 in 1 : vector<8x8xf32>, vector<8x8xf32>, vector<8x8xf32>, vector<8x8xf32> -> vector<8x32xf32>
    %375 = vector.extract_strided_slice %300 {offsets = [8, 0], sizes = [8, 8], strides = [1, 1]} : vector<16x32xbf16> to vector<8x8xbf16>
    %376 = vector.extract_strided_slice %309 {offsets = [16, 0], sizes = [16, 8], strides = [1, 1]} : vector<32x64xbf16> to vector<16x8xbf16>
    %377 = vector.extract_strided_slice %309 {offsets = [16, 32], sizes = [16, 8], strides = [1, 1]} : vector<32x64xbf16> to vector<16x8xbf16>
    %cst_145 = arith.constant dense<0.000000e+00> : vector<8x16xf32>
    %378 = tpu.matmul %375, %376, %cst_145 {dimension_numbers = #tpu.dot_dimension_numbers<[1], [1], [0], [0], [0, 0, 1, 0], [], []>} : vector<8x8xbf16>, vector<16x8xbf16>, vector<8x16xf32> -> vector<8x16xf32>
    %cst_146 = arith.constant dense<0xFF800000> : vector<8xf32>
    %379 = vector.multi_reduction <maximumf>, %378, %cst_146 [1] : vector<8x16xf32> to vector<8xf32>
    %380 = vector.shape_cast %379 : vector<8xf32> to vector<8x1xf32>
    %381 = vector.broadcast %380 : vector<8x1xf32> to vector<8x16xf32>
    %382 = arith.subf %378, %381 : vector<8x16xf32>
    %383 = math.exp %382 : vector<8x16xf32>
    %cst_147 = arith.constant dense<0.000000e+00> : vector<8xf32>
    %384 = vector.multi_reduction <add>, %383, %cst_147 [1] : vector<8x16xf32> to vector<8xf32>
    %385 = vector.shape_cast %384 : vector<8xf32> to vector<8x1xf32>
    %386 = tpu.reciprocal %385 {approx = true} : vector<8x1xf32> -> vector<8x1xf32>
    %387 = vector.broadcast %386 : vector<8x1xf32> to vector<8x16xf32>
    %388 = arith.mulf %383, %387 : vector<8x16xf32>
    %389 = arith.truncf %388 : vector<8x16xf32> to vector<8x16xbf16>
    %cst_148 = arith.constant dense<0.000000e+00> : vector<8x8xf32>
    %390 = tpu.matmul %389, %377, %cst_148 {dimension_numbers = #tpu.dot_dimension_numbers<[1], [0], [0], [1], [0, 0, 1, 1], [], []>} : vector<8x16xbf16>, vector<16x8xbf16>, vector<8x8xf32> -> vector<8x8xf32>
    %391 = vector.extract_strided_slice %300 {offsets = [8, 8], sizes = [8, 8], strides = [1, 1]} : vector<16x32xbf16> to vector<8x8xbf16>
    %392 = vector.extract_strided_slice %309 {offsets = [16, 8], sizes = [16, 8], strides = [1, 1]} : vector<32x64xbf16> to vector<16x8xbf16>
    %393 = vector.extract_strided_slice %309 {offsets = [16, 40], sizes = [16, 8], strides = [1, 1]} : vector<32x64xbf16> to vector<16x8xbf16>
    %cst_149 = arith.constant dense<0.000000e+00> : vector<8x16xf32>
    %394 = tpu.matmul %391, %392, %cst_149 {dimension_numbers = #tpu.dot_dimension_numbers<[1], [1], [0], [0], [0, 0, 1, 0], [], []>} : vector<8x8xbf16>, vector<16x8xbf16>, vector<8x16xf32> -> vector<8x16xf32>
    %cst_150 = arith.constant dense<0xFF800000> : vector<8xf32>
    %395 = vector.multi_reduction <maximumf>, %394, %cst_150 [1] : vector<8x16xf32> to vector<8xf32>
    %396 = vector.shape_cast %395 : vector<8xf32> to vector<8x1xf32>
    %397 = vector.broadcast %396 : vector<8x1xf32> to vector<8x16xf32>
    %398 = arith.subf %394, %397 : vector<8x16xf32>
    %399 = math.exp %398 : vector<8x16xf32>
    %cst_151 = arith.constant dense<0.000000e+00> : vector<8xf32>
    %400 = vector.multi_reduction <add>, %399, %cst_151 [1] : vector<8x16xf32> to vector<8xf32>
    %401 = vector.shape_cast %400 : vector<8xf32> to vector<8x1xf32>
    %402 = tpu.reciprocal %401 {approx = true} : vector<8x1xf32> -> vector<8x1xf32>
    %403 = vector.broadcast %402 : vector<8x1xf32> to vector<8x16xf32>
    %404 = arith.mulf %399, %403 : vector<8x16xf32>
    %405 = arith.truncf %404 : vector<8x16xf32> to vector<8x16xbf16>
    %cst_152 = arith.constant dense<0.000000e+00> : vector<8x8xf32>
    %406 = tpu.matmul %405, %393, %cst_152 {dimension_numbers = #tpu.dot_dimension_numbers<[1], [0], [0], [1], [0, 0, 1, 1], [], []>} : vector<8x16xbf16>, vector<16x8xbf16>, vector<8x8xf32> -> vector<8x8xf32>
    %407 = vector.extract_strided_slice %300 {offsets = [8, 16], sizes = [8, 8], strides = [1, 1]} : vector<16x32xbf16> to vector<8x8xbf16>
    %408 = vector.extract_strided_slice %309 {offsets = [16, 16], sizes = [16, 8], strides = [1, 1]} : vector<32x64xbf16> to vector<16x8xbf16>
    %409 = vector.extract_strided_slice %309 {offsets = [16, 48], sizes = [16, 8], strides = [1, 1]} : vector<32x64xbf16> to vector<16x8xbf16>
    %cst_153 = arith.constant dense<0.000000e+00> : vector<8x16xf32>
    %410 = tpu.matmul %407, %408, %cst_153 {dimension_numbers = #tpu.dot_dimension_numbers<[1], [1], [0], [0], [0, 0, 1, 0], [], []>} : vector<8x8xbf16>, vector<16x8xbf16>, vector<8x16xf32> -> vector<8x16xf32>
    %cst_154 = arith.constant dense<0xFF800000> : vector<8xf32>
    %411 = vector.multi_reduction <maximumf>, %410, %cst_154 [1] : vector<8x16xf32> to vector<8xf32>
    %412 = vector.shape_cast %411 : vector<8xf32> to vector<8x1xf32>
    %413 = vector.broadcast %412 : vector<8x1xf32> to vector<8x16xf32>
    %414 = arith.subf %410, %413 : vector<8x16xf32>
    %415 = math.exp %414 : vector<8x16xf32>
    %cst_155 = arith.constant dense<0.000000e+00> : vector<8xf32>
    %416 = vector.multi_reduction <add>, %415, %cst_155 [1] : vector<8x16xf32> to vector<8xf32>
    %417 = vector.shape_cast %416 : vector<8xf32> to vector<8x1xf32>
    %418 = tpu.reciprocal %417 {approx = true} : vector<8x1xf32> -> vector<8x1xf32>
    %419 = vector.broadcast %418 : vector<8x1xf32> to vector<8x16xf32>
    %420 = arith.mulf %415, %419 : vector<8x16xf32>
    %421 = arith.truncf %420 : vector<8x16xf32> to vector<8x16xbf16>
    %cst_156 = arith.constant dense<0.000000e+00> : vector<8x8xf32>
    %422 = tpu.matmul %421, %409, %cst_156 {dimension_numbers = #tpu.dot_dimension_numbers<[1], [0], [0], [1], [0, 0, 1, 1], [], []>} : vector<8x16xbf16>, vector<16x8xbf16>, vector<8x8xf32> -> vector<8x8xf32>
    %423 = vector.extract_strided_slice %300 {offsets = [8, 24], sizes = [8, 8], strides = [1, 1]} : vector<16x32xbf16> to vector<8x8xbf16>
    %424 = vector.extract_strided_slice %309 {offsets = [16, 24], sizes = [16, 8], strides = [1, 1]} : vector<32x64xbf16> to vector<16x8xbf16>
    %425 = vector.extract_strided_slice %309 {offsets = [16, 56], sizes = [16, 8], strides = [1, 1]} : vector<32x64xbf16> to vector<16x8xbf16>
    %cst_157 = arith.constant dense<0.000000e+00> : vector<8x16xf32>
    %426 = tpu.matmul %423, %424, %cst_157 {dimension_numbers = #tpu.dot_dimension_numbers<[1], [1], [0], [0], [0, 0, 1, 0], [], []>} : vector<8x8xbf16>, vector<16x8xbf16>, vector<8x16xf32> -> vector<8x16xf32>
    %cst_158 = arith.constant dense<0xFF800000> : vector<8xf32>
    %427 = vector.multi_reduction <maximumf>, %426, %cst_158 [1] : vector<8x16xf32> to vector<8xf32>
    %428 = vector.shape_cast %427 : vector<8xf32> to vector<8x1xf32>
    %429 = vector.broadcast %428 : vector<8x1xf32> to vector<8x16xf32>
    %430 = arith.subf %426, %429 : vector<8x16xf32>
    %431 = math.exp %430 : vector<8x16xf32>
    %cst_159 = arith.constant dense<0.000000e+00> : vector<8xf32>
    %432 = vector.multi_reduction <add>, %431, %cst_159 [1] : vector<8x16xf32> to vector<8xf32>
    %433 = vector.shape_cast %432 : vector<8xf32> to vector<8x1xf32>
    %434 = tpu.reciprocal %433 {approx = true} : vector<8x1xf32> -> vector<8x1xf32>
    %435 = vector.broadcast %434 : vector<8x1xf32> to vector<8x16xf32>
    %436 = arith.mulf %431, %435 : vector<8x16xf32>
    %437 = arith.truncf %436 : vector<8x16xf32> to vector<8x16xbf16>
    %cst_160 = arith.constant dense<0.000000e+00> : vector<8x8xf32>
    %438 = tpu.matmul %437, %425, %cst_160 {dimension_numbers = #tpu.dot_dimension_numbers<[1], [0], [0], [1], [0, 0, 1, 1], [], []>} : vector<8x16xbf16>, vector<16x8xbf16>, vector<8x8xf32> -> vector<8x8xf32>
    %439 = tpu.concatenate %390, %406, %422, %438 in 1 : vector<8x8xf32>, vector<8x8xf32>, vector<8x8xf32>, vector<8x8xf32> -> vector<8x32xf32>
    %440 = tpu.concatenate %374, %439 in 0 : vector<8x32xf32>, vector<8x32xf32> -> vector<16x32xf32>
    %c1_161 = arith.constant 1 : index
    %c0_162 = arith.constant 0 : index
    %c0_163 = arith.constant 0 : index
    %441 = vector.load %arg23[%c1_161, %c0_162, %c0_163] : memref<3x32x32xbf16, #tpu.memory_space<vmem>>, vector<1x32x32xbf16>
    %442 = vector.shape_cast %441 : vector<1x32x32xbf16> to vector<32x32xbf16>
    %c1_164 = arith.constant 1 : index
    %c0_165 = arith.constant 0 : index
    %c0_166 = arith.constant 0 : index
    %443 = vector.load %arg24[%c1_164, %c0_165, %c0_166] : memref<3x1x32xf32, #tpu.memory_space<vmem>>, vector<1x1x32xf32>
    %444 = vector.shape_cast %443 : vector<1x1x32xf32> to vector<1x32xf32>
    %445 = arith.truncf %440 : vector<16x32xf32> to vector<16x32xbf16>
    %cst_167 = arith.constant dense<0.000000e+00> : vector<16x32xf32>
    %446 = tpu.matmul %445, %442, %cst_167 {dimension_numbers = #tpu.dot_dimension_numbers<[1], [0], [0], [1], [0, 0, 1, 1], [], []>} : vector<16x32xbf16>, vector<32x32xbf16>, vector<16x32xf32> -> vector<16x32xf32>
    %447 = vector.broadcast %444 : vector<1x32xf32> to vector<16x32xf32>
    %448 = arith.addf %446, %447 : vector<16x32xf32>
    %449 = arith.addf %265, %448 : vector<16x32xf32>
    %c1_168 = arith.constant 1 : index
    %c0_169 = arith.constant 0 : index
    %c0_170 = arith.constant 0 : index
    %450 = vector.load %arg25[%c1_168, %c0_169, %c0_170] : memref<3x1x32xf32, #tpu.memory_space<vmem>>, vector<1x1x32xf32>
    %451 = vector.shape_cast %450 : vector<1x1x32xf32> to vector<1x32xf32>
    %c1_171 = arith.constant 1 : index
    %c0_172 = arith.constant 0 : index
    %c0_173 = arith.constant 0 : index
    %452 = vector.load %arg26[%c1_171, %c0_172, %c0_173] : memref<3x1x32xf32, #tpu.memory_space<vmem>>, vector<1x1x32xf32>
    %453 = vector.shape_cast %452 : vector<1x1x32xf32> to vector<1x32xf32>
    %cst_174 = arith.constant dense<0.000000e+00> : vector<16xf32>
    %454 = vector.multi_reduction <add>, %449, %cst_174 [1] : vector<16x32xf32> to vector<16xf32>
    %455 = vector.shape_cast %454 : vector<16xf32> to vector<16x1xf32>
    %cst_175 = arith.constant 3.200000e+01 : f32
    %456 = vector.broadcast %cst_175 : f32 to vector<16x1xf32>
    %457 = arith.divf %455, %456 : vector<16x1xf32>
    %458 = vector.broadcast %457 : vector<16x1xf32> to vector<16x32xf32>
    %459 = arith.subf %449, %458 : vector<16x32xf32>
    %460 = arith.mulf %459, %459 : vector<16x32xf32>
    %cst_176 = arith.constant dense<0.000000e+00> : vector<16xf32>
    %461 = vector.multi_reduction <add>, %460, %cst_176 [1] : vector<16x32xf32> to vector<16xf32>
    %462 = vector.shape_cast %461 : vector<16xf32> to vector<16x1xf32>
    %cst_177 = arith.constant 3.200000e+01 : f32
    %463 = vector.broadcast %cst_177 : f32 to vector<16x1xf32>
    %464 = arith.divf %462, %463 : vector<16x1xf32>
    %465 = vector.broadcast %457 : vector<16x1xf32> to vector<16x32xf32>
    %466 = arith.subf %449, %465 : vector<16x32xf32>
    %cst_178 = arith.constant 9.99999996E-13 : f32
    %467 = vector.broadcast %cst_178 : f32 to vector<16x1xf32>
    %468 = arith.addf %464, %467 : vector<16x1xf32>
    %469 = math.rsqrt %468 : vector<16x1xf32>
    %470 = vector.broadcast %469 : vector<16x1xf32> to vector<16x32xf32>
    %471 = arith.mulf %466, %470 : vector<16x32xf32>
    %472 = vector.broadcast %451 : vector<1x32xf32> to vector<16x32xf32>
    %473 = arith.mulf %471, %472 : vector<16x32xf32>
    %474 = vector.broadcast %453 : vector<1x32xf32> to vector<16x32xf32>
    %475 = arith.addf %473, %474 : vector<16x32xf32>
    %c1_179 = arith.constant 1 : index
    %c0_180 = arith.constant 0 : index
    %c0_181 = arith.constant 0 : index
    %476 = vector.load %arg27[%c1_179, %c0_180, %c0_181] : memref<3x32x64xbf16, #tpu.memory_space<vmem>>, vector<1x32x64xbf16>
    %477 = vector.shape_cast %476 : vector<1x32x64xbf16> to vector<32x64xbf16>
    %c1_182 = arith.constant 1 : index
    %c0_183 = arith.constant 0 : index
    %c0_184 = arith.constant 0 : index
    %478 = vector.load %arg28[%c1_182, %c0_183, %c0_184] : memref<3x1x64xf32, #tpu.memory_space<vmem>>, vector<1x1x64xf32>
    %479 = vector.shape_cast %478 : vector<1x1x64xf32> to vector<1x64xf32>
    %480 = arith.truncf %475 : vector<16x32xf32> to vector<16x32xbf16>
    %cst_185 = arith.constant dense<0.000000e+00> : vector<16x64xf32>
    %481 = tpu.matmul %480, %477, %cst_185 {dimension_numbers = #tpu.dot_dimension_numbers<[1], [0], [0], [1], [0, 0, 1, 1], [], []>} : vector<16x32xbf16>, vector<32x64xbf16>, vector<16x64xf32> -> vector<16x64xf32>
    %482 = vector.broadcast %479 : vector<1x64xf32> to vector<16x64xf32>
    %483 = arith.addf %481, %482 : vector<16x64xf32>
    %484 = arith.mulf %483, %483 : vector<16x64xf32>
    %485 = arith.mulf %483, %484 : vector<16x64xf32>
    %cst_186 = arith.constant 4.471500e-02 : f32
    %486 = vector.broadcast %cst_186 : f32 to vector<16x64xf32>
    %487 = arith.mulf %486, %485 : vector<16x64xf32>
    %488 = arith.addf %483, %487 : vector<16x64xf32>
    %cst_187 = arith.constant 0.797884583 : f32
    %489 = vector.broadcast %cst_187 : f32 to vector<16x64xf32>
    %490 = arith.mulf %489, %488 : vector<16x64xf32>
    %491 = math.tanh %490 : vector<16x64xf32>
    %cst_188 = arith.constant 1.000000e+00 : f32
    %492 = vector.broadcast %cst_188 : f32 to vector<16x64xf32>
    %493 = arith.addf %492, %491 : vector<16x64xf32>
    %cst_189 = arith.constant 5.000000e-01 : f32
    %494 = vector.broadcast %cst_189 : f32 to vector<16x64xf32>
    %495 = arith.mulf %494, %493 : vector<16x64xf32>
    %496 = arith.mulf %483, %495 : vector<16x64xf32>
    %c1_190 = arith.constant 1 : index
    %c0_191 = arith.constant 0 : index
    %c0_192 = arith.constant 0 : index
    %497 = vector.load %arg29[%c1_190, %c0_191, %c0_192] : memref<3x64x32xbf16, #tpu.memory_space<vmem>>, vector<1x64x32xbf16>
    %498 = vector.shape_cast %497 : vector<1x64x32xbf16> to vector<64x32xbf16>
    %c1_193 = arith.constant 1 : index
    %c0_194 = arith.constant 0 : index
    %c0_195 = arith.constant 0 : index
    %499 = vector.load %arg30[%c1_193, %c0_194, %c0_195] : memref<3x1x32xf32, #tpu.memory_space<vmem>>, vector<1x1x32xf32>
    %500 = vector.shape_cast %499 : vector<1x1x32xf32> to vector<1x32xf32>
    %501 = arith.truncf %496 : vector<16x64xf32> to vector<16x64xbf16>
    %cst_196 = arith.constant dense<0.000000e+00> : vector<16x32xf32>
    %502 = tpu.matmul %501, %498, %cst_196 {dimension_numbers = #tpu.dot_dimension_numbers<[1], [0], [0], [1], [0, 0, 1, 1], [], []>} : vector<16x64xbf16>, vector<64x32xbf16>, vector<16x32xf32> -> vector<16x32xf32>
    %503 = vector.broadcast %500 : vector<1x32xf32> to vector<16x32xf32>
    %504 = arith.addf %502, %503 : vector<16x32xf32>
    %505 = arith.addf %449, %504 : vector<16x32xf32>
    %c2 = arith.constant 2 : index
    %c0_197 = arith.constant 0 : index
    %c0_198 = arith.constant 0 : index
    %506 = vector.load %arg17[%c2, %c0_197, %c0_198] : memref<3x1x32xf32, #tpu.memory_space<vmem>>, vector<1x1x32xf32>
    %507 = vector.shape_cast %506 : vector<1x1x32xf32> to vector<1x32xf32>
    %c2_199 = arith.constant 2 : index
    %c0_200 = arith.constant 0 : index
    %c0_201 = arith.constant 0 : index
    %508 = vector.load %arg18[%c2_199, %c0_200, %c0_201] : memref<3x1x32xf32, #tpu.memory_space<vmem>>, vector<1x1x32xf32>
    %509 = vector.shape_cast %508 : vector<1x1x32xf32> to vector<1x32xf32>
    %cst_202 = arith.constant dense<0.000000e+00> : vector<16xf32>
    %510 = vector.multi_reduction <add>, %505, %cst_202 [1] : vector<16x32xf32> to vector<16xf32>
    %511 = vector.shape_cast %510 : vector<16xf32> to vector<16x1xf32>
    %cst_203 = arith.constant 3.200000e+01 : f32
    %512 = vector.broadcast %cst_203 : f32 to vector<16x1xf32>
    %513 = arith.divf %511, %512 : vector<16x1xf32>
    %514 = vector.broadcast %513 : vector<16x1xf32> to vector<16x32xf32>
    %515 = arith.subf %505, %514 : vector<16x32xf32>
    %516 = arith.mulf %515, %515 : vector<16x32xf32>
    %cst_204 = arith.constant dense<0.000000e+00> : vector<16xf32>
    %517 = vector.multi_reduction <add>, %516, %cst_204 [1] : vector<16x32xf32> to vector<16xf32>
    %518 = vector.shape_cast %517 : vector<16xf32> to vector<16x1xf32>
    %cst_205 = arith.constant 3.200000e+01 : f32
    %519 = vector.broadcast %cst_205 : f32 to vector<16x1xf32>
    %520 = arith.divf %518, %519 : vector<16x1xf32>
    %521 = vector.broadcast %513 : vector<16x1xf32> to vector<16x32xf32>
    %522 = arith.subf %505, %521 : vector<16x32xf32>
    %cst_206 = arith.constant 9.99999996E-13 : f32
    %523 = vector.broadcast %cst_206 : f32 to vector<16x1xf32>
    %524 = arith.addf %520, %523 : vector<16x1xf32>
    %525 = math.rsqrt %524 : vector<16x1xf32>
    %526 = vector.broadcast %525 : vector<16x1xf32> to vector<16x32xf32>
    %527 = arith.mulf %522, %526 : vector<16x32xf32>
    %528 = vector.broadcast %507 : vector<1x32xf32> to vector<16x32xf32>
    %529 = arith.mulf %527, %528 : vector<16x32xf32>
    %530 = vector.broadcast %509 : vector<1x32xf32> to vector<16x32xf32>
    %531 = arith.addf %529, %530 : vector<16x32xf32>
    %c2_207 = arith.constant 2 : index
    %c0_208 = arith.constant 0 : index
    %c0_209 = arith.constant 0 : index
    %532 = vector.load %arg19[%c2_207, %c0_208, %c0_209] : memref<3x32x32xbf16, #tpu.memory_space<vmem>>, vector<1x32x32xbf16>
    %533 = vector.shape_cast %532 : vector<1x32x32xbf16> to vector<32x32xbf16>
    %c2_210 = arith.constant 2 : index
    %c0_211 = arith.constant 0 : index
    %c0_212 = arith.constant 0 : index
    %534 = vector.load %arg20[%c2_210, %c0_211, %c0_212] : memref<3x1x32xf32, #tpu.memory_space<vmem>>, vector<1x1x32xf32>
    %535 = vector.shape_cast %534 : vector<1x1x32xf32> to vector<1x32xf32>
    %536 = arith.truncf %531 : vector<16x32xf32> to vector<16x32xbf16>
    %cst_213 = arith.constant dense<0.000000e+00> : vector<16x32xf32>
    %537 = tpu.matmul %536, %533, %cst_213 {dimension_numbers = #tpu.dot_dimension_numbers<[1], [0], [0], [1], [0, 0, 1, 1], [], []>} : vector<16x32xbf16>, vector<32x32xbf16>, vector<16x32xf32> -> vector<16x32xf32>
    %538 = vector.broadcast %535 : vector<1x32xf32> to vector<16x32xf32>
    %539 = arith.addf %537, %538 : vector<16x32xf32>
    %540 = arith.truncf %539 : vector<16x32xf32> to vector<16x32xbf16>
    %c2_214 = arith.constant 2 : index
    %c0_215 = arith.constant 0 : index
    %c0_216 = arith.constant 0 : index
    %541 = vector.load %arg21[%c2_214, %c0_215, %c0_216] : memref<3x32x64xbf16, #tpu.memory_space<vmem>>, vector<1x32x64xbf16>
    %542 = vector.shape_cast %541 : vector<1x32x64xbf16> to vector<32x64xbf16>
    %c2_217 = arith.constant 2 : index
    %c0_218 = arith.constant 0 : index
    %c0_219 = arith.constant 0 : index
    %543 = vector.load %arg22[%c2_217, %c0_218, %c0_219] : memref<3x1x64xf32, #tpu.memory_space<vmem>>, vector<1x1x64xf32>
    %544 = vector.shape_cast %543 : vector<1x1x64xf32> to vector<1x64xf32>
    %545 = arith.truncf %22 : vector<32x32xf32> to vector<32x32xbf16>
    %cst_220 = arith.constant dense<0.000000e+00> : vector<32x64xf32>
    %546 = tpu.matmul %545, %542, %cst_220 {dimension_numbers = #tpu.dot_dimension_numbers<[1], [0], [0], [1], [0, 0, 1, 1], [], []>} : vector<32x32xbf16>, vector<32x64xbf16>, vector<32x64xf32> -> vector<32x64xf32>
    %547 = vector.broadcast %544 : vector<1x64xf32> to vector<32x64xf32>
    %548 = arith.addf %546, %547 : vector<32x64xf32>
    %549 = arith.truncf %548 : vector<32x64xf32> to vector<32x64xbf16>
    %550 = vector.extract_strided_slice %540 {offsets = [0, 0], sizes = [8, 8], strides = [1, 1]} : vector<16x32xbf16> to vector<8x8xbf16>
    %551 = vector.extract_strided_slice %549 {offsets = [0, 0], sizes = [16, 8], strides = [1, 1]} : vector<32x64xbf16> to vector<16x8xbf16>
    %552 = vector.extract_strided_slice %549 {offsets = [0, 32], sizes = [16, 8], strides = [1, 1]} : vector<32x64xbf16> to vector<16x8xbf16>
    %cst_221 = arith.constant dense<0.000000e+00> : vector<8x16xf32>
    %553 = tpu.matmul %550, %551, %cst_221 {dimension_numbers = #tpu.dot_dimension_numbers<[1], [1], [0], [0], [0, 0, 1, 0], [], []>} : vector<8x8xbf16>, vector<16x8xbf16>, vector<8x16xf32> -> vector<8x16xf32>
    %cst_222 = arith.constant dense<0xFF800000> : vector<8xf32>
    %554 = vector.multi_reduction <maximumf>, %553, %cst_222 [1] : vector<8x16xf32> to vector<8xf32>
    %555 = vector.shape_cast %554 : vector<8xf32> to vector<8x1xf32>
    %556 = vector.broadcast %555 : vector<8x1xf32> to vector<8x16xf32>
    %557 = arith.subf %553, %556 : vector<8x16xf32>
    %558 = math.exp %557 : vector<8x16xf32>
    %cst_223 = arith.constant dense<0.000000e+00> : vector<8xf32>
    %559 = vector.multi_reduction <add>, %558, %cst_223 [1] : vector<8x16xf32> to vector<8xf32>
    %560 = vector.shape_cast %559 : vector<8xf32> to vector<8x1xf32>
    %561 = tpu.reciprocal %560 {approx = true} : vector<8x1xf32> -> vector<8x1xf32>
    %562 = vector.broadcast %561 : vector<8x1xf32> to vector<8x16xf32>
    %563 = arith.mulf %558, %562 : vector<8x16xf32>
    %564 = arith.truncf %563 : vector<8x16xf32> to vector<8x16xbf16>
    %cst_224 = arith.constant dense<0.000000e+00> : vector<8x8xf32>
    %565 = tpu.matmul %564, %552, %cst_224 {dimension_numbers = #tpu.dot_dimension_numbers<[1], [0], [0], [1], [0, 0, 1, 1], [], []>} : vector<8x16xbf16>, vector<16x8xbf16>, vector<8x8xf32> -> vector<8x8xf32>
    %566 = vector.extract_strided_slice %540 {offsets = [0, 8], sizes = [8, 8], strides = [1, 1]} : vector<16x32xbf16> to vector<8x8xbf16>
    %567 = vector.extract_strided_slice %549 {offsets = [0, 8], sizes = [16, 8], strides = [1, 1]} : vector<32x64xbf16> to vector<16x8xbf16>
    %568 = vector.extract_strided_slice %549 {offsets = [0, 40], sizes = [16, 8], strides = [1, 1]} : vector<32x64xbf16> to vector<16x8xbf16>
    %cst_225 = arith.constant dense<0.000000e+00> : vector<8x16xf32>
    %569 = tpu.matmul %566, %567, %cst_225 {dimension_numbers = #tpu.dot_dimension_numbers<[1], [1], [0], [0], [0, 0, 1, 0], [], []>} : vector<8x8xbf16>, vector<16x8xbf16>, vector<8x16xf32> -> vector<8x16xf32>
    %cst_226 = arith.constant dense<0xFF800000> : vector<8xf32>
    %570 = vector.multi_reduction <maximumf>, %569, %cst_226 [1] : vector<8x16xf32> to vector<8xf32>
    %571 = vector.shape_cast %570 : vector<8xf32> to vector<8x1xf32>
    %572 = vector.broadcast %571 : vector<8x1xf32> to vector<8x16xf32>
    %573 = arith.subf %569, %572 : vector<8x16xf32>
    %574 = math.exp %573 : vector<8x16xf32>
    %cst_227 = arith.constant dense<0.000000e+00> : vector<8xf32>
    %575 = vector.multi_reduction <add>, %574, %cst_227 [1] : vector<8x16xf32> to vector<8xf32>
    %576 = vector.shape_cast %575 : vector<8xf32> to vector<8x1xf32>
    %577 = tpu.reciprocal %576 {approx = true} : vector<8x1xf32> -> vector<8x1xf32>
    %578 = vector.broadcast %577 : vector<8x1xf32> to vector<8x16xf32>
    %579 = arith.mulf %574, %578 : vector<8x16xf32>
    %580 = arith.truncf %579 : vector<8x16xf32> to vector<8x16xbf16>
    %cst_228 = arith.constant dense<0.000000e+00> : vector<8x8xf32>
    %581 = tpu.matmul %580, %568, %cst_228 {dimension_numbers = #tpu.dot_dimension_numbers<[1], [0], [0], [1], [0, 0, 1, 1], [], []>} : vector<8x16xbf16>, vector<16x8xbf16>, vector<8x8xf32> -> vector<8x8xf32>
    %582 = vector.extract_strided_slice %540 {offsets = [0, 16], sizes = [8, 8], strides = [1, 1]} : vector<16x32xbf16> to vector<8x8xbf16>
    %583 = vector.extract_strided_slice %549 {offsets = [0, 16], sizes = [16, 8], strides = [1, 1]} : vector<32x64xbf16> to vector<16x8xbf16>
    %584 = vector.extract_strided_slice %549 {offsets = [0, 48], sizes = [16, 8], strides = [1, 1]} : vector<32x64xbf16> to vector<16x8xbf16>
    %cst_229 = arith.constant dense<0.000000e+00> : vector<8x16xf32>
    %585 = tpu.matmul %582, %583, %cst_229 {dimension_numbers = #tpu.dot_dimension_numbers<[1], [1], [0], [0], [0, 0, 1, 0], [], []>} : vector<8x8xbf16>, vector<16x8xbf16>, vector<8x16xf32> -> vector<8x16xf32>
    %cst_230 = arith.constant dense<0xFF800000> : vector<8xf32>
    %586 = vector.multi_reduction <maximumf>, %585, %cst_230 [1] : vector<8x16xf32> to vector<8xf32>
    %587 = vector.shape_cast %586 : vector<8xf32> to vector<8x1xf32>
    %588 = vector.broadcast %587 : vector<8x1xf32> to vector<8x16xf32>
    %589 = arith.subf %585, %588 : vector<8x16xf32>
    %590 = math.exp %589 : vector<8x16xf32>
    %cst_231 = arith.constant dense<0.000000e+00> : vector<8xf32>
    %591 = vector.multi_reduction <add>, %590, %cst_231 [1] : vector<8x16xf32> to vector<8xf32>
    %592 = vector.shape_cast %591 : vector<8xf32> to vector<8x1xf32>
    %593 = tpu.reciprocal %592 {approx = true} : vector<8x1xf32> -> vector<8x1xf32>
    %594 = vector.broadcast %593 : vector<8x1xf32> to vector<8x16xf32>
    %595 = arith.mulf %590, %594 : vector<8x16xf32>
    %596 = arith.truncf %595 : vector<8x16xf32> to vector<8x16xbf16>
    %cst_232 = arith.constant dense<0.000000e+00> : vector<8x8xf32>
    %597 = tpu.matmul %596, %584, %cst_232 {dimension_numbers = #tpu.dot_dimension_numbers<[1], [0], [0], [1], [0, 0, 1, 1], [], []>} : vector<8x16xbf16>, vector<16x8xbf16>, vector<8x8xf32> -> vector<8x8xf32>
    %598 = vector.extract_strided_slice %540 {offsets = [0, 24], sizes = [8, 8], strides = [1, 1]} : vector<16x32xbf16> to vector<8x8xbf16>
    %599 = vector.extract_strided_slice %549 {offsets = [0, 24], sizes = [16, 8], strides = [1, 1]} : vector<32x64xbf16> to vector<16x8xbf16>
    %600 = vector.extract_strided_slice %549 {offsets = [0, 56], sizes = [16, 8], strides = [1, 1]} : vector<32x64xbf16> to vector<16x8xbf16>
    %cst_233 = arith.constant dense<0.000000e+00> : vector<8x16xf32>
    %601 = tpu.matmul %598, %599, %cst_233 {dimension_numbers = #tpu.dot_dimension_numbers<[1], [1], [0], [0], [0, 0, 1, 0], [], []>} : vector<8x8xbf16>, vector<16x8xbf16>, vector<8x16xf32> -> vector<8x16xf32>
    %cst_234 = arith.constant dense<0xFF800000> : vector<8xf32>
    %602 = vector.multi_reduction <maximumf>, %601, %cst_234 [1] : vector<8x16xf32> to vector<8xf32>
    %603 = vector.shape_cast %602 : vector<8xf32> to vector<8x1xf32>
    %604 = vector.broadcast %603 : vector<8x1xf32> to vector<8x16xf32>
    %605 = arith.subf %601, %604 : vector<8x16xf32>
    %606 = math.exp %605 : vector<8x16xf32>
    %cst_235 = arith.constant dense<0.000000e+00> : vector<8xf32>
    %607 = vector.multi_reduction <add>, %606, %cst_235 [1] : vector<8x16xf32> to vector<8xf32>
    %608 = vector.shape_cast %607 : vector<8xf32> to vector<8x1xf32>
    %609 = tpu.reciprocal %608 {approx = true} : vector<8x1xf32> -> vector<8x1xf32>
    %610 = vector.broadcast %609 : vector<8x1xf32> to vector<8x16xf32>
    %611 = arith.mulf %606, %610 : vector<8x16xf32>
    %612 = arith.truncf %611 : vector<8x16xf32> to vector<8x16xbf16>
    %cst_236 = arith.constant dense<0.000000e+00> : vector<8x8xf32>
    %613 = tpu.matmul %612, %600, %cst_236 {dimension_numbers = #tpu.dot_dimension_numbers<[1], [0], [0], [1], [0, 0, 1, 1], [], []>} : vector<8x16xbf16>, vector<16x8xbf16>, vector<8x8xf32> -> vector<8x8xf32>
    %614 = tpu.concatenate %565, %581, %597, %613 in 1 : vector<8x8xf32>, vector<8x8xf32>, vector<8x8xf32>, vector<8x8xf32> -> vector<8x32xf32>
    %615 = vector.extract_strided_slice %540 {offsets = [8, 0], sizes = [8, 8], strides = [1, 1]} : vector<16x32xbf16> to vector<8x8xbf16>
    %616 = vector.extract_strided_slice %549 {offsets = [16, 0], sizes = [16, 8], strides = [1, 1]} : vector<32x64xbf16> to vector<16x8xbf16>
    %617 = vector.extract_strided_slice %549 {offsets = [16, 32], sizes = [16, 8], strides = [1, 1]} : vector<32x64xbf16> to vector<16x8xbf16>
    %cst_237 = arith.constant dense<0.000000e+00> : vector<8x16xf32>
    %618 = tpu.matmul %615, %616, %cst_237 {dimension_numbers = #tpu.dot_dimension_numbers<[1], [1], [0], [0], [0, 0, 1, 0], [], []>} : vector<8x8xbf16>, vector<16x8xbf16>, vector<8x16xf32> -> vector<8x16xf32>
    %cst_238 = arith.constant dense<0xFF800000> : vector<8xf32>
    %619 = vector.multi_reduction <maximumf>, %618, %cst_238 [1] : vector<8x16xf32> to vector<8xf32>
    %620 = vector.shape_cast %619 : vector<8xf32> to vector<8x1xf32>
    %621 = vector.broadcast %620 : vector<8x1xf32> to vector<8x16xf32>
    %622 = arith.subf %618, %621 : vector<8x16xf32>
    %623 = math.exp %622 : vector<8x16xf32>
    %cst_239 = arith.constant dense<0.000000e+00> : vector<8xf32>
    %624 = vector.multi_reduction <add>, %623, %cst_239 [1] : vector<8x16xf32> to vector<8xf32>
    %625 = vector.shape_cast %624 : vector<8xf32> to vector<8x1xf32>
    %626 = tpu.reciprocal %625 {approx = true} : vector<8x1xf32> -> vector<8x1xf32>
    %627 = vector.broadcast %626 : vector<8x1xf32> to vector<8x16xf32>
    %628 = arith.mulf %623, %627 : vector<8x16xf32>
    %629 = arith.truncf %628 : vector<8x16xf32> to vector<8x16xbf16>
    %cst_240 = arith.constant dense<0.000000e+00> : vector<8x8xf32>
    %630 = tpu.matmul %629, %617, %cst_240 {dimension_numbers = #tpu.dot_dimension_numbers<[1], [0], [0], [1], [0, 0, 1, 1], [], []>} : vector<8x16xbf16>, vector<16x8xbf16>, vector<8x8xf32> -> vector<8x8xf32>
    %631 = vector.extract_strided_slice %540 {offsets = [8, 8], sizes = [8, 8], strides = [1, 1]} : vector<16x32xbf16> to vector<8x8xbf16>
    %632 = vector.extract_strided_slice %549 {offsets = [16, 8], sizes = [16, 8], strides = [1, 1]} : vector<32x64xbf16> to vector<16x8xbf16>
    %633 = vector.extract_strided_slice %549 {offsets = [16, 40], sizes = [16, 8], strides = [1, 1]} : vector<32x64xbf16> to vector<16x8xbf16>
    %cst_241 = arith.constant dense<0.000000e+00> : vector<8x16xf32>
    %634 = tpu.matmul %631, %632, %cst_241 {dimension_numbers = #tpu.dot_dimension_numbers<[1], [1], [0], [0], [0, 0, 1, 0], [], []>} : vector<8x8xbf16>, vector<16x8xbf16>, vector<8x16xf32> -> vector<8x16xf32>
    %cst_242 = arith.constant dense<0xFF800000> : vector<8xf32>
    %635 = vector.multi_reduction <maximumf>, %634, %cst_242 [1] : vector<8x16xf32> to vector<8xf32>
    %636 = vector.shape_cast %635 : vector<8xf32> to vector<8x1xf32>
    %637 = vector.broadcast %636 : vector<8x1xf32> to vector<8x16xf32>
    %638 = arith.subf %634, %637 : vector<8x16xf32>
    %639 = math.exp %638 : vector<8x16xf32>
    %cst_243 = arith.constant dense<0.000000e+00> : vector<8xf32>
    %640 = vector.multi_reduction <add>, %639, %cst_243 [1] : vector<8x16xf32> to vector<8xf32>
    %641 = vector.shape_cast %640 : vector<8xf32> to vector<8x1xf32>
    %642 = tpu.reciprocal %641 {approx = true} : vector<8x1xf32> -> vector<8x1xf32>
    %643 = vector.broadcast %642 : vector<8x1xf32> to vector<8x16xf32>
    %644 = arith.mulf %639, %643 : vector<8x16xf32>
    %645 = arith.truncf %644 : vector<8x16xf32> to vector<8x16xbf16>
    %cst_244 = arith.constant dense<0.000000e+00> : vector<8x8xf32>
    %646 = tpu.matmul %645, %633, %cst_244 {dimension_numbers = #tpu.dot_dimension_numbers<[1], [0], [0], [1], [0, 0, 1, 1], [], []>} : vector<8x16xbf16>, vector<16x8xbf16>, vector<8x8xf32> -> vector<8x8xf32>
    %647 = vector.extract_strided_slice %540 {offsets = [8, 16], sizes = [8, 8], strides = [1, 1]} : vector<16x32xbf16> to vector<8x8xbf16>
    %648 = vector.extract_strided_slice %549 {offsets = [16, 16], sizes = [16, 8], strides = [1, 1]} : vector<32x64xbf16> to vector<16x8xbf16>
    %649 = vector.extract_strided_slice %549 {offsets = [16, 48], sizes = [16, 8], strides = [1, 1]} : vector<32x64xbf16> to vector<16x8xbf16>
    %cst_245 = arith.constant dense<0.000000e+00> : vector<8x16xf32>
    %650 = tpu.matmul %647, %648, %cst_245 {dimension_numbers = #tpu.dot_dimension_numbers<[1], [1], [0], [0], [0, 0, 1, 0], [], []>} : vector<8x8xbf16>, vector<16x8xbf16>, vector<8x16xf32> -> vector<8x16xf32>
    %cst_246 = arith.constant dense<0xFF800000> : vector<8xf32>
    %651 = vector.multi_reduction <maximumf>, %650, %cst_246 [1] : vector<8x16xf32> to vector<8xf32>
    %652 = vector.shape_cast %651 : vector<8xf32> to vector<8x1xf32>
    %653 = vector.broadcast %652 : vector<8x1xf32> to vector<8x16xf32>
    %654 = arith.subf %650, %653 : vector<8x16xf32>
    %655 = math.exp %654 : vector<8x16xf32>
    %cst_247 = arith.constant dense<0.000000e+00> : vector<8xf32>
    %656 = vector.multi_reduction <add>, %655, %cst_247 [1] : vector<8x16xf32> to vector<8xf32>
    %657 = vector.shape_cast %656 : vector<8xf32> to vector<8x1xf32>
    %658 = tpu.reciprocal %657 {approx = true} : vector<8x1xf32> -> vector<8x1xf32>
    %659 = vector.broadcast %658 : vector<8x1xf32> to vector<8x16xf32>
    %660 = arith.mulf %655, %659 : vector<8x16xf32>
    %661 = arith.truncf %660 : vector<8x16xf32> to vector<8x16xbf16>
    %cst_248 = arith.constant dense<0.000000e+00> : vector<8x8xf32>
    %662 = tpu.matmul %661, %649, %cst_248 {dimension_numbers = #tpu.dot_dimension_numbers<[1], [0], [0], [1], [0, 0, 1, 1], [], []>} : vector<8x16xbf16>, vector<16x8xbf16>, vector<8x8xf32> -> vector<8x8xf32>
    %663 = vector.extract_strided_slice %540 {offsets = [8, 24], sizes = [8, 8], strides = [1, 1]} : vector<16x32xbf16> to vector<8x8xbf16>
    %664 = vector.extract_strided_slice %549 {offsets = [16, 24], sizes = [16, 8], strides = [1, 1]} : vector<32x64xbf16> to vector<16x8xbf16>
    %665 = vector.extract_strided_slice %549 {offsets = [16, 56], sizes = [16, 8], strides = [1, 1]} : vector<32x64xbf16> to vector<16x8xbf16>
    %cst_249 = arith.constant dense<0.000000e+00> : vector<8x16xf32>
    %666 = tpu.matmul %663, %664, %cst_249 {dimension_numbers = #tpu.dot_dimension_numbers<[1], [1], [0], [0], [0, 0, 1, 0], [], []>} : vector<8x8xbf16>, vector<16x8xbf16>, vector<8x16xf32> -> vector<8x16xf32>
    %cst_250 = arith.constant dense<0xFF800000> : vector<8xf32>
    %667 = vector.multi_reduction <maximumf>, %666, %cst_250 [1] : vector<8x16xf32> to vector<8xf32>
    %668 = vector.shape_cast %667 : vector<8xf32> to vector<8x1xf32>
    %669 = vector.broadcast %668 : vector<8x1xf32> to vector<8x16xf32>
    %670 = arith.subf %666, %669 : vector<8x16xf32>
    %671 = math.exp %670 : vector<8x16xf32>
    %cst_251 = arith.constant dense<0.000000e+00> : vector<8xf32>
    %672 = vector.multi_reduction <add>, %671, %cst_251 [1] : vector<8x16xf32> to vector<8xf32>
    %673 = vector.shape_cast %672 : vector<8xf32> to vector<8x1xf32>
    %674 = tpu.reciprocal %673 {approx = true} : vector<8x1xf32> -> vector<8x1xf32>
    %675 = vector.broadcast %674 : vector<8x1xf32> to vector<8x16xf32>
    %676 = arith.mulf %671, %675 : vector<8x16xf32>
    %677 = arith.truncf %676 : vector<8x16xf32> to vector<8x16xbf16>
    %cst_252 = arith.constant dense<0.000000e+00> : vector<8x8xf32>
    %678 = tpu.matmul %677, %665, %cst_252 {dimension_numbers = #tpu.dot_dimension_numbers<[1], [0], [0], [1], [0, 0, 1, 1], [], []>} : vector<8x16xbf16>, vector<16x8xbf16>, vector<8x8xf32> -> vector<8x8xf32>
    %679 = tpu.concatenate %630, %646, %662, %678 in 1 : vector<8x8xf32>, vector<8x8xf32>, vector<8x8xf32>, vector<8x8xf32> -> vector<8x32xf32>
    %680 = tpu.concatenate %614, %679 in 0 : vector<8x32xf32>, vector<8x32xf32> -> vector<16x32xf32>
    %c2_253 = arith.constant 2 : index
    %c0_254 = arith.constant 0 : index
    %c0_255 = arith.constant 0 : index
    %681 = vector.load %arg23[%c2_253, %c0_254, %c0_255] : memref<3x32x32xbf16, #tpu.memory_space<vmem>>, vector<1x32x32xbf16>
    %682 = vector.shape_cast %681 : vector<1x32x32xbf16> to vector<32x32xbf16>
    %c2_256 = arith.constant 2 : index
    %c0_257 = arith.constant 0 : index
    %c0_258 = arith.constant 0 : index
    %683 = vector.load %arg24[%c2_256, %c0_257, %c0_258] : memref<3x1x32xf32, #tpu.memory_space<vmem>>, vector<1x1x32xf32>
    %684 = vector.shape_cast %683 : vector<1x1x32xf32> to vector<1x32xf32>
    %685 = arith.truncf %680 : vector<16x32xf32> to vector<16x32xbf16>
    %cst_259 = arith.constant dense<0.000000e+00> : vector<16x32xf32>
    %686 = tpu.matmul %685, %682, %cst_259 {dimension_numbers = #tpu.dot_dimension_numbers<[1], [0], [0], [1], [0, 0, 1, 1], [], []>} : vector<16x32xbf16>, vector<32x32xbf16>, vector<16x32xf32> -> vector<16x32xf32>
    %687 = vector.broadcast %684 : vector<1x32xf32> to vector<16x32xf32>
    %688 = arith.addf %686, %687 : vector<16x32xf32>
    %689 = arith.addf %505, %688 : vector<16x32xf32>
    %c2_260 = arith.constant 2 : index
    %c0_261 = arith.constant 0 : index
    %c0_262 = arith.constant 0 : index
    %690 = vector.load %arg25[%c2_260, %c0_261, %c0_262] : memref<3x1x32xf32, #tpu.memory_space<vmem>>, vector<1x1x32xf32>
    %691 = vector.shape_cast %690 : vector<1x1x32xf32> to vector<1x32xf32>
    %c2_263 = arith.constant 2 : index
    %c0_264 = arith.constant 0 : index
    %c0_265 = arith.constant 0 : index
    %692 = vector.load %arg26[%c2_263, %c0_264, %c0_265] : memref<3x1x32xf32, #tpu.memory_space<vmem>>, vector<1x1x32xf32>
    %693 = vector.shape_cast %692 : vector<1x1x32xf32> to vector<1x32xf32>
    %cst_266 = arith.constant dense<0.000000e+00> : vector<16xf32>
    %694 = vector.multi_reduction <add>, %689, %cst_266 [1] : vector<16x32xf32> to vector<16xf32>
    %695 = vector.shape_cast %694 : vector<16xf32> to vector<16x1xf32>
    %cst_267 = arith.constant 3.200000e+01 : f32
    %696 = vector.broadcast %cst_267 : f32 to vector<16x1xf32>
    %697 = arith.divf %695, %696 : vector<16x1xf32>
    %698 = vector.broadcast %697 : vector<16x1xf32> to vector<16x32xf32>
    %699 = arith.subf %689, %698 : vector<16x32xf32>
    %700 = arith.mulf %699, %699 : vector<16x32xf32>
    %cst_268 = arith.constant dense<0.000000e+00> : vector<16xf32>
    %701 = vector.multi_reduction <add>, %700, %cst_268 [1] : vector<16x32xf32> to vector<16xf32>
    %702 = vector.shape_cast %701 : vector<16xf32> to vector<16x1xf32>
    %cst_269 = arith.constant 3.200000e+01 : f32
    %703 = vector.broadcast %cst_269 : f32 to vector<16x1xf32>
    %704 = arith.divf %702, %703 : vector<16x1xf32>
    %705 = vector.broadcast %697 : vector<16x1xf32> to vector<16x32xf32>
    %706 = arith.subf %689, %705 : vector<16x32xf32>
    %cst_270 = arith.constant 9.99999996E-13 : f32
    %707 = vector.broadcast %cst_270 : f32 to vector<16x1xf32>
    %708 = arith.addf %704, %707 : vector<16x1xf32>
    %709 = math.rsqrt %708 : vector<16x1xf32>
    %710 = vector.broadcast %709 : vector<16x1xf32> to vector<16x32xf32>
    %711 = arith.mulf %706, %710 : vector<16x32xf32>
    %712 = vector.broadcast %691 : vector<1x32xf32> to vector<16x32xf32>
    %713 = arith.mulf %711, %712 : vector<16x32xf32>
    %714 = vector.broadcast %693 : vector<1x32xf32> to vector<16x32xf32>
    %715 = arith.addf %713, %714 : vector<16x32xf32>
    %c2_271 = arith.constant 2 : index
    %c0_272 = arith.constant 0 : index
    %c0_273 = arith.constant 0 : index
    %716 = vector.load %arg27[%c2_271, %c0_272, %c0_273] : memref<3x32x64xbf16, #tpu.memory_space<vmem>>, vector<1x32x64xbf16>
    %717 = vector.shape_cast %716 : vector<1x32x64xbf16> to vector<32x64xbf16>
    %c2_274 = arith.constant 2 : index
    %c0_275 = arith.constant 0 : index
    %c0_276 = arith.constant 0 : index
    %718 = vector.load %arg28[%c2_274, %c0_275, %c0_276] : memref<3x1x64xf32, #tpu.memory_space<vmem>>, vector<1x1x64xf32>
    %719 = vector.shape_cast %718 : vector<1x1x64xf32> to vector<1x64xf32>
    %720 = arith.truncf %715 : vector<16x32xf32> to vector<16x32xbf16>
    %cst_277 = arith.constant dense<0.000000e+00> : vector<16x64xf32>
    %721 = tpu.matmul %720, %717, %cst_277 {dimension_numbers = #tpu.dot_dimension_numbers<[1], [0], [0], [1], [0, 0, 1, 1], [], []>} : vector<16x32xbf16>, vector<32x64xbf16>, vector<16x64xf32> -> vector<16x64xf32>
    %722 = vector.broadcast %719 : vector<1x64xf32> to vector<16x64xf32>
    %723 = arith.addf %721, %722 : vector<16x64xf32>
    %724 = arith.mulf %723, %723 : vector<16x64xf32>
    %725 = arith.mulf %723, %724 : vector<16x64xf32>
    %cst_278 = arith.constant 4.471500e-02 : f32
    %726 = vector.broadcast %cst_278 : f32 to vector<16x64xf32>
    %727 = arith.mulf %726, %725 : vector<16x64xf32>
    %728 = arith.addf %723, %727 : vector<16x64xf32>
    %cst_279 = arith.constant 0.797884583 : f32
    %729 = vector.broadcast %cst_279 : f32 to vector<16x64xf32>
    %730 = arith.mulf %729, %728 : vector<16x64xf32>
    %731 = math.tanh %730 : vector<16x64xf32>
    %cst_280 = arith.constant 1.000000e+00 : f32
    %732 = vector.broadcast %cst_280 : f32 to vector<16x64xf32>
    %733 = arith.addf %732, %731 : vector<16x64xf32>
    %cst_281 = arith.constant 5.000000e-01 : f32
    %734 = vector.broadcast %cst_281 : f32 to vector<16x64xf32>
    %735 = arith.mulf %734, %733 : vector<16x64xf32>
    %736 = arith.mulf %723, %735 : vector<16x64xf32>
    %c2_282 = arith.constant 2 : index
    %c0_283 = arith.constant 0 : index
    %c0_284 = arith.constant 0 : index
    %737 = vector.load %arg29[%c2_282, %c0_283, %c0_284] : memref<3x64x32xbf16, #tpu.memory_space<vmem>>, vector<1x64x32xbf16>
    %738 = vector.shape_cast %737 : vector<1x64x32xbf16> to vector<64x32xbf16>
    %c2_285 = arith.constant 2 : index
    %c0_286 = arith.constant 0 : index
    %c0_287 = arith.constant 0 : index
    %739 = vector.load %arg30[%c2_285, %c0_286, %c0_287] : memref<3x1x32xf32, #tpu.memory_space<vmem>>, vector<1x1x32xf32>
    %740 = vector.shape_cast %739 : vector<1x1x32xf32> to vector<1x32xf32>
    %741 = arith.truncf %736 : vector<16x64xf32> to vector<16x64xbf16>
    %cst_288 = arith.constant dense<0.000000e+00> : vector<16x32xf32>
    %742 = tpu.matmul %741, %738, %cst_288 {dimension_numbers = #tpu.dot_dimension_numbers<[1], [0], [0], [1], [0, 0, 1, 1], [], []>} : vector<16x64xbf16>, vector<64x32xbf16>, vector<16x32xf32> -> vector<16x32xf32>
    %743 = vector.broadcast %740 : vector<1x32xf32> to vector<16x32xf32>
    %744 = arith.addf %742, %743 : vector<16x32xf32>
    %745 = arith.addf %689, %744 : vector<16x32xf32>
    %c0_289 = arith.constant 0 : index
    %c0_290 = arith.constant 0 : index
    %746 = vector.load %arg32[%c0_289, %c0_290] : memref<32x38xbf16, #tpu.memory_space<vmem>>, vector<32x38xbf16>
    %c0_291 = arith.constant 0 : index
    %c0_292 = arith.constant 0 : index
    %747 = vector.load %arg33[%c0_291, %c0_292] : memref<1x38xf32, #tpu.memory_space<vmem>>, vector<1x38xf32>
    %748 = arith.truncf %745 : vector<16x32xf32> to vector<16x32xbf16>
    %cst_293 = arith.constant dense<0.000000e+00> : vector<16x38xf32>
    %749 = tpu.matmul %748, %746, %cst_293 {dimension_numbers = #tpu.dot_dimension_numbers<[1], [0], [0], [1], [0, 0, 1, 1], [], []>} : vector<16x32xbf16>, vector<32x38xbf16>, vector<16x38xf32> -> vector<16x38xf32>
    %750 = vector.broadcast %747 : vector<1x38xf32> to vector<16x38xf32>
    %751 = arith.addf %749, %750 : vector<16x38xf32>
    %c0_294 = arith.constant 0 : index
    %c0_295 = arith.constant 0 : index
    %752 = vector.load %arg34[%c0_294, %c0_295] : memref<16x6xf32, #tpu.memory_space<vmem>>, vector<16x6xf32>
    %753 = vector.extract_strided_slice %751 {offsets = [0, 0], sizes = [16, 6], strides = [1, 1]} : vector<16x38xf32> to vector<16x6xf32>
    %cst_296 = arith.constant dense<0xFF800000> : vector<16xf32>
    %754 = vector.multi_reduction <maximumf>, %753, %cst_296 [1] : vector<16x6xf32> to vector<16xf32>
    %755 = vector.shape_cast %754 : vector<16xf32> to vector<16x1xf32>
    %756 = vector.broadcast %755 : vector<16x1xf32> to vector<16x6xf32>
    %757 = arith.subf %753, %756 : vector<16x6xf32>
    %758 = math.exp %757 : vector<16x6xf32>
    %cst_297 = arith.constant dense<0.000000e+00> : vector<16xf32>
    %759 = vector.multi_reduction <add>, %758, %cst_297 [1] : vector<16x6xf32> to vector<16xf32>
    %760 = vector.shape_cast %759 : vector<16xf32> to vector<16x1xf32>
    %761 = math.log %760 : vector<16x1xf32>
    %762 = vector.broadcast %761 : vector<16x1xf32> to vector<16x6xf32>
    %763 = arith.subf %762, %757 : vector<16x6xf32>
    %764 = arith.mulf %752, %763 : vector<16x6xf32>
    %cst_298 = arith.constant dense<0.000000e+00> : vector<16xf32>
    %765 = vector.multi_reduction <add>, %764, %cst_298 [1] : vector<16x6xf32> to vector<16xf32>
    %766 = vector.shape_cast %765 : vector<16xf32> to vector<16x1xf32>
    %cst_299 = arith.constant dense<0.000000e+00> : vector<1xf32>
    %767 = vector.multi_reduction <add>, %766, %cst_299 [0] : vector<16x1xf32> to vector<1xf32>
    %768 = vector.shape_cast %767 : vector<1xf32> to vector<1x1xf32>
    %769 = vector.extract_strided_slice %751 {offsets = [0, 6], sizes = [16, 32], strides = [1, 1]} : vector<16x38xf32> to vector<16x32xf32>
    %770 = arith.truncf %769 : vector<16x32xf32> to vector<16x32xbf16>
    %c0_300 = arith.constant 0 : index
    %c0_301 = arith.constant 0 : index
    %771 = vector.load %arg35[%c0_300, %c0_301] : memref<10x16xf32, #tpu.memory_space<vmem>>, vector<10x16xf32>
    %cst_302 = arith.constant 0.000000e+00 : f32
    %772 = vector.broadcast %cst_302 : f32 to vector<1x1xf32>
    %773 = vector.extract_strided_slice %770 {offsets = [0, 0], sizes = [5, 32], strides = [1, 1]} : vector<16x32xbf16> to vector<5x32xbf16>
    %774 = vector.extract_strided_slice %23 {offsets = [0, 0], sizes = [16, 32], strides = [1, 1]} : vector<32x32xbf16> to vector<16x32xbf16>
    %cst_303 = arith.constant dense<0.000000e+00> : vector<5x16xf32>
    %775 = tpu.matmul %773, %774, %cst_303 {dimension_numbers = #tpu.dot_dimension_numbers<[1], [1], [0], [0], [0, 0, 1, 0], [], []>} : vector<5x32xbf16>, vector<16x32xbf16>, vector<5x16xf32> -> vector<5x16xf32>
    %776 = vector.extract_strided_slice %771 {offsets = [0, 0], sizes = [5, 16], strides = [1, 1]} : vector<10x16xf32> to vector<5x16xf32>
    %cst_304 = arith.constant 0.000000e+00 : f32
    %777 = vector.broadcast %cst_304 : f32 to vector<5x16xf32>
    %778 = arith.maximumf %775, %777 : vector<5x16xf32>
    %779 = arith.mulf %775, %776 : vector<5x16xf32>
    %780 = arith.subf %778, %779 : vector<5x16xf32>
    %781 = math.absf %775 : vector<5x16xf32>
    %cst_305 = arith.constant 0.000000e+00 : f32
    %782 = vector.broadcast %cst_305 : f32 to vector<5x16xf32>
    %783 = arith.subf %782, %781 : vector<5x16xf32>
    %784 = math.exp %783 : vector<5x16xf32>
    %785 = math.log1p %784 : vector<5x16xf32>
    %786 = arith.addf %780, %785 : vector<5x16xf32>
    %cst_306 = arith.constant dense<0.000000e+00> : vector<5xf32>
    %787 = vector.multi_reduction <add>, %786, %cst_306 [1] : vector<5x16xf32> to vector<5xf32>
    %788 = vector.shape_cast %787 : vector<5xf32> to vector<5x1xf32>
    %cst_307 = arith.constant dense<0.000000e+00> : vector<1xf32>
    %789 = vector.multi_reduction <add>, %788, %cst_307 [0] : vector<5x1xf32> to vector<1xf32>
    %790 = vector.shape_cast %789 : vector<1xf32> to vector<1x1xf32>
    %791 = arith.addf %772, %790 : vector<1x1xf32>
    %792 = vector.extract_strided_slice %770 {offsets = [8, 0], sizes = [5, 32], strides = [1, 1]} : vector<16x32xbf16> to vector<5x32xbf16>
    %793 = vector.extract_strided_slice %23 {offsets = [16, 0], sizes = [16, 32], strides = [1, 1]} : vector<32x32xbf16> to vector<16x32xbf16>
    %cst_308 = arith.constant dense<0.000000e+00> : vector<5x16xf32>
    %794 = tpu.matmul %792, %793, %cst_308 {dimension_numbers = #tpu.dot_dimension_numbers<[1], [1], [0], [0], [0, 0, 1, 0], [], []>} : vector<5x32xbf16>, vector<16x32xbf16>, vector<5x16xf32> -> vector<5x16xf32>
    %795 = vector.extract_strided_slice %771 {offsets = [5, 0], sizes = [5, 16], strides = [1, 1]} : vector<10x16xf32> to vector<5x16xf32>
    %cst_309 = arith.constant 0.000000e+00 : f32
    %796 = vector.broadcast %cst_309 : f32 to vector<5x16xf32>
    %797 = arith.maximumf %794, %796 : vector<5x16xf32>
    %798 = arith.mulf %794, %795 : vector<5x16xf32>
    %799 = arith.subf %797, %798 : vector<5x16xf32>
    %800 = math.absf %794 : vector<5x16xf32>
    %cst_310 = arith.constant 0.000000e+00 : f32
    %801 = vector.broadcast %cst_310 : f32 to vector<5x16xf32>
    %802 = arith.subf %801, %800 : vector<5x16xf32>
    %803 = math.exp %802 : vector<5x16xf32>
    %804 = math.log1p %803 : vector<5x16xf32>
    %805 = arith.addf %799, %804 : vector<5x16xf32>
    %cst_311 = arith.constant dense<0.000000e+00> : vector<5xf32>
    %806 = vector.multi_reduction <add>, %805, %cst_311 [1] : vector<5x16xf32> to vector<5xf32>
    %807 = vector.shape_cast %806 : vector<5xf32> to vector<5x1xf32>
    %cst_312 = arith.constant dense<0.000000e+00> : vector<1xf32>
    %808 = vector.multi_reduction <add>, %807, %cst_312 [0] : vector<5x1xf32> to vector<1xf32>
    %809 = vector.shape_cast %808 : vector<1xf32> to vector<1x1xf32>
    %810 = arith.addf %791, %809 : vector<1x1xf32>
    %cst_313 = arith.constant 1.600000e+01 : f32
    %811 = vector.broadcast %cst_313 : f32 to vector<1x1xf32>
    %812 = arith.divf %768, %811 : vector<1x1xf32>
    %cst_314 = arith.constant 1.600000e+02 : f32
    %813 = vector.broadcast %cst_314 : f32 to vector<1x1xf32>
    %814 = arith.divf %810, %813 : vector<1x1xf32>
    %815 = arith.addf %812, %814 : vector<1x1xf32>
    %c0_315 = arith.constant 0 : index
    %c0_316 = arith.constant 0 : index
    %816 = vector.load %arg36[%c0_315, %c0_316] : memref<1x1xf32, #tpu.memory_space<vmem>>, vector<1x1xf32>
    tpu.vector_store %arg36[%c0_315, %c0_316], %815 {strides = array<i32>} : memref<1x1xf32, #tpu.memory_space<vmem>>, vector<1x1xf32>,
    return
  }
}

</mosaic_0001>

<bundles_post_ra>
// kernel: dgss_forward.1
= control target key start
LH: loop header
LB: loop body
LE: loop exit
PB: predicated region body
PF: predicated region fallthrough
CT: control target
= control target key end

     0   :  { %s8652_s6 = smov 1   ;;  %s8653_s10 = smov 2   ;;  %s10280_s0 = inlined_call_operand.smem [shape: u32[37], index: -1, kind: input, shape index: {}] }
   0x1   :  { %s8727_s5 = sld [smem:[%s10280_s0]]   ;;  %s8654_s14 = smov 3  }
   0x2   :  { %s8732_s9 = sld [smem:[%s10280_s0 + %s8652_s6]]   ;;  %s8655_s18 = smov 4  }
   0x3   :  { %s8737_s13 = sld [smem:[%s10280_s0 + %s8653_s10]]   ;;  %s8656_s22 = smov 5  }
   0x4   :  { %s8742_s17 = sld [smem:[%s10280_s0 + %s8654_s14]]   ;;  %s8657_s26 = smov 6  }
   0x5   :  { %s8747_s21 = sld [smem:[%s10280_s0 + %s8655_s18]]   ;;  %s8658_s30 = smov 7  }
   0x6   :  { %s8752_s25 = sld [smem:[%s10280_s0 + %s8656_s22]]   ;;  %s8659_s4 = smov 8  }
   0x7   :  { %s8757_s29 = sld [smem:[%s10280_s0 + %s8657_s26]]   ;;  %s8660_s10 = smov 9  }
   0x8   :  { %s8762_s3 = sld [smem:[%s10280_s0 + %s8658_s30]]   ;;  %s8661_s15 = smov 10  }
   0x9   :  { %s8767_s8 = sld [smem:[%s10280_s0 + %s8659_s4]]   ;;  %s8662_s20 = smov 11  }
   0xa   :  { %s8772_s14 = sld [smem:[%s10280_s0 + %s8660_s10]]   ;;  %s8663_s26 = smov 12  }
   0xb   :  { %s8777_s19 = sld [smem:[%s10280_s0 + %s8661_s15]]   ;;  %s8664_s1 = smov 13  }
   0xc   :  { %s8782_s24 = sld [smem:[%s10280_s0 + %s8662_s20]]   ;;  %s8665_s7 = smov 14  }
   0xd   :  { %s8787_s30 = sld [smem:[%s10280_s0 + %s8663_s26]]   ;;  %s8666_s15 = smov 15  }
   0xe   :  { %s8792_s6 = sld [smem:[%s10280_s0 + %s8664_s1]]   ;;  %s8667_s22 = smov 16  }
   0xf   :  { %s8797_s12 = sld [smem:[%s10280_s0 + %s8665_s7]]   ;;  %s8668_s28 = smov 17  }
  0x10   :  { %s8802_s20 = sld [smem:[%s10280_s0 + %s8666_s15]]   ;;  %s8669_s7 = smov 18  }
  0x11   :  { %s8807_s27 = sld [smem:[%s10280_s0 + %s8667_s22]]   ;;  %s8670_s15 = smov 19  }
  0x12   :  { %s8812_s4 = sld [smem:[%s10280_s0 + %s8668_s28]]   ;;  %s8671_s22 = smov 20  }
  0x13   :  { %s8672_s28 = smov 21  }
  0x15   :  { %10296 = sst [smem:[#allocation5_spill]] %s8797_s12 }
  0x16   :  { %10297 = sst [smem:[#allocation6_spill]] %s8802_s20 }
  0x17   :  { %10298 = sst [smem:[#allocation7_spill]] %s8807_s27 }
  0x18   :  { %10299 = sst [smem:[#allocation8_spill]] %s8812_s4 }
  0x19   :  { %s8817_s12 = sld [smem:[%s10280_s0 + %s8669_s7]]   ;;  %s8673_s7 = smov 22  }
  0x1a   :  { %s8822_s20 = sld [smem:[%s10280_s0 + %s8670_s15]]   ;;  %s8674_s15 = smov 23  }
  0x1b   :  { %s8827_s27 = sld [smem:[%s10280_s0 + %s8671_s22]]   ;;  %s8675_s22 = smov 24  }
  0x1c   :  { %s8832_s4 = sld [smem:[%s10280_s0 + %s8672_s28]]   ;;  %s8676_s28 = smov 25  }
  0x1f   :  { %10300 = sst [smem:[#allocation9_spill]] %s8817_s12 }
  0x20   :  { %10301 = sst [smem:[#allocation10_spill]] %s8822_s20 }
  0x21   :  { %10302 = sst [smem:[#allocation11_spill]] %s8827_s27 }
  0x22   :  { %10303 = sst [smem:[#allocation12_spill]] %s8832_s4 }
  0x23   :  { %s8837_s12 = sld [smem:[%s10280_s0 + %s8673_s7]]   ;;  %s8677_s7 = smov 26  }
  0x24   :  { %s8842_s20 = sld [smem:[%s10280_s0 + %s8674_s15]]   ;;  %s8678_s15 = smov 27  }
  0x25   :  { %s8847_s27 = sld [smem:[%s10280_s0 + %s8675_s22]]   ;;  %s8679_s22 = smov 28  }
  0x26   :  { %s8852_s4 = sld [smem:[%s10280_s0 + %s8676_s28]]   ;;  %s8680_s28 = smov 29  }
  0x29   :  { %10304 = sst [smem:[#allocation13_spill]] %s8837_s12 }
  0x2a   :  { %10305 = sst [smem:[#allocation14_spill]] %s8842_s20 }
  0x2b   :  { %10306 = sst [smem:[#allocation15_spill]] %s8847_s27 }
  0x2c   :  { %10307 = sst [smem:[#allocation16_spill]] %s8852_s4 }
  0x2d   :  { %s8857_s12 = sld [smem:[%s10280_s0 + %s8677_s7]]   ;;  %s8681_s7 = smov 30  }
  0x2e   :  { %s8862_s20 = sld [smem:[%s10280_s0 + %s8678_s15]]   ;;  %s8682_s15 = smov 31  }
  0x2f   :  { %s8867_s27 = sld [smem:[%s10280_s0 + %s8679_s22]]   ;;  %s8683_s22 = smov 32  }
  0x30   :  { %s8872_s4 = sld [smem:[%s10280_s0 + %s8680_s28]]   ;;  %s8684_s28 = smov 33  }
  0x33   :  { %10308 = sst [smem:[#allocation17_spill]] %s8857_s12 }
  0x34   :  { %10309 = sst [smem:[#allocation18_spill]] %s8862_s20 }
  0x35   :  { %10310 = sst [smem:[#allocation19_spill]] %s8867_s27 }
  0x36   :  { %10311 = sst [smem:[#allocation20_spill]] %s8872_s4 }
  0x37   :  { %s8877_s12 = sld [smem:[%s10280_s0 + %s8681_s7]]   ;;  %s8685_s7 = smov 34  }
  0x38   :  { %s8882_s20 = sld [smem:[%s10280_s0 + %s8682_s15]]   ;;  %s8686_s15 = smov 35  }
  0x39   :  { %s8887_s27 = sld [smem:[%s10280_s0 + %s8683_s22]]   ;;  %s8687_s22 = smov 36  }
  0x3a   :  { %s8892_s4 = sld [smem:[%s10280_s0 + %s8684_s28]]  }
  0x3d   :  { %10312 = sst [smem:[#allocation21_spill]] %s8877_s12 }
  0x3e   :  { %10313 = sst [smem:[#allocation22_spill]] %s8882_s20 }
  0x3f   :  { %10314 = sst [smem:[#allocation23_spill]] %s8887_s27 }
  0x40   :  { %s8897_s12 = sld [smem:[%s10280_s0 + %s8685_s7]]  }
  0x41   :  { %s8902_s20 = sld [smem:[%s10280_s0 + %s8686_s15]]  }
  0x42   :  { %s8907_s27 = sld [smem:[%s10280_s0 + %s8687_s22]]  }
  0x43   :  { %78 = vsyncpa [#allocation3], 0  ;;  %v8182_v0 = vld [vmem:[%s8732_s9] sm:$0xff]   ;;  %v8183_v1 = vld [vmem:[%s8732_s9 + $0x8] sm:$0xff]   ;;  %vm189_vm0 = vcmask 392192   ;;  %v275_v11 = vlaneseq  ;;  %vm253_vm1 = vcmask 1046528  }
  0x44   :  { %7405 = vmatprep.subr.bf16.mxu0 %v8182_v0  ;;  %v152_v2 = vld [vmem:[%s8727_s5] sm:$0xff]  ;;  %v153_v3 = vld [vmem:[%s8727_s5 + $0x8] sm:$0xff]  ;;  %v8184_v5 = vld [vmem:[%s8732_s9 + $0x10] sm:$0xff]   ;;  %vm267_vm2 = vcmask 1040384   ;;  %vm282_vm3 = vcmask 1041408   ;;  %s8936_s0 = smov 0  }
  0x45   :  { %7406 = vmatpush3.bf16.msra.mxu0 %v8182_v0  ;;  %v163_v4 = vpack.c.bf16 %v153_v3, %v152_v2  ;;  %v154_v6 = vld [vmem:[%s8727_s5 + $0x10] sm:$0xff]  ;;  %v155_v7 = vld [vmem:[%s8727_s5 + $0x18] sm:$0xff]  ;;  %v245_v9 = vld [vmem:[%s8747_s21] sm:$0xff]  ;;  %v276_v17 = vshrl.u32 %v275_v11, 7 }
  0x46   :  { %7407 = vmatprep.subr.bf16.mxu0 %v8183_v1  ;;  %v164_v8 = vpack.c.bf16 %v155_v7, %v154_v6  ;;  %v246_v10 = vld [vmem:[%s8747_s21 + $0x8] sm:$0xff]  ;;  %v247_v12 = vld [vmem:[%s8747_s21 + $0x10] sm:$0x1]  ;;  %v254_v13 = vrot.slane %v245_v9, 1  ;;  %v6878_v15 = vld [vmem:[%s8737_s13] ss:$0 sm:$0xff] }
  0x47   :  { %7411 = vmatprep.mubr.msk.bf16.mxu0 %vm189_vm0, %v163_v4  ;;  %v255_v14 = vrot.slane %v246_v10, 1  ;;  %v257_v16 = vrot.slane %v247_v12, 1  ;;  %v248_v18 = vld [vmem:[%s8742_s17] sm:$0x1]  ;;  %v277_v27 = vsub.s32 0, %v276_v17 }
  0x48   :  { %v249_v23 = vadd.f32 %v248_v18, %v245_v9 }
  0x49   :  { %7408 = vmatpush3.bf16.msra.mxu0 %v8183_v1  ;;  %v256_v20 = vsel %vm253_vm1, %v254_v13, %v255_v14  ;;  %v258_v26 = vsel %vm253_vm1, %v255_v14, %v257_v16 }
  0x4a   :  { %7409 = vmatprep.subr.bf16.mxu0 %v8184_v5  ;;  %v278_v36 = vrot.slane %v249_v23, %v277_v27 }
  0x4d   :  { %7410 = vmatpush3.bf16.msra.mxu0 %v8184_v5 }
  0x50   :  { %7412 = vmatmul.mubr.msk.bf16.vlgmr.msra.gmra.mrb[0].mxu0 %vm189_vm0, %v164_v8 }
 0x123   :  { %v7413_v19 = vpop.f32.mrb[0].mxu0 }
 0x124   :  { %v239_v21 = vadd.f32 %v7413_v19, %v6878_v15  ;;  %v230_v22 = vpop.f32.mrb[1].mxu0 }
 0x125   :  { %v231_v24 = vadd.f32 %v6878_v15, %v230_v22  ;;  %v7414_v25 = vpop.f32.mrb[2].mxu0 }
 0x126   :  { %v263_v28 = vadd.f32 %v256_v20, %v239_v21  ;;  %v242_v29 = vadd.f32 %v7414_v25, %v6878_v15  ;;  %v233_v30 = vpop.f32.mrb[3].mxu0 }
 0x127   :  { %v261_v31 = vadd.f32 %v256_v20, %v231_v24  ;;  %v234_v32 = vadd.f32 %v6878_v15, %v233_v30 }
 0x128   :  { %v264_v33 = vadd.f32 %v258_v26, %v242_v29  ;;  %v283_v37 = vrot.slane %v263_v28, 6 }
 0x129   :  { %v268_v34 = vrot.slane %v261_v31, 7  ;;  %v262_v35 = vadd.f32 %v258_v26, %v234_v32 }
 0x12a   :  { %v284_v38 = vrot.slane %v264_v33, 6  }
 0x12b   :  { %v289_v39 = vsel %vm267_vm2, %v249_v23, %v268_v34   ;;  %v269_v40 = vrot.slane %v262_v35, 7 }
 0x12c   :  { %v285_v41 = vsel %vm282_vm3, %v283_v37, %v284_v38  }
 0x12d   :  { %v270_v42 = vsel %vm267_vm2, %v268_v34, %v269_v40   ;;  %v290_v43 = vsel %vm267_vm2, %v269_v40, %v278_v36 }
 0x12e   :  { %v291_v44 = vsel %vm282_vm3, %v290_v43, %v283_v37  }
 0x12f LB: > { %vm307_vm4 = vcmask 261120   ;;  %vm320_vm5 = vcmask 254976   ;;  %v8688_v6 = vmov 0.0   ;;  %s7153_s5 = sshll.u32 %s8650_s0, 4  ;;  %vm8689_vm6 = vmmov 0   ;;  %s303_s21 = scalar_lea.vmem %s8752_s25, %s8650_s0  ;;  %s8650_s0 = sphi %s8936_s0, %s297_s0   ;;  %v8646_v39 = vphi %v289_v39, %v10322_v39   ;;  %v8642_v42 = vphi %v270_v42, %v10321_v42   ;;  %v8638_v44 = vphi %v291_v44, %v10320_v44   ;;  %v8634_v41 = vphi %v285_v41, %v10319_v41   ;;  %v8630_v38 = vphi %v284_v38, %v10318_v38  }
 0x130   : > { %v308_v45 = vsel %vm307_vm4, %v8646_v39, 0.0  ;;  %v314_v46 = vsel %vm307_vm4, %v8638_v44, 0.0  ;;  %v311_v47 = vsel %vm307_vm4, %v8642_v42, 0.0  ;;  %v317_v48 = vsel %vm307_vm4, %v8634_v41, 0.0  ;;  %7415 = vmatprep.subr.bf16.mxu1 %v8688_v6  ;;  %7419 = vmatprep.mubr.msk.bf16.mxu1 %vm8689_vm6, %v8688_v6  ;;  %s399_s9 = scalar_lea.vmem %s8762_s3, %s7153_s5  ;;  %s8984_s13 = scalar_lea.vmem %s8772_s14, %s7153_s5  ;;  %v6884_v28 = vld [vmem:[%s303_s21] ss:$0 sm:$0xff] }
 0x131   : > { %309 = vadd.xlane.f32.xlu0 %v308_v45  ;;  %315 = vadd.xlane.f32.xlu1 %v314_v46  ;;  %v321_v5 = vsel %vm320_vm5, %v8630_v38, 0.0  ;;  %v8215_v7 = vld [vmem:[%s399_s9] sm:$0xff]   ;;  %s8987_s17 = scalar_lea.vmem %s8792_s6, %s7153_s5  ;;  %v8216_v8 = vld [vmem:[%s399_s9 + $0x8] sm:$0xff]   ;;  %s305_s28 = scalar_lea.vmem %s8757_s29, %s8650_s0  ;;  %vm501_vm7 = vcmask 64512   ;;  %vm562_vm8 = vcmask 138240   ;;  %vm569_vm9 = vcmask 131072  }
 0x132   : > { %7416 = vmatpush3.bf16.msra.mxu1 %v8215_v7  ;;  %v6885_v33 = vld [vmem:[%s305_s28] ss:$0 sm:$0xff]  ;;  %s404_s1 = scalar_lea.vmem %s8767_s8, %s8650_s0  ;;  %s8690_s2 = smov 96   ;;  %vm1205_vm10 = vsmask.f32 7424  ;;  %vm1197_vm11 = vcmask 130048  }
 0x133   : > { %7417 = vmatprep.subr.bf16.mxu1 %v8688_v6  ;;  %s8691_s7 = smov 88   ;;  %s8692_s10 = smov 120   ;;  %vm1201_vm12 = vcmask 195584   ;;  %vm2307_vm13 = vcmask 523264  }
 0x134   : > { %s8693_s11 = smov 112   ;;  %s8694_s15 = smov 80  }
 0x135   : > { %312 = vadd.xlane.f32.xlu0 %v311_v47  ;;  %318 = vadd.xlane.f32.xlu1 %v317_v48  ;;  %s8695_s16 = smov 64   ;;  %s8696_s18 = smov 56  }
 0x136   : > { %7418 = vmatpush3.bf16.msra.mxu1 %v8216_v8  ;;  %s8697_s22 = smov 48   ;;  %s8698_s23 = smov 72  }
 0x137   : > { %s8699_s26 = smov 104   ;;  %s8701_s5 = smov 40  }
 0x138   : > { %s8702_s9 = smov 8   ;;  %s8703_s21 = smov 16  }
 0x139   : > { %s8704_s28 = smov 24  }
 0x1be   : > { %v310_v49 = vpop.xlane.xlu0 %309  ;;  %v316_v50 = vpop.xlane.xlu1 %315 }
 0x1bf   : > { %v325_v51 = vmul.f32 0.03125, %v310_v49  ;;  %v327_v52 = vmul.f32 0.03125, %v316_v50 }
 0x1c1   : > { %v330_v53 = vsub.f32 %v8646_v39, %v325_v51  ;;  %v8966_v54 = vsub.f32 %v8638_v44, %v327_v52 }
 0x1c2   : > { %v313_v55 = vpop.xlane.xlu0 %312  ;;  %v319_v56 = vpop.xlane.xlu1 %318 }
 0x1c3   : > { %v326_v57 = vmul.f32 0.03125, %v313_v55  ;;  %v335_v58 = vmul.f32 %v330_v53, %v330_v53  ;;  %v328_v59 = vmul.f32 0.03125, %v319_v56  ;;  %v337_v60 = vmul.f32 %v8966_v54, %v8966_v54 }
 0x1c5   : > { %v331_v61 = vsub.f32 %v8642_v42, %v326_v57  ;;  %v340_v62 = vsel %vm307_vm4, %v335_v58, 0.0  ;;  %v333_v63 = vsub.f32 %v8634_v41, %v328_v59  ;;  %v346_v0 = vsel %vm307_vm4, %v337_v60, 0.0  ;;  %v9006_v59 = vld [vmem:[%s404_s1] ss:$0 sm:$0xff]  ;;  %s2031_s1 = scalar_lea.vmem %s8782_s24, %s8650_s0 }
 0x1c6   : > { %341 = vadd.xlane.f32.xlu0 %v340_v62 }
 0x1c7   : > { %v336_v1 = vmul.f32 %v331_v61, %v331_v61  ;;  %v338_v2 = vmul.f32 %v333_v63, %v333_v63 }
 0x1c9   : > { %v343_v3 = vsel %vm307_vm4, %v336_v1, 0.0  ;;  %v349_v4 = vsel %vm307_vm4, %v338_v2, 0.0 }
 0x1ca   : > { %347 = vadd.xlane.f32.xlu0 %v346_v0  ;;  %344 = vadd.xlane.f32.xlu1 %v343_v3 }
 0x1ce   : > { %350 = vadd.xlane.f32.xlu1 %v349_v4  ;;  %322 = vadd.xlane.f32.xlu0 %v321_v5 }
 0x253   : > { %v342_v9 = vpop.xlane.xlu0 %341 }
 0x254   : > { %v355_v10 = vmul.f32 0.03125, %v342_v9 }
 0x256   : > { %v360_v11 = vadd.f32 1e-12, %v355_v10 }
 0x257   : > { %v348_v12 = vpop.xlane.xlu0 %347  ;;  %v345_v13 = vpop.xlane.xlu1 %344 }
 0x258   : > { %8225 = vrsqrt.f32 %v360_v11  ;;  %v357_v14 = vmul.f32 0.03125, %v348_v12  ;;  %v356_v15 = vmul.f32 0.03125, %v345_v13 }
 0x25a   : > { %v361_v16 = vadd.f32 1e-12, %v356_v15  ;;  %v362_v17 = vadd.f32 1e-12, %v357_v14 }
 0x25b   : > { %v351_v18 = vpop.xlane.xlu1 %350  ;;  %v323_v19 = vpop.xlane.xlu0 %322 }
 0x25c   : > { %v358_v20 = vmul.f32 0.03125, %v351_v18  ;;  %v329_v21 = vmul.f32 0.03125, %v323_v19  ;;  %8227 = vrsqrt.f32 %v361_v16 }
 0x25d   : > { %8229 = vrsqrt.f32 %v362_v17 }
 0x25e   : > { %v363_v22 = vadd.f32 1e-12, %v358_v20  ;;  %v334_v23 = vsub.f32 %v8630_v38, %v329_v21 }
 0x260   : > { %8231 = vrsqrt.f32 %v363_v22  ;;  %v339_v24 = vmul.f32 %v334_v23, %v334_v23 }
 0x262   : > { %v8226_v25 = vpop.eup %8225  ;;  %v352_v26 = vsel %vm320_vm5, %v339_v24, 0.0 }
 0x263   : > { %353 = vadd.xlane.f32.xlu1 %v352_v26  ;;  %v370_v27 = vmul.f32 %v8226_v25, %v330_v53 }
 0x265   : > { %v381_v31 = vmul.f32 %v6884_v28, %v370_v27 }
 0x266   : > { %v8228_v29 = vpop.eup %8227 }
 0x267   : > { %v371_v30 = vmul.f32 %v8228_v29, %v331_v61  ;;  %v8230_v32 = vpop.eup %8229  ;;  %v392_v37 = vadd.f32 %v6885_v33, %v381_v31 }
 0x268   : > { %v372_v43 = vmul.f32 %v8230_v32, %v8966_v54 }
 0x269   : > { %v382_v35 = vmul.f32 %v6884_v28, %v371_v30 }
 0x26a   : > { %v8232_v34 = vpop.eup %8231  ;;  %v383_v47 = vmul.f32 %v6884_v28, %v372_v43 }
 0x26b   : > { %v373_v36 = vmul.f32 %v8232_v34, %v333_v63  ;;  %v393_v40 = vadd.f32 %v6885_v33, %v382_v35 }
 0x26c   : > { %v394_v49 = vadd.f32 %v6885_v33, %v383_v47 }
 0x26d   : > { %v406_v45 = vpack.c.bf16 %v393_v40, %v392_v37  ;;  %v384_v46 = vmul.f32 %v6884_v28, %v373_v36 }
 0x26f   : > { %7420 = vmatmul.mubr.msk.bf16.vlgmr.msra.gmra.mrb[0].mxu1 %vm307_vm4, %v406_v45  ;;  %v395_v48 = vadd.f32 %v6885_v33, %v384_v46 }
 0x270   : > { %7423 = vmatprep.mubr.msk.bf16.mxu1 %vm8689_vm6, %v8688_v6 }
 0x271   : > { %v407_v50 = vpack.c.bf16 %v395_v48, %v394_v49 }
 0x277   : > { %7424 = vmatmul.mubr.msk.bf16.gmra.mrb[4].mxu1 %vm307_vm4, %v407_v50 }
 0x278   : > { %7427 = vmatprep.mubr.msk.bf16.mxu1 %vm8689_vm6, %v8688_v6 }
 0x2f0   : > { %v354_v51 = vpop.xlane.xlu1 %353 }
 0x2f1   : > { %v359_v52 = vmul.f32 0.03125, %v354_v51 }
 0x2f3   : > { %v364_v53 = vadd.f32 1e-12, %v359_v52 }
 0x2f5   : > { %8233 = vrsqrt.f32 %v364_v53 }
 0x2ff   : > { %v8234_v54 = vpop.eup %8233 }
 0x300   : > { %v374_v55 = vmul.f32 %v8234_v54, %v334_v23 }
 0x302   : > { %v385_v56 = vmul.f32 %v6884_v28, %v374_v55 }
 0x304   : > { %v396_v57 = vadd.f32 %v6885_v33, %v385_v56 }
 0x306   : > { %v408_v58 = vpack.c.bf16 %v396_v57, %v396_v57 }
 0x308   : > { %7428 = vmatmul.mubr.msk.bf16.gmra.mrb[8].mxu1 %vm307_vm4, %v408_v58 }
 0x342   : > { %v470_v60 = vpop.f32.mrb[0].mxu1 }
 0x343   : > { %v7421_v61 = vpop.f32.mrb[1].mxu1  ;;  %v471_v63 = vadd.f32 %v9006_v59, %v470_v60 }
 0x344   : > { %v473_v62 = vpop.f32.mrb[2].mxu1 }
 0x345   : > { %v474_v0 = vadd.f32 %v9006_v59, %v473_v62  ;;  %v7422_v1 = vpop.f32.mrb[3].mxu1 }
 0x347   : > { %v9010_v2 = vpack.c.bf16 %v474_v0, %v471_v63 }
 0x349   : > { %497 = vrot.lane.b32.xlu0 %v9010_v2, %s8690_s2  ;;  %667 = vrot.lane.b32.xlu1 %v9010_v2, %s8691_s7 }
 0x34a   : > { %7435 = vmatprep.mubr.msk.bf16.mxu1 %vm501_vm7, %v9010_v2  ;;  %v478_v3 = vpop.f32.mrb[4].mxu1 }
 0x34b   : > { %v7425_v4 = vpop.f32.mrb[5].mxu1  ;;  %v479_v7 = vadd.f32 %v9006_v59, %v478_v3 }
 0x34c   : > { %v481_v5 = vpop.f32.mrb[6].mxu1 }
 0x34d   : > { %v482_v8 = vadd.f32 %v9006_v59, %v481_v5  ;;  %v7426_v9 = vpop.f32.mrb[7].mxu1  ;;  %663 = vrot.lane.b32.xlu0 %v9010_v2, %s8692_s10 }
 0x34f   : > { %v9022_v10 = vpack.c.bf16 %v482_v8, %v479_v7 }
 0x351   : > { %665 = vrot.lane.b32.xlu0 %v9022_v10, %s8692_s10  ;;  %499 = vrot.lane.b32.xlu1 %v9022_v10, %s8690_s2 }
 0x355   : > { %828 = vrot.lane.b32.xlu0 %v9010_v2, %s8693_s11  ;;  %669 = vrot.lane.b32.xlu1 %v9022_v10, %s8691_s7 }
 0x359   : > { %832 = vrot.lane.b32.xlu1 %v9010_v2, %s8694_s15 }
 0x35d   : > { %834 = vrot.lane.b32.xlu1 %v9022_v10, %s8694_s15 }
 0x361   : > { %830 = vrot.lane.b32.xlu1 %v9022_v10, %s8693_s11 }
 0x3bb   : > { %v668_v11 = vpop.permute.xlu1 %667  ;;  %v498_v12 = vpop.permute.xlu0 %497 }
 0x3bc   : > { %8051 = vmatprep.subr.msk.bf16.mxu1 %vm501_vm7, %v498_v12  ;;  %8053 = vmatprep.subr.msk.bf16.mxu0 %vm501_vm7, %v668_v11  ;;  %v509_v13 = vsel %vm501_vm7, %v498_v12, 0  ;;  %v678_v14 = vsel %vm501_vm7, %v668_v11, 0 }
 0x3bd   : > { %7432 = vmatpush3.bf16.xpose.msra.mxu1 %v509_v13  ;;  %7448 = vmatpush3.bf16.xpose.msra.mxu0 %v678_v14 }
 0x3bf   : > { %v664_v15 = vpop.permute.xlu0 %663 }
 0x3c0   : > { %7451 = vmatprep.mubr.msk.bf16.mxu0 %vm501_vm7, %v664_v15 }
 0x3c3   : > { %v500_v16 = vpop.permute.xlu1 %499  ;;  %v666_v20 = vpop.permute.xlu0 %665 }
 0x3c4   : > { %8052 = vmatprep.subr.msk.bf16.mxu1 %vm501_vm7, %v500_v16  ;;  %v512_v17 = vsel %vm501_vm7, %v500_v16, 0 }
 0x3c5   : > { %7434 = vmatpush3.bf16.xpose.msra.mxu1 %v512_v17 }
 0x3c7   : > { %v670_v18 = vpop.permute.xlu1 %669  ;;  %v829_v22 = vpop.permute.xlu0 %828 }
 0x3c8   : > { %8054 = vmatprep.subr.msk.bf16.mxu0 %vm501_vm7, %v670_v18  ;;  %v681_v19 = vsel %vm501_vm7, %v670_v18, 0 }
 0x3c9   : > { %7450 = vmatpush3.bf16.xpose.msra.mxu0 %v681_v19 }
 0x3cb   : > { %v833_v21 = vpop.permute.xlu1 %832 }
 0x3cc   : > { %7436 = vmatmul.mubr.msk.bf16.vlgmr.msra.gmra.mrb[12].mxu1 %vm501_vm7, %v9022_v10  ;;  %8055 = vmatprep.subr.msk.bf16.mxu0 %vm501_vm7, %v833_v21  ;;  %v843_v23 = vsel %vm501_vm7, %v833_v21, 0 }
 0x3cf   : > { %v835_v24 = vpop.permute.xlu1 %834 }
 0x3d0   : > { %7452 = vmatmul.mubr.msk.bf16.vlgmr.msra.gmra.mrb[0].mxu0 %vm501_vm7, %v666_v20  ;;  %v846_v25 = vsel %vm501_vm7, %v835_v24, 0 }
 0x3d1   : > { %7464 = vmatpush3.bf16.xpose.msra.mxu0 %v843_v23  ;;  %7467 = vmatprep.mubr.msk.bf16.mxu0 %vm501_vm7, %v829_v22 }
 0x3d2   : > { %8056 = vmatprep.subr.msk.bf16.mxu0 %vm501_vm7, %v835_v24 }
 0x3d3   : > { %v831_v30 = vpop.permute.xlu1 %830 }
 0x3d9   : > { %7466 = vmatpush3.bf16.xpose.msra.mxu0 %v846_v25 }
 0x3db   : > { %v9055_v26 = vpop.f32.mrb[8].mxu1 }
 0x3dc   : > { %v7429_v27 = vpop.f32.mrb[9].mxu1 }
 0x3dd   : > { %v489_v28 = vpop.f32.mrb[10].mxu1 }
 0x3de   : > { %v7430_v29 = vpop.f32.mrb[11].mxu1 }
 0x3e0   : > { %7468 = vmatmul.mubr.msk.bf16.vlgmr.msra.gmra.mrb[4].mxu0 %vm501_vm7, %v831_v30 }
 0x49f   : > { %v7437_v31 = vpop.f32.mrb[12].mxu1 }
 0x4a0   : > { %v548_v32 = vpop.f32.mrb[13].mxu1  ;;  %v570_v45 = vsel %vm569_vm9, %v7437_v31, -inf }
 0x4a1   : > { %v7438_v33 = vpop.f32.mrb[14].mxu1  ;;  %v563_v34 = vsel %vm562_vm8, %v548_v32, -inf }
 0x4a2   : > { %564 = vmax.xlane.f32.xlu0 %v563_v34  ;;  %v551_v35 = vpop.f32.mrb[15].mxu1 }
 0x4a3   : > { %v7453_v36 = vpop.f32.mrb[0].mxu0  ;;  %v566_v37 = vsel %vm562_vm8, %v551_v35, -inf }
 0x4a4   : > { %567 = vmax.xlane.f32.xlu1 %v566_v37  ;;  %v717_v40 = vpop.f32.mrb[1].mxu0  ;;  %v737_v47 = vsel %vm569_vm9, %v7453_v36, -inf }
 0x4a5   : > { %v7454_v43 = vpop.f32.mrb[2].mxu0  ;;  %v731_v48 = vsel %vm562_vm8, %v717_v40, -inf }
 0x4a6   : > { %571 = vmax.xlane.f32.xlu0 %v570_v45  ;;  %v720_v46 = vpop.f32.mrb[3].mxu0 }
 0x4a7   : > { %v734_v49 = vsel %vm562_vm8, %v720_v46, -inf }
 0x4a8   : > { %738 = vmax.xlane.f32.xlu1 %v737_v47 }
 0x4aa   : > { %732 = vmax.xlane.f32.xlu0 %v731_v48 }
 0x4ae   : > { %735 = vmax.xlane.f32.xlu0 %v734_v49 }
 0x4b3   : > { %v7469_v50 = vpop.f32.mrb[4].mxu0 }
 0x4b4   : > { %v882_v51 = vpop.f32.mrb[5].mxu0  ;;  %v902_v56 = vsel %vm569_vm9, %v7469_v50, -inf }
 0x4b5   : > { %v7470_v52 = vpop.f32.mrb[6].mxu0  ;;  %v896_v53 = vsel %vm562_vm8, %v882_v51, -inf }
 0x4b6   : > { %897 = vmax.xlane.f32.xlu0 %v896_v53  ;;  %v885_v54 = vpop.f32.mrb[7].mxu0 }
 0x4b7   : > { %v899_v55 = vsel %vm562_vm8, %v885_v54, -inf }
 0x4b8   : > { %900 = vmax.xlane.f32.xlu1 %v899_v55 }
 0x4ba   : > { %903 = vmax.xlane.f32.xlu0 %v902_v56 }
 0x4c9   : > { %599 = vrot.lane.b32.xlu1 %v9010_v2, %s8695_s16 }
 0x52f   : > { %v565_v57 = vpop.xlane.xlu0 %564 }
 0x530   : > { %v573_v58 = vsub.f32 %v548_v32, %v565_v57 }
 0x531   : > { %v568_v60 = vpop.xlane.xlu1 %567 }
 0x532   : > { %v576_v63 = vmul.f32 1.442695, %v573_v58  ;;  %v574_v4 = vsub.f32 %v551_v35, %v568_v60 }
 0x533   : > { %v572_v61 = vpop.xlane.xlu0 %571 }
 0x534   : > { %v575_v62 = vsub.f32 %v7437_v31, %v572_v61  ;;  %v578_v11 = vmul.f32 1.442695, %v574_v4  ;;  %v8700_v4 = vmov 0  }
 0x535   : > { %v739_v0 = vpop.xlane.xlu1 %738 }
 0x536   : > { %v580_v1 = vmul.f32 1.442695, %v575_v62  ;;  %v742_v3 = vsub.f32 %v7453_v36, %v739_v0 }
 0x537   : > { %v733_v5 = vpop.xlane.xlu0 %732 }
 0x538   : > { %8235 = vpow2.f32 %v580_v1  ;;  %v747_v7 = vmul.f32 1.442695, %v742_v3  ;;  %v740_v8 = vsub.f32 %v717_v40, %v733_v5  ;;  %v9123_v5 = vsel %vm267_vm2, 65535, %v8700_v4 }
 0x539   : > { %8237 = vpow2.f32 %v576_v63 }
 0x53a   : > { %8239 = vpow2.f32 %v747_v7  ;;  %v743_v9 = vmul.f32 1.442695, %v740_v8 }
 0x53b   : > { %v736_v12 = vpop.xlane.xlu0 %735 }
 0x53c   : > { %8241 = vpow2.f32 %v743_v9  ;;  %v741_v13 = vsub.f32 %v720_v46, %v736_v12 }
 0x53d   : > { %8243 = vpow2.f32 %v578_v11 }
 0x53e   : > { %v745_v14 = vmul.f32 1.442695, %v741_v13 }
 0x540   : > { %8245 = vpow2.f32 %v745_v14 }
 0x542   : > { %v9069_v15 = vpop.eup %8235 }
 0x543   : > { %v9071_v16 = vpop.eup %8237  ;;  %v898_v17 = vpop.xlane.xlu0 %897  ;;  %v588_v18 = vsel %vm569_vm9, %v9069_v15, 0.0 }
 0x544   : > { %v9075_v19 = vpop.eup %8239  ;;  %589 = vadd.xlane.f32.xlu1 %v588_v18  ;;  %v905_v23 = vsub.f32 %v882_v51, %v898_v17  ;;  %v582_v25 = vsel %vm562_vm8, %v9071_v16, 0.0 }
 0x545   : > { %v901_v20 = vpop.xlane.xlu1 %900  ;;  %v755_v21 = vsel %vm569_vm9, %v9075_v19, 0.0 }
 0x546   : > { %v9079_v22 = vpop.eup %8241  ;;  %756 = vadd.xlane.f32.xlu0 %v755_v21  ;;  %v908_v32 = vmul.f32 1.442695, %v905_v23  ;;  %v906_v33 = vsub.f32 %v885_v54, %v901_v20 }
 0x547   : > { %v904_v24 = vpop.xlane.xlu0 %903  ;;  %v8244_v28 = vpop.eup %8243  ;;  %v749_v30 = vsel %vm562_vm8, %v9079_v22, 0.0 }
 0x548   : > { %v907_v27 = vsub.f32 %v7469_v50, %v904_v24  ;;  %583 = vadd.xlane.f32.xlu1 %v582_v25  ;;  %v585_v36 = vsel %vm562_vm8, %v8244_v28, 0.0  ;;  %v910_v37 = vmul.f32 1.442695, %v906_v33 }
 0x549   : > { %v600_v29 = vpop.permute.xlu1 %599 }
 0x54a   : > { %v9085_v31 = vpop.eup %8245  ;;  %v912_v34 = vmul.f32 1.442695, %v907_v27  ;;  %7439 = vmatprep.subr.bf16.mxu1 %v600_v29  ;;  %750 = vadd.xlane.f32.xlu0 %v749_v30 }
 0x54b   : > { %7440 = vmatpush3.bf16.msra.mxu1 %v600_v29  ;;  %v752_v35 = vsel %vm562_vm8, %v9085_v31, 0.0 }
 0x54c   : > { %8247 = vpow2.f32 %v912_v34  ;;  %753 = vadd.xlane.f32.xlu1 %v752_v35 }
 0x54d   : > { %8249 = vpow2.f32 %v908_v32 }
 0x54e   : > { %586 = vadd.xlane.f32.xlu0 %v585_v36  ;;  %8251 = vpow2.f32 %v910_v37 }
 0x556   : > { %v9090_v40 = vpop.eup %8247 }
 0x557   : > { %v920_v43 = vsel %vm569_vm9, %v9090_v40, 0.0  ;;  %v9094_v45 = vpop.eup %8249 }
 0x558   : > { %921 = vadd.xlane.f32.xlu0 %v920_v43  ;;  %v914_v46 = vsel %vm562_vm8, %v9094_v45, 0.0  ;;  %v9098_v47 = vpop.eup %8251 }
 0x559   : > { %v917_v48 = vsel %vm562_vm8, %v9098_v47, 0.0 }
 0x55c   : > { %915 = vadd.xlane.f32.xlu0 %v914_v46 }
 0x55d   : > { %766 = vrot.lane.b32.xlu1 %v9010_v2, %s8696_s18 }
 0x560   : > { %918 = vadd.xlane.f32.xlu0 %v917_v48 }
 0x561   : > { %768 = vrot.lane.b32.xlu1 %v9022_v10, %s8696_s18 }
 0x565   : > { %931 = vrot.lane.b32.xlu1 %v9010_v2, %s8697_s22 }
 0x569   : > { %933 = vrot.lane.b32.xlu1 %v9022_v10, %s8697_s22 }
 0x56d   : > { %997 = vrot.lane.b32.xlu1 %v9010_v2, %s8698_s23 }
 0x571   : > { %999 = vrot.lane.b32.xlu1 %v9022_v10, %s8698_s23 }
 0x575   : > { %995 = vrot.lane.b32.xlu1 %v9022_v10, %s8699_s26 }
 0x576   : > { %601 = vrot.lane.b32.xlu0 %v9022_v10, %s8695_s16 }
 0x57a   : > { %993 = vrot.lane.b32.xlu0 %v9010_v2, %s8699_s26 }
 0x5d1   : > { %v590_v49 = vpop.xlane.xlu1 %589 }
 0x5d3   : > { %v757_v50 = vpop.xlane.xlu0 %756 }
 0x5d5   : > { %v584_v51 = vpop.xlane.xlu1 %583 }
 0x5d6   : > { %8253 = vrcp.f32 %v584_v51 }
 0x5d7   : > { %v751_v52 = vpop.xlane.xlu0 %750 }
 0x5d9   : > { %v754_v54 = vpop.xlane.xlu1 %753 }
 0x5db   : > { %v587_v53 = vpop.xlane.xlu0 %586 }
 0x5dc   : > { %8255 = vrcp.f32 %v587_v53 }
 0x5dd   : > { %8257 = vrcp.f32 %v590_v49  ;;  %v767_v63 = vpop.permute.xlu1 %766 }
 0x5de   : > { %8259 = vrcp.f32 %v754_v54 }
 0x5df   : > { %8261 = vrcp.f32 %v751_v52 }
 0x5e0   : > { %v8254_v55 = vpop.eup %8253  ;;  %8263 = vrcp.f32 %v757_v50 }
 0x5e1   : > { %v594_v58 = vmul.f32 %v8254_v55, %v9071_v16  ;;  %v769_v7 = vpop.permute.xlu1 %768 }
 0x5e2   : > { %v778_v23 = vand.u32 %v769_v7, %v9123_v5 }
 0x5e5   : > { %v922_v56 = vpop.xlane.xlu0 %921  ;;  %v932_v18 = vpop.permute.xlu1 %931 }
 0x5e6   : > { %v8256_v57 = vpop.eup %8255 }
 0x5e7   : > { %v595_v60 = vmul.f32 %v8256_v57, %v8244_v28  ;;  %v8258_v1 = vpop.eup %8257 }
 0x5e8   : > { %v8260_v3 = vpop.eup %8259  ;;  %v596_v11 = vmul.f32 %v8258_v1, %v9069_v15 }
 0x5e9   : > { %v916_v61 = vpop.xlane.xlu0 %915  ;;  %v597_v62 = vpack.c.bf16 %v595_v60, %v594_v58  ;;  %v8262_v9 = vpop.eup %8261  ;;  %v762_v13 = vmul.f32 %v8260_v3, %v9085_v31 }
 0x5ea   : > { %v761_v14 = vmul.f32 %v8262_v9, %v9079_v22  ;;  %v598_v16 = vpack.c.bf16 %v596_v11, %v596_v11  ;;  %v8264_v17 = vpop.eup %8263  ;;  %v934_v22 = vpop.permute.xlu1 %933 }
 0x5eb   : > { %7443 = vmatprep.mubr.msk.bf16.mxu1 %vm562_vm8, %v597_v62  ;;  %v763_v24 = vmul.f32 %v8264_v17, %v9075_v19  ;;  %v943_v31 = vand.u32 %v934_v22, %v9123_v5 }
 0x5ec   : > { %v764_v20 = vpack.c.bf16 %v762_v13, %v761_v14 }
 0x5ed   : > { %v919_v0 = vpop.xlane.xlu0 %918  ;;  %v765_v28 = vpack.c.bf16 %v763_v24, %v763_v24 }
 0x5ee   : > { %8265 = vrcp.f32 %v919_v0  ;;  %v998_v32 = vpop.permute.xlu1 %997 }
 0x5ef   : > { %8267 = vrcp.f32 %v916_v61  ;;  %v1008_v35 = vsel %vm501_vm7, %v998_v32, 0 }
 0x5f0   : > { %8269 = vrcp.f32 %v922_v56 }
 0x5f1   : > { %v602_v8 = vpop.permute.xlu0 %601 }
 0x5f2   : > { %v613_v12 = vand.u32 %v9123_v5, %v602_v8  ;;  %v1000_v36 = vpop.permute.xlu1 %999 }
 0x5f3   : > { %v1011_v37 = vsel %vm501_vm7, %v1000_v36, 0 }
 0x5f4   : > { %7441 = vmatprep.subr.bf16.mxu1 %v613_v12 }
 0x5f5   : > { %7442 = vmatpush3.bf16.msra.mxu1 %v613_v12  ;;  %v994_v34 = vpop.permute.xlu0 %993 }
 0x5f6   : > { %7455 = vmatprep.subr.bf16.mxu1 %v767_v63 }
 0x5f8   : > { %v8266_v21 = vpop.eup %8265  ;;  %7444 = vmatmul.mubr.msk.bf16.vlgmr.msra.gmra.mrb[16].mxu1 %vm562_vm8, %v598_v16 }
 0x5f9   : > { %7456 = vmatpush3.bf16.msra.mxu1 %v767_v63  ;;  %7459 = vmatprep.mubr.msk.bf16.mxu1 %vm562_vm8, %v764_v20  ;;  %v8268_v15 = vpop.eup %8267  ;;  %v927_v25 = vmul.f32 %v8266_v21, %v9098_v47 }
 0x5fa   : > { %7457 = vmatprep.subr.bf16.mxu1 %v778_v23  ;;  %v926_v27 = vmul.f32 %v8268_v15, %v9094_v45  ;;  %v8270_v29 = vpop.eup %8269  ;;  %v487_v15 = vadd.f32 %v9006_v59, %v9055_v26 }
 0x5fb   : > { %v928_v19 = vmul.f32 %v8270_v29, %v9090_v40  ;;  %v996_v40 = vpop.permute.xlu1 %995 }
 0x5fc   : > { %v929_v30 = vpack.c.bf16 %v927_v25, %v926_v27  ;;  %v494_v24 = vpack.c.bf16 %v487_v15, %v487_v15  ;;  %v1208_v25 = vshll.u32 %v9022_v10, 16 }
 0x5fd   : > { %7458 = vmatpush3.bf16.msra.mxu1 %v778_v23  ;;  %v930_v33 = vpack.c.bf16 %v928_v19, %v928_v19 }
 0x5fe   : > { %7471 = vmatprep.subr.bf16.mxu1 %v932_v18  ;;  %v1213_v22 = vshll.u32 %v494_v24, 16  ;;  %v1210_v27 = vrot.slane %v1208_v25, 1  ;;  %v9186_v59 = vshrl.u32 %v494_v24, 16 }
 0x600   : > { %7460 = vmatmul.mubr.msk.bf16.vlgmr.msra.gmra.mrb[20].mxu1 %vm562_vm8, %v765_v28  ;;  %v1206_v28 = vshrl.u32 %v9022_v10, 16  ;;  %v1215_v29 = vrot.slane %v1213_v22, 1 }
 0x601   : > { %7472 = vmatpush3.bf16.msra.mxu1 %v932_v18  ;;  %7475 = vmatprep.mubr.msk.bf16.mxu1 %vm562_vm8, %v929_v30 }
 0x602   : > { %7473 = vmatprep.subr.bf16.mxu1 %v943_v31  ;;  %v1211_v30 = vor.u32 %v1210_v27, %v1206_v28 }
 0x605   : > { %7474 = vmatpush3.bf16.msra.mxu1 %v943_v31  ;;  %v9180_v31 = vsel %vm1205_vm10, %v1211_v30, %v1215_v29 }
 0x606   : > { %8057 = vmatprep.subr.msk.bf16.mxu1 %vm501_vm7, %v998_v32 }
 0x608   : > { %7476 = vmatmul.mubr.msk.bf16.vlgmr.msra.gmra.mrb[24].mxu1 %vm562_vm8, %v930_v33 }
 0x609   : > { %7483 = vmatprep.mubr.msk.bf16.mxu1 %vm501_vm7, %v994_v34 }
 0x60e   : > { %7480 = vmatpush3.bf16.xpose.msra.mxu1 %v1008_v35 }
 0x60f   : > { %8058 = vmatprep.subr.msk.bf16.mxu1 %vm501_vm7, %v1000_v36 }
 0x616   : > { %7482 = vmatpush3.bf16.xpose.msra.mxu1 %v1011_v37 }
 0x61d   : > { %7484 = vmatmul.mubr.msk.bf16.vlgmr.msra.gmra.mrb[28].mxu1 %vm501_vm7, %v996_v40 }
 0x6cb   : > { %v9146_v43 = vpop.f32.mrb[16].mxu1 }
 0x6cc   : > { %v9148_v45 = vpop.f32.mrb[17].mxu1 }
 0x6cd   : > { %v7446_v46 = vpop.f32.mrb[18].mxu1 }
 0x6ce   : > { %v9150_v47 = vpop.f32.mrb[19].mxu1 }
 0x6d3   : > { %v9152_v48 = vpop.f32.mrb[20].mxu1 }
 0x6d4   : > { %v9154_v49 = vpop.f32.mrb[21].mxu1 }
 0x6d5   : > { %v7462_v50 = vpop.f32.mrb[22].mxu1 }
 0x6d6   : > { %v9156_v51 = vpop.f32.mrb[23].mxu1 }
 0x6d7   : > { %v8185_v52 = vpack.i.bf16 %v9156_v51, %v9154_v49 }
 0x6db   : > { %v9160_v53 = vpop.f32.mrb[24].mxu1 }
 0x6dc   : > { %v9162_v54 = vpop.f32.mrb[25].mxu1 }
 0x6dd   : > { %v7478_v55 = vpop.f32.mrb[26].mxu1 }
 0x6de   : > { %v9164_v56 = vpop.f32.mrb[27].mxu1 }
 0x6df   : > { %v8190_v57 = vpack.i.bf16 %v9164_v56, %v9162_v54 }
 0x6f0   : > { %v7485_v58 = vpop.f32.mrb[28].mxu1 }
 0x6f1   : > { %v1047_v60 = vpop.f32.mrb[29].mxu1  ;;  %v1067_v1 = vsel %vm569_vm9, %v7485_v58, -inf }
 0x6f2   : > { %v7486_v61 = vpop.f32.mrb[30].mxu1  ;;  %v1061_v62 = vsel %vm562_vm8, %v1047_v60, -inf }
 0x6f3   : > { %1062 = vmax.xlane.f32.xlu0 %v1061_v62  ;;  %v1050_v63 = vpop.f32.mrb[31].mxu1 }
 0x6f4   : > { %v1064_v0 = vsel %vm562_vm8, %v1050_v63, -inf }
 0x6f5   : > { %1065 = vmax.xlane.f32.xlu1 %v1064_v0 }
 0x6f7   : > { %1068 = vmax.xlane.f32.xlu0 %v1067_v1 }
 0x780   : > { %v1063_v3 = vpop.xlane.xlu0 %1062 }
 0x781   : > { %v1070_v4 = vsub.f32 %v1047_v60, %v1063_v3 }
 0x782   : > { %v1066_v7 = vpop.xlane.xlu1 %1065 }
 0x783   : > { %v1073_v8 = vmul.f32 1.442695, %v1070_v4  ;;  %v1071_v9 = vsub.f32 %v1050_v63, %v1066_v7 }
 0x784   : > { %v1069_v11 = vpop.xlane.xlu0 %1068 }
 0x785   : > { %8271 = vpow2.f32 %v1073_v8  ;;  %v1075_v12 = vmul.f32 1.442695, %v1071_v9  ;;  %v1072_v13 = vsub.f32 %v7485_v58, %v1069_v11 }
 0x787   : > { %8273 = vpow2.f32 %v1075_v12  ;;  %v1077_v14 = vmul.f32 1.442695, %v1072_v13 }
 0x789   : > { %8275 = vpow2.f32 %v1077_v14 }
 0x78f   : > { %v8272_v16 = vpop.eup %8271 }
 0x790   : > { %v1079_v17 = vsel %vm562_vm8, %v8272_v16, 0.0 }
 0x791   : > { %v8274_v18 = vpop.eup %8273  ;;  %1080 = vadd.xlane.f32.xlu0 %v1079_v17 }
 0x792   : > { %v1082_v23 = vsel %vm562_vm8, %v8274_v18, 0.0 }
 0x793   : > { %v8276_v20 = vpop.eup %8275 }
 0x794   : > { %v1085_v21 = vsel %vm569_vm9, %v8276_v20, 0.0 }
 0x795   : > { %1086 = vadd.xlane.f32.xlu1 %v1085_v21  ;;  %1083 = vadd.xlane.f32.xlu0 %v1082_v23 }
 0x7a6   : > { %1098 = vrot.lane.b32.xlu1 %v9022_v10, %s8701_s5 }
 0x7aa   : > { %1219 = vrot.lane.b32.xlu1 %v9180_v31, %s8690_s2 }
 0x7ab   : > { %1096 = vrot.lane.b32.xlu0 %v9010_v2, %s8701_s5 }
 0x7ae   : > { %1221 = vrot.lane.b32.xlu1 %v9186_v59, %s8690_s2  ;;  %s2033_s2 = scalar_lea.vmem %s8787_s30, %s8650_s0 }
 0x81e   : > { %v1081_v26 = vpop.xlane.xlu0 %1080 }
 0x81f   : > { %8277 = vrcp.f32 %v1081_v26 }
 0x822   : > { %v1084_v19 = vpop.xlane.xlu0 %1083  ;;  %v1087_v32 = vpop.xlane.xlu1 %1086 }
 0x823   : > { %8279 = vrcp.f32 %v1084_v19 }
 0x824   : > { %8281 = vrcp.f32 %v1087_v32 }
 0x826   : > { %v1097_v10 = vpop.permute.xlu0 %1096  ;;  %v1099_v33 = vpop.permute.xlu1 %1098 }
 0x827   : > { %v1108_v34 = vand.u32 %v1099_v33, %v9123_v5  ;;  %7487 = vmatprep.subr.bf16.mxu0 %v1097_v10 }
 0x828   : > { %7488 = vmatpush3.bf16.msra.mxu0 %v1097_v10 }
 0x829   : > { %7489 = vmatprep.subr.bf16.mxu0 %v1108_v34  ;;  %v8278_v35 = vpop.eup %8277 }
 0x82a   : > { %v1220_v2 = vpop.permute.xlu1 %1219  ;;  %v1091_v40 = vmul.f32 %v8278_v35, %v8272_v16 }
 0x82b   : > { %v1230_v60 = vsel %vm501_vm7, %v1220_v2, 0 }
 0x82c   : > { %7490 = vmatpush3.bf16.msra.mxu0 %v1108_v34 }
 0x82d   : > { %v8280_v36 = vpop.eup %8279  ;;  %8059 = vmatprep.subr.msk.bf16.mxu0 %vm501_vm7, %v1220_v2 }
 0x82e   : > { %v8282_v37 = vpop.eup %8281  ;;  %v1092_v46 = vmul.f32 %v8280_v36, %v8274_v18  ;;  %v1222_v61 = vpop.permute.xlu1 %1221 }
 0x82f   : > { %v1093_v50 = vmul.f32 %v8282_v37, %v8276_v20  ;;  %v1233_v62 = vsel %vm501_vm7, %v1222_v61, 0 }
 0x830   : > { %v1094_v55 = vpack.c.bf16 %v1092_v46, %v1091_v40 }
 0x831   : > { %v1095_v58 = vpack.c.bf16 %v1093_v50, %v1093_v50 }
 0x832   : > { %7491 = vmatprep.mubr.msk.bf16.mxu0 %vm562_vm8, %v1094_v55 }
 0x833   : > { %7492 = vmatmul.mubr.msk.bf16.vlgmr.msra.gmra.mrb[8].mxu0 %vm562_vm8, %v1095_v58 }
 0x834   : > { %7499 = vmatprep.mubr.msk.bf16.mxu0 %vm501_vm7, %v9180_v31 }
 0x835   : > { %7496 = vmatpush3.bf16.xpose.msra.mxu0 %v1230_v60 }
 0x836   : > { %8060 = vmatprep.subr.msk.bf16.mxu0 %vm501_vm7, %v1222_v61 }
 0x83d   : > { %7498 = vmatpush3.bf16.xpose.msra.mxu0 %v1233_v62 }
 0x844   : > { %7500 = vmatmul.mubr.msk.bf16.vlgmr.msra.gmra.mrb[12].mxu0 %vm501_vm7, %v9186_v59 }
 0x906   : > { %v9201_v63 = vpop.f32.mrb[8].mxu0 }
 0x907   : > { %v9203_v0 = vpop.f32.mrb[9].mxu0 }
 0x908   : > { %v7494_v1 = vpop.f32.mrb[10].mxu0 }
 0x909   : > { %v9205_v3 = vpop.f32.mrb[11].mxu0 }
 0x90a   : > { %v8195_v4 = vpack.i.bf16 %v9205_v3, %v9203_v0 }
 0x917   : > { %v7501_v7 = vpop.f32.mrb[12].mxu0 }
 0x918   : > { %v1269_v8 = vpop.f32.mrb[13].mxu0  ;;  %v1289_v14 = vsel %vm569_vm9, %v7501_v7, -inf }
 0x919   : > { %v7502_v9 = vpop.f32.mrb[14].mxu0  ;;  %v1283_v11 = vsel %vm562_vm8, %v1269_v8, -inf }
 0x91a   : > { %1284 = vmax.xlane.f32.xlu0 %v1283_v11  ;;  %v1272_v12 = vpop.f32.mrb[15].mxu0 }
 0x91b   : > { %v1286_v13 = vsel %vm562_vm8, %v1272_v12, -inf }
 0x91c   : > { %1287 = vmax.xlane.f32.xlu1 %v1286_v13 }
 0x91e   : > { %1290 = vmax.xlane.f32.xlu0 %v1289_v14 }
 0x9a7   : > { %v1285_v16 = vpop.xlane.xlu0 %1284 }
 0x9a8   : > { %v1292_v17 = vsub.f32 %v1269_v8, %v1285_v16 }
 0x9a9   : > { %v1288_v18 = vpop.xlane.xlu1 %1287 }
 0x9aa   : > { %v1295_v20 = vmul.f32 1.442695, %v1292_v17  ;;  %v1293_v21 = vsub.f32 %v1272_v12, %v1288_v18 }
 0x9ab   : > { %v1291_v23 = vpop.xlane.xlu0 %1290 }
 0x9ac   : > { %8283 = vpow2.f32 %v1295_v20  ;;  %v1297_v15 = vmul.f32 1.442695, %v1293_v21  ;;  %v1294_v24 = vsub.f32 %v7501_v7, %v1291_v23 }
 0x9ae   : > { %8285 = vpow2.f32 %v1297_v15  ;;  %v1299_v25 = vmul.f32 1.442695, %v1294_v24 }
 0x9b0   : > { %8287 = vpow2.f32 %v1299_v25 }
 0x9b6   : > { %v8284_v22 = vpop.eup %8283 }
 0x9b7   : > { %v1301_v27 = vsel %vm562_vm8, %v8284_v22, 0.0 }
 0x9b8   : > { %v8286_v28 = vpop.eup %8285  ;;  %1302 = vadd.xlane.f32.xlu0 %v1301_v27 }
 0x9b9   : > { %v1304_v26 = vsel %vm562_vm8, %v8286_v28, 0.0 }
 0x9ba   : > { %v8288_v29 = vpop.eup %8287 }
 0x9bb   : > { %v1307_v30 = vsel %vm569_vm9, %v8288_v29, 0.0 }
 0x9bc   : > { %1308 = vadd.xlane.f32.xlu1 %v1307_v30  ;;  %1305 = vadd.xlane.f32.xlu0 %v1304_v26 }
 0x9cd   : > { %1320 = vrot.lane.b32.xlu1 %v9186_v59, %s8695_s16 }
 0x9d1   : > { %1384 = vrot.lane.b32.xlu1 %v9180_v31, %s8691_s7 }
 0x9d2   : > { %1318 = vrot.lane.b32.xlu0 %v9180_v31, %s8695_s16  ;;  %s10317_s16 = sld [smem:[#allocation7_spill]] }
 0x9d5   : > { %1386 = vrot.lane.b32.xlu1 %v9186_v59, %s8691_s7  ;;  %s7156_s7 = sshll.u32 %s8650_s0, 5 }
 0x9d6   : > { %1380 = vrot.lane.b32.xlu0 %v9180_v31, %s8692_s10 }
 0x9d9   : > { %1382 = vrot.lane.b32.xlu1 %v9186_v59, %s8692_s10 }
 0xa45   : > { %v1303_v19 = vpop.xlane.xlu0 %1302 }
 0xa46   : > { %8289 = vrcp.f32 %v1303_v19 }
 0xa49   : > { %v1306_v32 = vpop.xlane.xlu0 %1305  ;;  %v1309_v10 = vpop.xlane.xlu1 %1308 }
 0xa4a   : > { %8291 = vrcp.f32 %v1306_v32 }
 0xa4b   : > { %8293 = vrcp.f32 %v1309_v10 }
 0xa4d   : > { %v1319_v33 = vpop.permute.xlu0 %1318  ;;  %v1321_v34 = vpop.permute.xlu1 %1320 }
 0xa4e   : > { %v1330_v35 = vand.u32 %v1321_v34, %v9123_v5  ;;  %7503 = vmatprep.subr.bf16.mxu1 %v1319_v33 }
 0xa4f   : > { %7504 = vmatpush3.bf16.msra.mxu1 %v1319_v33 }
 0xa50   : > { %7505 = vmatprep.subr.bf16.mxu1 %v1330_v35  ;;  %v8290_v2 = vpop.eup %8289 }
 0xa51   : > { %v1385_v36 = vpop.permute.xlu1 %1384  ;;  %v1313_v46 = vmul.f32 %v8290_v2, %v8284_v22  ;;  %v1381_v61 = vpop.permute.xlu0 %1380 }
 0xa52   : > { %v1395_v62 = vsel %vm501_vm7, %v1385_v36, 0 }
 0xa53   : > { %7506 = vmatpush3.bf16.msra.mxu1 %v1330_v35 }
 0xa54   : > { %v8292_v37 = vpop.eup %8291  ;;  %8061 = vmatprep.subr.msk.bf16.mxu1 %vm501_vm7, %v1385_v36 }
 0xa55   : > { %v8294_v40 = vpop.eup %8293  ;;  %v1314_v50 = vmul.f32 %v8292_v37, %v8286_v28  ;;  %v1387_v1 = vpop.permute.xlu1 %1386 }
 0xa56   : > { %v1315_v55 = vmul.f32 %v8294_v40, %v8288_v29  ;;  %v1398_v7 = vsel %vm501_vm7, %v1387_v1, 0 }
 0xa57   : > { %v1316_v58 = vpack.c.bf16 %v1314_v50, %v1313_v46 }
 0xa58   : > { %v1317_v60 = vpack.c.bf16 %v1315_v55, %v1315_v55 }
 0xa59   : > { %7507 = vmatprep.mubr.msk.bf16.mxu1 %vm562_vm8, %v1316_v58  ;;  %v1383_v8 = vpop.permute.xlu1 %1382 }
 0xa5a   : > { %7508 = vmatmul.mubr.msk.bf16.vlgmr.msra.gmra.mrb[32].mxu1 %vm562_vm8, %v1317_v60 }
 0xa5b   : > { %7515 = vmatprep.mubr.msk.bf16.mxu1 %vm501_vm7, %v1381_v61 }
 0xa5c   : > { %7512 = vmatpush3.bf16.xpose.msra.mxu1 %v1395_v62 }
 0xa5d   : > { %8062 = vmatprep.subr.msk.bf16.mxu1 %vm501_vm7, %v1387_v1 }
 0xa64   : > { %7514 = vmatpush3.bf16.xpose.msra.mxu1 %v1398_v7 }
 0xa6b   : > { %7516 = vmatmul.mubr.msk.bf16.vlgmr.msra.gmra.mrb[36].mxu1 %vm501_vm7, %v1383_v8 }
 0xb2d   : > { %v9236_v9 = vpop.f32.mrb[32].mxu1 }
 0xb2e   : > { %v9238_v11 = vpop.f32.mrb[33].mxu1 }
 0xb2f   : > { %v7510_v12 = vpop.f32.mrb[34].mxu1 }
 0xb30   : > { %v9240_v13 = vpop.f32.mrb[35].mxu1 }
 0xb3e   : > { %v7517_v14 = vpop.f32.mrb[36].mxu1 }
 0xb3f   : > { %v1434_v16 = vpop.f32.mrb[37].mxu1  ;;  %v1454_v23 = vsel %vm569_vm9, %v7517_v14, -inf }
 0xb40   : > { %v7518_v17 = vpop.f32.mrb[38].mxu1  ;;  %v1448_v18 = vsel %vm562_vm8, %v1434_v16, -inf }
 0xb41   : > { %1449 = vmax.xlane.f32.xlu0 %v1448_v18  ;;  %v1437_v20 = vpop.f32.mrb[39].mxu1 }
 0xb42   : > { %v1451_v21 = vsel %vm562_vm8, %v1437_v20, -inf }
 0xb43   : > { %1452 = vmax.xlane.f32.xlu1 %v1451_v21 }
 0xb45   : > { %1455 = vmax.xlane.f32.xlu0 %v1454_v23 }
 0xbce   : > { %v1450_v15 = vpop.xlane.xlu0 %1449 }
 0xbcf   : > { %v1457_v24 = vsub.f32 %v1434_v16, %v1450_v15 }
 0xbd0   : > { %v1453_v25 = vpop.xlane.xlu1 %1452 }
 0xbd1   : > { %v1460_v22 = vmul.f32 1.442695, %v1457_v24  ;;  %v1458_v27 = vsub.f32 %v1437_v20, %v1453_v25 }
 0xbd2   : > { %v1456_v28 = vpop.xlane.xlu0 %1455 }
 0xbd3   : > { %8295 = vpow2.f32 %v1460_v22  ;;  %v1462_v29 = vmul.f32 1.442695, %v1458_v27  ;;  %v1459_v30 = vsub.f32 %v7517_v14, %v1456_v28 }
 0xbd5   : > { %8297 = vpow2.f32 %v1462_v29  ;;  %v1464_v26 = vmul.f32 1.442695, %v1459_v30 }
 0xbd7   : > { %8299 = vpow2.f32 %v1464_v26 }
 0xbdd   : > { %v8296_v19 = vpop.eup %8295 }
 0xbde   : > { %v1466_v32 = vsel %vm562_vm8, %v8296_v19, 0.0 }
 0xbdf   : > { %v8298_v10 = vpop.eup %8297  ;;  %1467 = vadd.xlane.f32.xlu0 %v1466_v32 }
 0xbe0   : > { %v1469_v35 = vsel %vm562_vm8, %v8298_v10, 0.0 }
 0xbe1   : > { %v8300_v33 = vpop.eup %8299 }
 0xbe2   : > { %v1472_v34 = vsel %vm569_vm9, %v8300_v33, 0.0 }
 0xbe3   : > { %1473 = vadd.xlane.f32.xlu1 %v1472_v34  ;;  %1470 = vadd.xlane.f32.xlu0 %v1469_v35 }
 0xbf4   : > { %1485 = vrot.lane.b32.xlu1 %v9186_v59, %s8696_s18 }
 0xbf8   : > { %1549 = vrot.lane.b32.xlu1 %v9180_v31, %s8694_s15 }
 0xbf9   : > { %1483 = vrot.lane.b32.xlu0 %v9180_v31, %s8696_s18  ;;  %s2272_s18 = scalar_lea.vmem %s10317_s16, %s8650_s0 }
 0xbfc   : > { %1551 = vrot.lane.b32.xlu1 %v9186_v59, %s8694_s15 }
 0xbfd   : > { %1545 = vrot.lane.b32.xlu0 %v9180_v31, %s8693_s11 }
 0xc00   : > { %1547 = vrot.lane.b32.xlu1 %v9186_v59, %s8693_s11  ;;  %s10316_s11 = sld [smem:[#allocation5_spill]] }
 0xc06   : > { %s2128_s15 = scalar_lea.vmem %s10316_s11, %s8650_s0 }
 0xc6c   : > { %v1468_v2 = vpop.xlane.xlu0 %1467 }
 0xc6d   : > { %8301 = vrcp.f32 %v1468_v2 }
 0xc70   : > { %v1471_v36 = vpop.xlane.xlu0 %1470  ;;  %v1474_v37 = vpop.xlane.xlu1 %1473 }
 0xc71   : > { %8303 = vrcp.f32 %v1471_v36 }
 0xc72   : > { %8305 = vrcp.f32 %v1474_v37 }
 0xc74   : > { %v1484_v40 = vpop.permute.xlu0 %1483  ;;  %v1486_v46 = vpop.permute.xlu1 %1485 }
 0xc75   : > { %v1495_v50 = vand.u32 %v1486_v46, %v9123_v5  ;;  %7519 = vmatprep.subr.bf16.mxu0 %v1484_v40 }
 0xc76   : > { %7520 = vmatpush3.bf16.msra.mxu0 %v1484_v40 }
 0xc77   : > { %7521 = vmatprep.subr.bf16.mxu0 %v1495_v50  ;;  %v8302_v55 = vpop.eup %8301 }
 0xc78   : > { %v1550_v58 = vpop.permute.xlu1 %1549  ;;  %v1478_v62 = vmul.f32 %v8302_v55, %v8296_v19  ;;  %v1546_v14 = vpop.permute.xlu0 %1545 }
 0xc79   : > { %v1560_v16 = vsel %vm501_vm7, %v1550_v58, 0 }
 0xc7a   : > { %7522 = vmatpush3.bf16.msra.mxu0 %v1495_v50 }
 0xc7b   : > { %v8304_v60 = vpop.eup %8303  ;;  %8063 = vmatprep.subr.msk.bf16.mxu0 %vm501_vm7, %v1550_v58 }
 0xc7c   : > { %v8306_v61 = vpop.eup %8305  ;;  %v1479_v1 = vmul.f32 %v8304_v60, %v8298_v10  ;;  %v1552_v17 = vpop.permute.xlu1 %1551 }
 0xc7d   : > { %v1480_v7 = vmul.f32 %v8306_v61, %v8300_v33  ;;  %v1563_v18 = vsel %vm501_vm7, %v1552_v17, 0 }
 0xc7e   : > { %v1481_v8 = vpack.c.bf16 %v1479_v1, %v1478_v62 }
 0xc7f   : > { %v1482_v12 = vpack.c.bf16 %v1480_v7, %v1480_v7 }
 0xc80   : > { %7523 = vmatprep.mubr.msk.bf16.mxu0 %vm562_vm8, %v1481_v8  ;;  %v1548_v20 = vpop.permute.xlu1 %1547 }
 0xc81   : > { %7524 = vmatmul.mubr.msk.bf16.vlgmr.msra.gmra.mrb[16].mxu0 %vm562_vm8, %v1482_v12 }
 0xc82   : > { %7531 = vmatprep.mubr.msk.bf16.mxu0 %vm501_vm7, %v1546_v14 }
 0xc83   : > { %7528 = vmatpush3.bf16.xpose.msra.mxu0 %v1560_v16 }
 0xc84   : > { %8064 = vmatprep.subr.msk.bf16.mxu0 %vm501_vm7, %v1552_v17 }
 0xc8b   : > { %7530 = vmatpush3.bf16.xpose.msra.mxu0 %v1563_v18 }
 0xc92   : > { %7532 = vmatmul.mubr.msk.bf16.vlgmr.msra.gmra.mrb[20].mxu0 %vm501_vm7, %v1548_v20 }
 0xd54   : > { %v9269_v21 = vpop.f32.mrb[16].mxu0 }
 0xd55   : > { %v9271_v23 = vpop.f32.mrb[17].mxu0 }
 0xd56   : > { %v7526_v15 = vpop.f32.mrb[18].mxu0 }
 0xd57   : > { %v9273_v24 = vpop.f32.mrb[19].mxu0 }
 0xd58   : > { %v8200_v25 = vpack.i.bf16 %v9273_v24, %v9271_v23 }
 0xd65   : > { %v7533_v22 = vpop.f32.mrb[20].mxu0 }
 0xd66   : > { %v1599_v27 = vpop.f32.mrb[21].mxu0  ;;  %v1619_v19 = vsel %vm569_vm9, %v7533_v22, -inf }
 0xd67   : > { %v7534_v28 = vpop.f32.mrb[22].mxu0  ;;  %v1613_v29 = vsel %vm562_vm8, %v1599_v27, -inf }
 0xd68   : > { %1614 = vmax.xlane.f32.xlu0 %v1613_v29  ;;  %v1602_v30 = vpop.f32.mrb[23].mxu0 }
 0xd69   : > { %v1616_v26 = vsel %vm562_vm8, %v1602_v30, -inf }
 0xd6a   : > { %1617 = vmax.xlane.f32.xlu1 %v1616_v26 }
 0xd6c   : > { %1620 = vmax.xlane.f32.xlu0 %v1619_v19 }
 0xdf5   : > { %v1615_v32 = vpop.xlane.xlu0 %1614 }
 0xdf6   : > { %v1622_v10 = vsub.f32 %v1599_v27, %v1615_v32 }
 0xdf7   : > { %v1618_v33 = vpop.xlane.xlu1 %1617 }
 0xdf8   : > { %v1625_v34 = vmul.f32 1.442695, %v1622_v10  ;;  %v1623_v35 = vsub.f32 %v1602_v30, %v1618_v33 }
 0xdf9   : > { %v1621_v2 = vpop.xlane.xlu0 %1620 }
 0xdfa   : > { %8307 = vpow2.f32 %v1625_v34  ;;  %v1627_v36 = vmul.f32 1.442695, %v1623_v35  ;;  %v1624_v37 = vsub.f32 %v7533_v22, %v1621_v2 }
 0xdfc   : > { %8309 = vpow2.f32 %v1627_v36  ;;  %v1629_v40 = vmul.f32 1.442695, %v1624_v37 }
 0xdfe   : > { %8311 = vpow2.f32 %v1629_v40 }
 0xe04   : > { %v8308_v46 = vpop.eup %8307 }
 0xe05   : > { %v1631_v50 = vsel %vm562_vm8, %v8308_v46, 0.0 }
 0xe06   : > { %v8310_v55 = vpop.eup %8309  ;;  %1632 = vadd.xlane.f32.xlu0 %v1631_v50 }
 0xe07   : > { %v1634_v61 = vsel %vm562_vm8, %v8310_v55, 0.0 }
 0xe08   : > { %v8312_v58 = vpop.eup %8311 }
 0xe09   : > { %v1637_v60 = vsel %vm569_vm9, %v8312_v58, 0.0 }
 0xe0a   : > { %1638 = vadd.xlane.f32.xlu1 %v1637_v60  ;;  %1635 = vadd.xlane.f32.xlu0 %v1634_v61 }
 0xe1b   : > { %1650 = vrot.lane.b32.xlu1 %v9186_v59, %s8697_s22 }
 0xe1f   : > { %1714 = vrot.lane.b32.xlu1 %v9180_v31, %s8698_s23 }
 0xe20   : > { %1648 = vrot.lane.b32.xlu0 %v9180_v31, %s8697_s22 }
 0xe23   : > { %1716 = vrot.lane.b32.xlu1 %v9186_v59, %s8698_s23 }
 0xe24   : > { %1710 = vrot.lane.b32.xlu0 %v9180_v31, %s8699_s26 }
 0xe27   : > { %1712 = vrot.lane.b32.xlu1 %v9186_v59, %s8699_s26 }
 0xe93   : > { %v1633_v62 = vpop.xlane.xlu0 %1632 }
 0xe94   : > { %8313 = vrcp.f32 %v1633_v62 }
 0xe97   : > { %v1636_v1 = vpop.xlane.xlu0 %1635  ;;  %v1639_v7 = vpop.xlane.xlu1 %1638 }
 0xe98   : > { %8315 = vrcp.f32 %v1636_v1 }
 0xe99   : > { %8317 = vrcp.f32 %v1639_v7 }
 0xe9b   : > { %v1649_v8 = vpop.permute.xlu0 %1648  ;;  %v1651_v12 = vpop.permute.xlu1 %1650 }
 0xe9c   : > { %v1660_v14 = vand.u32 %v1651_v12, %v9123_v5  ;;  %7535 = vmatprep.subr.bf16.mxu1 %v1649_v8 }
 0xe9d   : > { %7536 = vmatpush3.bf16.msra.mxu1 %v1649_v8 }
 0xe9e   : > { %7537 = vmatprep.subr.bf16.mxu1 %v1660_v14  ;;  %v8314_v16 = vpop.eup %8313 }
 0xe9f   : > { %v1715_v17 = vpop.permute.xlu1 %1714  ;;  %v1643_v15 = vmul.f32 %v8314_v16, %v8308_v46  ;;  %v1711_v30 = vpop.permute.xlu0 %1710 }
 0xea0   : > { %v1725_v26 = vsel %vm501_vm7, %v1715_v17, 0 }
 0xea1   : > { %7538 = vmatpush3.bf16.msra.mxu1 %v1660_v14 }
 0xea2   : > { %v8316_v18 = vpop.eup %8315  ;;  %8065 = vmatprep.subr.msk.bf16.mxu1 %vm501_vm7, %v1715_v17 }
 0xea3   : > { %v8318_v20 = vpop.eup %8317  ;;  %v1644_v22 = vmul.f32 %v8316_v18, %v8310_v55  ;;  %v1717_v19 = vpop.permute.xlu1 %1716 }
 0xea4   : > { %v1645_v27 = vmul.f32 %v8318_v20, %v8312_v58  ;;  %v1728_v32 = vsel %vm501_vm7, %v1717_v19, 0 }
 0xea5   : > { %v1646_v28 = vpack.c.bf16 %v1644_v22, %v1643_v15 }
 0xea6   : > { %v1647_v29 = vpack.c.bf16 %v1645_v27, %v1645_v27 }
 0xea7   : > { %7539 = vmatprep.mubr.msk.bf16.mxu1 %vm562_vm8, %v1646_v28  ;;  %v1713_v10 = vpop.permute.xlu1 %1712 }
 0xea8   : > { %7540 = vmatmul.mubr.msk.bf16.vlgmr.msra.gmra.mrb[40].mxu1 %vm562_vm8, %v1647_v29 }
 0xea9   : > { %7547 = vmatprep.mubr.msk.bf16.mxu1 %vm501_vm7, %v1711_v30 }
 0xeaa   : > { %7544 = vmatpush3.bf16.xpose.msra.mxu1 %v1725_v26 }
 0xeab   : > { %8066 = vmatprep.subr.msk.bf16.mxu1 %vm501_vm7, %v1717_v19 }
 0xeb2   : > { %7546 = vmatpush3.bf16.xpose.msra.mxu1 %v1728_v32  ;;  %v8217_v32 = vld [vmem:[%s8984_s13] sm:$0xff]  }
 0xeb3   : > { %7575 = vmatprep.subr.bf16.mxu1 %v8688_v6 }
 0xeb9   : > { %7548 = vmatmul.mubr.msk.bf16.vlgmr.msra.gmra.mrb[44].mxu1 %vm501_vm7, %v1713_v10 }
 0xeba   : > { %7579 = vmatprep.mubr.msk.bf16.mxu1 %vm8689_vm6, %v8688_v6 }
 0xf7b   : > { %v9307_v33 = vpop.f32.mrb[40].mxu1 }
 0xf7c   : > { %v1696_v34 = vpop.f32.mrb[41].mxu1 }
 0xf7d   : > { %v7542_v35 = vpop.f32.mrb[42].mxu1 }
 0xf7e   : > { %v1699_v2 = vpop.f32.mrb[43].mxu1 }
 0xf7f   : > { %v8205_v36 = vpack.i.bf16 %v1699_v2, %v1696_v34 }
 0xf8c   : > { %v7549_v37 = vpop.f32.mrb[44].mxu1 }
 0xf8d   : > { %v1764_v40 = vpop.f32.mrb[45].mxu1  ;;  %v1784_v60 = vsel %vm569_vm9, %v7549_v37, -inf }
 0xf8e   : > { %v7550_v46 = vpop.f32.mrb[46].mxu1  ;;  %v1778_v50 = vsel %vm562_vm8, %v1764_v40, -inf }
 0xf8f   : > { %1779 = vmax.xlane.f32.xlu0 %v1778_v50  ;;  %v1767_v55 = vpop.f32.mrb[47].mxu1  ;;  %v8218_v46 = vld [vmem:[%s8984_s13 + $0x8] sm:$0xff]   ;;  %s1938_s13 = scalar_lea.vmem %s8777_s19, %s8650_s0  ;;  %s297_s0 = sadd.s32 1, %s8650_s0  }
 0xf90   : > { %v1781_v58 = vsel %vm562_vm8, %v1767_v55, -inf  ;;  %p294_p0 = scmp.ge.s32.totalorder %s297_s0, 11  }
 0xf91   : > { %1782 = vmax.xlane.f32.xlu1 %v1781_v58  ;;  %s10323_s22 = sld [smem:[#allocation22_spill]] (%p294_p0)  ;;  %s10324_s23 = sld [smem:[#allocation12_spill]] (%p294_p0)  ;;  %vm2390_vm14 = vcmask (%p294_p0), 1045504   ;;  %vm8706_vm15 = vmmov (%p294_p0), 0   ;;  %vm6585_vm0 = vcmask (%p294_p0), 48128   ;;  %vm6691_vm3 = vcmask (%p294_p0), 126976  }
 0xf92   :  { %s10325_s26 = sld [smem:[#allocation10_spill]] (%p294_p0)  ;;  %s10326_s25 = sld [smem:[#allocation8_spill]] (%p294_p0) }
 0xf93   : > { %1785 = vmax.xlane.f32.xlu0 %v1784_v60  ;;  %s10327_s29 = sld [smem:[#allocation9_spill]] (%p294_p0)  ;;  %s10328_s3 = sld [smem:[#allocation13_spill]] (%p294_p0) }
 0xf94   :  { %s10329_s8 = sld [smem:[#allocation11_spill]] (%p294_p0)  ;;  %s8707_s14 = smov (%p294_p0), 112  }
 0xf95   :  { %s8708_s19 = smov (%p294_p0), 120   ;;  %s8709_s24 = smov (%p294_p0), 104  }
 0xf96   :  { %s8710_s30 = smov (%p294_p0), 88   ;;  %s8711_s6 = smov (%p294_p0), 96  }
 0xf97   :  { %s8712_s0 = smov (%p294_p0), 80   ;;  %s10336_s11 = sld [smem:[#allocation19_spill]] (%p294_p0) }
 0xf98   :  { %s10338_s16 = sld [smem:[#allocation23_spill]] (%p294_p0) }
0x101c   : > { %v1780_v61 = vpop.xlane.xlu0 %1779 }
0x101d   : > { %v1787_v62 = vsub.f32 %v1764_v40, %v1780_v61 }
0x101e   : > { %v1783_v1 = vpop.xlane.xlu1 %1782 }
0x101f   : > { %v1790_v7 = vmul.f32 1.442695, %v1787_v62  ;;  %v1788_v8 = vsub.f32 %v1767_v55, %v1783_v1 }
0x1020   : > { %v1786_v12 = vpop.xlane.xlu0 %1785 }
0x1021   : > { %8319 = vpow2.f32 %v1790_v7  ;;  %v1792_v14 = vmul.f32 1.442695, %v1788_v8  ;;  %v1789_v16 = vsub.f32 %v7549_v37, %v1786_v12  ;;  %v9367_v8 = vld [vmem:[%s1938_s13] ss:$0 sm:$0xff]  ;;  %s8716_s13 = smov (%p294_p0), 24  }
0x1023   : > { %8321 = vpow2.f32 %v1792_v14  ;;  %v1794_v17 = vmul.f32 1.442695, %v1789_v16 }
0x1025   : > { %8323 = vpow2.f32 %v1794_v17 }
0x102b   : > { %v8320_v18 = vpop.eup %8319 }
0x102c   : > { %v1796_v20 = vsel %vm562_vm8, %v8320_v18, 0.0 }
0x102d   : > { %v8322_v15 = vpop.eup %8321  ;;  %1797 = vadd.xlane.f32.xlu0 %v1796_v20 }
0x102e   : > { %v1799_v28 = vsel %vm562_vm8, %v8322_v15, 0.0 }
0x102f   : > { %v8324_v22 = vpop.eup %8323 }
0x1030   : > { %v1802_v27 = vsel %vm569_vm9, %v8324_v22, 0.0 }
0x1031   : > { %1803 = vadd.xlane.f32.xlu1 %v1802_v27  ;;  %1800 = vadd.xlane.f32.xlu0 %v1799_v28 }
0x1042   : > { %1815 = vrot.lane.b32.xlu1 %v9186_v59, %s8701_s5 }
0x1046   : > { %8186 = vrot.lane.b32.xlu1 %v8185_v52, %s8702_s9 }
0x1047   : > { %1813 = vrot.lane.b32.xlu0 %v9180_v31, %s8701_s5  ;;  %s8713_s5 = smov (%p294_p0), 72  }
0x104a   : > { %8191 = vrot.lane.b32.xlu1 %v8190_v57, %s8703_s21 }
0x104b   : > { %8196 = vrot.lane.b32.xlu0 %v8195_v4, %s8704_s28 }
0x104e   : > { %8201 = vrot.lane.b32.xlu1 %v8200_v25, %s8702_s9 }
0x104f   : > { %8206 = vrot.lane.b32.xlu0 %v8205_v36, %s8703_s21 }
0x1052   : > { %1165 = vrot.lane.b32.xlu1 %v9152_v48, %s8702_s9 }
0x1056   : > { %1177 = vrot.lane.b32.xlu1 %v9160_v53, %s8703_s21 }
0x105a   : > { %1882 = vrot.lane.b32.xlu1 %v9269_v21, %s8702_s9  ;;  %s10330_s9 = sld [smem:[#allocation14_spill]] (%p294_p0) }
0x10ba   : > { %v1798_v49 = vpop.xlane.xlu0 %1797 }
0x10bb   : > { %8325 = vrcp.f32 %v1798_v49 }
0x10be   : > { %v1801_v51 = vpop.xlane.xlu0 %1800  ;;  %v1804_v52 = vpop.xlane.xlu1 %1803 }
0x10bf   : > { %8327 = vrcp.f32 %v1801_v51 }
0x10c0   : > { %8329 = vrcp.f32 %v1804_v52 }
0x10c2   : > { %v1814_v54 = vpop.permute.xlu0 %1813  ;;  %v1816_v56 = vpop.permute.xlu1 %1815 }
0x10c3   : > { %v1825_v57 = vand.u32 %v1816_v56, %v9123_v5  ;;  %7551 = vmatprep.subr.bf16.mxu0 %v1814_v54 }
0x10c4   : > { %7552 = vmatpush3.bf16.msra.mxu0 %v1814_v54 }
0x10c5   : > { %7553 = vmatprep.subr.bf16.mxu0 %v1825_v57  ;;  %v8326_v48 = vpop.eup %8325 }
0x10c6   : > { %v8187_v31 = vpop.permute.xlu1 %8186  ;;  %v8197_v0 = vpop.permute.xlu0 %8196  ;;  %v1808_v23 = vmul.f32 %v8326_v48, %v8320_v18 }
0x10c7   : > { %v8189_v59 = vunpack.i.h.bf16 %v8187_v31  ;;  %v8188_v3 = vunpack.i.l.bf16 %v8187_v31  ;;  %v8199_v29 = vunpack.i.h.bf16 %v8197_v0  ;;  %v8198_v10 = vunpack.i.l.bf16 %v8197_v0 }
0x10c8   : > { %7554 = vmatpush3.bf16.msra.mxu0 %v1825_v57 }
0x10c9   : > { %v8328_v53 = vpop.eup %8327  ;;  %7559 = vmatprep.subr.bf16.mxu0 %v8688_v6  ;;  %v1195_v30 = vsel %vm501_vm7, %v9150_v47, %v8189_v59  ;;  %v1194_v34 = vsel %vm501_vm7, %v9148_v45, %v8188_v3 }
0x10ca   : > { %v8330_v4 = vpop.eup %8329  ;;  %v8192_v21 = vpop.permute.xlu1 %8191  ;;  %v1809_v24 = vmul.f32 %v8328_v53, %v8322_v15 }
0x10cb   : > { %v1810_v25 = vmul.f32 %v8330_v4, %v8324_v22  ;;  %v8194_v5 = vunpack.i.h.bf16 %v8192_v21  ;;  %v8193_v26 = vunpack.i.l.bf16 %v8192_v21  ;;  %v8207_v27 = vpop.permute.xlu0 %8206 }
0x10cc   : > { %v1811_v19 = vpack.c.bf16 %v1809_v24, %v1808_v23  ;;  %v8209_v51 = vunpack.i.h.bf16 %v8207_v27  ;;  %v8208_v52 = vunpack.i.l.bf16 %v8207_v27 }
0x10cd   : > { %v1199_v35 = vsel %vm1197_vm11, %v1195_v30, %v8194_v5  ;;  %v1812_v2 = vpack.c.bf16 %v1810_v25, %v1810_v25  ;;  %v1198_v36 = vsel %vm1197_vm11, %v1194_v34, %v8193_v26 }
0x10ce   : > { %v1203_v37 = vsel %vm1201_vm12, %v1199_v35, %v8199_v29  ;;  %7555 = vmatprep.mubr.msk.bf16.mxu0 %vm562_vm8, %v1811_v19  ;;  %v1202_v40 = vsel %vm1201_vm12, %v1198_v36, %v8198_v10  ;;  %v8202_v18 = vpop.permute.xlu1 %8201 }
0x10cf   : > { %7556 = vmatmul.mubr.msk.bf16.vlgmr.msra.gmra.mrb[24].mxu0 %vm562_vm8, %v1812_v2  ;;  %v1940_v47 = vpack.c.bf16 %v1203_v37, %v1202_v40  ;;  %v8204_v15 = vunpack.i.h.bf16 %v8202_v18  ;;  %v8203_v22 = vunpack.i.l.bf16 %v8202_v18 }
0x10d0   : > { %7560 = vmatpush3.bf16.msra.mxu0 %v8217_v32  ;;  %7563 = vmatprep.mubr.msk.bf16.mxu0 %vm8689_vm6, %v8688_v6 }
0x10d1   : > { %7561 = vmatprep.subr.bf16.mxu0 %v8688_v6  ;;  %v1911_v28 = vsel %vm501_vm7, %v9238_v11, %v8203_v22  ;;  %v8219_v22 = vld [vmem:[%s8987_s17] sm:$0xff]  }
0x10d2   : > { %v1166_v20 = vpop.permute.xlu1 %1165  ;;  %v1914_v31 = vsel %vm1197_vm11, %v1911_v28, %v8208_v52  ;;  %7576 = vmatpush3.bf16.msra.mxu1 %v8219_v22 }
0x10d3   : > { %v1196_v48 = vsel %vm501_vm7, %v9146_v43, %v1166_v20  ;;  %7577 = vmatprep.subr.bf16.mxu1 %v8688_v6 }
0x10d4   : > { %7562 = vmatpush3.bf16.msra.mxu0 %v8218_v46 }
0x10d5   : > { %7591 = vmatprep.subr.bf16.mxu0 %v8688_v6 }
0x10d6   : > { %v1178_v49 = vpop.permute.xlu1 %1177 }
0x10d7   : > { %7564 = vmatmul.mubr.msk.bf16.vlgmr.msra.gmra.mrb[28].mxu0 %vm307_vm4, %v1940_v47  ;;  %v1200_v53 = vsel %vm1197_vm11, %v1196_v48, %v1178_v49 }
0x10d8   : > { %7567 = vmatprep.mubr.msk.bf16.mxu0 %vm8689_vm6, %v8688_v6 }
0x10da   : > { %v1883_v4 = vpop.permute.xlu1 %1882 }
0x10db   : > { %v1913_v43 = vsel %vm501_vm7, %v9236_v9, %v1883_v4 }
0x11a2   : > { %v7557_v45 = vpop.f32.mrb[24].mxu0 }
0x11a3   : > { %1906 = vrot.lane.b32.xlu1 %v7557_v45, %s8704_s28  ;;  %v1861_v50 = vpop.f32.mrb[25].mxu0 }
0x11a4   : > { %v7558_v55 = vpop.f32.mrb[26].mxu0 }
0x11a5   : > { %v1864_v58 = vpop.f32.mrb[27].mxu0 }
0x11a6   : > { %v8210_v60 = vpack.i.bf16 %v1864_v58, %v1861_v50 }
0x11a8   : > { %8211 = vrot.lane.b32.xlu0 %v8210_v60, %s8704_s28 }
0x11aa   : > { %v2004_v61 = vpop.f32.mrb[28].mxu0 }
0x11ab   : > { %v7565_v62 = vpop.f32.mrb[29].mxu0  ;;  %v2005_v16 = vadd.f32 %v9367_v8, %v2004_v61 }
0x11ac   : > { %1189 = vrot.lane.b32.xlu0 %v9201_v63, %s8704_s28  ;;  %v2007_v1 = vpop.f32.mrb[30].mxu0  ;;  %s8715_s28 = smov (%p294_p0), 16  }
0x11ad   : > { %v7566_v7 = vpop.f32.mrb[31].mxu0  ;;  %v2008_v12 = vadd.f32 %v9367_v8, %v2007_v1  ;;  %v9377_v63 = vadd.f32 %v8646_v39, %v2005_v16 }
0x11af   : > { %v9371_v14 = vadd.f32 %v8642_v42, %v2008_v12  ;;  %v1912_v42 = vsel %vm501_vm7, %v9240_v13, %v8204_v15 }
0x11b0   : > { %1894 = vrot.lane.b32.xlu0 %v9307_v33, %s8703_s21  ;;  %v2035_v33 = vsel %vm307_vm4, %v9377_v63, 0.0  ;;  %v1915_v57 = vsel %vm1197_vm11, %v1912_v42, %v8209_v51  ;;  %s8714_s21 = smov (%p294_p0), 8  }
0x11b1   : > { %v2038_v17 = vsel %vm307_vm4, %v9371_v14, 0.0 }
0x11c7   : > { %2039 = vadd.xlane.f32.xlu1 %v2038_v17 }
0x11cf   : > { %2036 = vadd.xlane.f32.xlu0 %v2035_v33 }
0x1215   : > { %v1907_v29 = vpop.permute.xlu1 %1906 }
0x121a   : > { %v8212_v39 = vpop.permute.xlu0 %8211 }
0x121b   : > { %v8214_v54 = vunpack.i.h.bf16 %v8212_v39  ;;  %v8213_v56 = vunpack.i.l.bf16 %v8212_v39 }
0x121d   : > { %v1918_v59 = vsel %vm1201_vm12, %v1915_v57, %v8214_v54  ;;  %v1917_v13 = vsel %vm1201_vm12, %v1914_v31, %v8213_v56 }
0x121e   : > { %v1924_v11 = vrot.slane %v1918_v59, 7  ;;  %v1190_v0 = vpop.permute.xlu0 %1189  ;;  %v1923_v3 = vrot.slane %v1917_v13, 7 }
0x121f   : > { %v1204_v21 = vsel %vm1201_vm12, %v1200_v53, %v1190_v0 }
0x1220   : > { %v1925_v23 = vsel %vm267_vm2, %v1923_v3, %v1924_v11  ;;  %v1931_v24 = vsel %vm267_vm2, %v1204_v21, %v1923_v3 }
0x1221   : > { %v1941_v25 = vpack.c.bf16 %v1925_v23, %v1931_v24 }
0x1222   : > { %v1895_v5 = vpop.permute.xlu0 %1894 }
0x1223   : > { %v1916_v30 = vsel %vm1197_vm11, %v1913_v43, %v1895_v5  ;;  %7568 = vmatmul.mubr.msk.bf16.gmra.mrb[32].mxu0 %vm307_vm4, %v1941_v25  ;;  %v6933_v25 = vld [vmem:[%s2031_s1] ss:$0 sm:$0xff]  ;;  %s10332_s1 = sld [smem:[#allocation18_spill]] (%p294_p0) }
0x1224   : > { %v1919_v26 = vsel %vm1201_vm12, %v1916_v30, %v1907_v29  ;;  %7571 = vmatprep.mubr.msk.bf16.mxu0 %vm8689_vm6, %v8688_v6  ;;  %v6934_v30 = vld [vmem:[%s2033_s2] ss:$0 sm:$0xff]  ;;  %s10333_s2 = sld [smem:[#allocation16_spill]] (%p294_p0) }
0x1225   : > { %v1926_v19 = vrot.slane %v1919_v26, 7 }
0x1227   : > { %v1927_v32 = vsel %vm267_vm2, %v1924_v11, %v1926_v19 }
0x1228   : > { %v1942_v10 = vpack.c.bf16 %v1927_v32, %v1927_v32 }
0x122b   : > { %7572 = vmatmul.mubr.msk.bf16.gmra.mrb[36].mxu0 %vm307_vm4, %v1942_v10 }
0x122c   : > { %7599 = vmatprep.mubr.msk.bf16.mxu0 %vm8689_vm6, %v8688_v6 }
0x1254   : > { %v2040_v46 = vpop.xlane.xlu1 %2039 }
0x1255   : > { %v2051_v60 = vmul.f32 0.03125, %v2040_v46 }
0x1257   : > { %v2056_v7 = vsub.f32 %v9371_v14, %v2051_v60 }
0x1259   : > { %v2061_v20 = vmul.f32 %v2056_v7, %v2056_v7 }
0x125b   : > { %v2068_v15 = vsel %vm307_vm4, %v2061_v20, 0.0 }
0x125c   : > { %v2037_v9 = vpop.xlane.xlu0 %2036 }
0x125d   : > { %v2050_v34 = vmul.f32 0.03125, %v2037_v9 }
0x125f   : > { %v9407_v35 = vsub.f32 %v9377_v63, %v2050_v34 }
0x1261   : > { %v2060_v2 = vmul.f32 %v9407_v35, %v9407_v35 }
0x1263   : > { %v2065_v36 = vsel %vm307_vm4, %v2060_v2, 0.0 }
0x1264   : > { %2066 = vadd.xlane.f32.xlu1 %v2065_v36 }
0x12f1   : > { %v2067_v27 = vpop.xlane.xlu1 %2066 }
0x12f6   : > { %v2012_v37 = vpop.f32.mrb[32].mxu0 }
0x12f7   : > { %v2013_v40 = vadd.f32 %v9367_v8, %v2012_v37  ;;  %v7569_v47 = vpop.f32.mrb[33].mxu0 }
0x12f8   : > { %v2015_v45 = vpop.f32.mrb[34].mxu0 }
0x12f9   : > { %v9414_v50 = vadd.f32 %v8638_v44, %v2013_v40  ;;  %v2016_v55 = vadd.f32 %v9367_v8, %v2015_v45  ;;  %v7570_v58 = vpop.f32.mrb[35].mxu0 }
0x12fb   : > { %v9418_v61 = vadd.f32 %v8634_v41, %v2016_v55  ;;  %v2041_v62 = vsel %vm307_vm4, %v9414_v50, 0.0 }
0x12fc   : > { %2042 = vadd.xlane.f32.xlu0 %v2041_v62 }
0x12fd   : > { %v2044_v16 = vsel %vm307_vm4, %v9418_v61, 0.0 }
0x12fe   : > { %v2020_v1 = vpop.f32.mrb[36].mxu0 }
0x12ff   : > { %v2021_v12 = vadd.f32 %v9367_v8, %v2020_v1  ;;  %v7573_v44 = vpop.f32.mrb[37].mxu0  ;;  %v8220_v8 = vld [vmem:[%s8987_s17 + $0x8] sm:$0xff]   ;;  %s10315_s17 = sld [smem:[#allocation6_spill]] }
0x1300   : > { %2045 = vadd.xlane.f32.xlu0 %v2044_v16  ;;  %v2023_v17 = vpop.f32.mrb[38].mxu0  ;;  %7578 = vmatpush3.bf16.msra.mxu1 %v8220_v8 }
0x1301   : > { %v9427_v41 = vadd.f32 %v8630_v38, %v2021_v12  ;;  %v7574_v33 = vpop.f32.mrb[39].mxu0  ;;  %v2080_v38 = vmul.f32 0.03125, %v2067_v27 }
0x1303   : > { %v2047_v18 = vsel %vm320_vm5, %v9427_v41, 0.0  ;;  %v2085_v54 = vadd.f32 1e-12, %v2080_v38 }
0x1304   : > { %2048 = vadd.xlane.f32.xlu0 %v2047_v18 }
0x1305   : > { %8331 = vrsqrt.f32 %v2085_v54  ;;  %s2263_s10 = scalar_lea.vmem %s10315_s17, %s7156_s7  ;;  %s10331_s17 = sld [smem:[#allocation15_spill]] (%p294_p0) }
0x1306   : > { %v8221_v9 = vld [vmem:[%s2263_s10] sm:$0xff]   ;;  %v8222_v34 = vld [vmem:[%s2263_s10 + $0x8] sm:$0xff]   ;;  %v8224_v36 = vld [vmem:[%s2263_s10 + $0x18] sm:$0xff]   ;;  %s10334_s7 = sld [smem:[#allocation17_spill]] (%p294_p0) }
0x1307   : > { %7592 = vmatpush3.bf16.msra.mxu0 %v8221_v9 }
0x1308   : > { %2069 = vadd.xlane.f32.xlu0 %v2068_v15  ;;  %7593 = vmatprep.subr.bf16.mxu0 %v8688_v6 }
0x130b   : > { %7594 = vmatpush3.bf16.msra.mxu0 %v8222_v34 }
0x130c   : > { %7595 = vmatprep.subr.bf16.mxu0 %v8688_v6 }
0x130f   : > { %v8332_v23 = vpop.eup %8331 }
0x1310   : > { %v2095_v24 = vmul.f32 %v8332_v23, %v9407_v35  ;;  %v8223_v35 = vld [vmem:[%s2263_s10 + $0x10] sm:$0xff]   ;;  %s10335_s10 = sld [smem:[#allocation20_spill]] (%p294_p0) }
0x1311   : > { %7596 = vmatpush3.bf16.msra.mxu0 %v8223_v35 }
0x1312   : > { %v2106_v5 = vmul.f32 %v6933_v25, %v2095_v24  ;;  %7597 = vmatprep.subr.bf16.mxu0 %v8688_v6 }
0x1314   : > { %v2117_v19 = vadd.f32 %v6934_v30, %v2106_v5 }
0x1315   : > { %7598 = vmatpush3.bf16.msra.mxu0 %v8224_v36 }
0x1389   : > { %v2043_v42 = vpop.xlane.xlu0 %2042 }
0x138a   : > { %v2052_v28 = vmul.f32 0.03125, %v2043_v42  ;;  %v6936_v42 = vld [vmem:[%s2128_s15] ss:$0 sm:$0xff]  ;;  %s10337_s15 = sld [smem:[#allocation21_spill]] (%p294_p0) }
0x138c   : > { %v9436_v49 = vsub.f32 %v9414_v50, %v2052_v28 }
0x138d   : > { %v2046_v51 = vpop.xlane.xlu0 %2045 }
0x138e   : > { %v2053_v52 = vmul.f32 0.03125, %v2046_v51  ;;  %v2062_v39 = vmul.f32 %v9436_v49, %v9436_v49 }
0x1390   : > { %v2058_v56 = vsub.f32 %v9418_v61, %v2053_v52  ;;  %v2071_v57 = vsel %vm307_vm4, %v2062_v39, 0.0 }
0x1391   : > { %2072 = vadd.xlane.f32.xlu1 %v2071_v57  ;;  %v2049_v31 = vpop.xlane.xlu0 %2048 }
0x1392   : > { %v2054_v48 = vmul.f32 0.03125, %v2049_v31  ;;  %v2063_v59 = vmul.f32 %v2058_v56, %v2058_v56 }
0x1394   : > { %v2059_v13 = vsub.f32 %v9427_v41, %v2054_v48  ;;  %v2074_v53 = vsel %vm307_vm4, %v2063_v59, 0.0 }
0x1395   : > { %2075 = vadd.xlane.f32.xlu0 %v2074_v53  ;;  %v2070_v11 = vpop.xlane.xlu0 %2069 }
0x1396   : > { %v2081_v0 = vmul.f32 0.03125, %v2070_v11  ;;  %v2064_v3 = vmul.f32 %v2059_v13, %v2059_v13 }
0x1398   : > { %v2086_v4 = vadd.f32 1e-12, %v2081_v0  ;;  %v2077_v21 = vsel %vm320_vm5, %v2064_v3, 0.0  ;;  %vm6695_vm5 = vcmask (%p294_p0), 1044480  }
0x1399   : > { %2078 = vadd.xlane.f32.xlu1 %v2077_v21 }
0x139a   : > { %8333 = vrsqrt.f32 %v2086_v4 }
0x13a4   : > { %v8334_v43 = vpop.eup %8333 }
0x13a5   : > { %v2096_v29 = vmul.f32 %v8334_v43, %v2056_v7 }
0x13a7   : > { %v2107_v26 = vmul.f32 %v6933_v25, %v2096_v29 }
0x13a9   : > { %v2118_v32 = vadd.f32 %v6934_v30, %v2107_v26 }
0x13ab   : > { %v2130_v10 = vpack.c.bf16 %v2118_v32, %v2117_v19 }
0x13ad   : > { %7580 = vmatmul.mubr.msk.bf16.vlgmr.msra.gmra.mrb[48].mxu1 %vm307_vm4, %v2130_v10 }
0x13ae   : > { %7583 = vmatprep.mubr.msk.bf16.mxu1 %vm8689_vm6, %v8688_v6 }
0x141e   : > { %v2073_v2 = vpop.xlane.xlu1 %2072 }
0x141f   : > { %v2082_v37 = vmul.f32 0.03125, %v2073_v2 }
0x1421   : > { %v2087_v40 = vadd.f32 1e-12, %v2082_v37 }
0x1422   : > { %v2076_v47 = vpop.xlane.xlu0 %2075 }
0x1423   : > { %8335 = vrsqrt.f32 %v2087_v40  ;;  %v2083_v46 = vmul.f32 0.03125, %v2076_v47 }
0x1425   : > { %v2088_v45 = vadd.f32 1e-12, %v2083_v46 }
0x1426   : > { %v2079_v55 = vpop.xlane.xlu1 %2078 }
0x1427   : > { %8337 = vrsqrt.f32 %v2088_v45  ;;  %v2084_v58 = vmul.f32 0.03125, %v2079_v55 }
0x1429   : > { %v2089_v60 = vadd.f32 1e-12, %v2084_v58 }
0x142b   : > { %8339 = vrsqrt.f32 %v2089_v60 }
0x142d   : > { %v8336_v62 = vpop.eup %8335 }
0x142e   : > { %v2097_v1 = vmul.f32 %v8336_v62, %v9436_v49 }
0x1430   : > { %v2108_v44 = vmul.f32 %v6933_v25, %v2097_v1 }
0x1431   : > { %v8338_v7 = vpop.eup %8337 }
0x1432   : > { %v2098_v12 = vmul.f32 %v8338_v7, %v2058_v56  ;;  %v2119_v18 = vadd.f32 %v6934_v30, %v2108_v44 }
0x1434   : > { %v2109_v16 = vmul.f32 %v6933_v25, %v2098_v12 }
0x1435   : > { %v8340_v17 = vpop.eup %8339 }
0x1436   : > { %v2099_v33 = vmul.f32 %v8340_v17, %v2059_v13  ;;  %v2120_v20 = vadd.f32 %v6934_v30, %v2109_v16 }
0x1438   : > { %v2131_v15 = vpack.c.bf16 %v2120_v20, %v2119_v18  ;;  %v2110_v22 = vmul.f32 %v6933_v25, %v2099_v33 }
0x143a   : > { %7584 = vmatmul.mubr.msk.bf16.gmra.mrb[52].mxu1 %vm307_vm4, %v2131_v15  ;;  %v2121_v8 = vadd.f32 %v6934_v30, %v2110_v22 }
0x143b   : > { %7587 = vmatprep.mubr.msk.bf16.mxu1 %vm8689_vm6, %v8688_v6 }
0x143c   : > { %v2132_v27 = vpack.c.bf16 %v2121_v8, %v2121_v8 }
0x1442   : > { %7588 = vmatmul.mubr.msk.bf16.gmra.mrb[56].mxu1 %vm307_vm4, %v2132_v27 }
0x1480   : > { %v2194_v28 = vpop.f32.mrb[48].mxu1 }
0x1481   : > { %v2195_v38 = vadd.f32 %v6936_v42, %v2194_v28  ;;  %v7581_v49 = vpop.f32.mrb[49].mxu1 }
0x1482   : > { %v2197_v51 = vpop.f32.mrb[50].mxu1 }
0x1483   : > { %v2216_v52 = vmul.f32 %v2195_v38, %v2195_v38  ;;  %v2198_v39 = vadd.f32 %v6936_v42, %v2197_v51  ;;  %v7582_v54 = vpop.f32.mrb[51].mxu1 }
0x1485   : > { %v2221_v56 = vmul.f32 %v2216_v52, %v2195_v38  ;;  %v2217_v57 = vmul.f32 %v2198_v39, %v2198_v39 }
0x1487   : > { %v2226_v31 = vmul.f32 0.044715, %v2221_v56  ;;  %v2222_v48 = vmul.f32 %v2217_v57, %v2198_v39  ;;  %v6944_v56 = vld [vmem:[%s2272_s18] ss:$0 sm:$0xff]  ;;  %s8717_s18 = smov (%p294_p0), 122  }
0x1489   : > { %v2231_v59 = vadd.f32 %v2226_v31, %v2195_v38  ;;  %v2227_v13 = vmul.f32 0.044715, %v2222_v48 }
0x148b   : > { %v2236_v53 = vmul.f32 0.7978846, %v2231_v59  ;;  %v2232_v11 = vadd.f32 %v2227_v13, %v2198_v39 }
0x148d   : > { %8341 = vtanh.f32 %v2236_v53  ;;  %v2237_v0 = vmul.f32 0.7978846, %v2232_v11 }
0x148f   : > { %8343 = vtanh.f32 %v2237_v0 }
0x1497   : > { %v8342_v3 = vpop.eup %8341 }
0x1498   : > { %v2246_v4 = vadd.f32 1.0, %v8342_v3 }
0x1499   : > { %v8344_v21 = vpop.eup %8343 }
0x149a   : > { %v2251_v23 = vmul.f32 0.5, %v2246_v4  ;;  %v2247_v24 = vadd.f32 1.0, %v8344_v21 }
0x149c   : > { %v2252_v25 = vmul.f32 0.5, %v2247_v24  ;;  %v2256_v43 = vmul.f32 %v2251_v23, %v2195_v38 }
0x149e   : > { %v2257_v5 = vmul.f32 %v2252_v25, %v2198_v39 }
0x14a0   : > { %v2274_v29 = vpack.c.bf16 %v2257_v5, %v2256_v43 }
0x14a2   : > { %7600 = vmatmul.mubr.msk.bf16.vlgmr.msra.gmra.mrb[40].mxu0 %vm2307_vm13, %v2274_v29 }
0x14a3   : > { %7603 = vmatprep.mubr.msk.bf16.mxu0 %vm8689_vm6, %v8688_v6 }
0x150d   : > { %v2202_v30 = vpop.f32.mrb[52].mxu1 }
0x150e   : > { %v2203_v26 = vadd.f32 %v6936_v42, %v2202_v30  ;;  %v7585_v19 = vpop.f32.mrb[53].mxu1 }
0x150f   : > { %v2205_v32 = vpop.f32.mrb[54].mxu1 }
0x1510   : > { %v2218_v10 = vmul.f32 %v2203_v26, %v2203_v26  ;;  %v2206_v9 = vadd.f32 %v6936_v42, %v2205_v32  ;;  %v7586_v34 = vpop.f32.mrb[55].mxu1 }
0x1512   : > { %v2223_v35 = vmul.f32 %v2218_v10, %v2203_v26  ;;  %v2219_v2 = vmul.f32 %v2206_v9, %v2206_v9 }
0x1514   : > { %v2228_v36 = vmul.f32 0.044715, %v2223_v35  ;;  %v2224_v37 = vmul.f32 %v2219_v2, %v2206_v9  ;;  %v8396_v35 = vld [vmem:[%s10324_s23] sm:$0xff] (%p294_p0)  }
0x1515   : > { %v2210_v40 = vpop.f32.mrb[56].mxu1  ;;  %7619 = vmatprep.subr.bf16.mxu1 (%p294_p0), %v8396_v35 }
0x1516   : > { %v2233_v47 = vadd.f32 %v2228_v36, %v2203_v26  ;;  %v2229_v46 = vmul.f32 0.044715, %v2224_v37  ;;  %v2211_v45 = vadd.f32 %v6936_v42, %v2210_v40  ;;  %v7589_v55 = vpop.f32.mrb[57].mxu1  ;;  %7620 = vmatpush3.bf16.msra.mxu1 (%p294_p0), %v8396_v35  ;;  %v8398_v40 = vld [vmem:[%s10325_s26] sm:$0xff] (%p294_p0)  }
0x1517   : > { %v2213_v58 = vpop.f32.mrb[58].mxu1 }
0x1518   : > { %v2238_v60 = vmul.f32 0.7978846, %v2233_v47  ;;  %v2234_v62 = vadd.f32 %v2229_v46, %v2206_v9  ;;  %v2220_v1 = vmul.f32 %v2211_v45, %v2211_v45  ;;  %v7590_v7 = vpop.f32.mrb[59].mxu1 }
0x151a   : > { %8345 = vtanh.f32 %v2238_v60  ;;  %v2239_v12 = vmul.f32 0.7978846, %v2234_v62  ;;  %v2225_v44 = vmul.f32 %v2220_v1, %v2211_v45  ;;  %v8705_v60 = vmov (%p294_p0), 0.0  }
0x151b   :  { %7611 = vmatprep.subr.bf16.mxu0 (%p294_p0), %v8705_v60 }
0x151c   : > { %8347 = vtanh.f32 %v2239_v12  ;;  %v2230_v16 = vmul.f32 0.044715, %v2225_v44  ;;  %7612 = vmatpush3.bf16.msra.mxu0 (%p294_p0), %v8398_v40  ;;  %v8399_v12 = vld [vmem:[%s10325_s26 + $0x8] sm:$0xff] (%p294_p0)  }
0x151d   :  { %7613 = vmatprep.subr.bf16.mxu0 (%p294_p0), %v8705_v60 }
0x151e   : > { %v2235_v17 = vadd.f32 %v2230_v16, %v2211_v45 }
0x1520   : > { %v2240_v33 = vmul.f32 0.7978846, %v2235_v17  ;;  %7614 = vmatpush3.bf16.msra.mxu0 (%p294_p0), %v8399_v12 }
0x1521   :  { %7627 = vmatprep.subr.bf16.mxu0 (%p294_p0), %v8705_v60 }
0x1522   : > { %8349 = vtanh.f32 %v2240_v33 }
0x1524   : > { %v8346_v18 = vpop.eup %8345 }
0x1525   : > { %v2248_v20 = vadd.f32 1.0, %v8346_v18 }
0x1526   : > { %v8348_v15 = vpop.eup %8347 }
0x1527   : > { %v2253_v22 = vmul.f32 0.5, %v2248_v20  ;;  %v2249_v8 = vadd.f32 1.0, %v8348_v15  ;;  %v6952_v20 = vld [vmem:[%s10326_s25] ss:$0 sm:$0xff] (%p294_p0) }
0x1529   : > { %v2254_v27 = vmul.f32 0.5, %v2249_v8  ;;  %v2258_v42 = vmul.f32 %v2253_v22, %v2203_v26  ;;  %v6953_v22 = vld [vmem:[%s10327_s29] ss:$0 sm:$0xff] (%p294_p0) }
0x152b   : > { %v2259_v28 = vmul.f32 %v2254_v27, %v2206_v9 }
0x152c   : > { %v8350_v38 = vpop.eup %8349 }
0x152d   : > { %v2275_v49 = vpack.c.bf16 %v2259_v28, %v2258_v42  ;;  %v2250_v51 = vadd.f32 1.0, %v8350_v38  ;;  %v6958_v28 = vld [vmem:[%s10328_s3] ss:$0 sm:$0xff] (%p294_p0) }
0x152f   : > { %7604 = vmatmul.mubr.msk.bf16.gmra.mrb[44].mxu0 %vm2307_vm13, %v2275_v49  ;;  %v2255_v52 = vmul.f32 0.5, %v2250_v51 }
0x1530   : > { %7607 = vmatprep.mubr.msk.bf16.mxu0 %vm8689_vm6, %v8688_v6  ;;  %vm6790_vm6 = vcmask (%p294_p0), 0  }
0x1531   : > { %v2260_v39 = vmul.f32 %v2255_v52, %v2211_v45 }
0x1533   : > { %v2276_v54 = vpack.c.bf16 %v2260_v39, %v2260_v39 }
0x1537   : > { %7608 = vmatmul.mubr.msk.bf16.gmra.mrb[48].mxu0 %vm2307_vm13, %v2276_v54 }
0x1538   :  { %7615 = vmatprep.mubr.msk.bf16.mxu0 (%p294_p0), %vm8706_vm15, %v8705_v60 }
0x1575   : > { %v2351_v57 = vpop.f32.mrb[40].mxu0 }
0x1576   : > { %v2352_v31 = vadd.f32 %v6944_v56, %v2351_v57  ;;  %v7601_v48 = vpop.f32.mrb[41].mxu0 }
0x1577   : > { %v2354_v59 = vpop.f32.mrb[42].mxu0 }
0x1578   : > { %v2373_v13 = vadd.f32 %v2352_v31, %v9377_v63   ;;  %v2355_v53 = vadd.f32 %v6944_v56, %v2354_v59  ;;  %v7602_v11 = vpop.f32.mrb[43].mxu0 }
0x157a   : > { %v2374_v0 = vadd.f32 %v2355_v53, %v9371_v14   ;;  %v10322_v39 = vmov %v2373_v13  ;;  %v9493_v14 = vld [vmem:[%s10323_s22] sm:$0xff] (%p294_p0)  ;;  %v2381_v2 = vrot.slane (%p294_p0), %v2373_v13, 1 }
0x157b   :  { %v6954_v13 = vld [vmem:[%s10329_s8] ss:$0 sm:$0xff] (%p294_p0) }
0x157c   : > { %v10321_v42 = vmov %v2374_v0  ;;  %v2382_v36 = vrot.slane (%p294_p0), %v2374_v0, 1 }
0x157e   :  { %v2383_v55 = vsel (%p294_p0), %vm253_vm1, %v2381_v2, %v2382_v36 }
0x1602   : > { %v2359_v3 = vpop.f32.mrb[44].mxu0 }
0x1603   : > { %v2360_v4 = vadd.f32 %v6944_v56, %v2359_v3  ;;  %v7605_v21 = vpop.f32.mrb[45].mxu0 }
0x1604   : > { %v2362_v6 = vpop.f32.mrb[46].mxu0 }
0x1605   : > { %v2375_v23 = vadd.f32 %v2360_v4, %v9414_v50   ;;  %v2363_v24 = vadd.f32 %v6944_v56, %v2362_v6  ;;  %v7606_v25 = vpop.f32.mrb[47].mxu0  ;;  %v2404_v50 = vsel (%p294_p0), %vm307_vm4, %v9493_v14, 0.0 }
0x1606   :  { %2405 = vadd.xlane.f32.xlu0 (%p294_p0), %v2404_v50 }
0x1607   : > { %v2376_v43 = vadd.f32 %v2363_v24, %v9418_v61   ;;  %v10320_v44 = vmov %v2375_v23  ;;  %v2384_v37 = vrot.slane (%p294_p0), %v2375_v23, 1  ;;  %v2391_v47 = vrot.slane (%p294_p0), %v2375_v23, 2 }
0x1609   :  { %296 = sbr.rel (!%p294_p0) target bundleno = 303 (0x12f), region = 247  ;;  %v2392_v46 = vrot.slane (%p294_p0), %v2376_v43, 2  ;;  %v2385_v58 = vsel (%p294_p0), %vm253_vm1, %v2382_v36, %v2384_v37  ;;  %vm6753_vm1 = vcmask (%p294_p0), 1042432  }
0x160a   : > { %v2367_v5 = vpop.f32.mrb[48].mxu0  ;;  %v9505_v62 = vpack.c.bf16 (%p294_p0), %v2385_v58, %v2383_v55 }
0x160b   : > { %v2368_v29 = vadd.f32 %v6944_v56, %v2367_v5  ;;  %v7609_v30 = vpop.f32.mrb[49].mxu0  ;;  %v2393_v1 = vsel (%p294_p0), %vm2390_vm14, %v2391_v47, %v2392_v46 }
0x160c   : > { %v2370_v26 = vpop.f32.mrb[50].mxu0  ;;  %7623 = vmatprep.mubr.msk.bf16.mxu1 (%p294_p0), %vm307_vm4, %v9505_v62 }
0x160d   : > { %v2377_v63 = vadd.f32 %v2368_v29, %v9427_v41   ;;  %v7610_v19 = vpop.f32.mrb[51].mxu0  ;;  %v10319_v41 = vmov %v2376_v43 }
0x160e   :  { %v8397_v41 = vld [vmem:[%s10324_s23 + $0x8] sm:$0xff] (%p294_p0)  }
0x160f   : > { %v10318_v38 = vmov %v2377_v63  ;;  %v2394_v45 = vrot.slane (%p294_p0), %v2377_v63, 2  ;;  %7621 = vmatprep.subr.bf16.mxu1 (%p294_p0), %v8397_v41 }
0x1610   :  { %7622 = vmatpush3.bf16.msra.mxu1 %v8397_v41 }
0x1611   :  { %v2395_v7 = vsel %vm2390_vm14, %v2392_v46, %v2394_v45  ;;  %7633 = vmatprep.subr.bf16.mxu1 %v8705_v60 }
0x1612   :  { %v9510_v44 = vpack.c.bf16 %v2395_v7, %v2393_v1 }
0x1614   :  { %7624 = vmatmul.mubr.msk.bf16.vlgmr.msra.gmra.mrb[0].mxu1 %vm307_vm4, %v9510_v44 }
0x1615   :  { %7635 = vmatprep.mubr.msk.bf16.mxu1 %vm8706_vm15, %v8705_v60 }
0x1693   :  { %v2406_v61 = vpop.xlane.xlu0 %2405 }
0x1694   :  { %v2408_v32 = vmul.f32 0.03125, %v2406_v61 }
0x1696   :  { %v2409_v10 = vsub.f32 %v9493_v14, %v2408_v32 }
0x1698   :  { %v2410_v9 = vmul.f32 %v2409_v10, %v2409_v10 }
0x169a   :  { %v2411_v34 = vsel %vm307_vm4, %v2410_v9, 0.0 }
0x169b   :  { %2412 = vadd.xlane.f32.xlu0 %v2411_v34 }
0x16e7   :  { %v7625_v38 = vpop.f32.mrb[0].mxu1 }
0x16e8   :  { %v2573_v49 = vadd.f32 %v7625_v38, %v6958_v28  ;;  %v2564_v51 = vpop.f32.mrb[1].mxu1 }
0x16e9   :  { %v2565_v52 = vadd.f32 %v6958_v28, %v2564_v51  ;;  %v7626_v39 = vpop.f32.mrb[2].mxu1 }
0x16ea   :  { %v2576_v54 = vadd.f32 %v7626_v39, %v6958_v28  ;;  %v2567_v56 = vpop.f32.mrb[3].mxu1 }
0x16eb   :  { %v2568_v57 = vadd.f32 %v6958_v28, %v2567_v56 }
0x16ec   :  { %v9527_v31 = vpack.c.bf16 %v2576_v54, %v2573_v49 }
0x16ed   :  { %v9529_v48 = vpack.c.bf16 %v2568_v57, %v2565_v52 }
0x16ee   :  { %v3034_v50 = vsel %vm501_vm7, %v9527_v31, 0 }
0x16ef   :  { %2799 = vrot.lane.b32.xlu0 %v9529_v48, %s8707_s14  ;;  %2691 = vrot.lane.b32.xlu1 %v9529_v48, %s8708_s19  ;;  %v2586_v59 = vsel %vm501_vm7, %v9529_v48, 0 }
0x1728   :  { %v2413_v16 = vpop.xlane.xlu0 %2412 }
0x1729   :  { %v2414_v17 = vmul.f32 0.03125, %v2413_v16 }
0x172b   :  { %v2415_v33 = vadd.f32 1e-12, %v2414_v17 }
0x172d   :  { %8434 = vrsqrt.f32 %v2415_v33 }
0x1737   :  { %v8435_v18 = vpop.eup %8434 }
0x1738   :  { %v2417_v15 = vmul.f32 %v8435_v18, %v2409_v10 }
0x173a   :  { %v2424_v8 = vmul.f32 %v6952_v20, %v2417_v15 }
0x173c   :  { %v2431_v27 = vadd.f32 %v6953_v22, %v2424_v8 }
0x173e   :  { %v2437_v42 = vpack.c.bf16 %v2431_v27, %v2431_v27 }
0x1740   :  { %7616 = vmatmul.mubr.msk.bf16.vlgmr.msra.gmra.mrb[0].mxu0 %vm307_vm4, %v2437_v42 }
0x1741   :  { %7629 = vmatprep.mubr.msk.bf16.mxu0 %vm8706_vm15, %v8705_v60  ;;  %7628 = vmatpush3.bf16.xpose.msra.mxu0 %v2586_v59 }
0x1742   :  { %7639 = vmatprep.subr.bf16.mxu0 %v8705_v60 }
0x1761   :  { %v2692_v3 = vpop.permute.xlu1 %2691  ;;  %v2800_v43 = vpop.permute.xlu0 %2799 }
0x1762   :  { %v2697_v24 = vsel %vm501_vm7, %v2692_v3, 0  ;;  %v2805_v29 = vsel %vm501_vm7, %v2800_v43, 0 }
0x1813   :  { %v2493_v53 = vpop.f32.mrb[0].mxu0 }
0x1814   :  { %v7617_v11 = vpop.f32.mrb[1].mxu0  ;;  %v2494_v4 = vadd.f32 %v6954_v13, %v2493_v53 }
0x1815   :  { %v2496_v0 = vpop.f32.mrb[2].mxu0 }
0x1816   :  { %v2497_v21 = vadd.f32 %v6954_v13, %v2496_v0  ;;  %v7618_v6 = vpop.f32.mrb[3].mxu0 }
0x1818   :  { %v2500_v23 = vpack.c.bf16 %v2497_v21, %v2494_v4 }
0x181a   :  { %2689 = vrot.lane.b32.xlu1 %v2500_v23, %s8708_s19  ;;  %7630 = vmatmul.mubr.msk.bf16.vlgmr.msra.gmra.mrb[4].mxu0 %vm501_vm7, %v2500_v23  ;;  %v3029_v25 = vrot.slane %v2500_v23, 4 }
0x181b   :  { %7640 = vmatpush3.bf16.xpose.msra.mxu0 %v2697_v24  ;;  %7641 = vmatprep.mubr.msk.bf16.mxu0 %vm8706_vm15, %v8705_v60 }
0x181c   :  { %3243 = vrot.lane.b32.xlu0 %v3029_v25, %s8707_s14  ;;  %7651 = vmatprep.subr.bf16.mxu0 %v8705_v60 }
0x181e   :  { %2797 = vrot.lane.b32.xlu1 %v2500_v23, %s8707_s14 }
0x1820   :  { %3351 = vrot.lane.b32.xlu0 %v3029_v25, %s8709_s24 }
0x1822   :  { %2907 = vrot.lane.b32.xlu1 %v9529_v48, %s8709_s24 }
0x1826   :  { %2905 = vrot.lane.b32.xlu1 %v2500_v23, %s8709_s24 }
0x182a   :  { %3137 = vrot.lane.b32.xlu1 %v9527_v31, %s8708_s19 }
0x182e   :  { %3135 = vrot.lane.b32.xlu1 %v3029_v25, %s8708_s19 }
0x1832   :  { %3245 = vrot.lane.b32.xlu1 %v9527_v31, %s8707_s14 }
0x1836   :  { %3353 = vrot.lane.b32.xlu1 %v9527_v31, %s8709_s24 }
0x188c   :  { %v2690_v5 = vpop.permute.xlu1 %2689 }
0x188d   :  { %7642 = vmatmul.mubr.msk.bf16.vlgmr.msra.gmra.mrb[8].mxu0 %vm501_vm7, %v2690_v5 }
0x188e   :  { %7652 = vmatpush3.bf16.xpose.msra.mxu0 %v2805_v29  ;;  %7653 = vmatprep.mubr.msk.bf16.mxu0 %vm8706_vm15, %v8705_v60  ;;  %v3244_v41 = vpop.permute.xlu0 %3243 }
0x188f   :  { %7663 = vmatprep.subr.bf16.mxu0 %v8705_v60 }
0x1890   :  { %v2798_v30 = vpop.permute.xlu1 %2797 }
0x1892   :  { %v3352_v36 = vpop.permute.xlu0 %3351 }
0x1894   :  { %v2908_v26 = vpop.permute.xlu1 %2907 }
0x1895   :  { %v2913_v63 = vsel %vm501_vm7, %v2908_v26, 0  ;;  %7654 = vmatmul.mubr.msk.bf16.vlgmr.msra.gmra.mrb[12].mxu0 %vm501_vm7, %v2798_v30 }
0x1896   :  { %7664 = vmatpush3.bf16.xpose.msra.mxu0 %v2913_v63  ;;  %7665 = vmatprep.mubr.msk.bf16.mxu0 %vm8706_vm15, %v8705_v60 }
0x1897   :  { %7675 = vmatprep.subr.bf16.mxu0 %v8705_v60 }
0x1898   :  { %v2906_v19 = vpop.permute.xlu1 %2905 }
0x189c   :  { %v3138_v61 = vpop.permute.xlu1 %3137 }
0x189d   :  { %7666 = vmatmul.mubr.msk.bf16.vlgmr.msra.gmra.mrb[16].mxu0 %vm501_vm7, %v2906_v19  ;;  %v3143_v10 = vsel %vm501_vm7, %v3138_v61, 0 }
0x189e   :  { %7676 = vmatpush3.bf16.xpose.msra.mxu0 %v3034_v50  ;;  %7677 = vmatprep.mubr.msk.bf16.mxu0 %vm8706_vm15, %v8705_v60 }
0x189f   :  { %7687 = vmatprep.subr.bf16.mxu0 %v8705_v60 }
0x18a0   :  { %v3136_v32 = vpop.permute.xlu1 %3135 }
0x18a4   :  { %v3246_v9 = vpop.permute.xlu1 %3245 }
0x18a5   :  { %7678 = vmatmul.mubr.msk.bf16.vlgmr.msra.gmra.mrb[20].mxu0 %vm501_vm7, %v3029_v25  ;;  %v3251_v34 = vsel %vm501_vm7, %v3246_v9, 0 }
0x18a6   :  { %7688 = vmatpush3.bf16.xpose.msra.mxu0 %v3143_v10  ;;  %7689 = vmatprep.mubr.msk.bf16.mxu0 %vm8706_vm15, %v8705_v60 }
0x18a7   :  { %7699 = vmatprep.subr.bf16.mxu0 %v8705_v60 }
0x18a8   :  { %v3354_v35 = vpop.permute.xlu1 %3353 }
0x18a9   :  { %v3359_v2 = vsel %vm501_vm7, %v3354_v35, 0 }
0x18ad   :  { %7690 = vmatmul.mubr.msk.bf16.vlgmr.msra.gmra.mrb[24].mxu0 %vm501_vm7, %v3136_v32 }
0x18ae   :  { %7700 = vmatpush3.bf16.xpose.msra.mxu0 %v3251_v34  ;;  %7701 = vmatprep.mubr.msk.bf16.mxu0 %vm8706_vm15, %v8705_v60 }
0x18af   :  { %7711 = vmatprep.subr.bf16.mxu0 %v8705_v60 }
0x18b5   :  { %7702 = vmatmul.mubr.msk.bf16.vlgmr.msra.gmra.mrb[28].mxu0 %vm501_vm7, %v3244_v41 }
0x18b6   :  { %7712 = vmatpush3.bf16.xpose.msra.mxu0 %v3359_v2  ;;  %7713 = vmatprep.mubr.msk.bf16.mxu0 %vm8706_vm15, %v8705_v60 }
0x18b7   :  { %7723 = vmatprep.subr.bf16.mxu0 %v8705_v60 }
0x18bd   :  { %7714 = vmatmul.mubr.msk.bf16.vlgmr.msra.gmra.mrb[32].mxu0 %vm501_vm7, %v3352_v36 }
0x18be   :  { %7727 = vmatprep.mubr.msk.bf16.mxu0 %vm8706_vm15, %v8705_v60 }
0x18ed   :  { %v2622_v37 = vpop.f32.mrb[4].mxu0 }
0x18ee   :  { %v7631_v40 = vpop.f32.mrb[5].mxu0  ;;  %v2629_v47 = vsel %vm1197_vm11, %v2622_v37, -inf }
0x18ef   :  { %2630 = vmax.xlane.f32.xlu1 %v2629_v47  ;;  %v2625_v46 = vpop.f32.mrb[6].mxu0 }
0x18f0   :  { %v7632_v45 = vpop.f32.mrb[7].mxu0 }
0x1960   :  { %v2733_v55 = vpop.f32.mrb[8].mxu0 }
0x1961   :  { %v7643_v58 = vpop.f32.mrb[9].mxu0  ;;  %v2739_v1 = vsel %vm1197_vm11, %v2733_v55, -inf }
0x1962   :  { %2740 = vmax.xlane.f32.xlu0 %v2739_v1  ;;  %v2736_v7 = vpop.f32.mrb[10].mxu0 }
0x1963   :  { %v7644_v12 = vpop.f32.mrb[11].mxu0 }
0x1968   :  { %v2841_v16 = vpop.f32.mrb[12].mxu0 }
0x1969   :  { %v7655_v17 = vpop.f32.mrb[13].mxu0  ;;  %v2847_v33 = vsel %vm1197_vm11, %v2841_v16, -inf }
0x196a   :  { %2848 = vmax.xlane.f32.xlu0 %v2847_v33  ;;  %v2844_v18 = vpop.f32.mrb[14].mxu0 }
0x196b   :  { %v7656_v20 = vpop.f32.mrb[15].mxu0 }
0x1970   :  { %v2949_v15 = vpop.f32.mrb[16].mxu0 }
0x1971   :  { %v7667_v22 = vpop.f32.mrb[17].mxu0  ;;  %v2955_v8 = vsel %vm1197_vm11, %v2949_v15, -inf }
0x1972   :  { %2956 = vmax.xlane.f32.xlu1 %v2955_v8  ;;  %v2952_v27 = vpop.f32.mrb[18].mxu0 }
0x1973   :  { %v7668_v42 = vpop.f32.mrb[19].mxu0 }
0x1978   :  { %v3070_v28 = vpop.f32.mrb[20].mxu0 }
0x1979   :  { %v7679_v38 = vpop.f32.mrb[21].mxu0  ;;  %v3076_v49 = vsel %vm1197_vm11, %v3070_v28, -inf }
0x197a   :  { %3077 = vmax.xlane.f32.xlu0 %v3076_v49  ;;  %v3073_v51 = vpop.f32.mrb[22].mxu0 }
0x197b   :  { %v7680_v52 = vpop.f32.mrb[23].mxu0 }
0x197c   :  { %v2631_v24 = vpop.xlane.xlu1 %2630 }
0x197d   :  { %v2632_v25 = vsub.f32 %v2622_v37, %v2631_v24 }
0x197f   :  { %v2633_v43 = vmul.f32 1.442695, %v2632_v25 }
0x1980   :  { %v9597_v39 = vpop.f32.mrb[24].mxu0 }
0x1981   :  { %v7691_v54 = vpop.f32.mrb[25].mxu0  ;;  %v3185_v56 = vsel %vm1197_vm11, %v9597_v39, -inf  ;;  %8436 = vpow2.f32 %v2633_v43 }
0x1982   :  { %3186 = vmax.xlane.f32.xlu1 %v3185_v56  ;;  %v3182_v57 = vpop.f32.mrb[26].mxu0 }
0x1983   :  { %v7692_v59 = vpop.f32.mrb[27].mxu0 }
0x1988   :  { %v3287_v13 = vpop.f32.mrb[28].mxu0 }
0x1989   :  { %v7703_v53 = vpop.f32.mrb[29].mxu0  ;;  %v3293_v11 = vsel %vm1197_vm11, %v3287_v13, -inf }
0x198a   :  { %3294 = vmax.xlane.f32.xlu0 %v3293_v11  ;;  %v3290_v0 = vpop.f32.mrb[30].mxu0 }
0x198b   :  { %v7704_v3 = vpop.f32.mrb[31].mxu0  ;;  %v9610_v29 = vpop.eup %8436 }
0x198c   :  { %v2635_v30 = vsel %vm1197_vm11, %v9610_v29, 0.0 }
0x1990   :  { %v9602_v4 = vpop.f32.mrb[32].mxu0 }
0x1991   :  { %v7715_v21 = vpop.f32.mrb[33].mxu0  ;;  %v3401_v5 = vsel %vm1197_vm11, %v9602_v4, -inf }
0x1992   :  { %v3398_v6 = vpop.f32.mrb[34].mxu0 }
0x1993   :  { %2751 = vrot.lane.b32.xlu1 %v9529_v48, %s8710_s30  ;;  %v7716_v23 = vpop.f32.mrb[35].mxu0 }
0x19a0   :  { %2642 = vrot.lane.b32.xlu0 %v9529_v48, %s8711_s6 }
0x19b7   :  { %3402 = vmax.xlane.f32.xlu1 %v3401_v5 }
0x19bf   :  { %2636 = vadd.xlane.f32.xlu0 %v2635_v30 }
0x19c8   :  { %2859 = vrot.lane.b32.xlu1 %v9529_v48, %s8712_s0 }
0x19ef   :  { %v2741_v26 = vpop.xlane.xlu0 %2740 }
0x19f0   :  { %v2742_v63 = vsub.f32 %v2733_v55, %v2741_v26 }
0x19f2   :  { %v2743_v19 = vmul.f32 1.442695, %v2742_v63 }
0x19f4   :  { %8438 = vpow2.f32 %v2743_v19 }
0x19f7   :  { %v2849_v50 = vpop.xlane.xlu0 %2848 }
0x19f8   :  { %v2850_v61 = vsub.f32 %v2841_v16, %v2849_v50 }
0x19fa   :  { %v2851_v32 = vmul.f32 1.442695, %v2850_v61 }
0x19fc   :  { %8440 = vpow2.f32 %v2851_v32 }
0x19fe   :  { %v9616_v10 = vpop.eup %8438 }
0x19ff   :  { %v2957_v9 = vpop.xlane.xlu1 %2956  ;;  %v2745_v34 = vsel %vm1197_vm11, %v9616_v10, 0.0 }
0x1a00   :  { %v2958_v35 = vsub.f32 %v2949_v15, %v2957_v9  ;;  %2746 = vadd.xlane.f32.xlu1 %v2745_v34 }
0x1a02   :  { %v2959_v41 = vmul.f32 1.442695, %v2958_v35 }
0x1a04   :  { %8442 = vpow2.f32 %v2959_v41 }
0x1a06   :  { %v9620_v2 = vpop.eup %8440 }
0x1a07   :  { %v3078_v36 = vpop.xlane.xlu0 %3077  ;;  %v2853_v37 = vsel %vm1197_vm11, %v9620_v2, 0.0 }
0x1a08   :  { %v3079_v40 = vsub.f32 %v3070_v28, %v3078_v36  ;;  %2854 = vadd.xlane.f32.xlu0 %v2853_v37 }
0x1a0a   :  { %v3080_v47 = vmul.f32 1.442695, %v3079_v40 }
0x1a0c   :  { %8444 = vpow2.f32 %v3080_v47 }
0x1a0e   :  { %v9624_v46 = vpop.eup %8442 }
0x1a0f   :  { %v2961_v45 = vsel %vm1197_vm11, %v9624_v46, 0.0  ;;  %v3187_v17 = vpop.xlane.xlu1 %3186 }
0x1a10   :  { %2962 = vadd.xlane.f32.xlu1 %v2961_v45  ;;  %v3188_v18 = vsub.f32 %v9597_v39, %v3187_v17 }
0x1a12   :  { %v3189_v15 = vmul.f32 1.442695, %v3188_v18 }
0x1a13   :  { %v2752_v27 = vpop.permute.xlu1 %2751 }
0x1a16   :  { %v9628_v55 = vpop.eup %8444 }
0x1a17   :  { %v3295_v58 = vpop.xlane.xlu0 %3294  ;;  %v3082_v1 = vsel %vm1197_vm11, %v9628_v55, 0.0 }
0x1a18   :  { %v3296_v7 = vsub.f32 %v3287_v13, %v3295_v58  ;;  %3083 = vadd.xlane.f32.xlu1 %v3082_v1 }
0x1a1a   :  { %v3297_v12 = vmul.f32 1.442695, %v3296_v7 }
0x1a1b   :  { %v2643_v16 = vpop.permute.xlu0 %2642 }
0x1a1c   :  { %8446 = vpow2.f32 %v3297_v12  ;;  %7634 = vmatpush3.bf16.msra.mxu1 %v2643_v16 }
0x1a1d   :  { %7645 = vmatprep.subr.bf16.mxu1 %v8705_v60  ;;  %8448 = vpow2.f32 %v3189_v15 }
0x1a1e   :  { %2967 = vrot.lane.b32.xlu0 %v9529_v48, %s8713_s5 }
0x1a26   :  { %v9635_v33 = vpop.eup %8446 }
0x1a27   :  { %v3299_v20 = vsel %vm1197_vm11, %v9635_v33, 0.0  ;;  %v9640_v22 = vpop.eup %8448 }
0x1a28   :  { %3300 = vadd.xlane.f32.xlu1 %v3299_v20  ;;  %v3191_v8 = vsel %vm1197_vm11, %v9640_v22, 0.0 }
0x1a3d   :  { %3192 = vadd.xlane.f32.xlu0 %v3191_v8 }
0x1a44   :  { %v3403_v42 = vpop.xlane.xlu1 %3402 }
0x1a45   :  { %v3404_v48 = vsub.f32 %v9602_v4, %v3403_v42 }
0x1a47   :  { %v3405_v28 = vmul.f32 1.442695, %v3404_v48 }
0x1a48   :  { %v2860_v56 = vpop.permute.xlu1 %2859 }
0x1a49   :  { %8450 = vpow2.f32 %v3405_v28 }
0x1a4c   :  { %v2637_v38 = vpop.xlane.xlu0 %2636 }
0x1a4d   :  { %8452 = vrcp.f32 %v2637_v38 }
0x1a53   :  { %v9645_v49 = vpop.eup %8450  ;;  %3197 = vrot.lane.b32.xlu0 %v9527_v31, %s8710_s30 }
0x1a54   :  { %v3407_v51 = vsel %vm1197_vm11, %v9645_v49, 0.0 }
0x1a55   :  { %3408 = vadd.xlane.f32.xlu1 %v3407_v51 }
0x1a57   :  { %v8453_v52 = vpop.eup %8452  ;;  %3305 = vrot.lane.b32.xlu0 %v9527_v31, %s8712_s0 }
0x1a58   :  { %v2639_v39 = vmul.f32 %v8453_v52, %v9610_v29 }
0x1a5a   :  { %v2640_v54 = vpack.c.bf16 %v2639_v39, %v2639_v39 }
0x1a5b   :  { %3413 = vrot.lane.b32.xlu0 %v9527_v31, %s8713_s5 }
0x1a5c   :  { %7636 = vmatmul.mubr.msk.bf16.vlgmr.msra.gmra.mrb[4].mxu1 %vm1197_vm11, %v2640_v54 }
0x1a5d   :  { %7646 = vmatpush3.bf16.msra.mxu1 %v2752_v27  ;;  %7647 = vmatprep.mubr.msk.bf16.mxu1 %vm8706_vm15, %v8705_v60 }
0x1a5e   :  { %7657 = vmatprep.subr.bf16.mxu1 %v8705_v60 }
0x1a66   :  { %3089 = vrot.lane.b32.xlu1 %v9527_v31, %s8711_s6 }
0x1a8d   :  { %v2747_v57 = vpop.xlane.xlu1 %2746 }
0x1a8e   :  { %8454 = vrcp.f32 %v2747_v57 }
0x1a95   :  { %v2855_v59 = vpop.xlane.xlu0 %2854 }
0x1a96   :  { %8456 = vrcp.f32 %v2855_v59 }
0x1a98   :  { %v8455_v13 = vpop.eup %8454 }
0x1a99   :  { %v2749_v53 = vmul.f32 %v8455_v13, %v9616_v10  ;;  %v2968_v21 = vpop.permute.xlu0 %2967 }
0x1a9b   :  { %v2750_v11 = vpack.c.bf16 %v2749_v53, %v2749_v53 }
0x1a9d   :  { %7648 = vmatmul.mubr.msk.bf16.vlgmr.msra.gmra.mrb[8].mxu1 %vm1197_vm11, %v2750_v11  ;;  %v2963_v0 = vpop.xlane.xlu1 %2962 }
0x1a9e   :  { %7658 = vmatpush3.bf16.msra.mxu1 %v2860_v56  ;;  %8458 = vrcp.f32 %v2963_v0  ;;  %7659 = vmatprep.mubr.msk.bf16.mxu1 %vm8706_vm15, %v8705_v60  ;;  %v8401_v56 = vld [vmem:[%s10330_s9 + $0x8] sm:$0xff]  }
0x1a9f   :  { %7669 = vmatprep.subr.bf16.mxu1 %v8705_v60 }
0x1aa0   :  { %v8457_v31 = vpop.eup %8456 }
0x1aa1   :  { %v2857_v3 = vmul.f32 %v8457_v31, %v9620_v2 }
0x1aa3   :  { %v2858_v4 = vpack.c.bf16 %v2857_v3, %v2857_v3 }
0x1aa5   :  { %7660 = vmatmul.mubr.msk.bf16.vlgmr.msra.gmra.mrb[12].mxu1 %vm1197_vm11, %v2858_v4  ;;  %v3084_v25 = vpop.xlane.xlu1 %3083 }
0x1aa6   :  { %7670 = vmatpush3.bf16.msra.mxu1 %v2968_v21  ;;  %7671 = vmatprep.mubr.msk.bf16.mxu1 %vm8706_vm15, %v8705_v60  ;;  %8460 = vrcp.f32 %v3084_v25 }
0x1aa7   :  { %7681 = vmatprep.subr.bf16.mxu1 %v8705_v60 }
0x1aa8   :  { %v8459_v6 = vpop.eup %8458 }
0x1aa9   :  { %v2965_v23 = vmul.f32 %v8459_v6, %v9624_v46 }
0x1aab   :  { %v2966_v24 = vpack.c.bf16 %v2965_v23, %v2965_v23 }
0x1aad   :  { %7672 = vmatmul.mubr.msk.bf16.vlgmr.msra.gmra.mrb[16].mxu1 %vm1197_vm11, %v2966_v24 }
0x1aae   :  { %7683 = vmatprep.mubr.msk.bf16.mxu1 %vm8706_vm15, %v8705_v60 }
0x1ab0   :  { %v8461_v29 = vpop.eup %8460 }
0x1ab1   :  { %v3086_v26 = vmul.f32 %v8461_v29, %v9628_v55 }
0x1ab3   :  { %v3087_v19 = vpack.c.bf16 %v3086_v26, %v3086_v26 }
0x1ab5   :  { %v3301_v5 = vpop.xlane.xlu1 %3300 }
0x1aca   :  { %v3193_v43 = vpop.xlane.xlu0 %3192 }
0x1acb   :  { %8462 = vrcp.f32 %v3193_v43 }
0x1acc   :  { %8464 = vrcp.f32 %v3301_v5 }
0x1ace   :  { %v3198_v61 = vpop.permute.xlu0 %3197 }
0x1ad2   :  { %v3306_v34 = vpop.permute.xlu0 %3305 }
0x1ad5   :  { %v8463_v50 = vpop.eup %8462 }
0x1ad6   :  { %v3195_v32 = vmul.f32 %v8463_v50, %v9640_v22  ;;  %v8465_v9 = vpop.eup %8464  ;;  %v3414_v36 = vpop.permute.xlu0 %3413 }
0x1ad7   :  { %v3303_v35 = vmul.f32 %v8465_v9, %v9635_v33 }
0x1ad8   :  { %v3196_v10 = vpack.c.bf16 %v3195_v32, %v3195_v32 }
0x1ad9   :  { %v3304_v41 = vpack.c.bf16 %v3303_v35, %v3303_v35 }
0x1ae2   :  { %v3409_v30 = vpop.xlane.xlu1 %3408 }
0x1ae3   :  { %8466 = vrcp.f32 %v3409_v30 }
0x1ae6   :  { %v3090_v63 = vpop.permute.xlu1 %3089 }
0x1ae7   :  { %7682 = vmatpush3.bf16.msra.mxu1 %v3090_v63 }
0x1ae8   :  { %7693 = vmatprep.subr.bf16.mxu1 %v8705_v60 }
0x1aea   :  { %7684 = vmatmul.mubr.msk.bf16.vlgmr.msra.gmra.mrb[20].mxu1 %vm1197_vm11, %v3087_v19 }
0x1aeb   :  { %7694 = vmatpush3.bf16.msra.mxu1 %v3198_v61  ;;  %7695 = vmatprep.mubr.msk.bf16.mxu1 %vm8706_vm15, %v8705_v60 }
0x1aec   :  { %7705 = vmatprep.subr.bf16.mxu1 %v8705_v60 }
0x1aed   :  { %v8467_v2 = vpop.eup %8466 }
0x1aee   :  { %v3411_v37 = vmul.f32 %v8467_v2, %v9645_v49  ;;  %v8400_v49 = vld [vmem:[%s10330_s9] sm:$0xff]  }
0x1aef   :  { %7724 = vmatpush3.bf16.msra.mxu0 %v8400_v49 }
0x1af0   :  { %v3412_v40 = vpack.c.bf16 %v3411_v37, %v3411_v37  ;;  %7725 = vmatprep.subr.bf16.mxu0 %v8705_v60 }
0x1af2   :  { %7696 = vmatmul.mubr.msk.bf16.vlgmr.msra.gmra.mrb[24].mxu1 %vm1197_vm11, %v3196_v10 }
0x1af3   :  { %7706 = vmatpush3.bf16.msra.mxu1 %v3306_v34  ;;  %7707 = vmatprep.mubr.msk.bf16.mxu1 %vm8706_vm15, %v8705_v60  ;;  %v6979_v34 = vld [vmem:[%s10331_s17] ss:$0 sm:$0xff] }
0x1af4   :  { %7717 = vmatprep.subr.bf16.mxu1 %v8705_v60  ;;  %7726 = vmatpush3.bf16.msra.mxu0 %v8401_v56 }
0x1af5   :  { %7739 = vmatprep.subr.bf16.mxu0 %v8705_v60 }
0x1afa   :  { %7708 = vmatmul.mubr.msk.bf16.vlgmr.msra.gmra.mrb[28].mxu1 %vm1197_vm11, %v3304_v41 }
0x1afb   :  { %7718 = vmatpush3.bf16.msra.mxu1 %v3414_v36  ;;  %7719 = vmatprep.mubr.msk.bf16.mxu1 %vm8706_vm15, %v8705_v60 }
0x1afc   :  { %7731 = vmatprep.subr.bf16.mxu1 %v8705_v60 }
0x1b02   :  { %7720 = vmatmul.mubr.msk.bf16.vlgmr.msra.gmra.mrb[32].mxu1 %vm1197_vm11, %v3412_v40 }
0x1b03   :  { %7735 = vmatprep.mubr.msk.bf16.mxu1 %vm8706_vm15, %v8705_v60 }
0x1b2f   :  { %v2682_v47 = vpop.f32.mrb[4].mxu1 }
0x1b30   :  { %v7637_v46 = vpop.f32.mrb[5].mxu1 }
0x1b31   :  { %v2685_v45 = vpop.f32.mrb[6].mxu1 }
0x1b32   :  { %v7638_v55 = vpop.f32.mrb[7].mxu1 }
0x1b70   :  { %v2791_v58 = vpop.f32.mrb[8].mxu1 }
0x1b71   :  { %v7649_v1 = vpop.f32.mrb[9].mxu1 }
0x1b72   :  { %v2794_v7 = vpop.f32.mrb[10].mxu1 }
0x1b73   :  { %v7650_v12 = vpop.f32.mrb[11].mxu1 }
0x1b78   :  { %v2899_v16 = vpop.f32.mrb[12].mxu1 }
0x1b79   :  { %v7661_v17 = vpop.f32.mrb[13].mxu1 }
0x1b7a   :  { %v2902_v33 = vpop.f32.mrb[14].mxu1 }
0x1b7b   :  { %v7662_v18 = vpop.f32.mrb[15].mxu1 }
0x1b80   :  { %v3007_v20 = vpop.f32.mrb[16].mxu1 }
0x1b81   :  { %v7673_v15 = vpop.f32.mrb[17].mxu1 }
0x1b82   :  { %v3010_v22 = vpop.f32.mrb[18].mxu1  ;;  %v8402_v15 = vld [vmem:[%s10332_s1] sm:$0xff]  }
0x1b83   :  { %v7674_v8 = vpop.f32.mrb[19].mxu1  ;;  %7732 = vmatpush3.bf16.msra.mxu1 %v8402_v15  ;;  %v8403_v22 = vld [vmem:[%s10332_s1 + $0x8] sm:$0xff]  }
0x1b84   :  { %7733 = vmatprep.subr.bf16.mxu1 %v8705_v60 }
0x1b87   :  { %7734 = vmatpush3.bf16.msra.mxu1 %v8403_v22 }
0x1b88   :  { %7751 = vmatprep.subr.bf16.mxu1 %v8705_v60 }
0x1bbd   :  { %v3129_v27 = vpop.f32.mrb[20].mxu1 }
0x1bbe   :  { %v7685_v42 = vpop.f32.mrb[21].mxu1 }
0x1bbf   :  { %v3132_v48 = vpop.f32.mrb[22].mxu1 }
0x1bc0   :  { %v7686_v28 = vpop.f32.mrb[23].mxu1 }
0x1bc5   :  { %v3237_v38 = vpop.f32.mrb[24].mxu1 }
0x1bc6   :  { %v8351_v51 = vpack.i.bf16 %v3237_v38, %v2791_v58  ;;  %v7697_v52 = vpop.f32.mrb[25].mxu1 }
0x1bc7   :  { %v3240_v39 = vpop.f32.mrb[26].mxu1  ;;  %v6983_v52 = vld [vmem:[%s10333_s2] ss:$0 sm:$0xff] }
0x1bc8   :  { %8352 = vrot.lane.b32.xlu1 %v8351_v51, %s8714_s21  ;;  %v7698_v54 = vpop.f32.mrb[27].mxu1 }
0x1bcd   :  { %v3345_v57 = vpop.f32.mrb[28].mxu1 }
0x1bce   :  { %v8356_v59 = vpack.i.bf16 %v3345_v57, %v2899_v16  ;;  %v7709_v13 = vpop.f32.mrb[29].mxu1  ;;  %v6984_v57 = vld [vmem:[%s10334_s7] ss:$0 sm:$0xff] }
0x1bcf   :  { %v3348_v53 = vpop.f32.mrb[30].mxu1 }
0x1bd0   :  { %8357 = vrot.lane.b32.xlu0 %v8356_v59, %s8715_s28  ;;  %v7710_v11 = vpop.f32.mrb[31].mxu1 }
0x1bd5   :  { %v3453_v0 = vpop.f32.mrb[32].mxu1 }
0x1bd6   :  { %v8361_v31 = vpack.i.bf16 %v3453_v0, %v3007_v20  ;;  %v7721_v3 = vpop.f32.mrb[33].mxu1  ;;  %v8404_v0 = vld [vmem:[%s10335_s10] sm:$0xff]  }
0x1bd7   :  { %v3456_v4 = vpop.f32.mrb[34].mxu1  ;;  %v8406_v3 = vld [vmem:[%s10335_s10 + $0x10] sm:$0xff]  }
0x1bd8   :  { %8362 = vrot.lane.b32.xlu1 %v8361_v31, %s8716_s13  ;;  %v7722_v21 = vpop.f32.mrb[35].mxu1  ;;  %v8405_v31 = vld [vmem:[%s10335_s10 + $0x8] sm:$0xff]   ;;  %v8407_v4 = vld [vmem:[%s10335_s10 + $0x18] sm:$0xff]  }
0x1bd9   :  { %v6985_v21 = vld [vmem:[%s10336_s11] ss:$0 sm:$0xff] }
0x1c3a   :  { %v8353_v6 = vpop.permute.xlu1 %8352 }
0x1c3b   :  { %v8355_v24 = vunpack.i.h.bf16 %v8353_v6  ;;  %v8354_v25 = vunpack.i.l.bf16 %v8353_v6 }
0x1c3d   :  { %v3471_v30 = vsel %vm501_vm7, %v3129_v27, %v8355_v24  ;;  %v3025_v26 = vsel %vm501_vm7, %v2682_v47, %v8354_v25 }
0x1c42   :  { %v8358_v23 = vpop.permute.xlu0 %8357 }
0x1c43   :  { %v8360_v43 = vunpack.i.h.bf16 %v8358_v23  ;;  %v8359_v5 = vunpack.i.l.bf16 %v8358_v23 }
0x1c45   :  { %v3472_v50 = vsel %vm1197_vm11, %v3471_v30, %v8360_v43  ;;  %v3026_v61 = vsel %vm1197_vm11, %v3025_v26, %v8359_v5 }
0x1c4a   :  { %v8363_v29 = vpop.permute.xlu1 %8362 }
0x1c4b   :  { %v8365_v63 = vunpack.i.h.bf16 %v8363_v29  ;;  %v8364_v19 = vunpack.i.l.bf16 %v8363_v29 }
0x1c4d   :  { %v3473_v32 = vsel %vm1201_vm12, %v3472_v50, %v8365_v63  ;;  %v3028_v10 = vsel %vm1201_vm12, %v3026_v61, %v8364_v19 }
0x1c4e   :  { %v3479_v9 = vpack.c.bf16 %v3473_v32, %v3028_v10 }
0x1c50   :  { %7728 = vmatmul.mubr.msk.bf16.vlgmr.msra.gmra.mrb[36].mxu0 %vm307_vm4, %v3479_v9 }
0x1c51   :  { %7747 = vmatprep.mubr.msk.bf16.mxu0 %vm8706_vm15, %v8705_v60  ;;  %7740 = vmatpush3.bf16.msra.mxu0 %v8404_v0  ;;  %v6997_v0 = vld [vmem:[%s10326_s25 + $0x1] ss:$0 sm:$0xff] }
0x1c52   :  { %7741 = vmatprep.subr.bf16.mxu0 %v8705_v60 }
0x1c55   :  { %7742 = vmatpush3.bf16.msra.mxu0 %v8405_v31 }
0x1c56   :  { %7743 = vmatprep.subr.bf16.mxu0 %v8705_v60 }
0x1c59   :  { %7744 = vmatpush3.bf16.msra.mxu0 %v8406_v3 }
0x1c5a   :  { %7745 = vmatprep.subr.bf16.mxu0 %v8705_v60 }
0x1c5d   :  { %7746 = vmatpush3.bf16.msra.mxu0 %v8407_v4 }
0x1c5e   :  { %7767 = vmatprep.subr.bf16.mxu0 %v8705_v60 }
0x1d23   :  { %v3535_v35 = vpop.f32.mrb[36].mxu0 }
0x1d24   :  { %v3536_v41 = vadd.f32 %v6979_v34, %v3535_v35  ;;  %v7729_v2 = vpop.f32.mrb[37].mxu0 }
0x1d25   :  { %v3538_v36 = vpop.f32.mrb[38].mxu0 }
0x1d26   :  { %v9714_v37 = vadd.f32 %v3536_v41, %v9493_v14  ;;  %v3539_v40 = vadd.f32 %v6979_v34, %v3538_v36  ;;  %v7730_v47 = vpop.f32.mrb[39].mxu0 }
0x1d28   :  { %v9717_v46 = vadd.f32 %v3539_v40, %v9493_v14  ;;  %v3546_v45 = vsel %vm307_vm4, %v9714_v37, 0.0 }
0x1d29   :  { %3547 = vadd.xlane.f32.xlu0 %v3546_v45 }
0x1d2a   :  { %v3549_v55 = vsel %vm307_vm4, %v9717_v46, 0.0 }
0x1d2b   :  { %3550 = vadd.xlane.f32.xlu1 %v3549_v55 }
0x1db6   :  { %v3548_v58 = vpop.xlane.xlu0 %3547 }
0x1db7   :  { %v3552_v1 = vmul.f32 0.03125, %v3548_v58  ;;  %v6989_v58 = vld [vmem:[%s10337_s15] ss:$0 sm:$0xff] }
0x1db8   :  { %v3551_v7 = vpop.xlane.xlu1 %3550 }
0x1db9   :  { %v3553_v12 = vmul.f32 0.03125, %v3551_v7  ;;  %v3554_v16 = vsub.f32 %v9714_v37, %v3552_v1 }
0x1dbb   :  { %v3556_v17 = vmul.f32 %v3554_v16, %v3554_v16  ;;  %v3555_v14 = vsub.f32 %v9717_v46, %v3553_v12 }
0x1dbd   :  { %v3558_v33 = vsel %vm307_vm4, %v3556_v17, 0.0  ;;  %v3557_v18 = vmul.f32 %v3555_v14, %v3555_v14 }
0x1dbe   :  { %3559 = vadd.xlane.f32.xlu0 %v3558_v33 }
0x1dbf   :  { %v3561_v20 = vsel %vm307_vm4, %v3557_v18, 0.0 }
0x1dc2   :  { %3562 = vadd.xlane.f32.xlu0 %v3561_v20 }
0x1e4b   :  { %v3560_v8 = vpop.xlane.xlu0 %3559 }
0x1e4c   :  { %v3564_v27 = vmul.f32 0.03125, %v3560_v8 }
0x1e4e   :  { %v3566_v42 = vadd.f32 1e-12, %v3564_v27 }
0x1e4f   :  { %v3563_v48 = vpop.xlane.xlu0 %3562 }
0x1e50   :  { %8468 = vrsqrt.f32 %v3566_v42  ;;  %v3565_v28 = vmul.f32 0.03125, %v3563_v48 }
0x1e52   :  { %v3567_v38 = vadd.f32 1e-12, %v3565_v28 }
0x1e54   :  { %8470 = vrsqrt.f32 %v3567_v38 }
0x1e5a   :  { %v8469_v49 = vpop.eup %8468 }
0x1e5b   :  { %v3570_v51 = vmul.f32 %v8469_v49, %v3554_v16 }
0x1e5d   :  { %v3578_v56 = vmul.f32 %v6983_v52, %v3570_v51  ;;  %v8408_v51 = vld [vmem:[%s10325_s26 + $0x10] sm:$0xff]  }
0x1e5e   :  { %v8471_v39 = vpop.eup %8470 }
0x1e5f   :  { %v3571_v54 = vmul.f32 %v8471_v39, %v3555_v14  ;;  %v3586_v13 = vadd.f32 %v6984_v57, %v3578_v56  ;;  %v8410_v39 = vld [vmem:[%s10324_s23 + $0x10] sm:$0xff]  }
0x1e61   :  { %v3579_v59 = vmul.f32 %v6983_v52, %v3571_v54  ;;  %v8409_v52 = vld [vmem:[%s10325_s26 + $0x18] sm:$0xff]  }
0x1e63   :  { %v3587_v53 = vadd.f32 %v6984_v57, %v3579_v59 }
0x1e65   :  { %v3593_v11 = vpack.c.bf16 %v3587_v53, %v3586_v13 }
0x1e67   :  { %7736 = vmatmul.mubr.msk.bf16.vlgmr.msra.gmra.mrb[36].mxu1 %vm307_vm4, %v3593_v11 }
0x1e68   :  { %7755 = vmatprep.mubr.msk.bf16.mxu1 %vm8706_vm15, %v8705_v60  ;;  %7752 = vmatpush3.bf16.msra.mxu1 %v8408_v51 }
0x1e69   :  { %7753 = vmatprep.subr.bf16.mxu1 %v8705_v60 }
0x1e6c   :  { %7754 = vmatpush3.bf16.msra.mxu1 %v8409_v52 }
0x1e6d   :  { %7759 = vmatprep.subr.bf16.mxu1 %v8410_v39 }
0x1f3a   :  { %v3649_v6 = vpop.f32.mrb[36].mxu1 }
0x1f3b   :  { %v3650_v23 = vadd.f32 %v6985_v21, %v3649_v6  ;;  %v7737_v24 = vpop.f32.mrb[37].mxu1  ;;  %v6998_v6 = vld [vmem:[%s10327_s29 + $0x1] ss:$0 sm:$0xff] }
0x1f3c   :  { %v3652_v25 = vpop.f32.mrb[38].mxu1 }
0x1f3d   :  { %v3656_v43 = vmul.f32 %v3650_v23, %v3650_v23  ;;  %v3653_v5 = vadd.f32 %v6985_v21, %v3652_v25  ;;  %v7738_v29 = vpop.f32.mrb[39].mxu1 }
0x1f3e   :  { %v7004_v29 = vld [vmem:[%s10329_s8 + $0x1] ss:$0 sm:$0xff] }
0x1f3f   :  { %v3658_v30 = vmul.f32 %v3656_v43, %v3650_v23  ;;  %v3657_v26 = vmul.f32 %v3653_v5, %v3653_v5 }
0x1f41   :  { %v3660_v63 = vmul.f32 0.044715, %v3658_v30  ;;  %v3659_v19 = vmul.f32 %v3657_v26, %v3653_v5 }
0x1f43   :  { %v3662_v50 = vadd.f32 %v3660_v63, %v3650_v23  ;;  %v3661_v61 = vmul.f32 0.044715, %v3659_v19 }
0x1f45   :  { %v3664_v32 = vmul.f32 0.7978846, %v3662_v50  ;;  %v3663_v10 = vadd.f32 %v3661_v61, %v3653_v5 }
0x1f47   :  { %8472 = vtanh.f32 %v3664_v32  ;;  %v3665_v9 = vmul.f32 0.7978846, %v3663_v10 }
0x1f49   :  { %8474 = vtanh.f32 %v3665_v9  ;;  %v7013_v9 = vld [vmem:[%s10328_s3 + $0x1] ss:$0 sm:$0xff] }
0x1f51   :  { %v8473_v34 = vpop.eup %8472 }
0x1f52   :  { %v3668_v35 = vadd.f32 1.0, %v8473_v34 }
0x1f53   :  { %v8475_v41 = vpop.eup %8474 }
0x1f54   :  { %v3670_v2 = vmul.f32 0.5, %v3668_v35  ;;  %v3669_v36 = vadd.f32 1.0, %v8475_v41 }
0x1f56   :  { %v3671_v40 = vmul.f32 0.5, %v3669_v36  ;;  %v3672_v47 = vmul.f32 %v3670_v2, %v3650_v23 }
0x1f58   :  { %v3673_v45 = vmul.f32 %v3671_v40, %v3653_v5  ;;  %v8411_v5 = vld [vmem:[%s10324_s23 + $0x18] sm:$0xff]  }
0x1f5a   :  { %v3683_v55 = vpack.c.bf16 %v3673_v45, %v3672_v47 }
0x1f5c   :  { %7748 = vmatmul.mubr.msk.bf16.vlgmr.msra.gmra.mrb[40].mxu0 %vm2307_vm13, %v3683_v55 }
0x1f5d   :  { %7769 = vmatprep.mubr.msk.bf16.mxu0 %vm8706_vm15, %v8705_v60 }
0x202f   :  { %v3752_v1 = vpop.f32.mrb[40].mxu0 }
0x2030   :  { %v3753_v7 = vadd.f32 %v6989_v58, %v3752_v1  ;;  %v7749_v12 = vpop.f32.mrb[41].mxu0 }
0x2031   :  { %v3755_v16 = vpop.f32.mrb[42].mxu0 }
0x2032   :  { %v9750_v17 = vadd.f32 %v3753_v7, %v9714_v37  ;;  %v3756_v14 = vadd.f32 %v6989_v58, %v3755_v16  ;;  %v7750_v33 = vpop.f32.mrb[43].mxu0 }
0x2034   :  { %v9753_v18 = vadd.f32 %v3756_v14, %v9717_v46  ;;  %v3765_v20 = vsel %vm307_vm4, %v9750_v17, 0.0 }
0x2035   :  { %3766 = vadd.xlane.f32.xlu1 %v3765_v20 }
0x2036   :  { %v3768_v15 = vsel %vm307_vm4, %v9753_v18, 0.0 }
0x2037   :  { %3769 = vadd.xlane.f32.xlu0 %v3768_v15 }
0x20c2   :  { %v3767_v22 = vpop.xlane.xlu1 %3766 }
0x20c3   :  { %v3771_v8 = vmul.f32 0.03125, %v3767_v22 }
0x20c4   :  { %v3770_v37 = vpop.xlane.xlu0 %3769 }
0x20c5   :  { %v3772_v27 = vmul.f32 0.03125, %v3770_v37  ;;  %v3773_v42 = vsub.f32 %v9750_v17, %v3771_v8 }
0x20c7   :  { %v3775_v48 = vmul.f32 %v3773_v42, %v3773_v42  ;;  %v3774_v46 = vsub.f32 %v9753_v18, %v3772_v27 }
0x20c9   :  { %v3777_v28 = vsel %vm307_vm4, %v3775_v48, 0.0  ;;  %v3776_v38 = vmul.f32 %v3774_v46, %v3774_v46 }
0x20ca   :  { %3778 = vadd.xlane.f32.xlu1 %v3777_v28 }
0x20cb   :  { %v3780_v49 = vsel %vm307_vm4, %v3776_v38, 0.0 }
0x20cc   :  { %3781 = vadd.xlane.f32.xlu0 %v3780_v49 }
0x2157   :  { %v3779_v54 = vpop.xlane.xlu1 %3778 }
0x2158   :  { %v3783_v56 = vmul.f32 0.03125, %v3779_v54 }
0x2159   :  { %v3782_v57 = vpop.xlane.xlu0 %3781 }
0x215a   :  { %v3785_v59 = vadd.f32 1e-12, %v3783_v56  ;;  %v3784_v13 = vmul.f32 0.03125, %v3782_v57 }
0x215c   :  { %8476 = vrsqrt.f32 %v3785_v59  ;;  %v3786_v53 = vadd.f32 1e-12, %v3784_v13 }
0x215e   :  { %8478 = vrsqrt.f32 %v3786_v53 }
0x2166   :  { %v8477_v11 = vpop.eup %8476 }
0x2167   :  { %v3789_v31 = vmul.f32 %v8477_v11, %v3773_v42 }
0x2168   :  { %v8479_v3 = vpop.eup %8478 }
0x2169   :  { %v3790_v4 = vmul.f32 %v8479_v3, %v3774_v46  ;;  %v3797_v21 = vmul.f32 %v6997_v0, %v3789_v31 }
0x216b   :  { %v3798_v23 = vmul.f32 %v6997_v0, %v3790_v4  ;;  %v3805_v24 = vadd.f32 %v6998_v6, %v3797_v21 }
0x216d   :  { %v3806_v25 = vadd.f32 %v6998_v6, %v3798_v23 }
0x216f   :  { %v3814_v43 = vpack.c.bf16 %v3806_v25, %v3805_v24 }
0x2171   :  { %7756 = vmatmul.mubr.msk.bf16.vlgmr.msra.gmra.mrb[40].mxu1 %vm307_vm4, %v3814_v43 }
0x2172   :  { %7760 = vmatpush3.bf16.msra.mxu1 %v8410_v39  ;;  %7763 = vmatprep.mubr.msk.bf16.mxu1 %vm307_vm4, %v9505_v62 }
0x2173   :  { %7761 = vmatprep.subr.bf16.mxu1 %v8411_v5 }
0x2176   :  { %7762 = vmatpush3.bf16.msra.mxu1 %v8411_v5 }
0x2177   :  { %7773 = vmatprep.subr.bf16.mxu1 %v8705_v60 }
0x2179   :  { %7764 = vmatmul.mubr.msk.bf16.vlgmr.msra.gmra.mrb[44].mxu1 %vm307_vm4, %v9510_v44 }
0x217a   :  { %7775 = vmatprep.mubr.msk.bf16.mxu1 %vm8706_vm15, %v8705_v60 }
0x2244   :  { %v3870_v30 = vpop.f32.mrb[40].mxu1 }
0x2245   :  { %v7757_v26 = vpop.f32.mrb[41].mxu1  ;;  %v3871_v19 = vadd.f32 %v7004_v29, %v3870_v30 }
0x2246   :  { %v3873_v63 = vpop.f32.mrb[42].mxu1 }
0x2247   :  { %v3874_v50 = vadd.f32 %v7004_v29, %v3873_v63  ;;  %v7758_v61 = vpop.f32.mrb[43].mxu1 }
0x2249   :  { %v3877_v32 = vpack.c.bf16 %v3874_v50, %v3871_v19 }
0x224b   :  { %4060 = vrot.lane.b32.xlu0 %v3877_v32, %s8708_s19  ;;  %v4399_v1 = vrot.slane %v3877_v32, 4 }
0x224c   :  { %v7765_v10 = vpop.f32.mrb[44].mxu1 }
0x224d   :  { %v3937_v34 = vpop.f32.mrb[45].mxu1  ;;  %v3946_v41 = vadd.f32 %v7765_v10, %v7013_v9 }
0x224e   :  { %v7766_v35 = vpop.f32.mrb[46].mxu1  ;;  %v3938_v40 = vadd.f32 %v7013_v9, %v3937_v34 }
0x224f   :  { %v3949_v2 = vadd.f32 %v7766_v35, %v7013_v9  ;;  %v3940_v36 = vpop.f32.mrb[47].mxu1 }
0x2250   :  { %v3941_v47 = vadd.f32 %v7013_v9, %v3940_v36 }
0x2251   :  { %v9781_v45 = vpack.c.bf16 %v3949_v2, %v3946_v41 }
0x2252   :  { %v9783_v55 = vpack.c.bf16 %v3941_v47, %v3938_v40 }
0x2253   :  { %v4404_v37 = vsel %vm501_vm7, %v9781_v45, 0 }
0x2254   :  { %4278 = vrot.lane.b32.xlu0 %v9783_v55, %s8709_s24  ;;  %4062 = vrot.lane.b32.xlu1 %v9783_v55, %s8708_s19  ;;  %v3958_v58 = vsel %vm501_vm7, %v9783_v55, 0 }
0x2255   :  { %7768 = vmatpush3.bf16.xpose.msra.mxu0 %v3958_v58 }
0x2256   :  { %7779 = vmatprep.subr.bf16.mxu0 %v8705_v60 }
0x2258   :  { %4507 = vrot.lane.b32.xlu0 %v9781_v45, %s8708_s19  ;;  %4170 = vrot.lane.b32.xlu1 %v9783_v55, %s8707_s14 }
0x225c   :  { %4615 = vrot.lane.b32.xlu0 %v9781_v45, %s8707_s14  ;;  %4168 = vrot.lane.b32.xlu1 %v3877_v32, %s8707_s14 }
0x225d   :  { %7770 = vmatmul.mubr.msk.bf16.vlgmr.msra.gmra.mrb[44].mxu0 %vm501_vm7, %v3877_v32 }
0x225e   :  { %7781 = vmatprep.mubr.msk.bf16.mxu0 %vm8706_vm15, %v8705_v60 }
0x2260   :  { %4723 = vrot.lane.b32.xlu0 %v9781_v45, %s8709_s24  ;;  %4276 = vrot.lane.b32.xlu1 %v3877_v32, %s8709_s24 }
0x2264   :  { %4505 = vrot.lane.b32.xlu1 %v4399_v1, %s8708_s19 }
0x2268   :  { %4613 = vrot.lane.b32.xlu1 %v4399_v1, %s8707_s14 }
0x226c   :  { %4721 = vrot.lane.b32.xlu1 %v4399_v1, %s8709_s24 }
0x22bd   :  { %v4061_v14 = vpop.permute.xlu0 %4060 }
0x22c6   :  { %v4063_v7 = vpop.permute.xlu1 %4062  ;;  %v4279_v20 = vpop.permute.xlu0 %4278 }
0x22c7   :  { %v4068_v12 = vsel %vm501_vm7, %v4063_v7, 0  ;;  %v4284_v22 = vsel %vm501_vm7, %v4279_v20, 0 }
0x22c8   :  { %7780 = vmatpush3.bf16.xpose.msra.mxu0 %v4068_v12 }
0x22c9   :  { %7791 = vmatprep.subr.bf16.mxu0 %v8705_v60 }
0x22ca   :  { %v4171_v16 = vpop.permute.xlu1 %4170  ;;  %v4508_v27 = vpop.permute.xlu0 %4507 }
0x22cb   :  { %v4176_v33 = vsel %vm501_vm7, %v4171_v16, 0  ;;  %v4513_v42 = vsel %vm501_vm7, %v4508_v27, 0 }
0x22ce   :  { %v4169_v15 = vpop.permute.xlu1 %4168  ;;  %v4616_v48 = vpop.permute.xlu0 %4615 }
0x22cf   :  { %7782 = vmatmul.mubr.msk.bf16.vlgmr.msra.gmra.mrb[48].mxu0 %vm501_vm7, %v4061_v14  ;;  %v4621_v28 = vsel %vm501_vm7, %v4616_v48, 0 }
0x22d0   :  { %7792 = vmatpush3.bf16.xpose.msra.mxu0 %v4176_v33  ;;  %7793 = vmatprep.mubr.msk.bf16.mxu0 %vm8706_vm15, %v8705_v60 }
0x22d1   :  { %7803 = vmatprep.subr.bf16.mxu0 %v8705_v60 }
0x22d2   :  { %v4277_v8 = vpop.permute.xlu1 %4276  ;;  %v4724_v38 = vpop.permute.xlu0 %4723 }
0x22d3   :  { %v4729_v51 = vsel %vm501_vm7, %v4724_v38, 0 }
0x22d6   :  { %v4506_v46 = vpop.permute.xlu1 %4505 }
0x22d7   :  { %7794 = vmatmul.mubr.msk.bf16.vlgmr.msra.gmra.mrb[52].mxu0 %vm501_vm7, %v4169_v15 }
0x22d8   :  { %7804 = vmatpush3.bf16.xpose.msra.mxu0 %v4284_v22  ;;  %7805 = vmatprep.mubr.msk.bf16.mxu0 %vm8706_vm15, %v8705_v60 }
0x22d9   :  { %7815 = vmatprep.subr.bf16.mxu0 %v8705_v60 }
0x22da   :  { %v4614_v49 = vpop.permute.xlu1 %4613 }
0x22de   :  { %v4722_v52 = vpop.permute.xlu1 %4721 }
0x22df   :  { %7806 = vmatmul.mubr.msk.bf16.vlgmr.msra.gmra.mrb[56].mxu0 %vm501_vm7, %v4277_v8 }
0x22e0   :  { %7816 = vmatpush3.bf16.xpose.msra.mxu0 %v4404_v37  ;;  %7817 = vmatprep.mubr.msk.bf16.mxu0 %vm8706_vm15, %v8705_v60 }
0x22e1   :  { %7827 = vmatprep.subr.bf16.mxu0 %v8705_v60 }
0x22e7   :  { %7818 = vmatmul.mubr.msk.bf16.vlgmr.msra.gmra.mrb[60].mxu0 %vm501_vm7, %v4399_v1 }
0x22e8   :  { %7828 = vmatpush3.bf16.xpose.msra.mxu0 %v4513_v42  ;;  %7829 = vmatprep.mubr.msk.bf16.mxu0 %vm8706_vm15, %v8705_v60 }
0x22e9   :  { %7839 = vmatprep.subr.bf16.mxu0 %v8705_v60 }
0x22ef   :  { %7830 = vmatmul.mubr.msk.bf16.vlgmr.msra.gmra.mrb[64].mxu0 %vm501_vm7, %v4506_v46 }
0x22f0   :  { %7840 = vmatpush3.bf16.xpose.msra.mxu0 %v4621_v28  ;;  %7841 = vmatprep.mubr.msk.bf16.mxu0 %vm8706_vm15, %v8705_v60 }
0x22f1   :  { %7851 = vmatprep.subr.bf16.mxu0 %v8705_v60 }
0x22f7   :  { %7842 = vmatmul.mubr.msk.bf16.vlgmr.msra.gmra.mrb[68].mxu0 %vm501_vm7, %v4614_v49 }
0x22f8   :  { %7852 = vmatpush3.bf16.xpose.msra.mxu0 %v4729_v51  ;;  %7853 = vmatprep.mubr.msk.bf16.mxu0 %vm8706_vm15, %v8705_v60 }
0x22f9   :  { %7863 = vmatprep.subr.bf16.mxu0 %v8705_v60 }
0x22ff   :  { %7854 = vmatmul.mubr.msk.bf16.vlgmr.msra.gmra.mrb[72].mxu0 %vm501_vm7, %v4722_v52 }
0x2300   :  { %7867 = vmatprep.mubr.msk.bf16.mxu0 %vm8706_vm15, %v8705_v60 }
0x2330   :  { %v3994_v39 = vpop.f32.mrb[44].mxu0 }
0x2331   :  { %v7771_v54 = vpop.f32.mrb[45].mxu0  ;;  %v4000_v56 = vsel %vm1197_vm11, %v3994_v39, -inf }
0x2332   :  { %4001 = vmax.xlane.f32.xlu0 %v4000_v56  ;;  %v3997_v57 = vpop.f32.mrb[46].mxu0 }
0x2333   :  { %v7772_v59 = vpop.f32.mrb[47].mxu0 }
0x23a2   :  { %v4104_v13 = vpop.f32.mrb[48].mxu0 }
0x23a3   :  { %v7783_v53 = vpop.f32.mrb[49].mxu0  ;;  %v4110_v11 = vsel %vm1197_vm11, %v4104_v13, -inf }
0x23a4   :  { %4111 = vmax.xlane.f32.xlu1 %v4110_v11  ;;  %v4107_v0 = vpop.f32.mrb[50].mxu0 }
0x23a5   :  { %v7784_v31 = vpop.f32.mrb[51].mxu0 }
0x23aa   :  { %v4212_v3 = vpop.f32.mrb[52].mxu0 }
0x23ab   :  { %v7795_v4 = vpop.f32.mrb[53].mxu0  ;;  %v4218_v21 = vsel %vm1197_vm11, %v4212_v3, -inf }
0x23ac   :  { %4219 = vmax.xlane.f32.xlu0 %v4218_v21  ;;  %v4215_v6 = vpop.f32.mrb[54].mxu0 }
0x23ad   :  { %v7796_v23 = vpop.f32.mrb[55].mxu0 }
0x23b2   :  { %v4320_v24 = vpop.f32.mrb[56].mxu0 }
0x23b3   :  { %v7807_v25 = vpop.f32.mrb[57].mxu0  ;;  %v4326_v43 = vsel %vm1197_vm11, %v4320_v24, -inf }
0x23b4   :  { %4327 = vmax.xlane.f32.xlu0 %v4326_v43  ;;  %v4323_v5 = vpop.f32.mrb[58].mxu0 }
0x23b5   :  { %v7808_v29 = vpop.f32.mrb[59].mxu0 }
0x23ba   :  { %v4440_v30 = vpop.f32.mrb[60].mxu0 }
0x23bb   :  { %v7819_v26 = vpop.f32.mrb[61].mxu0  ;;  %v4446_v63 = vsel %vm1197_vm11, %v4440_v30, -inf }
0x23bc   :  { %4447 = vmax.xlane.f32.xlu1 %v4446_v63  ;;  %v4443_v19 = vpop.f32.mrb[62].mxu0 }
0x23bd   :  { %v7820_v50 = vpop.f32.mrb[63].mxu0 }
0x23bf   :  { %v4002_v12 = vpop.xlane.xlu0 %4001 }
0x23c0   :  { %v4003_v16 = vsub.f32 %v3994_v39, %v4002_v12 }
0x23c2   :  { %v4549_v61 = vpop.f32.mrb[64].mxu0  ;;  %v4004_v14 = vmul.f32 1.442695, %v4003_v16 }
0x23c3   :  { %v7831_v32 = vpop.f32.mrb[65].mxu0  ;;  %v4555_v10 = vsel %vm1197_vm11, %v4549_v61, -inf }
0x23c4   :  { %4556 = vmax.xlane.f32.xlu0 %v4555_v10  ;;  %v4552_v9 = vpop.f32.mrb[66].mxu0  ;;  %8480 = vpow2.f32 %v4004_v14 }
0x23c5   :  { %v7832_v34 = vpop.f32.mrb[67].mxu0 }
0x23ca   :  { %v4657_v35 = vpop.f32.mrb[68].mxu0 }
0x23cb   :  { %v7843_v41 = vpop.f32.mrb[69].mxu0  ;;  %v4663_v2 = vsel %vm1197_vm11, %v4657_v35, -inf }
0x23cc   :  { %4664 = vmax.xlane.f32.xlu1 %v4663_v2  ;;  %v4660_v36 = vpop.f32.mrb[70].mxu0 }
0x23cd   :  { %v7844_v40 = vpop.f32.mrb[71].mxu0 }
0x23ce   :  { %v9859_v20 = vpop.eup %8480 }
0x23cf   :  { %v4006_v15 = vsel %vm1197_vm11, %v9859_v20, 0.0 }
0x23d2   :  { %v9851_v47 = vpop.f32.mrb[72].mxu0 }
0x23d3   :  { %v7855_v58 = vpop.f32.mrb[73].mxu0  ;;  %v4771_v33 = vsel %vm1197_vm11, %v9851_v47, -inf }
0x23d4   :  { %v4768_v1 = vpop.f32.mrb[74].mxu0 }
0x23d5   :  { %v7856_v7 = vpop.f32.mrb[75].mxu0 }
0x23da   :  { %4122 = vrot.lane.b32.xlu0 %v9783_v55, %s8710_s30 }
0x23dd   :  { %4013 = vrot.lane.b32.xlu1 %v9783_v55, %s8711_s6 }
0x23f9   :  { %4772 = vmax.xlane.f32.xlu0 %v4771_v33 }
0x2401   :  { %4007 = vadd.xlane.f32.xlu1 %v4006_v15 }
0x2431   :  { %v4112_v22 = vpop.xlane.xlu1 %4111 }
0x2432   :  { %v4113_v8 = vsub.f32 %v4104_v13, %v4112_v22 }
0x2434   :  { %v4114_v37 = vmul.f32 1.442695, %v4113_v8 }
0x2436   :  { %8482 = vpow2.f32 %v4114_v37 }
0x2439   :  { %v4220_v27 = vpop.xlane.xlu0 %4219 }
0x243a   :  { %v4221_v42 = vsub.f32 %v4212_v3, %v4220_v27 }
0x243c   :  { %v4222_v48 = vmul.f32 1.442695, %v4221_v42 }
0x243e   :  { %8484 = vpow2.f32 %v4222_v48 }
0x2440   :  { %v9863_v46 = vpop.eup %8482 }
0x2441   :  { %v4116_v28 = vsel %vm1197_vm11, %v9863_v46, 0.0  ;;  %v4328_v54 = vpop.xlane.xlu0 %4327 }
0x2442   :  { %4117 = vadd.xlane.f32.xlu0 %v4116_v28  ;;  %v4329_v56 = vsub.f32 %v4320_v24, %v4328_v54 }
0x2444   :  { %v4330_v57 = vmul.f32 1.442695, %v4329_v56 }
0x2446   :  { %8486 = vpow2.f32 %v4330_v57 }
0x2448   :  { %v9867_v38 = vpop.eup %8484 }
0x2449   :  { %v4224_v49 = vsel %vm1197_vm11, %v9867_v38, 0.0  ;;  %v4448_v51 = vpop.xlane.xlu1 %4447 }
0x244a   :  { %4225 = vadd.xlane.f32.xlu1 %v4224_v49  ;;  %v4449_v59 = vsub.f32 %v4440_v30, %v4448_v51 }
0x244c   :  { %v4450_v11 = vmul.f32 1.442695, %v4449_v59 }
0x244e   :  { %8488 = vpow2.f32 %v4450_v11 }
0x2450   :  { %v8487_v4 = vpop.eup %8486 }
0x2451   :  { %v4557_v13 = vpop.xlane.xlu0 %4556 }
0x2452   :  { %v4558_v53 = vsub.f32 %v4549_v61, %v4557_v13 }
0x2454   :  { %v4559_v31 = vmul.f32 1.442695, %v4558_v53 }
0x2455   :  { %v4123_v5 = vpop.permute.xlu0 %4122 }
0x2456   :  { %8490 = vpow2.f32 %v4559_v31 }
0x2458   :  { %4230 = vrot.lane.b32.xlu0 %v9783_v55, %s8712_s0  ;;  %v9877_v21 = vpop.eup %8488 }
0x2459   :  { %v4665_v52 = vpop.xlane.xlu1 %4664  ;;  %v4452_v23 = vsel %vm1197_vm11, %v9877_v21, 0.0 }
0x245a   :  { %v4666_v0 = vsub.f32 %v4657_v35, %v4665_v52 }
0x245b   :  { %4338 = vrot.lane.b32.xlu1 %v9783_v55, %s8713_s5  ;;  %v4332_v55 = vsel %vm1197_vm11, %v8487_v4, 0.0 }
0x245c   :  { %v4667_v3 = vmul.f32 1.442695, %v4666_v0 }
0x245d   :  { %v4014_v39 = vpop.permute.xlu1 %4013 }
0x245e   :  { %7774 = vmatpush3.bf16.msra.mxu1 %v4014_v39  ;;  %8492 = vpow2.f32 %v4667_v3 }
0x245f   :  { %7785 = vmatprep.subr.bf16.mxu1 %v8705_v60 }
0x2460   :  { %v9879_v6 = vpop.eup %8490 }
0x2461   :  { %v4561_v25 = vsel %vm1197_vm11, %v9879_v6, 0.0 }
0x2468   :  { %v9883_v24 = vpop.eup %8492 }
0x2469   :  { %v4669_v43 = vsel %vm1197_vm11, %v9883_v24, 0.0 }
0x2477   :  { %4333 = vadd.xlane.f32.xlu0 %v4332_v55 }
0x247b   :  { %4453 = vadd.xlane.f32.xlu0 %v4452_v23 }
0x247f   :  { %4562 = vadd.xlane.f32.xlu1 %v4561_v25  ;;  %4670 = vadd.xlane.f32.xlu0 %v4669_v43 }
0x2486   :  { %v4773_v29 = vpop.xlane.xlu0 %4772 }
0x2487   :  { %v4774_v30 = vsub.f32 %v9851_v47, %v4773_v29 }
0x2489   :  { %v4775_v26 = vmul.f32 1.442695, %v4774_v30 }
0x248b   :  { %8494 = vpow2.f32 %v4775_v26 }
0x248e   :  { %v4008_v63 = vpop.xlane.xlu1 %4007 }
0x248f   :  { %8496 = vrcp.f32 %v4008_v63 }
0x2490   :  { %4567 = vrot.lane.b32.xlu1 %v9781_v45, %s8710_s30 }
0x2494   :  { %4675 = vrot.lane.b32.xlu1 %v9781_v45, %s8712_s0 }
0x2495   :  { %v9894_v19 = vpop.eup %8494 }
0x2496   :  { %v4777_v50 = vsel %vm1197_vm11, %v9894_v19, 0.0 }
0x2497   :  { %4778 = vadd.xlane.f32.xlu0 %v4777_v50  ;;  %v8412_v50 = vld [vmem:[%s10330_s9 + $0x10] sm:$0xff]  }
0x2498   :  { %4783 = vrot.lane.b32.xlu1 %v9781_v45, %s8713_s5  ;;  %7864 = vmatpush3.bf16.msra.mxu0 %v8412_v50 }
0x2499   :  { %v8497_v61 = vpop.eup %8496  ;;  %7865 = vmatprep.subr.bf16.mxu0 %v8705_v60 }
0x249a   :  { %v4010_v32 = vmul.f32 %v8497_v61, %v9859_v20 }
0x249c   :  { %v4011_v10 = vpack.c.bf16 %v4010_v32, %v4010_v32 }
0x249e   :  { %7776 = vmatmul.mubr.msk.bf16.vlgmr.msra.gmra.mrb[48].mxu1 %vm1197_vm11, %v4011_v10 }
0x249f   :  { %7786 = vmatpush3.bf16.msra.mxu1 %v4123_v5  ;;  %7787 = vmatprep.mubr.msk.bf16.mxu1 %vm8706_vm15, %v8705_v60 }
0x24a0   :  { %7797 = vmatprep.subr.bf16.mxu1 %v8705_v60 }
0x24ad   :  { %4459 = vrot.lane.b32.xlu0 %v9781_v45, %s8711_s6 }
0x24cf   :  { %v4118_v9 = vpop.xlane.xlu0 %4117 }
0x24d0   :  { %8498 = vrcp.f32 %v4118_v9 }
0x24d3   :  { %v4231_v36 = vpop.permute.xlu0 %4230 }
0x24d7   :  { %v4226_v34 = vpop.xlane.xlu1 %4225 }
0x24d8   :  { %8500 = vrcp.f32 %v4226_v34  ;;  %v8413_v34 = vld [vmem:[%s10330_s9 + $0x18] sm:$0xff]  }
0x24d9   :  { %7866 = vmatpush3.bf16.msra.mxu0 %v8413_v34 }
0x24da   :  { %v8499_v35 = vpop.eup %8498  ;;  %7879 = vmatprep.subr.bf16.mxu0 %v8705_v60 }
0x24db   :  { %v4120_v41 = vmul.f32 %v8499_v35, %v9863_v46  ;;  %v4339_v58 = vpop.permute.xlu1 %4338 }
0x24dd   :  { %v4121_v2 = vpack.c.bf16 %v4120_v41, %v4120_v41 }
0x24df   :  { %7788 = vmatmul.mubr.msk.bf16.vlgmr.msra.gmra.mrb[52].mxu1 %vm1197_vm11, %v4121_v2 }
0x24e0   :  { %7798 = vmatpush3.bf16.msra.mxu1 %v4231_v36  ;;  %7799 = vmatprep.mubr.msk.bf16.mxu1 %vm8706_vm15, %v8705_v60 }
0x24e1   :  { %7809 = vmatprep.subr.bf16.mxu1 %v8705_v60 }
0x24e2   :  { %v8501_v40 = vpop.eup %8500 }
0x24e3   :  { %v4228_v45 = vmul.f32 %v8501_v40, %v9867_v38 }
0x24e5   :  { %v4229_v47 = vpack.c.bf16 %v4228_v45, %v4228_v45 }
0x24e7   :  { %7800 = vmatmul.mubr.msk.bf16.vlgmr.msra.gmra.mrb[56].mxu1 %vm1197_vm11, %v4229_v47 }
0x24e8   :  { %7810 = vmatpush3.bf16.msra.mxu1 %v4339_v58  ;;  %7811 = vmatprep.mubr.msk.bf16.mxu1 %vm8706_vm15, %v8705_v60 }
0x24e9   :  { %7821 = vmatprep.subr.bf16.mxu1 %v8705_v60 }
0x2504   :  { %v4334_v1 = vpop.xlane.xlu0 %4333 }
0x2505   :  { %8502 = vrcp.f32 %v4334_v1 }
0x2508   :  { %v4454_v14 = vpop.xlane.xlu0 %4453 }
0x2509   :  { %8504 = vrcp.f32 %v4454_v14 }
0x250c   :  { %v4563_v33 = vpop.xlane.xlu1 %4562  ;;  %v4671_v20 = vpop.xlane.xlu0 %4670 }
0x250d   :  { %8506 = vrcp.f32 %v4563_v33 }
0x250e   :  { %8508 = vrcp.f32 %v4671_v20 }
0x250f   :  { %v8503_v7 = vpop.eup %8502 }
0x2510   :  { %v4336_v12 = vmul.f32 %v8503_v7, %v8487_v4  ;;  %v4568_v48 = vpop.permute.xlu1 %4567 }
0x2512   :  { %v4337_v16 = vpack.c.bf16 %v4336_v12, %v4336_v12 }
0x2513   :  { %v8505_v15 = vpop.eup %8504 }
0x2514   :  { %7812 = vmatmul.mubr.msk.bf16.vlgmr.msra.gmra.mrb[60].mxu1 %vm1197_vm11, %v4337_v16  ;;  %v4456_v8 = vmul.f32 %v8505_v15, %v9877_v21  ;;  %v4676_v49 = vpop.permute.xlu1 %4675 }
0x2515   :  { %7823 = vmatprep.mubr.msk.bf16.mxu1 %vm8706_vm15, %v8705_v60 }
0x2516   :  { %v4457_v27 = vpack.c.bf16 %v4456_v8, %v4456_v8 }
0x2517   :  { %v8507_v42 = vpop.eup %8506 }
0x2518   :  { %v4565_v46 = vmul.f32 %v8507_v42, %v9879_v6  ;;  %v8509_v38 = vpop.eup %8508  ;;  %v4784_v54 = vpop.permute.xlu1 %4783 }
0x2519   :  { %v4673_v51 = vmul.f32 %v8509_v38, %v9883_v24 }
0x251a   :  { %v4566_v28 = vpack.c.bf16 %v4565_v46, %v4565_v46 }
0x251b   :  { %v4674_v52 = vpack.c.bf16 %v4673_v51, %v4673_v51  ;;  %v7039_v51 = vld [vmem:[%s10331_s17 + $0x1] ss:$0 sm:$0xff] }
0x2524   :  { %v4779_v22 = vpop.xlane.xlu0 %4778 }
0x2525   :  { %8510 = vrcp.f32 %v4779_v22 }
0x2528   :  { %v4460_v37 = vpop.permute.xlu0 %4459 }
0x2529   :  { %7822 = vmatpush3.bf16.msra.mxu1 %v4460_v37 }
0x252a   :  { %7833 = vmatprep.subr.bf16.mxu1 %v8705_v60 }
0x252c   :  { %7824 = vmatmul.mubr.msk.bf16.vlgmr.msra.gmra.mrb[64].mxu1 %vm1197_vm11, %v4457_v27 }
0x252d   :  { %7834 = vmatpush3.bf16.msra.mxu1 %v4568_v48  ;;  %7835 = vmatprep.mubr.msk.bf16.mxu1 %vm8706_vm15, %v8705_v60 }
0x252e   :  { %7845 = vmatprep.subr.bf16.mxu1 %v8705_v60 }
0x252f   :  { %v8511_v39 = vpop.eup %8510 }
0x2530   :  { %v4781_v56 = vmul.f32 %v8511_v39, %v9894_v19 }
0x2532   :  { %v4782_v57 = vpack.c.bf16 %v4781_v56, %v4781_v56 }
0x2534   :  { %7836 = vmatmul.mubr.msk.bf16.vlgmr.msra.gmra.mrb[68].mxu1 %vm1197_vm11, %v4566_v28 }
0x2535   :  { %7846 = vmatpush3.bf16.msra.mxu1 %v4676_v49  ;;  %7847 = vmatprep.mubr.msk.bf16.mxu1 %vm8706_vm15, %v8705_v60 }
0x2536   :  { %7857 = vmatprep.subr.bf16.mxu1 %v8705_v60 }
0x253c   :  { %7848 = vmatmul.mubr.msk.bf16.vlgmr.msra.gmra.mrb[72].mxu1 %vm1197_vm11, %v4674_v52 }
0x253d   :  { %7858 = vmatpush3.bf16.msra.mxu1 %v4784_v54  ;;  %7859 = vmatprep.mubr.msk.bf16.mxu1 %vm8706_vm15, %v8705_v60 }
0x253e   :  { %7871 = vmatprep.subr.bf16.mxu1 %v8705_v60 }
0x2544   :  { %7860 = vmatmul.mubr.msk.bf16.vlgmr.msra.gmra.mrb[76].mxu1 %vm1197_vm11, %v4782_v57 }
0x2545   :  { %7875 = vmatprep.mubr.msk.bf16.mxu1 %vm8706_vm15, %v8705_v60 }
0x2571   :  { %v4053_v59 = vpop.f32.mrb[48].mxu1 }
0x2572   :  { %v7777_v13 = vpop.f32.mrb[49].mxu1 }
0x2573   :  { %v4056_v53 = vpop.f32.mrb[50].mxu1 }
0x2574   :  { %v7778_v11 = vpop.f32.mrb[51].mxu1 }
0x25b2   :  { %v4162_v0 = vpop.f32.mrb[52].mxu1 }
0x25b3   :  { %v7789_v31 = vpop.f32.mrb[53].mxu1 }
0x25b4   :  { %v4165_v3 = vpop.f32.mrb[54].mxu1 }
0x25b5   :  { %v7790_v4 = vpop.f32.mrb[55].mxu1 }
0x25ba   :  { %v4270_v55 = vpop.f32.mrb[56].mxu1 }
0x25bb   :  { %v7801_v21 = vpop.f32.mrb[57].mxu1 }
0x25bc   :  { %v4273_v6 = vpop.f32.mrb[58].mxu1 }
0x25bd   :  { %v7802_v23 = vpop.f32.mrb[59].mxu1 }
0x25e7   :  { %v4378_v24 = vpop.f32.mrb[60].mxu1 }
0x25e8   :  { %v7813_v25 = vpop.f32.mrb[61].mxu1 }
0x25e9   :  { %v4381_v43 = vpop.f32.mrb[62].mxu1  ;;  %v8414_v25 = vld [vmem:[%s10332_s1 + $0x10] sm:$0xff]  }
0x25ea   :  { %v7814_v5 = vpop.f32.mrb[63].mxu1  ;;  %7872 = vmatpush3.bf16.msra.mxu1 %v8414_v25  ;;  %v8415_v43 = vld [vmem:[%s10332_s1 + $0x18] sm:$0xff]  }
0x25eb   :  { %7873 = vmatprep.subr.bf16.mxu1 %v8705_v60 }
0x25ee   :  { %7874 = vmatpush3.bf16.msra.mxu1 %v8415_v43 }
0x25ef   :  { %7891 = vmatprep.subr.bf16.mxu1 %v8705_v60 }
0x25ff   :  { %v4499_v29 = vpop.f32.mrb[64].mxu1 }
0x2600   :  { %v7825_v30 = vpop.f32.mrb[65].mxu1 }
0x2601   :  { %v4502_v26 = vpop.f32.mrb[66].mxu1 }
0x2602   :  { %v7826_v63 = vpop.f32.mrb[67].mxu1 }
0x2607   :  { %v4607_v19 = vpop.f32.mrb[68].mxu1 }
0x2608   :  { %v8366_v61 = vpack.i.bf16 %v4607_v19, %v4162_v0  ;;  %v7837_v32 = vpop.f32.mrb[69].mxu1 }
0x2609   :  { %v4610_v10 = vpop.f32.mrb[70].mxu1 }
0x260a   :  { %8367 = vrot.lane.b32.xlu1 %v8366_v61, %s8714_s21  ;;  %v7838_v9 = vpop.f32.mrb[71].mxu1  ;;  %v7045_v61 = vld [vmem:[%s10333_s2 + $0x1] ss:$0 sm:$0xff] }
0x260f   :  { %v4715_v35 = vpop.f32.mrb[72].mxu1 }
0x2610   :  { %v8371_v41 = vpack.i.bf16 %v4715_v35, %v4270_v55  ;;  %v7849_v2 = vpop.f32.mrb[73].mxu1  ;;  %v7046_v35 = vld [vmem:[%s10334_s7 + $0x1] ss:$0 sm:$0xff] }
0x2611   :  { %v4718_v36 = vpop.f32.mrb[74].mxu1 }
0x2612   :  { %8372 = vrot.lane.b32.xlu1 %v8371_v41, %s8715_s28  ;;  %v7850_v40 = vpop.f32.mrb[75].mxu1 }
0x2617   :  { %v4823_v45 = vpop.f32.mrb[76].mxu1 }
0x2618   :  { %v8376_v47 = vpack.i.bf16 %v4823_v45, %v4378_v24  ;;  %v7861_v58 = vpop.f32.mrb[77].mxu1  ;;  %v8416_v45 = vld [vmem:[%s10335_s10 + $0x20] sm:$0xff]  }
0x2619   :  { %v4826_v1 = vpop.f32.mrb[78].mxu1  ;;  %v8418_v58 = vld [vmem:[%s10335_s10 + $0x30] sm:$0xff]  }
0x261a   :  { %8377 = vrot.lane.b32.xlu0 %v8376_v47, %s8716_s13  ;;  %v7862_v7 = vpop.f32.mrb[79].mxu1  ;;  %v8417_v47 = vld [vmem:[%s10335_s10 + $0x28] sm:$0xff]   ;;  %v8419_v1 = vld [vmem:[%s10335_s10 + $0x38] sm:$0xff]  }
0x261b   :  { %v7052_v7 = vld [vmem:[%s10336_s11 + $0x1] ss:$0 sm:$0xff] }
0x267c   :  { %v8368_v12 = vpop.permute.xlu1 %8367 }
0x267d   :  { %v8370_v14 = vunpack.i.h.bf16 %v8368_v12  ;;  %v8369_v33 = vunpack.i.l.bf16 %v8368_v12 }
0x267f   :  { %v4841_v8 = vsel %vm501_vm7, %v4499_v29, %v8370_v14  ;;  %v4396_v37 = vsel %vm501_vm7, %v4053_v59, %v8369_v33 }
0x2684   :  { %v8373_v16 = vpop.permute.xlu1 %8372 }
0x2685   :  { %v8375_v20 = vunpack.i.h.bf16 %v8373_v16  ;;  %v8374_v15 = vunpack.i.l.bf16 %v8373_v16 }
0x2687   :  { %v4842_v48 = vsel %vm1197_vm11, %v4841_v8, %v8375_v20  ;;  %v4397_v46 = vsel %vm1197_vm11, %v4396_v37, %v8374_v15 }
0x268c   :  { %v8378_v22 = vpop.permute.xlu0 %8377 }
0x268d   :  { %v8380_v27 = vunpack.i.h.bf16 %v8378_v22  ;;  %v8379_v42 = vunpack.i.l.bf16 %v8378_v22 }
0x268f   :  { %v4843_v28 = vsel %vm1201_vm12, %v4842_v48, %v8380_v27  ;;  %v4398_v38 = vsel %vm1201_vm12, %v4397_v46, %v8379_v42 }
0x2690   :  { %v4851_v49 = vpack.c.bf16 %v4843_v28, %v4398_v38 }
0x2692   :  { %7868 = vmatmul.mubr.msk.bf16.vlgmr.msra.gmra.mrb[76].mxu0 %vm307_vm4, %v4851_v49 }
0x2693   :  { %7887 = vmatprep.mubr.msk.bf16.mxu0 %vm8706_vm15, %v8705_v60  ;;  %7880 = vmatpush3.bf16.msra.mxu0 %v8416_v45  ;;  %v7073_v45 = vld [vmem:[%s10326_s25 + $0x2] ss:$0 sm:$0xff] }
0x2694   :  { %7881 = vmatprep.subr.bf16.mxu0 %v8705_v60 }
0x2697   :  { %7882 = vmatpush3.bf16.msra.mxu0 %v8417_v47 }
0x2698   :  { %7883 = vmatprep.subr.bf16.mxu0 %v8705_v60 }
0x269b   :  { %7884 = vmatpush3.bf16.msra.mxu0 %v8418_v58 }
0x269c   :  { %7885 = vmatprep.subr.bf16.mxu0 %v8705_v60 }
0x269f   :  { %7886 = vmatpush3.bf16.msra.mxu0 %v8419_v1 }
0x26a0   :  { %7907 = vmatprep.subr.bf16.mxu0 %v8705_v60 }
0x2765   :  { %v4907_v52 = vpop.f32.mrb[76].mxu0 }
0x2766   :  { %v4908_v39 = vadd.f32 %v7039_v51, %v4907_v52  ;;  %v7869_v54 = vpop.f32.mrb[77].mxu0 }
0x2767   :  { %v4910_v56 = vpop.f32.mrb[78].mxu0 }
0x2768   :  { %v9958_v57 = vadd.f32 %v4908_v39, %v9750_v17  ;;  %v4911_v59 = vadd.f32 %v7039_v51, %v4910_v56  ;;  %v7870_v13 = vpop.f32.mrb[79].mxu0 }
0x276a   :  { %v9961_v53 = vadd.f32 %v4911_v59, %v9753_v18  ;;  %v4920_v11 = vsel %vm307_vm4, %v9958_v57, 0.0 }
0x276b   :  { %4921 = vadd.xlane.f32.xlu1 %v4920_v11 }
0x276c   :  { %v4923_v0 = vsel %vm307_vm4, %v9961_v53, 0.0 }
0x276d   :  { %4924 = vadd.xlane.f32.xlu0 %v4923_v0 }
0x27f8   :  { %v4922_v31 = vpop.xlane.xlu1 %4921 }
0x27f9   :  { %v4926_v3 = vmul.f32 0.03125, %v4922_v31  ;;  %v7065_v31 = vld [vmem:[%s10337_s15 + $0x1] ss:$0 sm:$0xff] }
0x27fa   :  { %v4925_v4 = vpop.xlane.xlu0 %4924 }
0x27fb   :  { %v4928_v17 = vsub.f32 %v9958_v57, %v4926_v3  ;;  %v4927_v55 = vmul.f32 0.03125, %v4925_v4 }
0x27fd   :  { %v4929_v21 = vsub.f32 %v9961_v53, %v4927_v55  ;;  %v4930_v18 = vmul.f32 %v4928_v17, %v4928_v17 }
0x27ff   :  { %v4932_v6 = vsel %vm307_vm4, %v4930_v18, 0.0  ;;  %v4931_v23 = vmul.f32 %v4929_v21, %v4929_v21 }
0x2800   :  { %4933 = vadd.xlane.f32.xlu0 %v4932_v6 }
0x2801   :  { %v4935_v24 = vsel %vm307_vm4, %v4931_v23, 0.0 }
0x2802   :  { %4936 = vadd.xlane.f32.xlu1 %v4935_v24 }
0x288d   :  { %v4934_v5 = vpop.xlane.xlu0 %4933 }
0x288e   :  { %v4938_v29 = vmul.f32 0.03125, %v4934_v5 }
0x288f   :  { %v4937_v30 = vpop.xlane.xlu1 %4936 }
0x2890   :  { %v4940_v26 = vadd.f32 1e-12, %v4938_v29  ;;  %v4939_v63 = vmul.f32 0.03125, %v4937_v30 }
0x2892   :  { %8512 = vrsqrt.f32 %v4940_v26  ;;  %v4941_v19 = vadd.f32 1e-12, %v4939_v63 }
0x2894   :  { %8514 = vrsqrt.f32 %v4941_v19 }
0x289c   :  { %v8513_v50 = vpop.eup %8512 }
0x289d   :  { %v4944_v32 = vmul.f32 %v8513_v50, %v4928_v17 }
0x289e   :  { %v8515_v10 = vpop.eup %8514 }
0x289f   :  { %v4945_v9 = vmul.f32 %v8515_v10, %v4929_v21  ;;  %v4952_v34 = vmul.f32 %v7045_v61, %v4944_v32  ;;  %v8421_v32 = vld [vmem:[%s10325_s26 + $0x28] sm:$0xff]   ;;  %v8422_v10 = vld [vmem:[%s10324_s23 + $0x20] sm:$0xff]  }
0x28a1   :  { %v4953_v41 = vmul.f32 %v7045_v61, %v4945_v9  ;;  %v4960_v2 = vadd.f32 %v7046_v35, %v4952_v34  ;;  %v8420_v61 = vld [vmem:[%s10325_s26 + $0x20] sm:$0xff]  }
0x28a3   :  { %v4961_v36 = vadd.f32 %v7046_v35, %v4953_v41 }
0x28a5   :  { %v4969_v40 = vpack.c.bf16 %v4961_v36, %v4960_v2 }
0x28a7   :  { %7876 = vmatmul.mubr.msk.bf16.vlgmr.msra.gmra.mrb[80].mxu1 %vm307_vm4, %v4969_v40 }
0x28a8   :  { %7895 = vmatprep.mubr.msk.bf16.mxu1 %vm8706_vm15, %v8705_v60  ;;  %7892 = vmatpush3.bf16.msra.mxu1 %v8420_v61 }
0x28a9   :  { %7893 = vmatprep.subr.bf16.mxu1 %v8705_v60 }
0x28ac   :  { %7894 = vmatpush3.bf16.msra.mxu1 %v8421_v32 }
0x28ad   :  { %7899 = vmatprep.subr.bf16.mxu1 %v8422_v10 }
0x297a   :  { %v5025_v12 = vpop.f32.mrb[80].mxu1 }
0x297b   :  { %v5026_v16 = vadd.f32 %v7052_v7, %v5025_v12  ;;  %v7877_v14 = vpop.f32.mrb[81].mxu1  ;;  %v7074_v12 = vld [vmem:[%s10327_s29 + $0x2] ss:$0 sm:$0xff] }
0x297c   :  { %v5028_v33 = vpop.f32.mrb[82].mxu1 }
0x297d   :  { %v5032_v20 = vmul.f32 %v5026_v16, %v5026_v16  ;;  %v5029_v15 = vadd.f32 %v7052_v7, %v5028_v33  ;;  %v7878_v22 = vpop.f32.mrb[83].mxu1 }
0x297e   :  { %v7080_v22 = vld [vmem:[%s10329_s8 + $0x2] ss:$0 sm:$0xff] }
0x297f   :  { %v5034_v8 = vmul.f32 %v5032_v20, %v5026_v16  ;;  %v5033_v37 = vmul.f32 %v5029_v15, %v5029_v15 }
0x2981   :  { %v5036_v27 = vmul.f32 0.044715, %v5034_v8  ;;  %v5035_v42 = vmul.f32 %v5033_v37, %v5029_v15 }
0x2983   :  { %v5038_v48 = vadd.f32 %v5036_v27, %v5026_v16  ;;  %v5037_v46 = vmul.f32 0.044715, %v5035_v42 }
0x2985   :  { %v5040_v28 = vmul.f32 0.7978846, %v5038_v48  ;;  %v5039_v38 = vadd.f32 %v5037_v46, %v5029_v15 }
0x2987   :  { %8516 = vtanh.f32 %v5040_v28  ;;  %v5041_v49 = vmul.f32 0.7978846, %v5039_v38 }
0x2989   :  { %8518 = vtanh.f32 %v5041_v49  ;;  %v7089_v49 = vld [vmem:[%s10328_s3 + $0x2] ss:$0 sm:$0xff] }
0x2991   :  { %v8517_v51 = vpop.eup %8516 }
0x2992   :  { %v5044_v52 = vadd.f32 1.0, %v8517_v51 }
0x2993   :  { %v8519_v39 = vpop.eup %8518 }
0x2994   :  { %v5046_v54 = vmul.f32 0.5, %v5044_v52  ;;  %v5045_v56 = vadd.f32 1.0, %v8519_v39 }
0x2996   :  { %v5047_v59 = vmul.f32 0.5, %v5045_v56  ;;  %v5048_v13 = vmul.f32 %v5046_v54, %v5026_v16 }
0x2998   :  { %v5049_v11 = vmul.f32 %v5047_v59, %v5029_v15  ;;  %v8423_v15 = vld [vmem:[%s10324_s23 + $0x28] sm:$0xff]  }
0x299a   :  { %v5061_v0 = vpack.c.bf16 %v5049_v11, %v5048_v13 }
0x299c   :  { %7888 = vmatmul.mubr.msk.bf16.vlgmr.msra.gmra.mrb[80].mxu0 %vm2307_vm13, %v5061_v0 }
0x299d   :  { %7909 = vmatprep.mubr.msk.bf16.mxu0 %vm8706_vm15, %v8705_v60 }
0x2a6f   :  { %v5129_v3 = vpop.f32.mrb[80].mxu0 }
0x2a70   :  { %v5130_v4 = vadd.f32 %v7065_v31, %v5129_v3  ;;  %v7889_v17 = vpop.f32.mrb[81].mxu0 }
0x2a71   :  { %v5132_v55 = vpop.f32.mrb[82].mxu0 }
0x2a72   :  { %v9994_v21 = vadd.f32 %v5130_v4, %v9958_v57  ;;  %v5133_v18 = vadd.f32 %v7065_v31, %v5132_v55  ;;  %v7890_v6 = vpop.f32.mrb[83].mxu0 }
0x2a74   :  { %v9997_v23 = vadd.f32 %v5133_v18, %v9961_v53  ;;  %v5142_v24 = vsel %vm307_vm4, %v9994_v21, 0.0 }
0x2a75   :  { %5143 = vadd.xlane.f32.xlu0 %v5142_v24 }
0x2a76   :  { %v5145_v25 = vsel %vm307_vm4, %v9997_v23, 0.0 }
0x2a77   :  { %5146 = vadd.xlane.f32.xlu1 %v5145_v25 }
0x2b02   :  { %v5144_v43 = vpop.xlane.xlu0 %5143 }
0x2b03   :  { %v5148_v5 = vmul.f32 0.03125, %v5144_v43 }
0x2b04   :  { %v5147_v57 = vpop.xlane.xlu1 %5146 }
0x2b05   :  { %v5150_v29 = vsub.f32 %v9994_v21, %v5148_v5  ;;  %v5149_v30 = vmul.f32 0.03125, %v5147_v57 }
0x2b07   :  { %v5151_v53 = vsub.f32 %v9997_v23, %v5149_v30  ;;  %v5152_v26 = vmul.f32 %v5150_v29, %v5150_v29 }
0x2b09   :  { %v5154_v63 = vsel %vm307_vm4, %v5152_v26, 0.0  ;;  %v5153_v19 = vmul.f32 %v5151_v53, %v5151_v53 }
0x2b0a   :  { %5155 = vadd.xlane.f32.xlu0 %v5154_v63 }
0x2b0b   :  { %v5157_v50 = vsel %vm307_vm4, %v5153_v19, 0.0 }
0x2b0c   :  { %5158 = vadd.xlane.f32.xlu1 %v5157_v50 }
0x2b97   :  { %v5156_v9 = vpop.xlane.xlu0 %5155 }
0x2b98   :  { %v5160_v34 = vmul.f32 0.03125, %v5156_v9 }
0x2b99   :  { %v5159_v35 = vpop.xlane.xlu1 %5158 }
0x2b9a   :  { %v5162_v41 = vadd.f32 1e-12, %v5160_v34  ;;  %v5161_v2 = vmul.f32 0.03125, %v5159_v35 }
0x2b9c   :  { %8520 = vrsqrt.f32 %v5162_v41  ;;  %v5163_v36 = vadd.f32 1e-12, %v5161_v2 }
0x2b9e   :  { %8522 = vrsqrt.f32 %v5163_v36 }
0x2ba6   :  { %v8521_v40 = vpop.eup %8520 }
0x2ba7   :  { %v5166_v47 = vmul.f32 %v8521_v40, %v5150_v29 }
0x2ba8   :  { %v8523_v58 = vpop.eup %8522 }
0x2ba9   :  { %v5167_v1 = vmul.f32 %v8523_v58, %v5151_v53  ;;  %v5174_v7 = vmul.f32 %v7073_v45, %v5166_v47 }
0x2bab   :  { %v5175_v16 = vmul.f32 %v7073_v45, %v5167_v1  ;;  %v5182_v14 = vadd.f32 %v7074_v12, %v5174_v7 }
0x2bad   :  { %v5183_v33 = vadd.f32 %v7074_v12, %v5175_v16 }
0x2baf   :  { %v5191_v20 = vpack.c.bf16 %v5183_v33, %v5182_v14 }
0x2bb1   :  { %7896 = vmatmul.mubr.msk.bf16.vlgmr.msra.gmra.mrb[84].mxu1 %vm307_vm4, %v5191_v20 }
0x2bb2   :  { %7900 = vmatpush3.bf16.msra.mxu1 %v8422_v10  ;;  %7903 = vmatprep.mubr.msk.bf16.mxu1 %vm307_vm4, %v9505_v62 }
0x2bb3   :  { %7901 = vmatprep.subr.bf16.mxu1 %v8423_v15 }
0x2bb6   :  { %7902 = vmatpush3.bf16.msra.mxu1 %v8423_v15 }
0x2bb7   :  { %7913 = vmatprep.subr.bf16.mxu1 %v8705_v60 }
0x2bb9   :  { %7904 = vmatmul.mubr.msk.bf16.vlgmr.msra.gmra.mrb[88].mxu1 %vm307_vm4, %v9510_v44 }
0x2bba   :  { %7915 = vmatprep.mubr.msk.bf16.mxu1 %vm8706_vm15, %v8705_v60 }
0x2c84   :  { %v5247_v8 = vpop.f32.mrb[84].mxu1 }
0x2c85   :  { %v7897_v37 = vpop.f32.mrb[85].mxu1  ;;  %v5248_v42 = vadd.f32 %v7080_v22, %v5247_v8 }
0x2c86   :  { %v5250_v27 = vpop.f32.mrb[86].mxu1 }
0x2c87   :  { %v5251_v48 = vadd.f32 %v7080_v22, %v5250_v27  ;;  %v7898_v46 = vpop.f32.mrb[87].mxu1 }
0x2c89   :  { %v5254_v28 = vpack.c.bf16 %v5251_v48, %v5248_v42 }
0x2c8b   :  { %5437 = vrot.lane.b32.xlu1 %v5254_v28, %s8708_s19  ;;  %v5776_v3 = vrot.slane %v5254_v28, 4 }
0x2c8c   :  { %v7905_v38 = vpop.f32.mrb[88].mxu1 }
0x2c8d   :  { %v5314_v51 = vpop.f32.mrb[89].mxu1  ;;  %v5323_v39 = vadd.f32 %v7905_v38, %v7089_v49 }
0x2c8e   :  { %v7906_v52 = vpop.f32.mrb[90].mxu1  ;;  %v5315_v59 = vadd.f32 %v7089_v49, %v5314_v51 }
0x2c8f   :  { %v5326_v54 = vadd.f32 %v7906_v52, %v7089_v49  ;;  %v5317_v56 = vpop.f32.mrb[91].mxu1 }
0x2c90   :  { %v5318_v13 = vadd.f32 %v7089_v49, %v5317_v56 }
0x2c91   :  { %v10025_v11 = vpack.c.bf16 %v5326_v54, %v5323_v39 }
0x2c92   :  { %v10027_v0 = vpack.c.bf16 %v5318_v13, %v5315_v59 }
0x2c93   :  { %v5781_v57 = vsel %vm501_vm7, %v10025_v11, 0 }
0x2c94   :  { %5547 = vrot.lane.b32.xlu1 %v10027_v0, %s8707_s14  ;;  %5439 = vrot.lane.b32.xlu0 %v10027_v0, %s8708_s19  ;;  %v5335_v31 = vsel %vm501_vm7, %v10027_v0, 0 }
0x2c95   :  { %7908 = vmatpush3.bf16.xpose.msra.mxu0 %v5335_v31 }
0x2c96   :  { %7919 = vmatprep.subr.bf16.mxu0 %v8705_v60 }
0x2c98   :  { %5655 = vrot.lane.b32.xlu1 %v10027_v0, %s8709_s24  ;;  %5545 = vrot.lane.b32.xlu0 %v5254_v28, %s8707_s14 }
0x2c9c   :  { %5884 = vrot.lane.b32.xlu1 %v10025_v11, %s8708_s19  ;;  %5653 = vrot.lane.b32.xlu0 %v5254_v28, %s8709_s24 }
0x2c9d   :  { %7910 = vmatmul.mubr.msk.bf16.vlgmr.msra.gmra.mrb[84].mxu0 %vm501_vm7, %v5254_v28 }
0x2c9e   :  { %7921 = vmatprep.mubr.msk.bf16.mxu0 %vm8706_vm15, %v8705_v60 }
0x2ca0   :  { %5992 = vrot.lane.b32.xlu1 %v10025_v11, %s8707_s14  ;;  %5882 = vrot.lane.b32.xlu0 %v5776_v3, %s8708_s19 }
0x2ca4   :  { %6100 = vrot.lane.b32.xlu1 %v10025_v11, %s8709_s24  ;;  %5990 = vrot.lane.b32.xlu0 %v5776_v3, %s8707_s14 }
0x2ca8   :  { %6098 = vrot.lane.b32.xlu0 %v5776_v3, %s8709_s24 }
0x2cfd   :  { %v5438_v55 = vpop.permute.xlu1 %5437 }
0x2d06   :  { %v5440_v4 = vpop.permute.xlu0 %5439  ;;  %v5548_v18 = vpop.permute.xlu1 %5547 }
0x2d07   :  { %v5445_v17 = vsel %vm501_vm7, %v5440_v4, 0  ;;  %v5553_v6 = vsel %vm501_vm7, %v5548_v18, 0 }
0x2d08   :  { %7920 = vmatpush3.bf16.xpose.msra.mxu0 %v5445_v17 }
0x2d09   :  { %7931 = vmatprep.subr.bf16.mxu0 %v8705_v60 }
0x2d0a   :  { %v5656_v24 = vpop.permute.xlu1 %5655  ;;  %v5546_v25 = vpop.permute.xlu0 %5545 }
0x2d0b   :  { %v5661_v43 = vsel %vm501_vm7, %v5656_v24, 0 }
0x2d0e   :  { %v5654_v5 = vpop.permute.xlu0 %5653  ;;  %v5885_v29 = vpop.permute.xlu1 %5884 }
0x2d0f   :  { %7922 = vmatmul.mubr.msk.bf16.vlgmr.msra.gmra.mrb[88].mxu0 %vm501_vm7, %v5438_v55  ;;  %v5890_v30 = vsel %vm501_vm7, %v5885_v29, 0 }
0x2d10   :  { %7932 = vmatpush3.bf16.xpose.msra.mxu0 %v5553_v6  ;;  %7933 = vmatprep.mubr.msk.bf16.mxu0 %vm8706_vm15, %v8705_v60 }
0x2d11   :  { %7943 = vmatprep.subr.bf16.mxu0 %v8705_v60 }
0x2d12   :  { %v5993_v53 = vpop.permute.xlu1 %5992  ;;  %v5883_v26 = vpop.permute.xlu0 %5882 }
0x2d13   :  { %v5998_v63 = vsel %vm501_vm7, %v5993_v53, 0 }
0x2d16   :  { %v6101_v19 = vpop.permute.xlu1 %6100  ;;  %v5991_v50 = vpop.permute.xlu0 %5990 }
0x2d17   :  { %7934 = vmatmul.mubr.msk.bf16.vlgmr.msra.gmra.mrb[92].mxu0 %vm501_vm7, %v5546_v25  ;;  %v6106_v61 = vsel %vm501_vm7, %v6101_v19, 0 }
0x2d18   :  { %7944 = vmatpush3.bf16.xpose.msra.mxu0 %v5661_v43  ;;  %7945 = vmatprep.mubr.msk.bf16.mxu0 %vm8706_vm15, %v8705_v60 }
0x2d19   :  { %7955 = vmatprep.subr.bf16.mxu0 %v8705_v60 }
0x2d1a   :  { %v6099_v32 = vpop.permute.xlu0 %6098 }
0x2d1f   :  { %7946 = vmatmul.mubr.msk.bf16.vlgmr.msra.gmra.mrb[96].mxu0 %vm501_vm7, %v5654_v5 }
0x2d20   :  { %7956 = vmatpush3.bf16.xpose.msra.mxu0 %v5781_v57  ;;  %7957 = vmatprep.mubr.msk.bf16.mxu0 %vm8706_vm15, %v8705_v60 }
0x2d21   :  { %7967 = vmatprep.subr.bf16.mxu0 %v8705_v60 }
0x2d27   :  { %7958 = vmatmul.mubr.msk.bf16.vlgmr.msra.gmra.mrb[100].mxu0 %vm501_vm7, %v5776_v3 }
0x2d28   :  { %7968 = vmatpush3.bf16.xpose.msra.mxu0 %v5890_v30  ;;  %7969 = vmatprep.mubr.msk.bf16.mxu0 %vm8706_vm15, %v8705_v60 }
0x2d29   :  { %7979 = vmatprep.subr.bf16.mxu0 %v8705_v60 }
0x2d2f   :  { %7970 = vmatmul.mubr.msk.bf16.vlgmr.msra.gmra.mrb[104].mxu0 %vm501_vm7, %v5883_v26 }
0x2d30   :  { %7980 = vmatpush3.bf16.xpose.msra.mxu0 %v5998_v63  ;;  %7981 = vmatprep.mubr.msk.bf16.mxu0 %vm8706_vm15, %v8705_v60 }
0x2d31   :  { %7991 = vmatprep.subr.bf16.mxu0 %v8705_v60 }
0x2d37   :  { %7982 = vmatmul.mubr.msk.bf16.vlgmr.msra.gmra.mrb[108].mxu0 %vm501_vm7, %v5991_v50 }
0x2d38   :  { %7992 = vmatpush3.bf16.xpose.msra.mxu0 %v6106_v61  ;;  %7993 = vmatprep.mubr.msk.bf16.mxu0 %vm8706_vm15, %v8705_v60 }
0x2d39   :  { %8003 = vmatprep.subr.bf16.mxu0 %v8705_v60 }
0x2d3f   :  { %7994 = vmatmul.mubr.msk.bf16.vlgmr.msra.gmra.mrb[112].mxu0 %vm501_vm7, %v6099_v32 }
0x2d40   :  { %8007 = vmatprep.mubr.msk.bf16.mxu0 %vm8706_vm15, %v8705_v60 }
0x2d70   :  { %v5371_v10 = vpop.f32.mrb[84].mxu0 }
0x2d71   :  { %v7911_v9 = vpop.f32.mrb[85].mxu0  ;;  %v5377_v34 = vsel %vm1197_vm11, %v5371_v10, -inf }
0x2d72   :  { %5378 = vmax.xlane.f32.xlu1 %v5377_v34  ;;  %v5374_v35 = vpop.f32.mrb[86].mxu0 }
0x2d73   :  { %v7912_v41 = vpop.f32.mrb[87].mxu0 }
0x2de2   :  { %v5481_v2 = vpop.f32.mrb[88].mxu0 }
0x2de3   :  { %v7923_v36 = vpop.f32.mrb[89].mxu0  ;;  %v5487_v40 = vsel %vm1197_vm11, %v5481_v2, -inf }
0x2de4   :  { %5488 = vmax.xlane.f32.xlu0 %v5487_v40  ;;  %v5484_v45 = vpop.f32.mrb[90].mxu0 }
0x2de5   :  { %v7924_v47 = vpop.f32.mrb[91].mxu0 }
0x2dea   :  { %v5589_v58 = vpop.f32.mrb[92].mxu0 }
0x2deb   :  { %v7935_v1 = vpop.f32.mrb[93].mxu0  ;;  %v5595_v7 = vsel %vm1197_vm11, %v5589_v58, -inf }
0x2dec   :  { %5596 = vmax.xlane.f32.xlu0 %v5595_v7  ;;  %v5592_v12 = vpop.f32.mrb[94].mxu0 }
0x2ded   :  { %v7936_v16 = vpop.f32.mrb[95].mxu0 }
0x2df2   :  { %v5697_v14 = vpop.f32.mrb[96].mxu0 }
0x2df3   :  { %v7947_v33 = vpop.f32.mrb[97].mxu0  ;;  %v5703_v20 = vsel %vm1197_vm11, %v5697_v14, -inf }
0x2df4   :  { %5704 = vmax.xlane.f32.xlu1 %v5703_v20  ;;  %v5700_v15 = vpop.f32.mrb[98].mxu0 }
0x2df5   :  { %v7948_v22 = vpop.f32.mrb[99].mxu0 }
0x2dfa   :  { %v5817_v8 = vpop.f32.mrb[100].mxu0 }
0x2dfb   :  { %v7959_v37 = vpop.f32.mrb[101].mxu0  ;;  %v5823_v27 = vsel %vm1197_vm11, %v5817_v8, -inf }
0x2dfc   :  { %5824 = vmax.xlane.f32.xlu0 %v5823_v27  ;;  %v5820_v42 = vpop.f32.mrb[102].mxu0 }
0x2dfd   :  { %v7960_v48 = vpop.f32.mrb[103].mxu0 }
0x2dff   :  { %v5379_v17 = vpop.xlane.xlu1 %5378 }
0x2e00   :  { %v5380_v55 = vsub.f32 %v5371_v10, %v5379_v17 }
0x2e02   :  { %v10093_v46 = vpop.f32.mrb[104].mxu0  ;;  %v5381_v18 = vmul.f32 1.442695, %v5380_v55 }
0x2e03   :  { %v7971_v28 = vpop.f32.mrb[105].mxu0  ;;  %v5932_v38 = vsel %vm1197_vm11, %v10093_v46, -inf }
0x2e04   :  { %5933 = vmax.xlane.f32.xlu1 %v5932_v38  ;;  %v5929_v49 = vpop.f32.mrb[106].mxu0  ;;  %8524 = vpow2.f32 %v5381_v18 }
0x2e05   :  { %v7972_v51 = vpop.f32.mrb[107].mxu0 }
0x2e0a   :  { %v6034_v52 = vpop.f32.mrb[108].mxu0 }
0x2e0b   :  { %v7983_v39 = vpop.f32.mrb[109].mxu0  ;;  %v6040_v54 = vsel %vm1197_vm11, %v6034_v52, -inf }
0x2e0c   :  { %6041 = vmax.xlane.f32.xlu0 %v6040_v54  ;;  %v6037_v56 = vpop.f32.mrb[110].mxu0 }
0x2e0d   :  { %v7984_v59 = vpop.f32.mrb[111].mxu0 }
0x2e0e   :  { %v10106_v24 = vpop.eup %8524 }
0x2e0f   :  { %v5383_v25 = vsel %vm1197_vm11, %v10106_v24, 0.0 }
0x2e12   :  { %v10098_v13 = vpop.f32.mrb[112].mxu0 }
0x2e13   :  { %v7995_v31 = vpop.f32.mrb[113].mxu0  ;;  %v6148_v6 = vsel %vm1197_vm11, %v10098_v13, -inf }
0x2e14   :  { %v6145_v3 = vpop.f32.mrb[114].mxu0 }
0x2e15   :  { %5499 = vrot.lane.b32.xlu1 %v10027_v0, %s8710_s30  ;;  %v7996_v4 = vpop.f32.mrb[115].mxu0 }
0x2e22   :  { %5390 = vrot.lane.b32.xlu0 %v10027_v0, %s8711_s6 }
0x2e39   :  { %6149 = vmax.xlane.f32.xlu1 %v6148_v6 }
0x2e41   :  { %5384 = vadd.xlane.f32.xlu0 %v5383_v25 }
0x2e4a   :  { %5607 = vrot.lane.b32.xlu1 %v10027_v0, %s8712_s0 }
0x2e71   :  { %v5489_v43 = vpop.xlane.xlu0 %5488 }
0x2e72   :  { %v5490_v5 = vsub.f32 %v5481_v2, %v5489_v43 }
0x2e74   :  { %v5491_v57 = vmul.f32 1.442695, %v5490_v5 }
0x2e76   :  { %8526 = vpow2.f32 %v5491_v57 }
0x2e79   :  { %v5597_v29 = vpop.xlane.xlu0 %5596 }
0x2e7a   :  { %v5598_v30 = vsub.f32 %v5589_v58, %v5597_v29 }
0x2e7c   :  { %v5599_v53 = vmul.f32 1.442695, %v5598_v30 }
0x2e7e   :  { %8528 = vpow2.f32 %v5599_v53 }
0x2e80   :  { %v10112_v26 = vpop.eup %8526 }
0x2e81   :  { %v5705_v63 = vpop.xlane.xlu1 %5704  ;;  %v5493_v19 = vsel %vm1197_vm11, %v10112_v26, 0.0 }
0x2e82   :  { %v5706_v50 = vsub.f32 %v5697_v14, %v5705_v63  ;;  %5494 = vadd.xlane.f32.xlu1 %v5493_v19 }
0x2e84   :  { %v5707_v61 = vmul.f32 1.442695, %v5706_v50 }
0x2e86   :  { %8530 = vpow2.f32 %v5707_v61 }
0x2e88   :  { %v10116_v32 = vpop.eup %8528 }
0x2e89   :  { %v5825_v10 = vpop.xlane.xlu0 %5824  ;;  %v5601_v9 = vsel %vm1197_vm11, %v10116_v32, 0.0 }
0x2e8a   :  { %v5826_v34 = vsub.f32 %v5817_v8, %v5825_v10  ;;  %5602 = vadd.xlane.f32.xlu0 %v5601_v9 }
0x2e8c   :  { %v5827_v35 = vmul.f32 1.442695, %v5826_v34 }
0x2e8e   :  { %8532 = vpow2.f32 %v5827_v35 }
0x2e90   :  { %v10120_v41 = vpop.eup %8530 }
0x2e91   :  { %v5709_v2 = vsel %vm1197_vm11, %v10120_v41, 0.0  ;;  %v5934_v7 = vpop.xlane.xlu1 %5933 }
0x2e92   :  { %5710 = vadd.xlane.f32.xlu1 %v5709_v2  ;;  %v5935_v16 = vsub.f32 %v10093_v46, %v5934_v7 }
0x2e94   :  { %v5936_v33 = vmul.f32 1.442695, %v5935_v16 }
0x2e95   :  { %v5500_v22 = vpop.permute.xlu1 %5499 }
0x2e98   :  { %v10124_v36 = vpop.eup %8532 }
0x2e99   :  { %v6042_v40 = vpop.xlane.xlu0 %6041  ;;  %v5829_v45 = vsel %vm1197_vm11, %v10124_v36, 0.0 }
0x2e9a   :  { %v6043_v47 = vsub.f32 %v6034_v52, %v6042_v40  ;;  %5830 = vadd.xlane.f32.xlu1 %v5829_v45 }
0x2e9c   :  { %v6044_v58 = vmul.f32 1.442695, %v6043_v47 }
0x2e9d   :  { %v5391_v1 = vpop.permute.xlu0 %5390 }
0x2e9e   :  { %8534 = vpow2.f32 %v6044_v58  ;;  %7914 = vmatpush3.bf16.msra.mxu1 %v5391_v1 }
0x2e9f   :  { %7925 = vmatprep.subr.bf16.mxu1 %v8705_v60  ;;  %8536 = vpow2.f32 %v5936_v33 }
0x2ea0   :  { %5715 = vrot.lane.b32.xlu0 %v10027_v0, %s8713_s5 }
0x2ea8   :  { %v10131_v12 = vpop.eup %8534 }
0x2ea9   :  { %v6046_v14 = vsel %vm1197_vm11, %v10131_v12, 0.0  ;;  %v10136_v20 = vpop.eup %8536 }
0x2eaa   :  { %6047 = vadd.xlane.f32.xlu1 %v6046_v14  ;;  %v5938_v15 = vsel %vm1197_vm11, %v10136_v20, 0.0 }
0x2ebf   :  { %5939 = vadd.xlane.f32.xlu0 %v5938_v15 }
0x2ec6   :  { %v6150_v8 = vpop.xlane.xlu1 %6149 }
0x2ec7   :  { %v6151_v0 = vsub.f32 %v10098_v13, %v6150_v8 }
0x2ec9   :  { %v6152_v37 = vmul.f32 1.442695, %v6151_v0 }
0x2eca   :  { %v5608_v49 = vpop.permute.xlu1 %5607 }
0x2ecb   :  { %8538 = vpow2.f32 %v6152_v37 }
0x2ece   :  { %v5385_v27 = vpop.xlane.xlu0 %5384 }
0x2ecf   :  { %8540 = vrcp.f32 %v5385_v27 }
0x2ed5   :  { %v10141_v42 = vpop.eup %8538  ;;  %5944 = vrot.lane.b32.xlu0 %v10025_v11, %s8710_s30 }
0x2ed6   :  { %v6154_v48 = vsel %vm1197_vm11, %v10141_v42, 0.0 }
0x2ed7   :  { %6155 = vadd.xlane.f32.xlu1 %v6154_v48  ;;  %v8424_v48 = vld [vmem:[%s10330_s9 + $0x20] sm:$0xff]  }
0x2ed8   :  { %8004 = vmatpush3.bf16.msra.mxu0 %v8424_v48 }
0x2ed9   :  { %v8541_v46 = vpop.eup %8540  ;;  %6052 = vrot.lane.b32.xlu0 %v10025_v11, %s8712_s0  ;;  %8005 = vmatprep.subr.bf16.mxu0 %v8705_v60 }
0x2eda   :  { %v5387_v28 = vmul.f32 %v8541_v46, %v10106_v24 }
0x2edc   :  { %v5388_v38 = vpack.c.bf16 %v5387_v28, %v5387_v28 }
0x2edd   :  { %6160 = vrot.lane.b32.xlu0 %v10025_v11, %s8713_s5 }
0x2ede   :  { %7916 = vmatmul.mubr.msk.bf16.vlgmr.msra.gmra.mrb[92].mxu1 %vm1197_vm11, %v5388_v38 }
0x2edf   :  { %7926 = vmatpush3.bf16.msra.mxu1 %v5500_v22  ;;  %7927 = vmatprep.mubr.msk.bf16.mxu1 %vm8706_vm15, %v8705_v60 }
0x2ee0   :  { %7937 = vmatprep.subr.bf16.mxu1 %v8705_v60 }
0x2ee8   :  { %5836 = vrot.lane.b32.xlu1 %v10025_v11, %s8711_s6 }
0x2f0f   :  { %v5495_v51 = vpop.xlane.xlu1 %5494 }
0x2f10   :  { %8542 = vrcp.f32 %v5495_v51  ;;  %v8425_v51 = vld [vmem:[%s10330_s9 + $0x28] sm:$0xff]  }
0x2f11   :  { %8006 = vmatpush3.bf16.msra.mxu0 %v8425_v51 }
0x2f12   :  { %8019 = vmatprep.subr.bf16.mxu0 %v8705_v60 }
0x2f17   :  { %v5603_v52 = vpop.xlane.xlu0 %5602 }
0x2f18   :  { %8544 = vrcp.f32 %v5603_v52 }
0x2f1a   :  { %v8543_v39 = vpop.eup %8542 }
0x2f1b   :  { %v5497_v54 = vmul.f32 %v8543_v39, %v10112_v26  ;;  %v5716_v3 = vpop.permute.xlu0 %5715 }
0x2f1d   :  { %v5498_v56 = vpack.c.bf16 %v5497_v54, %v5497_v54 }
0x2f1f   :  { %7928 = vmatmul.mubr.msk.bf16.vlgmr.msra.gmra.mrb[96].mxu1 %vm1197_vm11, %v5498_v56  ;;  %v5711_v59 = vpop.xlane.xlu1 %5710 }
0x2f20   :  { %7938 = vmatpush3.bf16.msra.mxu1 %v5608_v49  ;;  %8546 = vrcp.f32 %v5711_v59  ;;  %7939 = vmatprep.mubr.msk.bf16.mxu1 %vm8706_vm15, %v8705_v60 }
0x2f21   :  { %7949 = vmatprep.subr.bf16.mxu1 %v8705_v60 }
0x2f22   :  { %v8545_v11 = vpop.eup %8544 }
0x2f23   :  { %v5605_v13 = vmul.f32 %v8545_v11, %v10116_v32 }
0x2f25   :  { %v5606_v31 = vpack.c.bf16 %v5605_v13, %v5605_v13 }
0x2f27   :  { %7940 = vmatmul.mubr.msk.bf16.vlgmr.msra.gmra.mrb[100].mxu1 %vm1197_vm11, %v5606_v31  ;;  %v5831_v18 = vpop.xlane.xlu1 %5830 }
0x2f28   :  { %7950 = vmatpush3.bf16.msra.mxu1 %v5716_v3  ;;  %7951 = vmatprep.mubr.msk.bf16.mxu1 %vm8706_vm15, %v8705_v60  ;;  %8548 = vrcp.f32 %v5831_v18 }
0x2f29   :  { %7961 = vmatprep.subr.bf16.mxu1 %v8705_v60 }
0x2f2a   :  { %v8547_v4 = vpop.eup %8546 }
0x2f2b   :  { %v5713_v17 = vmul.f32 %v8547_v4, %v10120_v41 }
0x2f2d   :  { %v5714_v55 = vpack.c.bf16 %v5713_v17, %v5713_v17 }
0x2f2f   :  { %7952 = vmatmul.mubr.msk.bf16.vlgmr.msra.gmra.mrb[104].mxu1 %vm1197_vm11, %v5714_v55 }
0x2f30   :  { %7963 = vmatprep.mubr.msk.bf16.mxu1 %vm8706_vm15, %v8705_v60 }
0x2f32   :  { %v8549_v25 = vpop.eup %8548 }
0x2f33   :  { %v5833_v5 = vmul.f32 %v8549_v25, %v10124_v36 }
0x2f35   :  { %v5834_v29 = vpack.c.bf16 %v5833_v5, %v5833_v5 }
0x2f37   :  { %v6048_v24 = vpop.xlane.xlu1 %6047 }
0x2f4c   :  { %v5940_v6 = vpop.xlane.xlu0 %5939 }
0x2f4d   :  { %8550 = vrcp.f32 %v5940_v6 }
0x2f4e   :  { %8552 = vrcp.f32 %v6048_v24 }
0x2f50   :  { %v5945_v53 = vpop.permute.xlu0 %5944 }
0x2f54   :  { %v6053_v50 = vpop.permute.xlu0 %6052 }
0x2f57   :  { %v8551_v30 = vpop.eup %8550 }
0x2f58   :  { %v5942_v26 = vmul.f32 %v8551_v30, %v10136_v20  ;;  %v8553_v19 = vpop.eup %8552  ;;  %v6161_v9 = vpop.permute.xlu0 %6160 }
0x2f59   :  { %v6050_v61 = vmul.f32 %v8553_v19, %v10131_v12 }
0x2f5a   :  { %v5943_v63 = vpack.c.bf16 %v5942_v26, %v5942_v26 }
0x2f5b   :  { %v6051_v32 = vpack.c.bf16 %v6050_v61, %v6050_v61  ;;  %v7115_v61 = vld [vmem:[%s10331_s17 + $0x2] ss:$0 sm:$0xff] }
0x2f64   :  { %v6156_v43 = vpop.xlane.xlu1 %6155 }
0x2f65   :  { %8554 = vrcp.f32 %v6156_v43 }
0x2f68   :  { %v5837_v57 = vpop.permute.xlu1 %5836 }
0x2f69   :  { %7962 = vmatpush3.bf16.msra.mxu1 %v5837_v57 }
0x2f6a   :  { %7973 = vmatprep.subr.bf16.mxu1 %v8705_v60 }
0x2f6c   :  { %7964 = vmatmul.mubr.msk.bf16.vlgmr.msra.gmra.mrb[108].mxu1 %vm1197_vm11, %v5834_v29 }
0x2f6d   :  { %7974 = vmatpush3.bf16.msra.mxu1 %v5945_v53  ;;  %7975 = vmatprep.mubr.msk.bf16.mxu1 %vm8706_vm15, %v8705_v60 }
0x2f6e   :  { %7985 = vmatprep.subr.bf16.mxu1 %v8705_v60 }
0x2f6f   :  { %v8555_v10 = vpop.eup %8554 }
0x2f70   :  { %v6158_v34 = vmul.f32 %v8555_v10, %v10141_v42 }
0x2f72   :  { %v6159_v35 = vpack.c.bf16 %v6158_v34, %v6158_v34 }
0x2f74   :  { %7976 = vmatmul.mubr.msk.bf16.vlgmr.msra.gmra.mrb[112].mxu1 %vm1197_vm11, %v5943_v63 }
0x2f75   :  { %7986 = vmatpush3.bf16.msra.mxu1 %v6053_v50  ;;  %7987 = vmatprep.mubr.msk.bf16.mxu1 %vm8706_vm15, %v8705_v60 }
0x2f76   :  { %7997 = vmatprep.subr.bf16.mxu1 %v8705_v60 }
0x2f7c   :  { %7988 = vmatmul.mubr.msk.bf16.vlgmr.msra.gmra.mrb[116].mxu1 %vm1197_vm11, %v6051_v32 }
0x2f7d   :  { %7998 = vmatpush3.bf16.msra.mxu1 %v6161_v9  ;;  %7999 = vmatprep.mubr.msk.bf16.mxu1 %vm8706_vm15, %v8705_v60 }
0x2f7e   :  { %8011 = vmatprep.subr.bf16.mxu1 %v8705_v60 }
0x2f84   :  { %8000 = vmatmul.mubr.msk.bf16.vlgmr.msra.gmra.mrb[120].mxu1 %vm1197_vm11, %v6159_v35 }
0x2f85   :  { %8015 = vmatprep.mubr.msk.bf16.mxu1 %vm8706_vm15, %v8705_v60 }
0x2fb1   :  { %v5430_v41 = vpop.f32.mrb[92].mxu1 }
0x2fb2   :  { %v7917_v2 = vpop.f32.mrb[93].mxu1 }
0x2fb3   :  { %v5433_v36 = vpop.f32.mrb[94].mxu1 }
0x2fb4   :  { %v7918_v40 = vpop.f32.mrb[95].mxu1 }
0x2ff2   :  { %v5539_v45 = vpop.f32.mrb[96].mxu1 }
0x2ff3   :  { %v7929_v47 = vpop.f32.mrb[97].mxu1 }
0x2ff4   :  { %v5542_v58 = vpop.f32.mrb[98].mxu1 }
0x2ff5   :  { %v7930_v1 = vpop.f32.mrb[99].mxu1 }
0x2ffa   :  { %v5647_v7 = vpop.f32.mrb[100].mxu1 }
0x2ffb   :  { %v7941_v12 = vpop.f32.mrb[101].mxu1 }
0x2ffc   :  { %v5650_v16 = vpop.f32.mrb[102].mxu1 }
0x2ffd   :  { %v7942_v14 = vpop.f32.mrb[103].mxu1 }
0x3002   :  { %v5755_v33 = vpop.f32.mrb[104].mxu1 }
0x3003   :  { %v7953_v20 = vpop.f32.mrb[105].mxu1 }
0x3004   :  { %v5758_v15 = vpop.f32.mrb[106].mxu1  ;;  %v8426_v20 = vld [vmem:[%s10332_s1 + $0x20] sm:$0xff]  }
0x3005   :  { %v7954_v22 = vpop.f32.mrb[107].mxu1  ;;  %8012 = vmatpush3.bf16.msra.mxu1 %v8426_v20  ;;  %v8427_v15 = vld [vmem:[%s10332_s1 + $0x28] sm:$0xff]  }
0x3006   :  { %8013 = vmatprep.subr.bf16.mxu1 %v8705_v60 }
0x3009   :  { %8014 = vmatpush3.bf16.msra.mxu1 %v8427_v15 }
0x300a   :  { %8031 = vmatprep.subr.bf16.mxu1 %v8705_v60 }
0x303f   :  { %v5876_v8 = vpop.f32.mrb[108].mxu1 }
0x3040   :  { %v7965_v0 = vpop.f32.mrb[109].mxu1 }
0x3041   :  { %v5879_v37 = vpop.f32.mrb[110].mxu1 }
0x3042   :  { %v7966_v27 = vpop.f32.mrb[111].mxu1 }
0x3047   :  { %v5984_v42 = vpop.f32.mrb[112].mxu1 }
0x3048   :  { %v8381_v46 = vpack.i.bf16 %v5984_v42, %v5539_v45  ;;  %v7977_v28 = vpop.f32.mrb[113].mxu1 }
0x3049   :  { %v5987_v38 = vpop.f32.mrb[114].mxu1  ;;  %v7121_v28 = vld [vmem:[%s10333_s2 + $0x2] ss:$0 sm:$0xff] }
0x304a   :  { %8382 = vrot.lane.b32.xlu1 %v8381_v46, %s8714_s21  ;;  %v7978_v49 = vpop.f32.mrb[115].mxu1 }
0x304f   :  { %v6092_v52 = vpop.f32.mrb[116].mxu1 }
0x3050   :  { %v8386_v39 = vpack.i.bf16 %v6092_v52, %v5647_v7  ;;  %v7989_v54 = vpop.f32.mrb[117].mxu1  ;;  %v7122_v52 = vld [vmem:[%s10334_s7 + $0x2] ss:$0 sm:$0xff] }
0x3051   :  { %v6095_v56 = vpop.f32.mrb[118].mxu1 }
0x3052   :  { %8387 = vrot.lane.b32.xlu0 %v8386_v39, %s8715_s28  ;;  %v7990_v59 = vpop.f32.mrb[119].mxu1 }
0x3057   :  { %v6200_v11 = vpop.f32.mrb[120].mxu1 }
0x3058   :  { %v8391_v13 = vpack.i.bf16 %v6200_v11, %v5755_v33  ;;  %v8001_v31 = vpop.f32.mrb[121].mxu1  ;;  %v8428_v11 = vld [vmem:[%s10335_s10 + $0x40] sm:$0xff]  }
0x3059   :  { %v6203_v3 = vpop.f32.mrb[122].mxu1  ;;  %v8430_v31 = vld [vmem:[%s10335_s10 + $0x50] sm:$0xff]  }
0x305a   :  { %8392 = vrot.lane.b32.xlu1 %v8391_v13, %s8716_s13  ;;  %v8002_v4 = vpop.f32.mrb[123].mxu1  ;;  %v8429_v13 = vld [vmem:[%s10335_s10 + $0x48] sm:$0xff]   ;;  %v8431_v3 = vld [vmem:[%s10335_s10 + $0x58] sm:$0xff]  }
0x305b   :  { %v7128_v4 = vld [vmem:[%s10336_s11 + $0x2] ss:$0 sm:$0xff] }
0x30bc   :  { %v8383_v17 = vpop.permute.xlu1 %8382 }
0x30bd   :  { %v8385_v18 = vunpack.i.h.bf16 %v8383_v17  ;;  %v8384_v6 = vunpack.i.l.bf16 %v8383_v17 }
0x30bf   :  { %v6218_v5 = vsel %vm501_vm7, %v5876_v8, %v8385_v18  ;;  %v5773_v57 = vsel %vm501_vm7, %v5430_v41, %v8384_v6 }
0x30c4   :  { %v8388_v55 = vpop.permute.xlu0 %8387 }
0x30c5   :  { %v8390_v24 = vunpack.i.h.bf16 %v8388_v55  ;;  %v8389_v25 = vunpack.i.l.bf16 %v8388_v55 }
0x30c7   :  { %v6219_v53 = vsel %vm1197_vm11, %v6218_v5, %v8390_v24  ;;  %v5774_v26 = vsel %vm1197_vm11, %v5773_v57, %v8389_v25 }
0x30cc   :  { %v8393_v43 = vpop.permute.xlu1 %8392 }
0x30cd   :  { %v8395_v29 = vunpack.i.h.bf16 %v8393_v43  ;;  %v8394_v30 = vunpack.i.l.bf16 %v8393_v43 }
0x30cf   :  { %v6220_v63 = vsel %vm1201_vm12, %v6219_v53, %v8395_v29  ;;  %v5775_v19 = vsel %vm1201_vm12, %v5774_v26, %v8394_v30 }
0x30d0   :  { %v6228_v50 = vpack.c.bf16 %v6220_v63, %v5775_v19 }
0x30d2   :  { %8008 = vmatmul.mubr.msk.bf16.vlgmr.msra.gmra.mrb[116].mxu0 %vm307_vm4, %v6228_v50 }
0x30d3   :  { %8027 = vmatprep.mubr.msk.bf16.mxu0 %vm8706_vm15, %v8705_v60  ;;  %8020 = vmatpush3.bf16.msra.mxu0 %v8428_v11 }
0x30d4   :  { %8021 = vmatprep.subr.bf16.mxu0 %v8705_v60 }
0x30d7   :  { %8022 = vmatpush3.bf16.msra.mxu0 %v8429_v13 }
0x30d8   :  { %8023 = vmatprep.subr.bf16.mxu0 %v8705_v60 }
0x30db   :  { %8024 = vmatpush3.bf16.msra.mxu0 %v8430_v31 }
0x30dc   :  { %8025 = vmatprep.subr.bf16.mxu0 %v8705_v60 }
0x30df   :  { %8026 = vmatpush3.bf16.msra.mxu0 %v8431_v3 }
0x30e0   :  { %8045 = vmatprep.subr.bf16.mxu0 %v8705_v60 }
0x31a5   :  { %v6284_v32 = vpop.f32.mrb[116].mxu0 }
0x31a6   :  { %v6285_v10 = vadd.f32 %v7115_v61, %v6284_v32  ;;  %v8009_v9 = vpop.f32.mrb[117].mxu0 }
0x31a7   :  { %v6287_v34 = vpop.f32.mrb[118].mxu0 }
0x31a8   :  { %v10210_v35 = vadd.f32 %v6285_v10, %v9994_v21  ;;  %v6288_v41 = vadd.f32 %v7115_v61, %v6287_v34  ;;  %v8010_v2 = vpop.f32.mrb[119].mxu0 }
0x31aa   :  { %v10213_v36 = vadd.f32 %v6288_v41, %v9997_v23  ;;  %v6297_v40 = vsel %vm307_vm4, %v10210_v35, 0.0 }
0x31ab   :  { %6298 = vadd.xlane.f32.xlu0 %v6297_v40 }
0x31ac   :  { %v6300_v45 = vsel %vm307_vm4, %v10213_v36, 0.0 }
0x31ad   :  { %6301 = vadd.xlane.f32.xlu1 %v6300_v45 }
0x3238   :  { %v6299_v47 = vpop.xlane.xlu0 %6298 }
0x3239   :  { %v6303_v58 = vmul.f32 0.03125, %v6299_v47  ;;  %v8432_v47 = vld [vmem:[%s10338_s16] sm:$0xff]  }
0x323a   :  { %v6302_v1 = vpop.xlane.xlu1 %6301 }
0x323b   :  { %v6305_v21 = vsub.f32 %v10210_v35, %v6303_v58  ;;  %v6304_v7 = vmul.f32 0.03125, %v6302_v1  ;;  %v8433_v58 = vld [vmem:[%s10338_s16 + $0x8] sm:$0xff]   ;;  %v7141_v1 = vld [vmem:[%s10337_s15 + $0x2] ss:$0 sm:$0xff] }
0x323d   :  { %v6306_v12 = vsub.f32 %v10213_v36, %v6304_v7  ;;  %v6307_v23 = vmul.f32 %v6305_v21, %v6305_v21 }
0x323f   :  { %v6309_v16 = vsel %vm307_vm4, %v6307_v23, 0.0  ;;  %v6308_v14 = vmul.f32 %v6306_v12, %v6306_v12 }
0x3240   :  { %6310 = vadd.xlane.f32.xlu0 %v6309_v16 }
0x3241   :  { %v6312_v33 = vsel %vm307_vm4, %v6308_v14, 0.0 }
0x3244   :  { %6313 = vadd.xlane.f32.xlu0 %v6312_v33 }
0x32cd   :  { %v6311_v22 = vpop.xlane.xlu0 %6310 }
0x32ce   :  { %v6315_v8 = vmul.f32 0.03125, %v6311_v22  ;;  %v2525_v22 = vsel %vm307_vm4, %v9505_v62, 0 }
0x32d0   :  { %v6317_v0 = vadd.f32 1e-12, %v6315_v8  ;;  %v2528_v8 = vsel %vm307_vm4, %v9510_v44, 0 }
0x32d1   :  { %v6314_v37 = vpop.xlane.xlu0 %6313 }
0x32d2   :  { %8556 = vrsqrt.f32 %v6317_v0  ;;  %v6316_v27 = vmul.f32 0.03125, %v6314_v37  ;;  %v7147_v0 = vld [vmem:[%s8892_s4] ss:$0 sm:$0xff] }
0x32d4   :  { %v6318_v42 = vadd.f32 1e-12, %v6316_v27 }
0x32d6   :  { %8558 = vrsqrt.f32 %v6318_v42 }
0x32dc   :  { %v8557_v48 = vpop.eup %8556 }
0x32dd   :  { %v6321_v46 = vmul.f32 %v8557_v48, %v6305_v21 }
0x32df   :  { %v6329_v51 = vmul.f32 %v7121_v28, %v6321_v46 }
0x32e0   :  { %v8559_v38 = vpop.eup %8558 }
0x32e1   :  { %v6322_v49 = vmul.f32 %v8559_v38, %v6306_v12  ;;  %v6337_v54 = vadd.f32 %v7122_v52, %v6329_v51 }
0x32e3   :  { %v6330_v39 = vmul.f32 %v7121_v28, %v6322_v49 }
0x32e5   :  { %v6338_v56 = vadd.f32 %v7122_v52, %v6330_v39 }
0x32e7   :  { %v6346_v59 = vpack.c.bf16 %v6338_v56, %v6337_v54 }
0x32e9   :  { %8016 = vmatmul.mubr.msk.bf16.vlgmr.msra.gmra.mrb[124].mxu1 %vm307_vm4, %v6346_v59 }
0x32ea   :  { %8035 = vmatprep.mubr.msk.bf16.mxu1 %vm8706_vm15, %v8705_v60  ;;  %8032 = vmatpush3.bf16.msra.mxu1 %v8432_v47 }
0x32eb   :  { %8033 = vmatprep.subr.bf16.mxu1 %v8705_v60 }
0x32ee   :  { %8034 = vmatpush3.bf16.msra.mxu1 %v8433_v58 }
0x32ef   :  { %8039 = vmatprep.subr.bf16.mxu1 %v8705_v60 }
0x33bc   :  { %v6402_v17 = vpop.f32.mrb[124].mxu1 }
0x33bd   :  { %v6403_v55 = vadd.f32 %v7128_v4, %v6402_v17  ;;  %v8017_v18 = vpop.f32.mrb[125].mxu1 }
0x33be   :  { %v6405_v6 = vpop.f32.mrb[126].mxu1 }
0x33bf   :  { %v6409_v24 = vmul.f32 %v6403_v55, %v6403_v55  ;;  %v6406_v25 = vadd.f32 %v7128_v4, %v6405_v6  ;;  %v8018_v43 = vpop.f32.mrb[127].mxu1 }
0x33c1   :  { %v6411_v5 = vmul.f32 %v6409_v24, %v6403_v55  ;;  %v6410_v57 = vmul.f32 %v6406_v25, %v6406_v25 }
0x33c3   :  { %v6413_v29 = vmul.f32 0.044715, %v6411_v5  ;;  %v6412_v30 = vmul.f32 %v6410_v57, %v6406_v25 }
0x33c5   :  { %v6415_v53 = vadd.f32 %v6413_v29, %v6403_v55  ;;  %v6414_v26 = vmul.f32 0.044715, %v6412_v30 }
0x33c7   :  { %v6417_v63 = vmul.f32 0.7978846, %v6415_v53  ;;  %v6416_v19 = vadd.f32 %v6414_v26, %v6406_v25 }
0x33c9   :  { %8560 = vtanh.f32 %v6417_v63  ;;  %v6418_v50 = vmul.f32 0.7978846, %v6416_v19 }
0x33cb   :  { %8562 = vtanh.f32 %v6418_v50 }
0x33d3   :  { %v8561_v61 = vpop.eup %8560 }
0x33d4   :  { %v6421_v32 = vadd.f32 1.0, %v8561_v61 }
0x33d5   :  { %v8563_v10 = vpop.eup %8562 }
0x33d6   :  { %v6423_v9 = vmul.f32 0.5, %v6421_v32  ;;  %v6422_v34 = vadd.f32 1.0, %v8563_v10  ;;  %v6626_v32 = vld [vmem:[%s8902_s20] sm:$0xff] }
0x33d7   :  { %v6754_v47 = vrot.slane %v6626_v32, 5 }
0x33d8   :  { %v6424_v41 = vmul.f32 0.5, %v6422_v34  ;;  %v6425_v2 = vmul.f32 %v6423_v9, %v6403_v55  ;;  %v6627_v34 = vld [vmem:[%s8902_s20 + $0x8] sm:$0x3] }
0x33da   :  { %v6426_v40 = vmul.f32 %v6424_v41, %v6406_v25  ;;  %v6584_v41 = vld [vmem:[%s8897_s12 + $0x8] sm:$0xff] }
0x33dc   :  { %v6438_v45 = vpack.c.bf16 %v6426_v40, %v6425_v2 }
0x33de   :  { %8028 = vmatmul.mubr.msk.bf16.vlgmr.msra.gmra.mrb[120].mxu0 %vm2307_vm13, %v6438_v45 }
0x33df   :  { %8047 = vmatprep.mubr.msk.bf16.mxu0 %vm8706_vm15, %v8705_v60  ;;  %8046 = vmatpush3.bf16.xpose.msra.mxu0 %v2528_v8 }
0x34b1   :  { %v6506_v21 = vpop.f32.mrb[120].mxu0 }
0x34b2   :  { %v6507_v7 = vadd.f32 %v7141_v1, %v6506_v21  ;;  %v8029_v12 = vpop.f32.mrb[121].mxu0 }
0x34b3   :  { %v6509_v23 = vpop.f32.mrb[122].mxu0 }
0x34b4   :  { %v6510_v16 = vadd.f32 %v7141_v1, %v6509_v23  ;;  %v8030_v14 = vpop.f32.mrb[123].mxu0  ;;  %v6513_v33 = vadd.f32 %v6507_v7, %v10210_v35  ;;  %v6755_v1 = vrot.slane %v6627_v34, 5  ;;  %v6583_v7 = vld [vmem:[%s8897_s12] sm:$0xff]  ;;  %s8718_s12 = smov [#allocation2]  }
0x34b5   :  { %s6798_s20 = sshll.u32 %s8718_s12, 4  ;;  %s6799_s20 = int_to_ptr.vmem [resolvable:$true] %s6798_s20 }
0x34b6   :  { %v6514_v20 = vadd.f32 %v6510_v16, %v10213_v36  ;;  %s8580_s4 = scalar_lea.vmem %s6799_s20, 16  ;;  %s8584_s22 = scalar_lea.vmem %s6799_s20, 32 }
0x34b7   :  { %p8581_p1 = scmp.ne.s32.totalorder %s6799_s20, %s8580_s4  ;;  %p8585_p2 = scmp.lt.s32.totalorder %s6799_s20, %s6799_s20 }
0x34b8   :  { %v6520_v15 = vpack.c.bf16 %v6514_v20, %v6513_v33  ;;  %v6756_v20 = vsel %vm6753_vm1, %v6754_v47, %v6755_v1  ;;  %p8586_p3 = scmp.lt.s32.totalorder %s8584_s22, %s8580_s4 }
0x34ba   :  { %8036 = vmatmul.mubr.msk.bf16.vlgmr.msra.gmra.mrb[128].mxu1 %vm307_vm4, %v6520_v15  ;;  %p8587_p4 = por %p8586_p3, %p8585_p2 }
0x34bb   :  { %8041 = vmatprep.mubr.msk.bf16.mxu1 %vm8706_vm15, %v8705_v60  ;;  %8040 = vmatpush3.bf16.xpose.msra.mxu1 %v2525_v22 }
0x34bc   :  { %p8588_p5 = pnand %p8587_p4, %p8581_p1 }
0x358d   :  { %v6576_v37 = vpop.f32.mrb[128].mxu1 }
0x358e   :  { %v8037_v27 = vpop.f32.mrb[129].mxu1  ;;  %v6577_v42 = vadd.f32 %v7147_v0, %v6576_v37 }
0x358f   :  { %v6579_v35 = vpop.f32.mrb[130].mxu1 }
0x3590   :  { %v6580_v36 = vadd.f32 %v7147_v0, %v6579_v35  ;;  %v8038_v48 = vpop.f32.mrb[131].mxu1  ;;  %v6586_v62 = vsel %vm6585_vm0, %v6577_v42, -inf }
0x3592   :  { %v6625_v46 = vpack.c.bf16 %v6580_v36, %v6577_v42  ;;  %v6589_v60 = vsel %vm6585_vm0, %v6580_v36, -inf }
0x3594   :  { %v6704_v28 = vrot.slane %v6625_v46, 4  ;;  %6629 = vrot.lane.b32.xlu1 %v6625_v46, %s8717_s18 }
0x3596   :  { %6705 = vrot.lane.b32.xlu0 %v6704_v28, %s8717_s18 }
0x35b5   :  { %6590 = vmax.xlane.f32.xlu0 %v6589_v60 }
0x35b8   :  { %6587 = vmax.xlane.f32.xlu1 %v6586_v62 }
0x3606   :  { %v6630_v44 = vpop.permute.xlu1 %6629 }
0x3607   :  { %8042 = vmatmul.mubr.msk.bf16.vlgmr.msra.gmra.mrb[132].mxu1 %vm307_vm4, %v6630_v44 }
0x3608   :  { %v6706_v38 = vpop.permute.xlu0 %6705 }
0x3609   :  { %8048 = vmatmul.mubr.msk.bf16.vlgmr.msra.gmra.mrb[124].mxu0 %vm307_vm4, %v6706_v38 }
0x3642   :  { %v6591_v49 = vpop.xlane.xlu0 %6590 }
0x3643   :  { %v6593_v51 = vsub.f32 %v6580_v36, %v6591_v49 }
0x3645   :  { %v6596_v52 = vmul.f32 1.442695, %v6593_v51  ;;  %v6588_v39 = vpop.xlane.xlu1 %6587 }
0x3646   :  { %v6592_v54 = vsub.f32 %v6577_v42, %v6588_v39 }
0x3647   :  { %8564 = vpow2.f32 %v6596_v52 }
0x3648   :  { %v6594_v56 = vmul.f32 1.442695, %v6592_v54 }
0x364a   :  { %8566 = vpow2.f32 %v6594_v56 }
0x3651   :  { %v8565_v59 = vpop.eup %8564 }
0x3652   :  { %v6601_v11 = vsel %vm6585_vm0, %v8565_v59, 0.0 }
0x3653   :  { %6602 = vadd.xlane.f32.xlu0 %v6601_v11 }
0x3654   :  { %v8567_v13 = vpop.eup %8566 }
0x3655   :  { %v6598_v31 = vsel %vm6585_vm0, %v8567_v13, 0.0 }
0x3656   :  { %6599 = vadd.xlane.f32.xlu1 %v6598_v31 }
0x36da   :  { %v6668_v3 = vpop.f32.mrb[132].mxu1 }
0x36db   :  { %v6677_v4 = vand.u32 2147483647, %v6668_v3  ;;  %v8043_v17 = vpop.f32.mrb[133].mxu1  ;;  %v6674_v22 = vmax.f32 %v6668_v3, 0.0  ;;  %v6675_v8 = vmul.f32 %v6668_v3, %v6626_v32 }
0x36dc   :  { %v6671_v55 = vpop.f32.mrb[134].mxu1  ;;  %v10265_v18 = vpop.f32.mrb[124].mxu0 }
0x36dd   :  { %v6678_v6 = vsub.f32 0.0, %v6677_v4  ;;  %v8044_v24 = vpop.f32.mrb[135].mxu1  ;;  %v8049_v25 = vpop.f32.mrb[125].mxu0  ;;  %v6760_v43 = vand.u32 2147483647, %v10265_v18  ;;  %v6750_v35 = vmax.f32 %v10265_v18, 0.0  ;;  %v6758_v36 = vmul.f32 %v6756_v20, %v10265_v18 }
0x36de   :  { %v6747_v5 = vpop.f32.mrb[126].mxu0  ;;  %v6676_v60 = vsub.f32 %v6674_v22, %v6675_v8 }
0x36df   :  { %v6679_v57 = vmul.f32 1.442695, %v6678_v6  ;;  %v8050_v29 = vpop.f32.mrb[127].mxu0  ;;  %v6761_v30 = vsub.f32 0.0, %v6760_v43  ;;  %v6759_v52 = vsub.f32 %v6750_v35, %v6758_v36 }
0x36e0   :  { %v6603_v53 = vpop.xlane.xlu0 %6602 }
0x36e1   :  { %8568 = vpow2.f32 %v6679_v57  ;;  %v6762_v26 = vmul.f32 1.442695, %v6761_v30 }
0x36e2   :  { %8570 = vlog2.f32 %v6603_v53 }
0x36e3   :  { %v6600_v63 = vpop.xlane.xlu1 %6599  ;;  %8572 = vpow2.f32 %v6762_v26 }
0x36e4   :  { %8574 = vlog2.f32 %v6600_v63 }
0x36eb   :  { %v8569_v19 = vpop.eup %8568 }
0x36ec   :  { %v8571_v50 = vpop.eup %8570  ;;  %v6681_v61 = vadd.f32 1.0, %v8569_v19  ;;  %v6684_v12 = vmul.f32 -0.5, %v8569_v19  ;;  %v6687_v37 = vand.u32 2147483647, %v8569_v19 }
0x36ed   :  { %v6607_v10 = vmul.f32 0.6931472, %v8571_v50  ;;  %v8573_v9 = vpop.eup %8572 }
0x36ee   :  { %8576 = vlog2.f32 %v6681_v61  ;;  %v8575_v2 = vpop.eup %8574  ;;  %v6764_v45 = vadd.f32 1.0, %v8573_v9  ;;  %v6767_v33 = vmul.f32 -0.5, %v8573_v9  ;;  %v6685_v15 = vadd.f32 1.0, %v6684_v12 }
0x36ef   :  { %v6609_v40 = vsub.f32 %v6607_v10, %v6593_v51  ;;  %v6605_v58 = vmul.f32 0.6931472, %v8575_v2  ;;  %v6770_v28 = vand.u32 2147483647, %v8573_v9  ;;  %vm6688_vm2 = vcmp.lt.f32.partialorder %v6687_v37, 0.0004427343 }
0x36f0   :  { %8578 = vlog2.f32 %v6764_v45  ;;  %v6768_v42 = vadd.f32 1.0, %v6767_v33  ;;  %v6686_v46 = vmul.f32 %v8569_v19, %v6685_v15 }
0x36f1   :  { %v6611_v21 = vmul.f32 %v6609_v40, %v6584_v41  ;;  %v6608_v23 = vsub.f32 %v6605_v58, %v6592_v54  ;;  %vm6771_vm4 = vcmp.lt.f32.partialorder %v6770_v28, 0.0004427343 }
0x36f2   :  { %v6769_v51 = vmul.f32 %v8573_v9, %v6768_v42 }
0x36f3   :  { %v6615_v16 = vsel %vm6585_vm0, %v6611_v21, 0.0  ;;  %v6610_v14 = vmul.f32 %v6608_v23, %v6583_v7 }
0x36f4   :  { %6616 = vadd.xlane.f32.xlu0 %v6615_v16 }
0x36f5   :  { %v6612_v0 = vsel %vm6585_vm0, %v6610_v14, 0.0 }
0x36f6   :  { %6613 = vadd.xlane.f32.xlu1 %v6612_v0 }
0x36f8   :  { %v8577_v27 = vpop.eup %8576 }
0x36f9   :  { %v6683_v48 = vmul.f32 0.6931472, %v8577_v27 }
0x36fa   :  { %v8579_v62 = vpop.eup %8578 }
0x36fb   :  { %v6689_v44 = vsel %vm6688_vm2, %v6686_v46, %v6683_v48  ;;  %v6766_v49 = vmul.f32 0.6931472, %v8579_v62 }
0x36fc   :  { %v6690_v38 = vadd.f32 %v6689_v44, %v6676_v60 }
0x36fd   :  { %v6772_v54 = vsel %vm6771_vm4, %v6769_v51, %v6766_v49 }
0x36fe   :  { %v6692_v39 = vsel %vm6691_vm3, %v6690_v38, 0.0  ;;  %v6773_v56 = vadd.f32 %v6772_v54, %v6759_v52 }
0x36ff   :  { %6693 = vadd.xlane.f32.xlu1 %v6692_v39 }
0x3700   :  { %v6774_v59 = vsel %vm6691_vm3, %v6773_v56, 0.0 }
0x3701   :  { %6775 = vadd.xlane.f32.xlu0 %v6774_v59 }
0x3781   :  { %v6617_v11 = vpop.xlane.xlu0 %6616 }
0x3783   :  { %v6614_v13 = vpop.xlane.xlu1 %6613 }
0x3784   :  { %v6618_v31 = vadd.f32 %v6617_v11, %v6614_v13 }
0x3786   :  { %v6619_v3 = vrot.slane %v6618_v31, 4 }
0x3788   :  { %v6620_v4 = vadd.f32 %v6619_v3, %v6618_v31 }
0x378a   :  { %v6621_v6 = vrot.slane %v6620_v4, 2 }
0x378c   :  { %v6694_v17 = vpop.xlane.xlu1 %6693  ;;  %v6622_v29 = vadd.f32 %v6621_v6, %v6620_v4 }
0x378d   :  { %v6696_v55 = vsel %vm6695_vm5, %v6694_v17, 0.0 }
0x378e   :  { %v6697_v18 = vrot.slane %v6696_v55, 4  ;;  %v6776_v24 = vpop.xlane.xlu0 %6775  ;;  %v6623_v63 = vrot.slane %v6622_v29, 1 }
0x378f   :  { %v6777_v43 = vsel %vm6695_vm5, %v6776_v24, 0.0 }
0x3790   :  { %v6698_v25 = vadd.f32 %v6697_v18, %v6696_v55  ;;  %v6778_v5 = vrot.slane %v6777_v43, 4  ;;  %v6624_v9 = vadd.f32 %v6623_v63, %v6622_v29 }
0x3792   :  { %v6699_v57 = vrot.slane %v6698_v25, 2  ;;  %v6779_v30 = vadd.f32 %v6778_v5, %v6777_v43  ;;  %v6786_v41 = vmul.f32 0.0625, %v6624_v9 }
0x3794   :  { %v6700_v53 = vadd.f32 %v6699_v57, %v6698_v25  ;;  %v6780_v26 = vrot.slane %v6779_v30, 2 }
0x3796   :  { %v6701_v19 = vrot.slane %v6700_v53, 1  ;;  %v6781_v50 = vadd.f32 %v6780_v26, %v6779_v30 }
0x3798   :  { %v6782_v61 = vrot.slane %v6781_v50, 1  ;;  %v6702_v32 = vadd.f32 %v6701_v19, %v6700_v53 }
0x379a   :  { %v6783_v10 = vadd.f32 %v6782_v61, %v6781_v50 }
0x379c   :  { %v6784_v34 = vadd.f32 %v6783_v10, %v6702_v32 }
0x379e   :  { %v6788_v2 = vmul.f32 0.00625, %v6784_v34 }
0x37a0   :  { %v6789_v40 = vadd.f32 %v6788_v2, %v6786_v41 }
0x37a2   :  { %6791 = vst.msk [vmem:[#allocation2] sm:$0x1] %vm6790_vm6, %v6789_v40 }
0x37a3   :  { %8591 = shalt.err (!%p8588_p5)
}
0x37a4   :  { %s8592_s23 = scalar_lea.hbm %s8907_s27, 16 }
0x37a5   :  { %p8593_p6 = scmp.ne.s32.totalorder %s8907_s27, %s8592_s23  ;;  %p8596_p7 = scmp.lt.u32.totalorder %s8592_s23, %s8907_s27 }
0x37a7   :  { %p8598_p8 = pnand %p8596_p7, %p8593_p6 }
0x37a9   :  { %8601 = shalt.err (!%p8598_p8)
}
0x37aa   :  { %6801 = dma.vmem_to_hbm [thread:$0]  %s6799_s20, 16, %s8907_s27, [#allocation3]  }
0x37ab   :  { %8626 = dma.done.wait [#allocation3], 16  }
0x37ac   :  { %8627 = vsyncadd [#allocation3], 4294967280 }
0x37ad   :  { %6805 = vsyncpa [#allocation3], 1 }

</bundles_post_ra>
